<compile_context>
chip_gen: v7x
topology: tpu7x:2x2x1
jax: 0.10.0
libtpu: 0.0.40
codegen_flags: <defaults>
</compile_context>

<pallas_src>
import functools
import math

import jax
import jax.numpy as jnp
from jax.experimental import pallas as pl
from jax.experimental.pallas import tpu as pltpu


@functools.lru_cache(maxsize=1)
def _vmem_limit_bytes():
    # ~85% of physical VMEM per chip (v5e/v6e: ~109 MiB, v7x: ~54 MiB).
    try:
        cap = int(pltpu.get_tpu_info().vmem_capacity_bytes)
    except Exception:
        cap = 64 * 1024 * 1024
    return min(int(cap * 0.85), 112 * 1024 * 1024)


def _pick_tile(n, cap=512):
    for c in (1024, 512, 256, 128, 64, 32, 16, 8):
        if c <= cap and n % c == 0:
            return c
    return n


def _pick_ff_tile(dff, cap=2048):
    if dff <= cap:
        return dff
    for c in (2048, 1024, 512, 256, 128):
        if c <= cap and dff % c == 0:
            return c
    return dff


def _layer_norm(x, w, b, eps=1e-5):
    mu = jnp.mean(x, axis=-1, keepdims=True)
    var = jnp.mean((x - mu) ** 2, axis=-1, keepdims=True)
    return (x - mu) * jax.lax.rsqrt(var + eps) * w + b


# ---------------------------------------------------------------------------
# Kernel 0: segment projection, computed ONCE per forward (layer-invariant).
# ---------------------------------------------------------------------------
def seg_proj_kernel(seg_ref, wseg_ref, segp_ref):
    segp_ref[0] = jnp.dot(seg_ref[0].astype(jnp.bfloat16), wseg_ref[...],
                          preferred_element_type=jnp.float32)


def seg_proj(seg, wseg):
    b, s, dseg = seg.shape
    d = wseg.shape[1]
    ts = _pick_tile(s, cap=512)
    grid = (b, s // ts)
    flops = 2 * b * s * dseg * d
    bytes_accessed = b * s * dseg * 4 + dseg * d * 2 + b * s * d * 4
    return pl.pallas_call(
        seg_proj_kernel,
        out_shape=jax.ShapeDtypeStruct((b, s, d), jnp.float32),
        grid=grid,
        in_specs=[pl.BlockSpec((1, ts, dseg), lambda bi, si: (bi, si, 0)),
                  pl.BlockSpec((dseg, d), lambda bi, si: (0, 0))],
        out_specs=pl.BlockSpec((1, ts, d), lambda bi, si: (bi, si, 0)),
        compiler_params=pltpu.CompilerParams(
            dimension_semantics=("parallel", "parallel"),
            vmem_limit_bytes=_vmem_limit_bytes()),
        cost_estimate=pl.CostEstimate(flops=int(flops), transcendentals=0,
                                      bytes_accessed=int(bytes_accessed)),
    )(seg, wseg)


# ---------------------------------------------------------------------------
# Kernel 1: x_in = x + segp   fused with the QKV projection.
# Lane-dense (B, S, D) outputs; head selection happens in flash's BlockSpecs.
# ---------------------------------------------------------------------------
def seg_qkv_kernel(x_ref, segp_ref, wqkv_ref, bqkv_ref,
                   xin_ref, q_ref, k_ref, v_ref, *, d_model):
    x_in = x_ref[0] + segp_ref[0]                              # (ts, D) f32
    xin_ref[0] = x_in
    qkv = jnp.dot(x_in.astype(jnp.bfloat16), wqkv_ref[...],
                  preferred_element_type=jnp.float32) + bqkv_ref[0]  # (ts, 3D)
    d = d_model
    q_ref[0] = qkv[:, :d].astype(jnp.bfloat16)
    k_ref[0] = qkv[:, d:2 * d].astype(jnp.bfloat16)
    v_ref[0] = qkv[:, 2 * d:3 * d].astype(jnp.bfloat16)


def seg_qkv(x, segp, wqkv, bqkv):
    b, s, d = x.shape
    ts = _pick_tile(s, cap=512)
    grid = (b, s // ts)

    flops = 2 * b * s * d * 3 * d
    bytes_accessed = (2 * b * s * d * 4 + 3 * d * d * 2 + 3 * d * 4
                      + b * s * d * 4 + 3 * b * s * d * 2)

    return pl.pallas_call(
        functools.partial(seg_qkv_kernel, d_model=d),
        out_shape=(jax.ShapeDtypeStruct((b, s, d), jnp.float32),
                   jax.ShapeDtypeStruct((b, s, d), jnp.bfloat16),
                   jax.ShapeDtypeStruct((b, s, d), jnp.bfloat16),
                   jax.ShapeDtypeStruct((b, s, d), jnp.bfloat16)),
        grid=grid,
        in_specs=[pl.BlockSpec((1, ts, d), lambda bi, si: (bi, si, 0)),
                  pl.BlockSpec((1, ts, d), lambda bi, si: (bi, si, 0)),
                  pl.BlockSpec((d, 3 * d), lambda bi, si: (0, 0)),
                  pl.BlockSpec((1, 3 * d), lambda bi, si: (0, 0))],
        out_specs=(pl.BlockSpec((1, ts, d), lambda bi, si: (bi, si, 0)),
                   pl.BlockSpec((1, ts, d), lambda bi, si: (bi, si, 0)),
                   pl.BlockSpec((1, ts, d), lambda bi, si: (bi, si, 0)),
                   pl.BlockSpec((1, ts, d), lambda bi, si: (bi, si, 0))),
        compiler_params=pltpu.CompilerParams(
            dimension_semantics=("parallel", "parallel"),
            vmem_limit_bytes=_vmem_limit_bytes()),
        cost_estimate=pl.CostEstimate(flops=int(flops), transcendentals=0,
                                      bytes_accessed=int(bytes_accessed)),
    )(x, segp, wqkv, bqkv)


# ---------------------------------------------------------------------------
# Kernel 2: causal flash attention over (B, S, D) head-concatenated q/k/v.
# Grid (B, H, Sq, Sk); the head is selected via the feature-dim block index.
# q is already pre-scaled by 1/sqrt(head_dim) (folded into Wq/bq).
# ---------------------------------------------------------------------------
def _online_softmax_step(q, k, v, m_sc, l_sc, acc_sc, *, masked):
    s = jax.lax.dot_general(q, k, (((1,), (1,)), ((), ())),
                            preferred_element_type=jnp.float32)      # (tq, tk)
    if masked:  # diagonal tile only (tq == tk, same start offset)
        tq, tk = s.shape
        rows = jax.lax.broadcasted_iota(jnp.int32, (tq, tk), 0)
        cols = jax.lax.broadcasted_iota(jnp.int32, (tq, tk), 1)
        s = jnp.where(cols <= rows, s, -1e30)
    m_prev = m_sc[...]
    m_new = jnp.maximum(m_prev, jnp.max(s, axis=-1, keepdims=True))
    alpha = jnp.exp(m_prev - m_new)
    p = jnp.exp(s - m_new)
    l_sc[...] = alpha * l_sc[...] + jnp.sum(p, axis=-1, keepdims=True)
    acc_sc[...] = alpha * acc_sc[...] + jnp.dot(
        p.astype(jnp.bfloat16), v, preferred_element_type=jnp.float32)
    m_sc[...] = m_new


def flash_kernel(q_ref, k_ref, v_ref, o_ref, m_sc, l_sc, acc_sc,
                 *, tq, head_dim):
    qi = pl.program_id(2)
    ki = pl.program_id(3)

    @pl.when(ki == 0)
    def _init():
        m_sc[...] = jnp.full((tq, 1), -1e30, jnp.float32)
        l_sc[...] = jnp.zeros((tq, 1), jnp.float32)
        acc_sc[...] = jnp.zeros((tq, head_dim), jnp.float32)

    @pl.when(ki < qi)       # fully-visible interior tile: no mask work at all
    def _interior():
        _online_softmax_step(q_ref[0], k_ref[0], v_ref[0],
                             m_sc, l_sc, acc_sc, masked=False)

    @pl.when(ki == qi)      # diagonal tile: in-kernel iota causal mask
    def _diag():
        _online_softmax_step(q_ref[0], k_ref[0], v_ref[0],
                             m_sc, l_sc, acc_sc, masked=True)

    # ki > qi: fully masked, no compute (and no DMA thanks to the clamped map).

    @pl.when(ki == pl.num_programs(3) - 1)
    def _finalize():
        o_ref[0] = (acc_sc[...] *
                    pl.reciprocal(l_sc[...], approx=True)).astype(o_ref.dtype)


def flash_attention(q, k, v, n_head):
    b, s, d = q.shape
    hd = d // n_head
    assert hd % 128 == 0 or n_head == 1, (
        "lane-dense attention layout requires head_dim % 128 == 0")
    tq = _pick_tile(s, cap=256)
    tk = tq
    grid = (b, n_head, s // tq, s // tk)

    flops = 2 * b * n_head * s * s * hd          # ~causal half of 4*S*S*hd
    transcendentals = b * n_head * s * s // 2
    bytes_accessed = 2 * b * s * d * 2 + b * s * d * (s // tq)

    # K/V index_map clamped into the causal region: future tiles re-map to the
    # diagonal tile (already resident) so no new DMA is issued for them.
    kv_map = lambda bi, hi, qi, ki: (bi, jnp.minimum(ki, qi), hi)

    return pl.pallas_call(
        functools.partial(flash_kernel, tq=tq, head_dim=hd),
        out_shape=jax.ShapeDtypeStruct((b, s, d), jnp.bfloat16),
        grid=grid,
        in_specs=[pl.BlockSpec((1, tq, hd),
                               lambda bi, hi, qi, ki: (bi, qi, hi)),
                  pl.BlockSpec((1, tk, hd), kv_map),
                  pl.BlockSpec((1, tk, hd), kv_map)],
        out_specs=pl.BlockSpec((1, tq, hd),
                               lambda bi, hi, qi, ki: (bi, qi, hi)),
        scratch_shapes=[pltpu.VMEM((tq, 1), jnp.float32),
                        pltpu.VMEM((tq, 1), jnp.float32),
                        pltpu.VMEM((tq, hd), jnp.float32)],
        compiler_params=pltpu.CompilerParams(
            dimension_semantics=("parallel", "parallel", "parallel",
                                 "arbitrary"),
            vmem_limit_bytes=_vmem_limit_bytes()),
        cost_estimate=pl.CostEstimate(flops=int(flops),
                                      transcendentals=int(transcendentals),
                                      bytes_accessed=int(bytes_accessed)),
    )(q, k, v)


# ---------------------------------------------------------------------------
# Kernel 3: output projection (single D-wide matmul) + residual + LN1 +
# FFN(ReLU, d_ff tiled with accumulator) + residual + LN2.
# ---------------------------------------------------------------------------
def out_ffn_kernel(o_ref, xin_ref, wo_ref, bo_ref, ln1w_ref, ln1b_ref,
                   w1_ref, b1_ref, w2_ref, b2_ref, ln2w_ref, ln2b_ref,
                   out_ref, y_sc, acc_sc):
    fi = pl.program_id(2)

    @pl.when(fi == 0)
    def _init():
        proj = jnp.dot(o_ref[0], wo_ref[...],
                       preferred_element_type=jnp.float32) + bo_ref[0]
        y_sc[...] = _layer_norm(xin_ref[0] + proj, ln1w_ref[0], ln1b_ref[0])
        acc_sc[...] = jnp.zeros_like(acc_sc)

    h1 = jnp.dot(y_sc[...].astype(jnp.bfloat16), w1_ref[...],
                 preferred_element_type=jnp.float32) + b1_ref[0]
    h1 = jnp.maximum(h1, 0.0)
    acc_sc[...] += jnp.dot(h1.astype(jnp.bfloat16), w2_ref[...],
                           preferred_element_type=jnp.float32)

    @pl.when(fi == pl.num_programs(2) - 1)
    def _finalize():
        h2 = acc_sc[...] + b2_ref[0]
        out_ref[0] = _layer_norm(y_sc[...] + h2, ln2w_ref[0], ln2b_ref[0])


def out_ffn(o, x_in, p):
    b, s, d = o.shape
    dff = p["w1"].shape[1]
    ts = _pick_tile(s, cap=512)
    tf = _pick_ff_tile(dff)
    grid = (b, s // ts, dff // tf)

    def const(shape):
        return pl.BlockSpec(shape, lambda bi, si, fi: (0,) * len(shape))

    flops = 2 * b * s * d * (d + 2 * dff)
    transcendentals = 2 * b * s
    bytes_accessed = ((d * d + 2 * d * dff) * 2
                      + b * s * d * (2 + 4 + 4))

    return pl.pallas_call(
        out_ffn_kernel,
        out_shape=jax.ShapeDtypeStruct((b, s, d), jnp.float32),
        grid=grid,
        in_specs=[pl.BlockSpec((1, ts, d), lambda bi, si, fi: (bi, si, 0)),
                  pl.BlockSpec((1, ts, d), lambda bi, si, fi: (bi, si, 0)),
                  const((d, d)),
                  const((1, d)), const((1, d)), const((1, d)),
                  pl.BlockSpec((d, tf), lambda bi, si, fi: (0, fi)),
                  pl.BlockSpec((1, tf), lambda bi, si, fi: (0, fi)),
                  pl.BlockSpec((tf, d), lambda bi, si, fi: (fi, 0)),
                  const((1, d)),
                  const((1, d)), const((1, d))],
        out_specs=pl.BlockSpec((1, ts, d), lambda bi, si, fi: (bi, si, 0)),
        scratch_shapes=[pltpu.VMEM((ts, d), jnp.float32),
                        pltpu.VMEM((ts, d), jnp.float32)],
        compiler_params=pltpu.CompilerParams(
            dimension_semantics=("parallel", "parallel", "arbitrary"),
            vmem_limit_bytes=_vmem_limit_bytes()),
        cost_estimate=pl.CostEstimate(flops=int(flops),
                                      transcendentals=int(transcendentals),
                                      bytes_accessed=int(bytes_accessed)),
    )(o, x_in, p["wo"], p["bo"], p["ln1_w"], p["ln1_b"],
      p["w1"], p["b1"], p["w2"], p["b2"], p["ln2_w"], p["ln2_b"])


# ---------------------------------------------------------------------------
# Full forward (PyTorch convention: x (S, B, d_model), seg_emb (S, B, d_seg)).
# ---------------------------------------------------------------------------
def decoder_layer(x, segp, p, n_head):
    x_in, q, k, v = seg_qkv(x, segp, p["wqkv"], p["bqkv"])
    o = flash_attention(q, k, v, n_head)
    return out_ffn(o, x_in, p)


def full_song_transformer_decoder(x_sbd, seg_sbe, params, n_head):
    # TODO(synk): the two boundary (S,B,D)<->(B,S,D) transposes are left to XLA
    # (done once per forward, not per layer).
    x = jnp.transpose(x_sbd, (1, 0, 2)).astype(jnp.float32)      # (B, S, D)
    seg = jnp.transpose(seg_sbe, (1, 0, 2)).astype(jnp.float32)  # (B, S, d_seg)
    segp = seg_proj(seg, params["wseg"])  # hoisted: layer-invariant projection
    for layer_p in params["layers"]:
        x = decoder_layer(x, segp, layer_p, n_head)
    return jnp.transpose(x, (1, 0, 2))                           # (S, B, D)


# ---------------------------------------------------------------------------
# Deterministic parameter init (TPU-friendly layouts).
#
# Mapping from the PyTorch module:
#   wseg  = seg_emb_proj.weight.T                        (d_seg, D)   bf16
#   wqkv  = self_attn.in_proj_weight.T                   (D, 3D)      bf16
#           (q columns pre-scaled by 1/sqrt(head_dim))
#   bqkv  = self_attn.in_proj_bias[None, :]              (1, 3D)      f32
#   wo    = self_attn.out_proj.weight.T                  (D, D)       bf16
#   w1/w2 = linear1.weight.T / linear2.weight.T                       bf16
#   ln*_w/b = norm1/2.weight/bias[None, :]                            f32
# ---------------------------------------------------------------------------
def init_params(key, n_layer, n_head, d_model, d_ff, d_seg_emb):
    hd = d_model // n_head
    attn_scale = 1.0 / math.sqrt(hd)
    keys = jax.random.split(key, 1 + 8 * n_layer)
    w_scale = 0.05

    wseg = (w_scale * jax.random.normal(
        keys[0], (d_seg_emb, d_model), jnp.float32)).astype(jnp.bfloat16)

    layers = []
    for i in range(n_layer):
        k = keys[1 + 8 * i: 1 + 8 * (i + 1)]
        wqkv = w_scale * jax.random.normal(k[0], (d_model, 3 * d_model),
                                           jnp.float32)
        wqkv = wqkv.at[:, :d_model].multiply(attn_scale)
        bqkv = 0.02 * jax.random.normal(k[1], (1, 3 * d_model), jnp.float32)
        bqkv = bqkv.at[:, :d_model].multiply(attn_scale)
        layers.append({
            "wqkv": wqkv.astype(jnp.bfloat16),
            "bqkv": bqkv,
            "wo": (w_scale * jax.random.normal(
                k[2], (d_model, d_model), jnp.float32)).astype(jnp.bfloat16),
            "bo": 0.02 * jax.random.normal(k[3], (1, d_model), jnp.float32),
            "ln1_w": jnp.ones((1, d_model), jnp.float32),
            "ln1_b": jnp.zeros((1, d_model), jnp.float32),
            "w1": (w_scale * jax.random.normal(
                k[4], (d_model, d_ff), jnp.float32)).astype(jnp.bfloat16),
            "b1": 0.02 * jax.random.normal(k[5], (1, d_ff), jnp.float32),
            "w2": (w_scale * jax.random.normal(
                k[6], (d_ff, d_model), jnp.float32)).astype(jnp.bfloat16),
            "b2": 0.02 * jax.random.normal(k[7], (1, d_model), jnp.float32),
            "ln2_w": jnp.ones((1, d_model), jnp.float32),
            "ln2_b": jnp.zeros((1, d_model), jnp.float32),
        })
    return {"wseg": wseg, "layers": layers}


if __name__ == "__main__":
    # head_dim = d_model // n_head = 128 (lane-dense attention layout).
    n_layer, n_head, d_model, d_ff, d_seg_emb = 2, 2, 256, 512, 64
    seq_len, batch = 128, 2

    key = jax.random.PRNGKey(0)
    kx, ks, kp = jax.random.split(key, 3)
    x = jax.random.normal(kx, (seq_len, batch, d_model), jnp.float32)
    seg_emb = jax.random.normal(ks, (seq_len, batch, d_seg_emb), jnp.float32)
    params = init_params(kp, n_layer, n_head, d_model, d_ff, d_seg_emb)

    # TODO(synk): dropout is treated as identity (inference); training-time RNG
    # dropout not implemented.
    fwd = jax.jit(functools.partial(full_song_transformer_decoder,
                                    n_head=n_head))
    out = jax.block_until_ready(fwd(x, seg_emb, params))
    assert out.shape == (seq_len, batch, d_model)
    assert bool(jnp.all(jnp.isfinite(out)))
    print("KERNEL_OK")
</pallas_src>

<mosaic_0001>
module attributes {stable_mosaic.version = 11 : i64} {
  func.func @seg_proj_kernel(%arg0: i32, %arg1: i32, %arg2: memref<1x128x64xf32, #tpu.memory_space<vmem>>, %arg3: memref<64x256xbf16, #tpu.memory_space<vmem>>, %arg4: memref<1x128x256xf32, #tpu.memory_space<vmem>>) attributes {dimension_semantics = [#tpu.dimension_semantics<parallel>, #tpu.dimension_semantics<parallel>], iteration_bounds = array<i64: 2, 1>, scalar_prefetch = 0 : i64, scratch_operands = 0 : i64, tpu.core_type = #tpu.core_type<tc>, window_params = [{transform_indices = @transform_0, window_bounds = array<i64: 1, 128, 64>}, {pipeline_mode = #tpu.pipeline_mode<synchronous>, transform_indices = @transform_1, window_bounds = array<i64: 64, 256>}, {transform_indices = @transform_2, window_bounds = array<i64: 1, 128, 256>}]} {
    %c0 = arith.constant 0 : index
    %c0_0 = arith.constant 0 : index
    %c0_1 = arith.constant 0 : index
    %0 = vector.load %arg2[%c0, %c0_0, %c0_1] : memref<1x128x64xf32, #tpu.memory_space<vmem>>, vector<1x128x64xf32>
    %1 = vector.shape_cast %0 : vector<1x128x64xf32> to vector<128x64xf32>
    %2 = arith.truncf %1 : vector<128x64xf32> to vector<128x64xbf16>
    %c0_2 = arith.constant 0 : index
    %c0_3 = arith.constant 0 : index
    %3 = vector.load %arg3[%c0_2, %c0_3] : memref<64x256xbf16, #tpu.memory_space<vmem>>, vector<64x256xbf16>
    %cst = arith.constant dense<0.000000e+00> : vector<128x256xf32>
    %4 = tpu.matmul %2, %3, %cst {dimension_numbers = #tpu.dot_dimension_numbers<[1], [0], [0], [1], [0, 0, 1, 1], [], []>} : vector<128x64xbf16>, vector<64x256xbf16>, vector<128x256xf32> -> vector<128x256xf32>
    %c0_4 = arith.constant 0 : index
    %c0_5 = arith.constant 0 : index
    %c0_6 = arith.constant 0 : index
    %5 = vector.load %arg4[%c0_4, %c0_5, %c0_6] : memref<1x128x256xf32, #tpu.memory_space<vmem>>, vector<1x128x256xf32>
    %6 = vector.shape_cast %5 : vector<1x128x256xf32> to vector<128x256xf32>
    %7 = vector.shape_cast %4 : vector<128x256xf32> to vector<1x128x256xf32>
    tpu.vector_store %arg4[%c0_4, %c0_5, %c0_6], %7 {strides = array<i32>} : memref<1x128x256xf32, #tpu.memory_space<vmem>>, vector<1x128x256xf32>,
    return
  }
  func.func @transform_0(%arg0: i32, %arg1: i32) -> (i32, i32, i32) {
    %c0_i32 = arith.constant 0 : i32
    %c0_i32_0 = arith.constant 0 : i32
    return %arg0, %arg1, %c0_i32 : i32, i32, i32
  }
  func.func @transform_1(%arg0: i32, %arg1: i32) -> (i32, i32) {
    %c0_i32 = arith.constant 0 : i32
    %c0_i32_0 = arith.constant 0 : i32
    %c0_i32_1 = arith.constant 0 : i32
    return %c0_i32, %c0_i32_0 : i32, i32
  }
  func.func @transform_2(%arg0: i32, %arg1: i32) -> (i32, i32, i32) {
    %c0_i32 = arith.constant 0 : i32
    %c0_i32_0 = arith.constant 0 : i32
    return %arg0, %arg1, %c0_i32 : i32, i32, i32
  }
}

module attributes {stable_mosaic.version = 11 : i64} {
  func.func @seg_qkv_kernel(%arg0: i32, %arg1: i32, %arg2: memref<1x128x256xf32, #tpu.memory_space<vmem>>, %arg3: memref<1x128x256xf32, #tpu.memory_space<vmem>>, %arg4: memref<256x768xbf16, #tpu.memory_space<vmem>>, %arg5: memref<1x768xf32, #tpu.memory_space<vmem>>, %arg6: memref<1x128x256xf32, #tpu.memory_space<vmem>>, %arg7: memref<1x128x256xbf16, #tpu.memory_space<vmem>>, %arg8: memref<1x128x256xbf16, #tpu.memory_space<vmem>>, %arg9: memref<1x128x256xbf16, #tpu.memory_space<vmem>>) attributes {dimension_semantics = [#tpu.dimension_semantics<parallel>, #tpu.dimension_semantics<parallel>], iteration_bounds = array<i64: 2, 1>, scalar_prefetch = 0 : i64, scratch_operands = 0 : i64, tpu.core_type = #tpu.core_type<tc>, window_params = [{transform_indices = @transform_0, window_bounds = array<i64: 1, 128, 256>}, {transform_indices = @transform_1, window_bounds = array<i64: 1, 128, 256>}, {pipeline_mode = #tpu.pipeline_mode<synchronous>, transform_indices = @transform_2, window_bounds = array<i64: 256, 768>}, {pipeline_mode = #tpu.pipeline_mode<synchronous>, transform_indices = @transform_3, window_bounds = array<i64: 1, 768>}, {transform_indices = @transform_4, window_bounds = array<i64: 1, 128, 256>}, {transform_indices = @transform_5, window_bounds = array<i64: 1, 128, 256>}, {transform_indices = @transform_6, window_bounds = array<i64: 1, 128, 256>}, {transform_indices = @transform_7, window_bounds = array<i64: 1, 128, 256>}]} {
    %c0 = arith.constant 0 : index
    %c0_0 = arith.constant 0 : index
    %c0_1 = arith.constant 0 : index
    %0 = vector.load %arg2[%c0, %c0_0, %c0_1] : memref<1x128x256xf32, #tpu.memory_space<vmem>>, vector<1x128x256xf32>
    %1 = vector.shape_cast %0 : vector<1x128x256xf32> to vector<128x256xf32>
    %c0_2 = arith.constant 0 : index
    %c0_3 = arith.constant 0 : index
    %c0_4 = arith.constant 0 : index
    %2 = vector.load %arg3[%c0_2, %c0_3, %c0_4] : memref<1x128x256xf32, #tpu.memory_space<vmem>>, vector<1x128x256xf32>
    %3 = vector.shape_cast %2 : vector<1x128x256xf32> to vector<128x256xf32>
    %4 = arith.addf %1, %3 : vector<128x256xf32>
    %c0_5 = arith.constant 0 : index
    %c0_6 = arith.constant 0 : index
    %c0_7 = arith.constant 0 : index
    %5 = vector.load %arg6[%c0_5, %c0_6, %c0_7] : memref<1x128x256xf32, #tpu.memory_space<vmem>>, vector<1x128x256xf32>
    %6 = vector.shape_cast %5 : vector<1x128x256xf32> to vector<128x256xf32>
    %7 = vector.shape_cast %4 : vector<128x256xf32> to vector<1x128x256xf32>
    tpu.vector_store %arg6[%c0_5, %c0_6, %c0_7], %7 {strides = array<i32>} : memref<1x128x256xf32, #tpu.memory_space<vmem>>, vector<1x128x256xf32>,
    %8 = arith.truncf %4 : vector<128x256xf32> to vector<128x256xbf16>
    %c0_8 = arith.constant 0 : index
    %c0_9 = arith.constant 0 : index
    %9 = vector.load %arg4[%c0_8, %c0_9] : memref<256x768xbf16, #tpu.memory_space<vmem>>, vector<256x768xbf16>
    %cst = arith.constant dense<0.000000e+00> : vector<128x768xf32>
    %10 = tpu.matmul %8, %9, %cst {dimension_numbers = #tpu.dot_dimension_numbers<[1], [0], [0], [1], [0, 0, 1, 1], [], []>} : vector<128x256xbf16>, vector<256x768xbf16>, vector<128x768xf32> -> vector<128x768xf32>
    %c0_10 = arith.constant 0 : index
    %c0_11 = arith.constant 0 : index
    %11 = vector.load %arg5[%c0_10, %c0_11] : memref<1x768xf32, #tpu.memory_space<vmem>>, vector<1x768xf32>
    %12 = vector.shape_cast %11 : vector<1x768xf32> to vector<768xf32>
    %13 = vector.shape_cast %12 : vector<768xf32> to vector<1x768xf32>
    %14 = vector.broadcast %13 : vector<1x768xf32> to vector<128x768xf32>
    %15 = arith.addf %10, %14 : vector<128x768xf32>
    %16 = vector.extract_strided_slice %15 {offsets = [0, 0], sizes = [128, 256], strides = [1, 1]} : vector<128x768xf32> to vector<128x256xf32>
    %17 = arith.truncf %16 : vector<128x256xf32> to vector<128x256xbf16>
    %c0_12 = arith.constant 0 : index
    %c0_13 = arith.constant 0 : index
    %c0_14 = arith.constant 0 : index
    %18 = vector.load %arg7[%c0_12, %c0_13, %c0_14] : memref<1x128x256xbf16, #tpu.memory_space<vmem>>, vector<1x128x256xbf16>
    %19 = vector.shape_cast %18 : vector<1x128x256xbf16> to vector<128x256xbf16>
    %20 = vector.shape_cast %17 : vector<128x256xbf16> to vector<1x128x256xbf16>
    tpu.vector_store %arg7[%c0_12, %c0_13, %c0_14], %20 {strides = array<i32>} : memref<1x128x256xbf16, #tpu.memory_space<vmem>>, vector<1x128x256xbf16>,
    %21 = vector.extract_strided_slice %15 {offsets = [0, 256], sizes = [128, 256], strides = [1, 1]} : vector<128x768xf32> to vector<128x256xf32>
    %22 = arith.truncf %21 : vector<128x256xf32> to vector<128x256xbf16>
    %c0_15 = arith.constant 0 : index
    %c0_16 = arith.constant 0 : index
    %c0_17 = arith.constant 0 : index
    %23 = vector.load %arg8[%c0_15, %c0_16, %c0_17] : memref<1x128x256xbf16, #tpu.memory_space<vmem>>, vector<1x128x256xbf16>
    %24 = vector.shape_cast %23 : vector<1x128x256xbf16> to vector<128x256xbf16>
    %25 = vector.shape_cast %22 : vector<128x256xbf16> to vector<1x128x256xbf16>
    tpu.vector_store %arg8[%c0_15, %c0_16, %c0_17], %25 {strides = array<i32>} : memref<1x128x256xbf16, #tpu.memory_space<vmem>>, vector<1x128x256xbf16>,
    %26 = vector.extract_strided_slice %15 {offsets = [0, 512], sizes = [128, 256], strides = [1, 1]} : vector<128x768xf32> to vector<128x256xf32>
    %27 = arith.truncf %26 : vector<128x256xf32> to vector<128x256xbf16>
    %c0_18 = arith.constant 0 : index
    %c0_19 = arith.constant 0 : index
    %c0_20 = arith.constant 0 : index
    %28 = vector.load %arg9[%c0_18, %c0_19, %c0_20] : memref<1x128x256xbf16, #tpu.memory_space<vmem>>, vector<1x128x256xbf16>
    %29 = vector.shape_cast %28 : vector<1x128x256xbf16> to vector<128x256xbf16>
    %30 = vector.shape_cast %27 : vector<128x256xbf16> to vector<1x128x256xbf16>
    tpu.vector_store %arg9[%c0_18, %c0_19, %c0_20], %30 {strides = array<i32>} : memref<1x128x256xbf16, #tpu.memory_space<vmem>>, vector<1x128x256xbf16>,
    return
  }
  func.func @transform_0(%arg0: i32, %arg1: i32) -> (i32, i32, i32) {
    %c0_i32 = arith.constant 0 : i32
    %c0_i32_0 = arith.constant 0 : i32
    return %arg0, %arg1, %c0_i32 : i32, i32, i32
  }
  func.func @transform_1(%arg0: i32, %arg1: i32) -> (i32, i32, i32) {
    %c0_i32 = arith.constant 0 : i32
    %c0_i32_0 = arith.constant 0 : i32
    return %arg0, %arg1, %c0_i32 : i32, i32, i32
  }
  func.func @transform_2(%arg0: i32, %arg1: i32) -> (i32, i32) {
    %c0_i32 = arith.constant 0 : i32
    %c0_i32_0 = arith.constant 0 : i32
    %c0_i32_1 = arith.constant 0 : i32
    return %c0_i32, %c0_i32_0 : i32, i32
  }
  func.func @transform_3(%arg0: i32, %arg1: i32) -> (i32, i32) {
    %c0_i32 = arith.constant 0 : i32
    %c0_i32_0 = arith.constant 0 : i32
    %c0_i32_1 = arith.constant 0 : i32
    return %c0_i32, %c0_i32_0 : i32, i32
  }
  func.func @transform_4(%arg0: i32, %arg1: i32) -> (i32, i32, i32) {
    %c0_i32 = arith.constant 0 : i32
    %c0_i32_0 = arith.constant 0 : i32
    return %arg0, %arg1, %c0_i32 : i32, i32, i32
  }
  func.func @transform_5(%arg0: i32, %arg1: i32) -> (i32, i32, i32) {
    %c0_i32 = arith.constant 0 : i32
    %c0_i32_0 = arith.constant 0 : i32
    return %arg0, %arg1, %c0_i32 : i32, i32, i32
  }
  func.func @transform_6(%arg0: i32, %arg1: i32) -> (i32, i32, i32) {
    %c0_i32 = arith.constant 0 : i32
    %c0_i32_0 = arith.constant 0 : i32
    return %arg0, %arg1, %c0_i32 : i32, i32, i32
  }
  func.func @transform_7(%arg0: i32, %arg1: i32) -> (i32, i32, i32) {
    %c0_i32 = arith.constant 0 : i32
    %c0_i32_0 = arith.constant 0 : i32
    return %arg0, %arg1, %c0_i32 : i32, i32, i32
  }
}

module attributes {stable_mosaic.version = 11 : i64} {
  func.func @flash_kernel(%arg0: i32, %arg1: i32, %arg2: i32, %arg3: i32, %arg4: memref<1x128x128xbf16, #tpu.memory_space<vmem>>, %arg5: memref<1x128x128xbf16, #tpu.memory_space<vmem>>, %arg6: memref<1x128x128xbf16, #tpu.memory_space<vmem>>, %arg7: memref<1x128x128xbf16, #tpu.memory_space<vmem>>, %arg8: memref<128x1xf32, #tpu.memory_space<vmem>>, %arg9: memref<128x1xf32, #tpu.memory_space<vmem>>, %arg10: memref<128x128xf32, #tpu.memory_space<vmem>>) attributes {dimension_semantics = [#tpu.dimension_semantics<parallel>, #tpu.dimension_semantics<parallel>, #tpu.dimension_semantics<parallel>, #tpu.dimension_semantics<arbitrary>], iteration_bounds = array<i64: 2, 2, 1, 1>, scalar_prefetch = 0 : i64, scratch_operands = 3 : i64, tpu.core_type = #tpu.core_type<tc>, window_params = [{transform_indices = @transform_0, window_bounds = array<i64: 1, 128, 128>}, {transform_indices = @transform_1, window_bounds = array<i64: 1, 128, 128>}, {transform_indices = @transform_2, window_bounds = array<i64: 1, 128, 128>}, {transform_indices = @transform_3, window_bounds = array<i64: 1, 128, 128>}]} {
    %c0_i32 = arith.constant 0 : i32
    %0 = arith.cmpi eq, %arg3, %c0_i32 : i32
    %1 = arith.extui %0 : i1 to i32
    %c0_i32_0 = arith.constant 0 : i32
    %2 = arith.cmpi ne, %1, %c0_i32_0 : i32
    scf.if %2 {
      %cst = arith.constant -1.000000e+30 : f32
      %12 = vector.broadcast %cst : f32 to vector<128x1xf32>
      %c0 = arith.constant 0 : index
      %c0_5 = arith.constant 0 : index
      %13 = vector.load %arg8[%c0, %c0_5] : memref<128x1xf32, #tpu.memory_space<vmem>>, vector<128x1xf32>
      tpu.vector_store %arg8[%c0, %c0_5], %12 {strides = array<i32>} : memref<128x1xf32, #tpu.memory_space<vmem>>, vector<128x1xf32>,
      %cst_6 = arith.constant 0.000000e+00 : f32
      %14 = vector.broadcast %cst_6 : f32 to vector<128x1xf32>
      %c0_7 = arith.constant 0 : index
      %c0_8 = arith.constant 0 : index
      %15 = vector.load %arg9[%c0_7, %c0_8] : memref<128x1xf32, #tpu.memory_space<vmem>>, vector<128x1xf32>
      tpu.vector_store %arg9[%c0_7, %c0_8], %14 {strides = array<i32>} : memref<128x1xf32, #tpu.memory_space<vmem>>, vector<128x1xf32>,
      %cst_9 = arith.constant 0.000000e+00 : f32
      %16 = vector.broadcast %cst_9 : f32 to vector<128x128xf32>
      %c0_10 = arith.constant 0 : index
      %c0_11 = arith.constant 0 : index
      %17 = vector.load %arg10[%c0_10, %c0_11] : memref<128x128xf32, #tpu.memory_space<vmem>>, vector<128x128xf32>
      tpu.vector_store %arg10[%c0_10, %c0_11], %16 {strides = array<i32>} : memref<128x128xf32, #tpu.memory_space<vmem>>, vector<128x128xf32>,
    } else {
    }
    %3 = arith.cmpi slt, %arg3, %arg2 : i32
    %4 = arith.extui %3 : i1 to i32
    %c0_i32_1 = arith.constant 0 : i32
    %5 = arith.cmpi ne, %4, %c0_i32_1 : i32
    scf.if %5 {
      %c0 = arith.constant 0 : index
      %c0_5 = arith.constant 0 : index
      %c0_6 = arith.constant 0 : index
      %12 = vector.load %arg4[%c0, %c0_5, %c0_6] : memref<1x128x128xbf16, #tpu.memory_space<vmem>>, vector<1x128x128xbf16>
      %13 = vector.shape_cast %12 : vector<1x128x128xbf16> to vector<128x128xbf16>
      %c0_7 = arith.constant 0 : index
      %c0_8 = arith.constant 0 : index
      %c0_9 = arith.constant 0 : index
      %14 = vector.load %arg5[%c0_7, %c0_8, %c0_9] : memref<1x128x128xbf16, #tpu.memory_space<vmem>>, vector<1x128x128xbf16>
      %15 = vector.shape_cast %14 : vector<1x128x128xbf16> to vector<128x128xbf16>
      %c0_10 = arith.constant 0 : index
      %c0_11 = arith.constant 0 : index
      %c0_12 = arith.constant 0 : index
      %16 = vector.load %arg6[%c0_10, %c0_11, %c0_12] : memref<1x128x128xbf16, #tpu.memory_space<vmem>>, vector<1x128x128xbf16>
      %17 = vector.shape_cast %16 : vector<1x128x128xbf16> to vector<128x128xbf16>
      %cst = arith.constant dense<0.000000e+00> : vector<128x128xf32>
      %18 = tpu.matmul %13, %15, %cst {dimension_numbers = #tpu.dot_dimension_numbers<[1], [1], [0], [0], [0, 0, 1, 0], [], []>} : vector<128x128xbf16>, vector<128x128xbf16>, vector<128x128xf32> -> vector<128x128xf32>
      %c0_13 = arith.constant 0 : index
      %c0_14 = arith.constant 0 : index
      %19 = vector.load %arg8[%c0_13, %c0_14] : memref<128x1xf32, #tpu.memory_space<vmem>>, vector<128x1xf32>
      %cst_15 = arith.constant dense<0xFF800000> : vector<128xf32>
      %20 = vector.multi_reduction <maximumf>, %18, %cst_15 [1] : vector<128x128xf32> to vector<128xf32>
      %21 = vector.shape_cast %20 : vector<128xf32> to vector<128x1xf32>
      %22 = arith.maximumf %19, %21 : vector<128x1xf32>
      %23 = arith.subf %19, %22 : vector<128x1xf32>
      %24 = math.exp %23 : vector<128x1xf32>
      %25 = vector.broadcast %22 : vector<128x1xf32> to vector<128x128xf32>
      %26 = arith.subf %18, %25 : vector<128x128xf32>
      %27 = math.exp %26 : vector<128x128xf32>
      %c0_16 = arith.constant 0 : index
      %c0_17 = arith.constant 0 : index
      %28 = vector.load %arg9[%c0_16, %c0_17] : memref<128x1xf32, #tpu.memory_space<vmem>>, vector<128x1xf32>
      %29 = arith.mulf %24, %28 : vector<128x1xf32>
      %cst_18 = arith.constant dense<0.000000e+00> : vector<128xf32>
      %30 = vector.multi_reduction <add>, %27, %cst_18 [1] : vector<128x128xf32> to vector<128xf32>
      %31 = vector.shape_cast %30 : vector<128xf32> to vector<128x1xf32>
      %32 = arith.addf %29, %31 : vector<128x1xf32>
      %c0_19 = arith.constant 0 : index
      %c0_20 = arith.constant 0 : index
      %33 = vector.load %arg9[%c0_19, %c0_20] : memref<128x1xf32, #tpu.memory_space<vmem>>, vector<128x1xf32>
      tpu.vector_store %arg9[%c0_19, %c0_20], %32 {strides = array<i32>} : memref<128x1xf32, #tpu.memory_space<vmem>>, vector<128x1xf32>,
      %c0_21 = arith.constant 0 : index
      %c0_22 = arith.constant 0 : index
      %34 = vector.load %arg10[%c0_21, %c0_22] : memref<128x128xf32, #tpu.memory_space<vmem>>, vector<128x128xf32>
      %35 = vector.broadcast %24 : vector<128x1xf32> to vector<128x128xf32>
      %36 = arith.mulf %35, %34 : vector<128x128xf32>
      %37 = arith.truncf %27 : vector<128x128xf32> to vector<128x128xbf16>
      %cst_23 = arith.constant dense<0.000000e+00> : vector<128x128xf32>
      %38 = tpu.matmul %37, %17, %cst_23 {dimension_numbers = #tpu.dot_dimension_numbers<[1], [0], [0], [1], [0, 0, 1, 1], [], []>} : vector<128x128xbf16>, vector<128x128xbf16>, vector<128x128xf32> -> vector<128x128xf32>
      %39 = arith.addf %36, %38 : vector<128x128xf32>
      %c0_24 = arith.constant 0 : index
      %c0_25 = arith.constant 0 : index
      %40 = vector.load %arg10[%c0_24, %c0_25] : memref<128x128xf32, #tpu.memory_space<vmem>>, vector<128x128xf32>
      tpu.vector_store %arg10[%c0_24, %c0_25], %39 {strides = array<i32>} : memref<128x128xf32, #tpu.memory_space<vmem>>, vector<128x128xf32>,
      %c0_26 = arith.constant 0 : index
      %c0_27 = arith.constant 0 : index
      %41 = vector.load %arg8[%c0_26, %c0_27] : memref<128x1xf32, #tpu.memory_space<vmem>>, vector<128x1xf32>
      tpu.vector_store %arg8[%c0_26, %c0_27], %22 {strides = array<i32>} : memref<128x1xf32, #tpu.memory_space<vmem>>, vector<128x1xf32>,
    } else {
    }
    %6 = arith.cmpi eq, %arg3, %arg2 : i32
    %7 = arith.extui %6 : i1 to i32
    %c0_i32_2 = arith.constant 0 : i32
    %8 = arith.cmpi ne, %7, %c0_i32_2 : i32
    scf.if %8 {
      %c0 = arith.constant 0 : index
      %c0_5 = arith.constant 0 : index
      %c0_6 = arith.constant 0 : index
      %12 = vector.load %arg4[%c0, %c0_5, %c0_6] : memref<1x128x128xbf16, #tpu.memory_space<vmem>>, vector<1x128x128xbf16>
      %13 = vector.shape_cast %12 : vector<1x128x128xbf16> to vector<128x128xbf16>
      %c0_7 = arith.constant 0 : index
      %c0_8 = arith.constant 0 : index
      %c0_9 = arith.constant 0 : index
      %14 = vector.load %arg5[%c0_7, %c0_8, %c0_9] : memref<1x128x128xbf16, #tpu.memory_space<vmem>>, vector<1x128x128xbf16>
      %15 = vector.shape_cast %14 : vector<1x128x128xbf16> to vector<128x128xbf16>
      %c0_10 = arith.constant 0 : index
      %c0_11 = arith.constant 0 : index
      %c0_12 = arith.constant 0 : index
      %16 = vector.load %arg6[%c0_10, %c0_11, %c0_12] : memref<1x128x128xbf16, #tpu.memory_space<vmem>>, vector<1x128x128xbf16>
      %17 = vector.shape_cast %16 : vector<1x128x128xbf16> to vector<128x128xbf16>
      %cst = arith.constant dense<0.000000e+00> : vector<128x128xf32>
      %18 = tpu.matmul %13, %15, %cst {dimension_numbers = #tpu.dot_dimension_numbers<[1], [1], [0], [0], [0, 0, 1, 0], [], []>} : vector<128x128xbf16>, vector<128x128xbf16>, vector<128x128xf32> -> vector<128x128xf32>
      %19 = tpu.iota {dimensions = array<i32: 0>} : vector<128x128xi32>
      %20 = tpu.iota {dimensions = array<i32: 1>} : vector<128x128xi32>
      %21 = arith.cmpi sle, %20, %19 : vector<128x128xi32>
      %cst_13 = arith.constant -1.000000e+30 : f32
      %22 = vector.broadcast %cst_13 : f32 to vector<128x128xf32>
      %23 = arith.select %21, %18, %22 : vector<128x128xi1>, vector<128x128xf32>
      %c0_14 = arith.constant 0 : index
      %c0_15 = arith.constant 0 : index
      %24 = vector.load %arg8[%c0_14, %c0_15] : memref<128x1xf32, #tpu.memory_space<vmem>>, vector<128x1xf32>
      %cst_16 = arith.constant dense<0xFF800000> : vector<128xf32>
      %25 = vector.multi_reduction <maximumf>, %23, %cst_16 [1] : vector<128x128xf32> to vector<128xf32>
      %26 = vector.shape_cast %25 : vector<128xf32> to vector<128x1xf32>
      %27 = arith.maximumf %24, %26 : vector<128x1xf32>
      %28 = arith.subf %24, %27 : vector<128x1xf32>
      %29 = math.exp %28 : vector<128x1xf32>
      %30 = vector.broadcast %27 : vector<128x1xf32> to vector<128x128xf32>
      %31 = arith.subf %23, %30 : vector<128x128xf32>
      %32 = math.exp %31 : vector<128x128xf32>
      %c0_17 = arith.constant 0 : index
      %c0_18 = arith.constant 0 : index
      %33 = vector.load %arg9[%c0_17, %c0_18] : memref<128x1xf32, #tpu.memory_space<vmem>>, vector<128x1xf32>
      %34 = arith.mulf %29, %33 : vector<128x1xf32>
      %cst_19 = arith.constant dense<0.000000e+00> : vector<128xf32>
      %35 = vector.multi_reduction <add>, %32, %cst_19 [1] : vector<128x128xf32> to vector<128xf32>
      %36 = vector.shape_cast %35 : vector<128xf32> to vector<128x1xf32>
      %37 = arith.addf %34, %36 : vector<128x1xf32>
      %c0_20 = arith.constant 0 : index
      %c0_21 = arith.constant 0 : index
      %38 = vector.load %arg9[%c0_20, %c0_21] : memref<128x1xf32, #tpu.memory_space<vmem>>, vector<128x1xf32>
      tpu.vector_store %arg9[%c0_20, %c0_21], %37 {strides = array<i32>} : memref<128x1xf32, #tpu.memory_space<vmem>>, vector<128x1xf32>,
      %c0_22 = arith.constant 0 : index
      %c0_23 = arith.constant 0 : index
      %39 = vector.load %arg10[%c0_22, %c0_23] : memref<128x128xf32, #tpu.memory_space<vmem>>, vector<128x128xf32>
      %40 = vector.broadcast %29 : vector<128x1xf32> to vector<128x128xf32>
      %41 = arith.mulf %40, %39 : vector<128x128xf32>
      %42 = arith.truncf %32 : vector<128x128xf32> to vector<128x128xbf16>
      %cst_24 = arith.constant dense<0.000000e+00> : vector<128x128xf32>
      %43 = tpu.matmul %42, %17, %cst_24 {dimension_numbers = #tpu.dot_dimension_numbers<[1], [0], [0], [1], [0, 0, 1, 1], [], []>} : vector<128x128xbf16>, vector<128x128xbf16>, vector<128x128xf32> -> vector<128x128xf32>
      %44 = arith.addf %41, %43 : vector<128x128xf32>
      %c0_25 = arith.constant 0 : index
      %c0_26 = arith.constant 0 : index
      %45 = vector.load %arg10[%c0_25, %c0_26] : memref<128x128xf32, #tpu.memory_space<vmem>>, vector<128x128xf32>
      tpu.vector_store %arg10[%c0_25, %c0_26], %44 {strides = array<i32>} : memref<128x128xf32, #tpu.memory_space<vmem>>, vector<128x128xf32>,
      %c0_27 = arith.constant 0 : index
      %c0_28 = arith.constant 0 : index
      %46 = vector.load %arg8[%c0_27, %c0_28] : memref<128x1xf32, #tpu.memory_space<vmem>>, vector<128x1xf32>
      tpu.vector_store %arg8[%c0_27, %c0_28], %27 {strides = array<i32>} : memref<128x1xf32, #tpu.memory_space<vmem>>, vector<128x1xf32>,
    } else {
    }
    %c0_i32_3 = arith.constant 0 : i32
    %9 = arith.cmpi eq, %arg3, %c0_i32_3 : i32
    %10 = arith.extui %9 : i1 to i32
    %c0_i32_4 = arith.constant 0 : i32
    %11 = arith.cmpi ne, %10, %c0_i32_4 : i32
    scf.if %11 {
      %c0 = arith.constant 0 : index
      %c0_5 = arith.constant 0 : index
      %12 = vector.load %arg10[%c0, %c0_5] : memref<128x128xf32, #tpu.memory_space<vmem>>, vector<128x128xf32>
      %c0_6 = arith.constant 0 : index
      %c0_7 = arith.constant 0 : index
      %13 = vector.load %arg9[%c0_6, %c0_7] : memref<128x1xf32, #tpu.memory_space<vmem>>, vector<128x1xf32>
      %14 = tpu.reciprocal %13 {approx = true} : vector<128x1xf32> -> vector<128x1xf32>
      %15 = vector.broadcast %14 : vector<128x1xf32> to vector<128x128xf32>
      %16 = arith.mulf %12, %15 : vector<128x128xf32>
      %17 = arith.truncf %16 : vector<128x128xf32> to vector<128x128xbf16>
      %c0_8 = arith.constant 0 : index
      %c0_9 = arith.constant 0 : index
      %c0_10 = arith.constant 0 : index
      %18 = vector.load %arg7[%c0_8, %c0_9, %c0_10] : memref<1x128x128xbf16, #tpu.memory_space<vmem>>, vector<1x128x128xbf16>
      %19 = vector.shape_cast %18 : vector<1x128x128xbf16> to vector<128x128xbf16>
      %20 = vector.shape_cast %17 : vector<128x128xbf16> to vector<1x128x128xbf16>
      tpu.vector_store %arg7[%c0_8, %c0_9, %c0_10], %20 {strides = array<i32>} : memref<1x128x128xbf16, #tpu.memory_space<vmem>>, vector<1x128x128xbf16>,
    } else {
    }
    return
  }
  func.func @transform_0(%arg0: i32, %arg1: i32, %arg2: i32, %arg3: i32) -> (i32, i32, i32) {
    %c0_i32 = arith.constant 0 : i32
    return %arg0, %arg2, %arg1 : i32, i32, i32
  }
  func.func @transform_1(%arg0: i32, %arg1: i32, %arg2: i32, %arg3: i32) -> (i32, i32, i32) {
    %0 = arith.minsi %arg3, %arg2 : i32
    %c0_i32 = arith.constant 0 : i32
    return %arg0, %0, %arg1 : i32, i32, i32
  }
  func.func @transform_2(%arg0: i32, %arg1: i32, %arg2: i32, %arg3: i32) -> (i32, i32, i32) {
    %0 = arith.minsi %arg3, %arg2 : i32
    %c0_i32 = arith.constant 0 : i32
    return %arg0, %0, %arg1 : i32, i32, i32
  }
  func.func @transform_3(%arg0: i32, %arg1: i32, %arg2: i32, %arg3: i32) -> (i32, i32, i32) {
    %c0_i32 = arith.constant 0 : i32
    return %arg0, %arg2, %arg1 : i32, i32, i32
  }
}

module attributes {stable_mosaic.version = 11 : i64} {
  func.func @out_ffn_kernel(%arg0: i32, %arg1: i32, %arg2: i32, %arg3: memref<1x128x256xbf16, #tpu.memory_space<vmem>>, %arg4: memref<1x128x256xf32, #tpu.memory_space<vmem>>, %arg5: memref<256x256xbf16, #tpu.memory_space<vmem>>, %arg6: memref<1x256xf32, #tpu.memory_space<vmem>>, %arg7: memref<1x256xf32, #tpu.memory_space<vmem>>, %arg8: memref<1x256xf32, #tpu.memory_space<vmem>>, %arg9: memref<256x512xbf16, #tpu.memory_space<vmem>>, %arg10: memref<1x512xf32, #tpu.memory_space<vmem>>, %arg11: memref<512x256xbf16, #tpu.memory_space<vmem>>, %arg12: memref<1x256xf32, #tpu.memory_space<vmem>>, %arg13: memref<1x256xf32, #tpu.memory_space<vmem>>, %arg14: memref<1x256xf32, #tpu.memory_space<vmem>>, %arg15: memref<1x128x256xf32, #tpu.memory_space<vmem>>, %arg16: memref<128x256xf32, #tpu.memory_space<vmem>>, %arg17: memref<128x256xf32, #tpu.memory_space<vmem>>) attributes {dimension_semantics = [#tpu.dimension_semantics<parallel>, #tpu.dimension_semantics<parallel>, #tpu.dimension_semantics<arbitrary>], iteration_bounds = array<i64: 2, 1, 1>, scalar_prefetch = 0 : i64, scratch_operands = 2 : i64, tpu.core_type = #tpu.core_type<tc>, window_params = [{transform_indices = @transform_0, window_bounds = array<i64: 1, 128, 256>}, {transform_indices = @transform_1, window_bounds = array<i64: 1, 128, 256>}, {pipeline_mode = #tpu.pipeline_mode<synchronous>, transform_indices = @transform_2, window_bounds = array<i64: 256, 256>}, {pipeline_mode = #tpu.pipeline_mode<synchronous>, transform_indices = @transform_3, window_bounds = array<i64: 1, 256>}, {pipeline_mode = #tpu.pipeline_mode<synchronous>, transform_indices = @transform_4, window_bounds = array<i64: 1, 256>}, {pipeline_mode = #tpu.pipeline_mode<synchronous>, transform_indices = @transform_5, window_bounds = array<i64: 1, 256>}, {transform_indices = @transform_6, window_bounds = array<i64: 256, 512>}, {transform_indices = @transform_7, window_bounds = array<i64: 1, 512>}, {transform_indices = @transform_8, window_bounds = array<i64: 512, 256>}, {pipeline_mode = #tpu.pipeline_mode<synchronous>, transform_indices = @transform_9, window_bounds = array<i64: 1, 256>}, {pipeline_mode = #tpu.pipeline_mode<synchronous>, transform_indices = @transform_10, window_bounds = array<i64: 1, 256>}, {pipeline_mode = #tpu.pipeline_mode<synchronous>, transform_indices = @transform_11, window_bounds = array<i64: 1, 256>}, {transform_indices = @transform_12, window_bounds = array<i64: 1, 128, 256>}]} {
    %c0_i32 = arith.constant 0 : i32
    %0 = arith.cmpi eq, %arg2, %c0_i32 : i32
    %1 = arith.extui %0 : i1 to i32
    %c0_i32_0 = arith.constant 0 : i32
    %2 = arith.cmpi ne, %1, %c0_i32_0 : i32
    scf.if %2 {
      %c0_16 = arith.constant 0 : index
      %c0_17 = arith.constant 0 : index
      %c0_18 = arith.constant 0 : index
      %23 = vector.load %arg3[%c0_16, %c0_17, %c0_18] : memref<1x128x256xbf16, #tpu.memory_space<vmem>>, vector<1x128x256xbf16>
      %24 = vector.shape_cast %23 : vector<1x128x256xbf16> to vector<128x256xbf16>
      %c0_19 = arith.constant 0 : index
      %c0_20 = arith.constant 0 : index
      %25 = vector.load %arg5[%c0_19, %c0_20] : memref<256x256xbf16, #tpu.memory_space<vmem>>, vector<256x256xbf16>
      %cst_21 = arith.constant dense<0.000000e+00> : vector<128x256xf32>
      %26 = tpu.matmul %24, %25, %cst_21 {dimension_numbers = #tpu.dot_dimension_numbers<[1], [0], [0], [1], [0, 0, 1, 1], [], []>} : vector<128x256xbf16>, vector<256x256xbf16>, vector<128x256xf32> -> vector<128x256xf32>
      %c0_22 = arith.constant 0 : index
      %c0_23 = arith.constant 0 : index
      %27 = vector.load %arg6[%c0_22, %c0_23] : memref<1x256xf32, #tpu.memory_space<vmem>>, vector<1x256xf32>
      %28 = vector.shape_cast %27 : vector<1x256xf32> to vector<256xf32>
      %29 = vector.shape_cast %28 : vector<256xf32> to vector<1x256xf32>
      %30 = vector.broadcast %29 : vector<1x256xf32> to vector<128x256xf32>
      %31 = arith.addf %26, %30 : vector<128x256xf32>
      %c0_24 = arith.constant 0 : index
      %c0_25 = arith.constant 0 : index
      %c0_26 = arith.constant 0 : index
      %32 = vector.load %arg4[%c0_24, %c0_25, %c0_26] : memref<1x128x256xf32, #tpu.memory_space<vmem>>, vector<1x128x256xf32>
      %33 = vector.shape_cast %32 : vector<1x128x256xf32> to vector<128x256xf32>
      %34 = arith.addf %33, %31 : vector<128x256xf32>
      %c0_27 = arith.constant 0 : index
      %c0_28 = arith.constant 0 : index
      %35 = vector.load %arg7[%c0_27, %c0_28] : memref<1x256xf32, #tpu.memory_space<vmem>>, vector<1x256xf32>
      %36 = vector.shape_cast %35 : vector<1x256xf32> to vector<256xf32>
      %c0_29 = arith.constant 0 : index
      %c0_30 = arith.constant 0 : index
      %37 = vector.load %arg8[%c0_29, %c0_30] : memref<1x256xf32, #tpu.memory_space<vmem>>, vector<1x256xf32>
      %38 = vector.shape_cast %37 : vector<1x256xf32> to vector<256xf32>
      %cst_31 = arith.constant dense<0.000000e+00> : vector<128xf32>
      %39 = vector.multi_reduction <add>, %34, %cst_31 [1] : vector<128x256xf32> to vector<128xf32>
      %40 = vector.shape_cast %39 : vector<128xf32> to vector<128x1xf32>
      %cst_32 = arith.constant 2.560000e+02 : f32
      %41 = vector.broadcast %cst_32 : f32 to vector<128x1xf32>
      %42 = arith.divf %40, %41 : vector<128x1xf32>
      %43 = vector.broadcast %42 : vector<128x1xf32> to vector<128x256xf32>
      %44 = arith.subf %34, %43 : vector<128x256xf32>
      %45 = arith.mulf %44, %44 : vector<128x256xf32>
      %cst_33 = arith.constant dense<0.000000e+00> : vector<128xf32>
      %46 = vector.multi_reduction <add>, %45, %cst_33 [1] : vector<128x256xf32> to vector<128xf32>
      %47 = vector.shape_cast %46 : vector<128xf32> to vector<128x1xf32>
      %cst_34 = arith.constant 2.560000e+02 : f32
      %48 = vector.broadcast %cst_34 : f32 to vector<128x1xf32>
      %49 = arith.divf %47, %48 : vector<128x1xf32>
      %50 = vector.broadcast %42 : vector<128x1xf32> to vector<128x256xf32>
      %51 = arith.subf %34, %50 : vector<128x256xf32>
      %cst_35 = arith.constant 9.99999974E-6 : f32
      %52 = vector.broadcast %cst_35 : f32 to vector<128x1xf32>
      %53 = arith.addf %49, %52 : vector<128x1xf32>
      %54 = math.rsqrt %53 : vector<128x1xf32>
      %55 = vector.broadcast %54 : vector<128x1xf32> to vector<128x256xf32>
      %56 = arith.mulf %51, %55 : vector<128x256xf32>
      %57 = vector.shape_cast %36 : vector<256xf32> to vector<1x256xf32>
      %58 = vector.broadcast %57 : vector<1x256xf32> to vector<128x256xf32>
      %59 = arith.mulf %56, %58 : vector<128x256xf32>
      %60 = vector.shape_cast %38 : vector<256xf32> to vector<1x256xf32>
      %61 = vector.broadcast %60 : vector<1x256xf32> to vector<128x256xf32>
      %62 = arith.addf %59, %61 : vector<128x256xf32>
      %c0_36 = arith.constant 0 : index
      %c0_37 = arith.constant 0 : index
      %63 = vector.load %arg16[%c0_36, %c0_37] : memref<128x256xf32, #tpu.memory_space<vmem>>, vector<128x256xf32>
      tpu.vector_store %arg16[%c0_36, %c0_37], %62 {strides = array<i32>} : memref<128x256xf32, #tpu.memory_space<vmem>>, vector<128x256xf32>,
      %cst_38 = arith.constant 0.000000e+00 : f32
      %64 = vector.broadcast %cst_38 : f32 to vector<128x256xf32>
      %c0_39 = arith.constant 0 : index
      %c0_40 = arith.constant 0 : index
      %65 = vector.load %arg17[%c0_39, %c0_40] : memref<128x256xf32, #tpu.memory_space<vmem>>, vector<128x256xf32>
      tpu.vector_store %arg17[%c0_39, %c0_40], %64 {strides = array<i32>} : memref<128x256xf32, #tpu.memory_space<vmem>>, vector<128x256xf32>,
    } else {
    }
    %c0 = arith.constant 0 : index
    %c0_1 = arith.constant 0 : index
    %3 = vector.load %arg16[%c0, %c0_1] : memref<128x256xf32, #tpu.memory_space<vmem>>, vector<128x256xf32>
    %4 = arith.truncf %3 : vector<128x256xf32> to vector<128x256xbf16>
    %c0_2 = arith.constant 0 : index
    %c0_3 = arith.constant 0 : index
    %5 = vector.load %arg9[%c0_2, %c0_3] : memref<256x512xbf16, #tpu.memory_space<vmem>>, vector<256x512xbf16>
    %cst = arith.constant dense<0.000000e+00> : vector<128x512xf32>
    %6 = tpu.matmul %4, %5, %cst {dimension_numbers = #tpu.dot_dimension_numbers<[1], [0], [0], [1], [0, 0, 1, 1], [], []>} : vector<128x256xbf16>, vector<256x512xbf16>, vector<128x512xf32> -> vector<128x512xf32>
    %c0_4 = arith.constant 0 : index
    %c0_5 = arith.constant 0 : index
    %7 = vector.load %arg10[%c0_4, %c0_5] : memref<1x512xf32, #tpu.memory_space<vmem>>, vector<1x512xf32>
    %8 = vector.shape_cast %7 : vector<1x512xf32> to vector<512xf32>
    %9 = vector.shape_cast %8 : vector<512xf32> to vector<1x512xf32>
    %10 = vector.broadcast %9 : vector<1x512xf32> to vector<128x512xf32>
    %11 = arith.addf %6, %10 : vector<128x512xf32>
    %cst_6 = arith.constant 0.000000e+00 : f32
    %12 = vector.broadcast %cst_6 : f32 to vector<128x512xf32>
    %13 = arith.maximumf %11, %12 : vector<128x512xf32>
    %c0_7 = arith.constant 0 : index
    %c0_8 = arith.constant 0 : index
    %14 = vector.load %arg17[%c0_7, %c0_8] : memref<128x256xf32, #tpu.memory_space<vmem>>, vector<128x256xf32>
    %15 = arith.truncf %13 : vector<128x512xf32> to vector<128x512xbf16>
    %c0_9 = arith.constant 0 : index
    %c0_10 = arith.constant 0 : index
    %16 = vector.load %arg11[%c0_9, %c0_10] : memref<512x256xbf16, #tpu.memory_space<vmem>>, vector<512x256xbf16>
    %cst_11 = arith.constant dense<0.000000e+00> : vector<128x256xf32>
    %17 = tpu.matmul %15, %16, %cst_11 {dimension_numbers = #tpu.dot_dimension_numbers<[1], [0], [0], [1], [0, 0, 1, 1], [], []>} : vector<128x512xbf16>, vector<512x256xbf16>, vector<128x256xf32> -> vector<128x256xf32>
    %18 = arith.addf %14, %17 : vector<128x256xf32>
    %c0_12 = arith.constant 0 : index
    %c0_13 = arith.constant 0 : index
    %19 = vector.load %arg17[%c0_12, %c0_13] : memref<128x256xf32, #tpu.memory_space<vmem>>, vector<128x256xf32>
    tpu.vector_store %arg17[%c0_12, %c0_13], %18 {strides = array<i32>} : memref<128x256xf32, #tpu.memory_space<vmem>>, vector<128x256xf32>,
    %c0_i32_14 = arith.constant 0 : i32
    %20 = arith.cmpi eq, %arg2, %c0_i32_14 : i32
    %21 = arith.extui %20 : i1 to i32
    %c0_i32_15 = arith.constant 0 : i32
    %22 = arith.cmpi ne, %21, %c0_i32_15 : i32
    scf.if %22 {
      %c0_16 = arith.constant 0 : index
      %c0_17 = arith.constant 0 : index
      %23 = vector.load %arg17[%c0_16, %c0_17] : memref<128x256xf32, #tpu.memory_space<vmem>>, vector<128x256xf32>
      %c0_18 = arith.constant 0 : index
      %c0_19 = arith.constant 0 : index
      %24 = vector.load %arg12[%c0_18, %c0_19] : memref<1x256xf32, #tpu.memory_space<vmem>>, vector<1x256xf32>
      %25 = vector.shape_cast %24 : vector<1x256xf32> to vector<256xf32>
      %26 = vector.shape_cast %25 : vector<256xf32> to vector<1x256xf32>
      %27 = vector.broadcast %26 : vector<1x256xf32> to vector<128x256xf32>
      %28 = arith.addf %23, %27 : vector<128x256xf32>
      %c0_20 = arith.constant 0 : index
      %c0_21 = arith.constant 0 : index
      %29 = vector.load %arg16[%c0_20, %c0_21] : memref<128x256xf32, #tpu.memory_space<vmem>>, vector<128x256xf32>
      %30 = arith.addf %29, %28 : vector<128x256xf32>
      %c0_22 = arith.constant 0 : index
      %c0_23 = arith.constant 0 : index
      %31 = vector.load %arg13[%c0_22, %c0_23] : memref<1x256xf32, #tpu.memory_space<vmem>>, vector<1x256xf32>
      %32 = vector.shape_cast %31 : vector<1x256xf32> to vector<256xf32>
      %c0_24 = arith.constant 0 : index
      %c0_25 = arith.constant 0 : index
      %33 = vector.load %arg14[%c0_24, %c0_25] : memref<1x256xf32, #tpu.memory_space<vmem>>, vector<1x256xf32>
      %34 = vector.shape_cast %33 : vector<1x256xf32> to vector<256xf32>
      %cst_26 = arith.constant dense<0.000000e+00> : vector<128xf32>
      %35 = vector.multi_reduction <add>, %30, %cst_26 [1] : vector<128x256xf32> to vector<128xf32>
      %36 = vector.shape_cast %35 : vector<128xf32> to vector<128x1xf32>
      %cst_27 = arith.constant 2.560000e+02 : f32
      %37 = vector.broadcast %cst_27 : f32 to vector<128x1xf32>
      %38 = arith.divf %36, %37 : vector<128x1xf32>
      %39 = vector.broadcast %38 : vector<128x1xf32> to vector<128x256xf32>
      %40 = arith.subf %30, %39 : vector<128x256xf32>
      %41 = arith.mulf %40, %40 : vector<128x256xf32>
      %cst_28 = arith.constant dense<0.000000e+00> : vector<128xf32>
      %42 = vector.multi_reduction <add>, %41, %cst_28 [1] : vector<128x256xf32> to vector<128xf32>
      %43 = vector.shape_cast %42 : vector<128xf32> to vector<128x1xf32>
      %cst_29 = arith.constant 2.560000e+02 : f32
      %44 = vector.broadcast %cst_29 : f32 to vector<128x1xf32>
      %45 = arith.divf %43, %44 : vector<128x1xf32>
      %46 = vector.broadcast %38 : vector<128x1xf32> to vector<128x256xf32>
      %47 = arith.subf %30, %46 : vector<128x256xf32>
      %cst_30 = arith.constant 9.99999974E-6 : f32
      %48 = vector.broadcast %cst_30 : f32 to vector<128x1xf32>
      %49 = arith.addf %45, %48 : vector<128x1xf32>
      %50 = math.rsqrt %49 : vector<128x1xf32>
      %51 = vector.broadcast %50 : vector<128x1xf32> to vector<128x256xf32>
      %52 = arith.mulf %47, %51 : vector<128x256xf32>
      %53 = vector.shape_cast %32 : vector<256xf32> to vector<1x256xf32>
      %54 = vector.broadcast %53 : vector<1x256xf32> to vector<128x256xf32>
      %55 = arith.mulf %52, %54 : vector<128x256xf32>
      %56 = vector.shape_cast %34 : vector<256xf32> to vector<1x256xf32>
      %57 = vector.broadcast %56 : vector<1x256xf32> to vector<128x256xf32>
      %58 = arith.addf %55, %57 : vector<128x256xf32>
      %c0_31 = arith.constant 0 : index
      %c0_32 = arith.constant 0 : index
      %c0_33 = arith.constant 0 : index
      %59 = vector.load %arg15[%c0_31, %c0_32, %c0_33] : memref<1x128x256xf32, #tpu.memory_space<vmem>>, vector<1x128x256xf32>
      %60 = vector.shape_cast %59 : vector<1x128x256xf32> to vector<128x256xf32>
      %61 = vector.shape_cast %58 : vector<128x256xf32> to vector<1x128x256xf32>
      tpu.vector_store %arg15[%c0_31, %c0_32, %c0_33], %61 {strides = array<i32>} : memref<1x128x256xf32, #tpu.memory_space<vmem>>, vector<1x128x256xf32>,
    } else {
    }
    return
  }
  func.func @transform_0(%arg0: i32, %arg1: i32, %arg2: i32) -> (i32, i32, i32) {
    %c0_i32 = arith.constant 0 : i32
    %c0_i32_0 = arith.constant 0 : i32
    return %arg0, %arg1, %c0_i32 : i32, i32, i32
  }
  func.func @transform_1(%arg0: i32, %arg1: i32, %arg2: i32) -> (i32, i32, i32) {
    %c0_i32 = arith.constant 0 : i32
    %c0_i32_0 = arith.constant 0 : i32
    return %arg0, %arg1, %c0_i32 : i32, i32, i32
  }
  func.func @transform_2(%arg0: i32, %arg1: i32, %arg2: i32) -> (i32, i32) {
    %c0_i32 = arith.constant 0 : i32
    %c0_i32_0 = arith.constant 0 : i32
    %c0_i32_1 = arith.constant 0 : i32
    return %c0_i32, %c0_i32_0 : i32, i32
  }
  func.func @transform_3(%arg0: i32, %arg1: i32, %arg2: i32) -> (i32, i32) {
    %c0_i32 = arith.constant 0 : i32
    %c0_i32_0 = arith.constant 0 : i32
    %c0_i32_1 = arith.constant 0 : i32
    return %c0_i32, %c0_i32_0 : i32, i32
  }
  func.func @transform_4(%arg0: i32, %arg1: i32, %arg2: i32) -> (i32, i32) {
    %c0_i32 = arith.constant 0 : i32
    %c0_i32_0 = arith.constant 0 : i32
    %c0_i32_1 = arith.constant 0 : i32
    return %c0_i32, %c0_i32_0 : i32, i32
  }
  func.func @transform_5(%arg0: i32, %arg1: i32, %arg2: i32) -> (i32, i32) {
    %c0_i32 = arith.constant 0 : i32
    %c0_i32_0 = arith.constant 0 : i32
    %c0_i32_1 = arith.constant 0 : i32
    return %c0_i32, %c0_i32_0 : i32, i32
  }
  func.func @transform_6(%arg0: i32, %arg1: i32, %arg2: i32) -> (i32, i32) {
    %c0_i32 = arith.constant 0 : i32
    %c0_i32_0 = arith.constant 0 : i32
    return %c0_i32, %arg2 : i32, i32
  }
  func.func @transform_7(%arg0: i32, %arg1: i32, %arg2: i32) -> (i32, i32) {
    %c0_i32 = arith.constant 0 : i32
    %c0_i32_0 = arith.constant 0 : i32
    return %c0_i32, %arg2 : i32, i32
  }
  func.func @transform_8(%arg0: i32, %arg1: i32, %arg2: i32) -> (i32, i32) {
    %c0_i32 = arith.constant 0 : i32
    %c0_i32_0 = arith.constant 0 : i32
    return %arg2, %c0_i32 : i32, i32
  }
  func.func @transform_9(%arg0: i32, %arg1: i32, %arg2: i32) -> (i32, i32) {
    %c0_i32 = arith.constant 0 : i32
    %c0_i32_0 = arith.constant 0 : i32
    %c0_i32_1 = arith.constant 0 : i32
    return %c0_i32, %c0_i32_0 : i32, i32
  }
  func.func @transform_10(%arg0: i32, %arg1: i32, %arg2: i32) -> (i32, i32) {
    %c0_i32 = arith.constant 0 : i32
    %c0_i32_0 = arith.constant 0 : i32
    %c0_i32_1 = arith.constant 0 : i32
    return %c0_i32, %c0_i32_0 : i32, i32
  }
  func.func @transform_11(%arg0: i32, %arg1: i32, %arg2: i32) -> (i32, i32) {
    %c0_i32 = arith.constant 0 : i32
    %c0_i32_0 = arith.constant 0 : i32
    %c0_i32_1 = arith.constant 0 : i32
    return %c0_i32, %c0_i32_0 : i32, i32
  }
  func.func @transform_12(%arg0: i32, %arg1: i32, %arg2: i32) -> (i32, i32, i32) {
    %c0_i32 = arith.constant 0 : i32
    %c0_i32_0 = arith.constant 0 : i32
    return %arg0, %arg1, %c0_i32 : i32, i32, i32
  }
}

</mosaic_0001>

<bundles_post_ra>
// kernel: full_song_transformer_decoder.7
= control target key start
LH: loop header
LB: loop body
LE: loop exit
PB: predicated region body
PF: predicated region fallthrough
CT: control target
= control target key end

     0   :  { %s635_s9 = smov 0   ;;  %s637_s10 = smov 0   ;;  %s756_s0 = inlined_call_operand.vmem [shape: f32[2,128,64], index: 0, kind: input, shape index: {}]   ;;  %s757_s1 = inlined_call_operand.vmem [shape: bf16[64,256], index: 1, kind: input, shape index: {}]   ;;  %s758_s2 = inlined_call_operand.vmem [shape: f32[2,128,256], index: 2, kind: output, shape index: {}]  }
   0x1   :  { %s639_s11 = smov 0  }
   0x2 LB: > { %s24_s12 = sadd.s32 1, %s613_s10  ;;  %p525_p0 = scmp.ge.s32.totalorder %s617_s11, 1  ;;  %s617_s11 = sphi %s639_s11, %s12_s11   ;;  %s613_s10 = sphi %s637_s10, %s760_s10   ;;  %s609_s9 = sphi %s635_s9, %s759_s9  }
   0x3   : > { %p26_p1 = scmp.ge.s32.totalorder %s24_s12, 2  ;;  %p133_p2 = scmp.lt.s32.totalorder %s617_s11, 3 }
   0x5   : > { %s762_s12 = smov (%p26_p1, %s24_s12), 0  ;;  %p134_p3 = pnand %p525_p0, %p133_p2 }
   0x6   : > { %v583_v0 = vld [vmem:[%s757_s1 + $0x4] ss:$8 sps:$4 sm:$0xff] (!%p134_p3)   ;;  %p165_p4 = scmp.lt.s32.totalorder (!%p134_p3), %s609_s9, 1  ;;  %v585_v1 = vld [vmem:[%s757_s1] ss:$8 sps:$4 sm:$0xff] (!%p134_p3)   ;;  %v619_v2 = vmov (!%p134_p3), 0  }
   0x7   : > { %137 = sbr.rel (%p134_p3) target bundleno = 264 (0x108), region = 28  ;;  %315 = vmatprep.mubr.bf16.mxu0 (!%p134_p3), %v619_v2  ;;  %355 = vmatprep.mubr.bf16.mxu1 (!%p134_p3), %v619_v2  ;;  %v586_v3 = vld [vmem:[%s757_s1 + $0x14] ss:$8 sps:$4 sm:$0xff] (!%p134_p3)   ;;  %v588_v4 = vld [vmem:[%s757_s1 + $0x10] ss:$8 sps:$4 sm:$0xff] (!%p134_p3)   ;;  %vm258_vm0 = vcmask (!%p134_p3), 523264  }
   0x8   : > { %283 = vmatprep.subr.bf16.mxu0 (!%p134_p3), %v583_v0  ;;  %550 = vmatprep.subr.bf16.mxu1 (!%p134_p3), %v583_v0  ;;  %v589_v5 = vld [vmem:[%s757_s1 + $0x24] ss:$8 sps:$4 sm:$0xff] (!%p134_p3)   ;;  %v591_v6 = vld [vmem:[%s757_s1 + $0x20] ss:$8 sps:$4 sm:$0xff] (!%p134_p3)   ;;  %v592_v7 = vld [vmem:[%s757_s1 + $0x34] ss:$8 sps:$4 sm:$0xff] (!%p134_p3)  }
   0x9   : > { %284 = vmatpush1.bf16.msra.mxu0 (!%p134_p3), %v585_v1  ;;  %554 = vmatpush1.bf16.msra.mxu1 (!%p134_p3), %v585_v1  ;;  %v594_v8 = vld [vmem:[%s757_s1 + $0x30] ss:$8 sps:$4 sm:$0xff] (!%p134_p3)  }
   0xa   : > { %285 = vmatprep.subr.bf16.mxu0 (!%p134_p3), %v586_v3  ;;  %551 = vmatprep.subr.bf16.mxu1 (!%p134_p3), %v586_v3 }
   0xd   : > { %286 = vmatpush1.bf16.msra.mxu0 (!%p134_p3), %v588_v4  ;;  %555 = vmatpush1.bf16.msra.mxu1 (!%p134_p3), %v588_v4 }
   0xe   : > { %s764_s9 = smov (!%p165_p4, %s609_s9), 1  ;;  %287 = vmatprep.subr.bf16.mxu0 %v589_v5  ;;  %552 = vmatprep.subr.bf16.mxu1 %v589_v5 }
   0xf   : > { %s548_s23 = sshll.u32 %s764_s9, 7  ;;  %s549_s5 = sshll.u32 %s764_s9, 8 }
  0x10   : > { %s677_s28 = scalar_lea.vmem %s756_s0, %s548_s23  ;;  %s713_s8 = scalar_lea.vmem %s758_s2, %s549_s5 }
  0x11   : > { %v186_v9 = vld [vmem:[%s677_s28] sm:$0xff]  ;;  %288 = vmatpush1.bf16.msra.mxu0 %v591_v6  ;;  %556 = vmatpush1.bf16.msra.mxu1 %v591_v6  ;;  %v187_v10 = vld [vmem:[%s677_s28 + $0x8] sm:$0xff]  ;;  %v188_v15 = vld [vmem:[%s677_s28 + $0x10] sm:$0xff] }
  0x12   : > { %v194_v11 = vld [vmem:[%s677_s28 + $0x40] sm:$0xff]  ;;  %v195_v12 = vld [vmem:[%s677_s28 + $0x48] sm:$0xff]  ;;  %289 = vmatprep.subr.bf16.mxu0 %v592_v7  ;;  %553 = vmatprep.subr.bf16.mxu1 %v592_v7  ;;  %v202_v13 = vpack.c.bf16 %v187_v10, %v186_v9  ;;  %v189_v16 = vld [vmem:[%s677_s28 + $0x18] sm:$0xff] }
  0x13   : > { %v206_v14 = vpack.c.bf16 %v195_v12, %v194_v11  ;;  %v196_v17 = vld [vmem:[%s677_s28 + $0x50] sm:$0xff]  ;;  %v197_v18 = vld [vmem:[%s677_s28 + $0x58] sm:$0xff]  ;;  %v203_v19 = vpack.c.bf16 %v189_v16, %v188_v15  ;;  %v190_v21 = vld [vmem:[%s677_s28 + $0x20] sm:$0xff] }
  0x14   : > { %v207_v20 = vpack.c.bf16 %v197_v18, %v196_v17  ;;  %v191_v22 = vld [vmem:[%s677_s28 + $0x28] sm:$0xff]  ;;  %v198_v23 = vld [vmem:[%s677_s28 + $0x60] sm:$0xff]  ;;  %v192_v27 = vld [vmem:[%s677_s28 + $0x30] sm:$0xff] }
  0x15   : > { %290 = vmatpush1.bf16.msra.mxu0 %v594_v8  ;;  %557 = vmatpush1.bf16.msra.mxu1 %v594_v8  ;;  %v199_v24 = vld [vmem:[%s677_s28 + $0x68] sm:$0xff]  ;;  %v204_v25 = vpack.c.bf16 %v191_v22, %v190_v21  ;;  %v193_v28 = vld [vmem:[%s677_s28 + $0x38] sm:$0xff]  ;;  %v200_v29 = vld [vmem:[%s677_s28 + $0x70] sm:$0xff] }
  0x16   : > { %v208_v26 = vpack.c.bf16 %v199_v24, %v198_v23  ;;  %v201_v30 = vld [vmem:[%s677_s28 + $0x78] sm:$0xff]  ;;  %v205_v31 = vpack.c.bf16 %v193_v28, %v192_v27 }
  0x17   : > { %v209_v32 = vpack.c.bf16 %v201_v30, %v200_v29 }
  0x18   : > { %538 = vmatmul.mubr.msk.bf16.vlgmr.msra.gmra.mrb[0].mxu0 %vm258_vm0, %v202_v13  ;;  %542 = vmatmul.mubr.msk.bf16.vlgmr.msra.gmra.mrb[0].mxu1 %vm258_vm0, %v206_v14 }
  0x19   : > { %325 = vmatprep.mubr.bf16.mxu0 %v619_v2  ;;  %365 = vmatprep.mubr.bf16.mxu1 %v619_v2 }
  0x20   : > { %539 = vmatmul.mubr.msk.bf16.gmra.mrb[4].mxu0 %vm258_vm0, %v203_v19  ;;  %543 = vmatmul.mubr.msk.bf16.gmra.mrb[4].mxu1 %vm258_vm0, %v207_v20 }
  0x21   : > { %335 = vmatprep.mubr.bf16.mxu0 %v619_v2  ;;  %375 = vmatprep.mubr.bf16.mxu1 %v619_v2 }
  0x28   : > { %540 = vmatmul.mubr.msk.bf16.gmra.mrb[8].mxu0 %vm258_vm0, %v204_v25  ;;  %544 = vmatmul.mubr.msk.bf16.gmra.mrb[8].mxu1 %vm258_vm0, %v208_v26 }
  0x29   : > { %345 = vmatprep.mubr.bf16.mxu0 %v619_v2  ;;  %385 = vmatprep.mubr.bf16.mxu1 %v619_v2 }
  0x30   : > { %541 = vmatmul.mubr.msk.bf16.gmra.mrb[12].mxu0 %vm258_vm0, %v205_v31  ;;  %545 = vmatmul.mubr.msk.bf16.gmra.mrb[12].mxu1 %vm258_vm0, %v209_v32 }
  0xeb   : > { %v317_v33 = vpop.f32.mrb[0].mxu0  ;;  %v357_v34 = vpop.f32.mrb[0].mxu1 }
  0xec   : > { %396 = vst [vmem:[%s713_s8] sm:$0xff] %v317_v33  ;;  %412 = vst [vmem:[%s713_s8 + $0x80] sm:$0xff] %v357_v34  ;;  %v319_v35 = vpop.f32.mrb[1].mxu0  ;;  %v359_v36 = vpop.f32.mrb[1].mxu1 }
  0xed   : > { %397 = vst [vmem:[%s713_s8 + $0x8] sm:$0xff] %v319_v35  ;;  %413 = vst [vmem:[%s713_s8 + $0x88] sm:$0xff] %v359_v36  ;;  %v321_v37 = vpop.f32.mrb[2].mxu0  ;;  %v361_v38 = vpop.f32.mrb[2].mxu1 }
  0xee   : > { %398 = vst [vmem:[%s713_s8 + $0x10] sm:$0xff] %v321_v37  ;;  %414 = vst [vmem:[%s713_s8 + $0x90] sm:$0xff] %v361_v38  ;;  %v323_v39 = vpop.f32.mrb[3].mxu0  ;;  %v363_v40 = vpop.f32.mrb[3].mxu1 }
  0xef   : > { %399 = vst [vmem:[%s713_s8 + $0x18] sm:$0xff] %v323_v39  ;;  %415 = vst [vmem:[%s713_s8 + $0x98] sm:$0xff] %v363_v40 }
  0xf3   : > { %v327_v41 = vpop.f32.mrb[4].mxu0  ;;  %v367_v42 = vpop.f32.mrb[4].mxu1 }
  0xf4   : > { %400 = vst [vmem:[%s713_s8 + $0x20] sm:$0xff] %v327_v41  ;;  %416 = vst [vmem:[%s713_s8 + $0xa0] sm:$0xff] %v367_v42  ;;  %v329_v43 = vpop.f32.mrb[5].mxu0  ;;  %v369_v44 = vpop.f32.mrb[5].mxu1 }
  0xf5   : > { %401 = vst [vmem:[%s713_s8 + $0x28] sm:$0xff] %v329_v43  ;;  %417 = vst [vmem:[%s713_s8 + $0xa8] sm:$0xff] %v369_v44  ;;  %v331_v45 = vpop.f32.mrb[6].mxu0  ;;  %v371_v46 = vpop.f32.mrb[6].mxu1 }
  0xf6   : > { %402 = vst [vmem:[%s713_s8 + $0x30] sm:$0xff] %v331_v45  ;;  %418 = vst [vmem:[%s713_s8 + $0xb0] sm:$0xff] %v371_v46  ;;  %v333_v47 = vpop.f32.mrb[7].mxu0  ;;  %v373_v48 = vpop.f32.mrb[7].mxu1 }
  0xf7   : > { %403 = vst [vmem:[%s713_s8 + $0x38] sm:$0xff] %v333_v47  ;;  %419 = vst [vmem:[%s713_s8 + $0xb8] sm:$0xff] %v373_v48 }
  0xfb   : > { %v337_v49 = vpop.f32.mrb[8].mxu0  ;;  %v377_v50 = vpop.f32.mrb[8].mxu1 }
  0xfc   : > { %404 = vst [vmem:[%s713_s8 + $0x40] sm:$0xff] %v337_v49  ;;  %420 = vst [vmem:[%s713_s8 + $0xc0] sm:$0xff] %v377_v50  ;;  %v339_v51 = vpop.f32.mrb[9].mxu0  ;;  %v379_v52 = vpop.f32.mrb[9].mxu1 }
  0xfd   : > { %405 = vst [vmem:[%s713_s8 + $0x48] sm:$0xff] %v339_v51  ;;  %421 = vst [vmem:[%s713_s8 + $0xc8] sm:$0xff] %v379_v52  ;;  %v341_v53 = vpop.f32.mrb[10].mxu0  ;;  %v381_v54 = vpop.f32.mrb[10].mxu1 }
  0xfe   : > { %406 = vst [vmem:[%s713_s8 + $0x50] sm:$0xff] %v341_v53  ;;  %422 = vst [vmem:[%s713_s8 + $0xd0] sm:$0xff] %v381_v54  ;;  %v343_v55 = vpop.f32.mrb[11].mxu0  ;;  %v383_v56 = vpop.f32.mrb[11].mxu1 }
  0xff   : > { %407 = vst [vmem:[%s713_s8 + $0x58] sm:$0xff] %v343_v55  ;;  %423 = vst [vmem:[%s713_s8 + $0xd8] sm:$0xff] %v383_v56 }
 0x103   : > { %v347_v57 = vpop.f32.mrb[12].mxu0  ;;  %v387_v58 = vpop.f32.mrb[12].mxu1 }
 0x104   : > { %408 = vst [vmem:[%s713_s8 + $0x60] sm:$0xff] %v347_v57  ;;  %424 = vst [vmem:[%s713_s8 + $0xe0] sm:$0xff] %v387_v58  ;;  %v349_v59 = vpop.f32.mrb[13].mxu0  ;;  %v389_v60 = vpop.f32.mrb[13].mxu1 }
 0x105   : > { %409 = vst [vmem:[%s713_s8 + $0x68] sm:$0xff] %v349_v59  ;;  %425 = vst [vmem:[%s713_s8 + $0xe8] sm:$0xff] %v389_v60  ;;  %v351_v61 = vpop.f32.mrb[14].mxu0  ;;  %v391_v62 = vpop.f32.mrb[14].mxu1 }
 0x106   : > { %410 = vst [vmem:[%s713_s8 + $0x70] sm:$0xff] %v351_v61  ;;  %426 = vst [vmem:[%s713_s8 + $0xf0] sm:$0xff] %v391_v62  ;;  %v353_v63 = vpop.f32.mrb[15].mxu0  ;;  %v393_v0 = vpop.f32.mrb[15].mxu1 }
 0x107   : > { %411 = vst [vmem:[%s713_s8 + $0x78] sm:$0xff] %v353_v63  ;;  %427 = vst [vmem:[%s713_s8 + $0xf8] sm:$0xff] %v393_v0 }
 0x108 PF: > { %s12_s11 = sadd.s32 1, %s617_s11   ;;  %s759_s9 = smov %s613_s10 }
 0x109   : > { %p9_p5 = scmp.ge.s32.totalorder %s12_s11, 4   ;;  %s760_s10 = smov %s762_s12 }
 0x10b   :  { %11 = sbr.rel (!%p9_p5) target bundleno = 2 (0x2), region = 58 }

// kernel: full_song_transformer_decoder.8
= control target key start
LH: loop header
LB: loop body
LE: loop exit
PB: predicated region body
PF: predicated region fallthrough
CT: control target
= control target key end

     0   :  { %s2631_s24 = smov 0   ;;  %s2633_s25 = smov 0   ;;  %s3419_s0 = inlined_call_operand.vmem [shape: f32[2,128,256], index: 0, kind: input, shape index: {}]   ;;  %s3420_s1 = inlined_call_operand.vmem [shape: f32[2,128,256], index: 1, kind: input, shape index: {}]   ;;  %s3421_s2 = inlined_call_operand.vmem [shape: bf16[256,768], index: 2, kind: input, shape index: {}]   ;;  %s3422_s3 = inlined_call_operand.vmem [shape: f32[1,768], index: 3, kind: input, shape index: {}]   ;;  %s3423_s4 = inlined_call_operand.vmem [shape: f32[2,128,256], index: 4, kind: output, shape index: {0}]   ;;  %s3424_s5 = inlined_call_operand.vmem [shape: bf16[2,128,256], index: 5, kind: output, shape index: {1}]   ;;  %s3425_s6 = inlined_call_operand.vmem [shape: bf16[2,128,256], index: 6, kind: output, shape index: {2}]   ;;  %s3426_s7 = inlined_call_operand.vmem [shape: bf16[2,128,256], index: 7, kind: output, shape index: {3}]  }
   0x1   :  { %s2635_s26 = smov 0  }
   0x2 LB: > { %s30_s27 = sadd.s32 1, %s2585_s25  ;;  %p2154_p0 = scmp.ge.s32.totalorder %s2589_s26, 1  ;;  %s2589_s26 = sphi %s2635_s26, %s18_s26   ;;  %s2585_s25 = sphi %s2633_s25, %s3428_s25   ;;  %s2581_s24 = sphi %s2631_s24, %s3427_s24  }
   0x3   : > { %p32_p1 = scmp.ge.s32.totalorder %s30_s27, 2  ;;  %p290_p2 = scmp.lt.s32.totalorder %s2589_s26, 3 }
   0x5   : > { %s3430_s27 = smov (%p32_p1, %s30_s27), 0  ;;  %p291_p3 = pnand %p2154_p0, %p290_p2 }
   0x6   : > { %v2423_v0 = vld [vmem:[%s3421_s2 + $0x4] ss:$24 sps:$4 sm:$0xff] (!%p291_p3)   ;;  %v2427_v2 = vld [vmem:[%s3421_s2] ss:$24 sps:$4 sm:$0xff] (!%p291_p3)   ;;  %v2429_v4 = vld [vmem:[%s3421_s2 + $0x34] ss:$24 sps:$4 sm:$0xff] (!%p291_p3)  }
   0x7   : > { %294 = sbr.rel (%p291_p3) target bundleno = 380 (0x17c), region = 36  ;;  %v2425_v1 = vld [vmem:[%s3421_s2 + $0xc] ss:$24 sps:$4 sm:$0xff] (!%p291_p3)   ;;  %1190 = vmatprep.subr.bf16.mxu0 (!%p291_p3), %v2423_v0  ;;  %v2428_v3 = vld [vmem:[%s3421_s2 + $0x8] ss:$24 sps:$4 sm:$0xff] (!%p291_p3)   ;;  %p373_p4 = scmp.lt.s32.totalorder (!%p291_p3), %s2581_s24, 1 }
   0x8   : > { %1303 = vmatprep.subr.bf16.mxu1 (!%p291_p3), %v2425_v1  ;;  %1191 = vmatpush1.bf16.msra.mxu0 (!%p291_p3), %v2427_v2  ;;  %v2431_v5 = vld [vmem:[%s3421_s2 + $0x3c] ss:$24 sps:$4 sm:$0xff] (!%p291_p3)   ;;  %v2433_v6 = vld [vmem:[%s3421_s2 + $0x30] ss:$24 sps:$4 sm:$0xff] (!%p291_p3)   ;;  %v2437_v9 = vld [vmem:[%s3421_s2 + $0x6c] ss:$24 sps:$4 sm:$0xff] (!%p291_p3)  }
   0x9   : > { %1304 = vmatpush1.bf16.msra.mxu1 (!%p291_p3), %v2428_v3  ;;  %1192 = vmatprep.subr.bf16.mxu0 (!%p291_p3), %v2429_v4  ;;  %v2434_v7 = vld [vmem:[%s3421_s2 + $0x38] ss:$24 sps:$4 sm:$0xff] (!%p291_p3)   ;;  %v2435_v8 = vld [vmem:[%s3421_s2 + $0x64] ss:$24 sps:$4 sm:$0xff] (!%p291_p3)   ;;  %v2440_v11 = vld [vmem:[%s3421_s2 + $0x68] ss:$24 sps:$4 sm:$0xff] (!%p291_p3)  }
   0xa   : > { %1305 = vmatprep.subr.bf16.mxu1 (!%p291_p3), %v2431_v5  ;;  %v2439_v10 = vld [vmem:[%s3421_s2 + $0x60] ss:$24 sps:$4 sm:$0xff] (!%p291_p3)   ;;  %v2441_v12 = vld [vmem:[%s3421_s2 + $0x94] ss:$24 sps:$4 sm:$0xff] (!%p291_p3)   ;;  %v2445_v14 = vld [vmem:[%s3421_s2 + $0x90] ss:$24 sps:$4 sm:$0xff] (!%p291_p3)  }
   0xb   : > { %v2443_v13 = vld [vmem:[%s3421_s2 + $0x9c] ss:$24 sps:$4 sm:$0xff] (!%p291_p3)   ;;  %v2446_v15 = vld [vmem:[%s3421_s2 + $0x98] ss:$24 sps:$4 sm:$0xff] (!%p291_p3)   ;;  %v2449_v17 = vld [vmem:[%s3421_s2 + $0xcc] ss:$24 sps:$4 sm:$0xff] (!%p291_p3)  }
   0xc   : > { %1193 = vmatpush1.bf16.msra.mxu0 (!%p291_p3), %v2433_v6  ;;  %v2447_v16 = vld [vmem:[%s3421_s2 + $0xc4] ss:$24 sps:$4 sm:$0xff] (!%p291_p3)   ;;  %v2451_v18 = vld [vmem:[%s3421_s2 + $0xc0] ss:$24 sps:$4 sm:$0xff] (!%p291_p3)   ;;  %v2453_v20 = vld [vmem:[%s3421_s2 + $0xf4] ss:$24 sps:$4 sm:$0xff] (!%p291_p3)  }
   0xd   : > { %1306 = vmatpush1.bf16.msra.mxu1 (!%p291_p3), %v2434_v7  ;;  %1194 = vmatprep.subr.bf16.mxu0 (!%p291_p3), %v2435_v8  ;;  %v2452_v19 = vld [vmem:[%s3421_s2 + $0xc8] ss:$24 sps:$4 sm:$0xff] (!%p291_p3)   ;;  %v2455_v21 = vld [vmem:[%s3421_s2 + $0xfc] ss:$24 sps:$4 sm:$0xff] (!%p291_p3)   ;;  %v2458_v23 = vld [vmem:[%s3421_s2 + $0xf8] ss:$24 sps:$4 sm:$0xff] (!%p291_p3)  }
   0xe   : > { %1307 = vmatprep.subr.bf16.mxu1 %v2437_v9  ;;  %v2457_v22 = vld [vmem:[%s3421_s2 + $0xf0] ss:$24 sps:$4 sm:$0xff]   ;;  %v2459_v24 = vld [vmem:[%s3421_s2 + $0x124] ss:$24 sps:$4 sm:$0xff]   ;;  %v2463_v26 = vld [vmem:[%s3421_s2 + $0x120] ss:$24 sps:$4 sm:$0xff]  }
   0xf   : > { %v2461_v25 = vld [vmem:[%s3421_s2 + $0x12c] ss:$24 sps:$4 sm:$0xff]   ;;  %v2464_v27 = vld [vmem:[%s3421_s2 + $0x128] ss:$24 sps:$4 sm:$0xff]   ;;  %v2467_v29 = vld [vmem:[%s3421_s2 + $0x15c] ss:$24 sps:$4 sm:$0xff]  }
  0x10   : > { %1195 = vmatpush1.bf16.msra.mxu0 %v2439_v10  ;;  %v2465_v28 = vld [vmem:[%s3421_s2 + $0x154] ss:$24 sps:$4 sm:$0xff]   ;;  %v2469_v30 = vld [vmem:[%s3421_s2 + $0x150] ss:$24 sps:$4 sm:$0xff]   ;;  %v2471_v32 = vld [vmem:[%s3421_s2 + $0x184] ss:$24 sps:$4 sm:$0xff]  }
  0x11   : > { %1308 = vmatpush1.bf16.msra.mxu1 %v2440_v11  ;;  %1196 = vmatprep.subr.bf16.mxu0 %v2441_v12  ;;  %v2470_v31 = vld [vmem:[%s3421_s2 + $0x158] ss:$24 sps:$4 sm:$0xff]   ;;  %v2473_v33 = vld [vmem:[%s3421_s2 + $0x18c] ss:$24 sps:$4 sm:$0xff]   ;;  %v2476_v35 = vld [vmem:[%s3421_s2 + $0x188] ss:$24 sps:$4 sm:$0xff]  }
  0x12   : > { %1309 = vmatprep.subr.bf16.mxu1 %v2443_v13  ;;  %v2475_v34 = vld [vmem:[%s3421_s2 + $0x180] ss:$24 sps:$4 sm:$0xff]   ;;  %v2477_v36 = vld [vmem:[%s3421_s2 + $0x1b4] ss:$24 sps:$4 sm:$0xff]   ;;  %s3432_s24 = smov (!%p373_p4, %s2581_s24), 1 }
  0x13   : > { %v2479_v37 = vld [vmem:[%s3421_s2 + $0x1bc] ss:$24 sps:$4 sm:$0xff]   ;;  %v2481_v38 = vld [vmem:[%s3421_s2 + $0x1b0] ss:$24 sps:$4 sm:$0xff]   ;;  %s2313_s11 = sshll.u32 %s3432_s24, 8  ;;  %s3246_s9 = sshll.u32 %s3432_s24, 7 }
  0x14   : > { %1197 = vmatpush1.bf16.msra.mxu0 %v2445_v14  ;;  %v2482_v39 = vld [vmem:[%s3421_s2 + $0x1b8] ss:$24 sps:$4 sm:$0xff]   ;;  %v2483_v40 = vld [vmem:[%s3421_s2 + $0x1e4] ss:$24 sps:$4 sm:$0xff]   ;;  %v2488_v43 = vld [vmem:[%s3421_s2 + $0x1e8] ss:$24 sps:$4 sm:$0xff]   ;;  %s2791_s20 = scalar_lea.vmem %s3419_s0, %s2313_s11  ;;  %s2799_s29 = scalar_lea.vmem %s3420_s1, %s2313_s11 }
  0x15   : > { %1310 = vmatpush1.bf16.msra.mxu1 %v2446_v15  ;;  %1198 = vmatprep.subr.bf16.mxu0 %v2447_v16  ;;  %v2485_v41 = vld [vmem:[%s3421_s2 + $0x1ec] ss:$24 sps:$4 sm:$0xff]   ;;  %v2487_v42 = vld [vmem:[%s3421_s2 + $0x1e0] ss:$24 sps:$4 sm:$0xff]   ;;  %v2491_v45 = vld [vmem:[%s3421_s2 + $0x21c] ss:$24 sps:$4 sm:$0xff]   ;;  %s2820_s21 = scalar_lea.vmem %s3423_s4, %s2313_s11  ;;  %s3256_s12 = scalar_lea.vmem %s3424_s5, %s3246_s9 }
  0x16   : > { %1311 = vmatprep.subr.bf16.mxu1 %v2449_v17  ;;  %v2489_v44 = vld [vmem:[%s3421_s2 + $0x214] ss:$24 sps:$4 sm:$0xff]   ;;  %v2493_v46 = vld [vmem:[%s3421_s2 + $0x210] ss:$24 sps:$4 sm:$0xff]   ;;  %v2495_v49 = vld [vmem:[%s3421_s2 + $0x244] ss:$24 sps:$4 sm:$0xff]   ;;  %s3262_s14 = scalar_lea.vmem %s3425_s6, %s3246_s9  ;;  %s3364_s17 = scalar_lea.vmem %s3426_s7, %s3246_s9 }
  0x17   : > { %v2494_v47 = vld [vmem:[%s3421_s2 + $0x218] ss:$24 sps:$4 sm:$0xff]   ;;  %v439_v48 = vld [vmem:[%s2791_s20 + $0x8] sm:$0xff]  ;;  %v438_v56 = vld [vmem:[%s2791_s20] sm:$0xff] }
  0x18   : > { %1199 = vmatpush1.bf16.msra.mxu0 %v2451_v18  ;;  %v2497_v50 = vld [vmem:[%s3421_s2 + $0x24c] ss:$24 sps:$4 sm:$0xff]   ;;  %v441_v51 = vld [vmem:[%s2791_s20 + $0x18] sm:$0xff]  ;;  %v440_v57 = vld [vmem:[%s2791_s20 + $0x10] sm:$0xff] }
  0x19   : > { %1312 = vmatpush1.bf16.msra.mxu1 %v2452_v19  ;;  %1200 = vmatprep.subr.bf16.mxu0 %v2453_v20  ;;  %v471_v52 = vld [vmem:[%s2799_s29 + $0x8] sm:$0xff]  ;;  %v473_v53 = vld [vmem:[%s2799_s29 + $0x18] sm:$0xff]  ;;  %v470_v58 = vld [vmem:[%s2799_s29] sm:$0xff] }
  0x1a   : > { %1313 = vmatprep.subr.bf16.mxu1 %v2455_v21  ;;  %v503_v54 = vadd.f32 %v471_v52, %v439_v48  ;;  %v505_v55 = vadd.f32 %v473_v53, %v441_v51  ;;  %v472_v59 = vld [vmem:[%s2799_s29 + $0x10] sm:$0xff]  ;;  %v2829_v60 = vadd.f32 %v470_v58, %v438_v56  ;;  %v2499_v61 = vld [vmem:[%s3421_s2 + $0x240] ss:$24 sps:$4 sm:$0xff]   ;;  %v443_v3 = vld [vmem:[%s2791_s20 + $0x28] sm:$0xff] }
  0x1b   : > { %v2500_v62 = vld [vmem:[%s3421_s2 + $0x248] ss:$24 sps:$4 sm:$0xff]   ;;  %v2841_v0 = vadd.f32 %v472_v59, %v440_v57  ;;  %v2501_v1 = vld [vmem:[%s3421_s2 + $0x274] ss:$24 sps:$4 sm:$0xff]   ;;  %v445_v4 = vld [vmem:[%s2791_s20 + $0x38] sm:$0xff] }
  0x1c   : > { %1201 = vmatpush1.bf16.msra.mxu0 %v2457_v22  ;;  %535 = vst [vmem:[%s2820_s21 + $0x8] sm:$0xff] %v503_v54  ;;  %537 = vst [vmem:[%s2820_s21 + $0x18] sm:$0xff] %v505_v55  ;;  %v2839_v63 = vpack.c.bf16 %v505_v55, %v503_v54  ;;  %v2503_v2 = vld [vmem:[%s3421_s2 + $0x27c] ss:$24 sps:$4 sm:$0xff]   ;;  %v475_v5 = vld [vmem:[%s2799_s29 + $0x28] sm:$0xff] }
  0x1d   : > { %1314 = vmatpush1.bf16.msra.mxu1 %v2458_v23  ;;  %1202 = vmatprep.subr.bf16.mxu0 %v2459_v24  ;;  %534 = vst [vmem:[%s2820_s21] sm:$0xff] %v2829_v60  ;;  %536 = vst [vmem:[%s2820_s21 + $0x10] sm:$0xff] %v2841_v0  ;;  %v477_v6 = vld [vmem:[%s2799_s29 + $0x38] sm:$0xff]  ;;  %v2857_v7 = vadd.f32 %v475_v5, %v443_v3  ;;  %v442_v8 = vld [vmem:[%s2791_s20 + $0x20] sm:$0xff] }
  0x1e   : > { %1315 = vmatprep.subr.bf16.mxu1 %v2461_v25  ;;  %v444_v9 = vld [vmem:[%s2791_s20 + $0x30] sm:$0xff]  ;;  %1222 = vmatprep.mubr.bf16.mxu0 %v2839_v63  ;;  %v2863_v10 = vadd.f32 %v477_v6, %v445_v4  ;;  %v474_v11 = vld [vmem:[%s2799_s29 + $0x20] sm:$0xff]  ;;  %v447_v19 = vld [vmem:[%s2791_s20 + $0x48] sm:$0xff] }
  0x1f   : > { %1335 = vmatprep.mubr.bf16.mxu1 %v2839_v63  ;;  %v476_v12 = vld [vmem:[%s2799_s29 + $0x30] sm:$0xff]  ;;  %539 = vst [vmem:[%s2820_s21 + $0x28] sm:$0xff] %v2857_v7  ;;  %v2875_v15 = vadd.f32 %v474_v11, %v442_v8  ;;  %v2507_v17 = vld [vmem:[%s3421_s2 + $0x2a4] ss:$24 sps:$4 sm:$0xff]   ;;  %v2511_v21 = vld [vmem:[%s3421_s2 + $0x2a0] ss:$24 sps:$4 sm:$0xff]  }
  0x20   : > { %1203 = vmatpush1.bf16.msra.mxu0 %v2463_v26  ;;  %v2505_v13 = vld [vmem:[%s3421_s2 + $0x270] ss:$24 sps:$4 sm:$0xff]   ;;  %v2877_v16 = vadd.f32 %v476_v12, %v444_v9  ;;  %541 = vst [vmem:[%s2820_s21 + $0x38] sm:$0xff] %v2863_v10  ;;  %v2509_v18 = vld [vmem:[%s3421_s2 + $0x2ac] ss:$24 sps:$4 sm:$0xff]   ;;  %v449_v20 = vld [vmem:[%s2791_s20 + $0x58] sm:$0xff] }
  0x21   : > { %1316 = vmatpush1.bf16.msra.mxu1 %v2464_v27  ;;  %1204 = vmatprep.subr.bf16.mxu0 %v2465_v28  ;;  %v2506_v14 = vld [vmem:[%s3421_s2 + $0x278] ss:$24 sps:$4 sm:$0xff]   ;;  %538 = vst [vmem:[%s2820_s21 + $0x20] sm:$0xff] %v2875_v15  ;;  %v2512_v22 = vld [vmem:[%s3421_s2 + $0x2a8] ss:$24 sps:$4 sm:$0xff]  }
  0x22   : > { %1317 = vmatprep.subr.bf16.mxu1 %v2467_v29  ;;  %540 = vst [vmem:[%s2820_s21 + $0x30] sm:$0xff] %v2877_v16  ;;  %v479_v23 = vld [vmem:[%s2799_s29 + $0x48] sm:$0xff]  ;;  %v481_v24 = vld [vmem:[%s2799_s29 + $0x58] sm:$0xff]  ;;  %v446_v25 = vld [vmem:[%s2791_s20 + $0x40] sm:$0xff] }
  0x23   : > { %v2902_v26 = vadd.f32 %v479_v23, %v447_v19  ;;  %v2904_v27 = vadd.f32 %v481_v24, %v449_v20  ;;  %v448_v28 = vld [vmem:[%s2791_s20 + $0x50] sm:$0xff]  ;;  %v478_v29 = vld [vmem:[%s2799_s29 + $0x40] sm:$0xff]  ;;  %v455_v53 = vld [vmem:[%s2791_s20 + $0x88] sm:$0xff] }
  0x24   : > { %1205 = vmatpush1.bf16.msra.mxu0 %v2469_v30  ;;  %v480_v30 = vld [vmem:[%s2799_s29 + $0x50] sm:$0xff]  ;;  %v2524_v52 = vld [vmem:[%s3421_s2 + $0x44] ss:$24 sps:$4 sm:$0xff]   ;;  %v487_v55 = vld [vmem:[%s2799_s29 + $0x88] sm:$0xff] }
  0x25   : > { %1318 = vmatpush1.bf16.msra.mxu1 %v2470_v31  ;;  %1206 = vmatprep.subr.bf16.mxu0 %v2471_v32  ;;  %v2513_v31 = vld [vmem:[%s3421_s2 + $0x2d4] ss:$24 sps:$4 sm:$0xff]   ;;  %v2912_v32 = vadd.f32 %v478_v29, %v446_v25  ;;  %543 = vst [vmem:[%s2820_s21 + $0x48] sm:$0xff] %v2902_v26  ;;  %545 = vst [vmem:[%s2820_s21 + $0x58] sm:$0xff] %v2904_v27  ;;  %v2519_v51 = vld [vmem:[%s3421_s2 + $0x10] ss:$24 sps:$4 sm:$0xff]   ;;  %v2974_v57 = vadd.f32 %v487_v55, %v455_v53 }
  0x26   : > { %1319 = vmatprep.subr.bf16.mxu1 %v2473_v33  ;;  %v2914_v33 = vadd.f32 %v480_v30, %v448_v28  ;;  %v457_v54 = vld [vmem:[%s2791_s20 + $0x98] sm:$0xff]  ;;  %v454_v58 = vld [vmem:[%s2791_s20 + $0x80] sm:$0xff]  ;;  %v456_v59 = vld [vmem:[%s2791_s20 + $0x90] sm:$0xff] }
  0x27   : > { %542 = vst [vmem:[%s2820_s21 + $0x40] sm:$0xff] %v2912_v32  ;;  %v489_v56 = vld [vmem:[%s2799_s29 + $0x98] sm:$0xff]  ;;  %551 = vst [vmem:[%s2820_s21 + $0x88] sm:$0xff] %v2974_v57  ;;  %v2527_v4 = vld [vmem:[%s3421_s2 + $0x74] ss:$24 sps:$4 sm:$0xff]  }
  0x28   : > { %1207 = vmatpush1.bf16.msra.mxu0 %v2475_v34  ;;  %v2515_v34 = vld [vmem:[%s3421_s2 + $0x2dc] ss:$24 sps:$4 sm:$0xff]   ;;  %544 = vst [vmem:[%s2820_s21 + $0x50] sm:$0xff] %v2914_v33  ;;  %v2522_v3 = vld [vmem:[%s3421_s2 + $0x40] ss:$24 sps:$4 sm:$0xff]   ;;  %v459_v5 = vld [vmem:[%s2791_s20 + $0xa8] sm:$0xff] }
  0x29   : > { %1320 = vmatpush1.bf16.msra.mxu1 %v2476_v35  ;;  %1208 = vmatprep.subr.bf16.mxu0 %v2477_v36  ;;  %v2517_v35 = vld [vmem:[%s3421_s2 + $0x2d0] ss:$24 sps:$4 sm:$0xff]   ;;  %v461_v6 = vld [vmem:[%s2791_s20 + $0xb8] sm:$0xff]  ;;  %v458_v9 = vld [vmem:[%s2791_s20 + $0xa0] sm:$0xff] }
  0x2a   : > { %1321 = vmatprep.subr.bf16.mxu1 %v2479_v37  ;;  %v2518_v36 = vld [vmem:[%s3421_s2 + $0x2d8] ss:$24 sps:$4 sm:$0xff]   ;;  %v451_v37 = vld [vmem:[%s2791_s20 + $0x68] sm:$0xff]  ;;  %v462_v29 = vld [vmem:[%s2791_s20 + $0xc0] sm:$0xff] }
  0x2b   : > { %v493_v8 = vld [vmem:[%s2799_s29 + $0xb8] sm:$0xff]  ;;  %v2533_v23 = vld [vmem:[%s3421_s2 + $0xd4] ss:$24 sps:$4 sm:$0xff]  }
  0x2c   : > { %1209 = vmatpush1.bf16.msra.mxu0 %v2481_v38  ;;  %v2521_v38 = vld [vmem:[%s3421_s2 + $0x14] ss:$24 sps:$4 sm:$0xff]   ;;  %v3019_v12 = vadd.f32 %v493_v8, %v461_v6  ;;  %v2528_v20 = vld [vmem:[%s3421_s2 + $0xa0] ss:$24 sps:$4 sm:$0xff]   ;;  %v2554_v6 = vld [vmem:[%s3421_s2 + $0x224] ss:$24 sps:$4 sm:$0xff]  }
  0x2d   : > { %1322 = vmatpush1.bf16.msra.mxu1 %v2482_v39  ;;  %1210 = vmatprep.subr.bf16.mxu0 %v2483_v40  ;;  %v453_v39 = vld [vmem:[%s2791_s20 + $0x78] sm:$0xff]  ;;  %v483_v40 = vld [vmem:[%s2799_s29 + $0x68] sm:$0xff]  ;;  %v464_v30 = vld [vmem:[%s2791_s20 + $0xd0] sm:$0xff] }
  0x2e   : > { %1323 = vmatprep.subr.bf16.mxu1 %v2485_v41  ;;  %v485_v41 = vld [vmem:[%s2799_s29 + $0x78] sm:$0xff]  ;;  %557 = vst [vmem:[%s2820_s21 + $0xb8] sm:$0xff] %v3019_v12  ;;  %v495_v25 = vld [vmem:[%s2799_s29 + $0xc8] sm:$0xff]  ;;  %v500_v53 = vld [vmem:[%s2799_s29 + $0xf0] sm:$0xff] }
  0x2f   : > { %v465_v24 = vld [vmem:[%s2791_s20 + $0xd8] sm:$0xff] }
  0x30   : > { %1211 = vmatpush1.bf16.msra.mxu0 %v2487_v42  ;;  %v2940_v42 = vadd.f32 %v483_v40, %v451_v37  ;;  %v3078_v37 = vpack.c.bf16 %v2914_v33, %v2912_v32  ;;  %v467_v40 = vld [vmem:[%s2791_s20 + $0xe8] sm:$0xff]  ;;  %v469_v32 = vld [vmem:[%s2791_s20 + $0xf8] sm:$0xff] }
  0x31   : > { %1324 = vmatpush1.bf16.msra.mxu1 %v2488_v43  ;;  %1212 = vmatprep.subr.bf16.mxu0 %v2489_v44  ;;  %v2942_v43 = vadd.f32 %v485_v41, %v453_v39  ;;  %v450_v44 = vld [vmem:[%s2791_s20 + $0x60] sm:$0xff]  ;;  %v499_v33 = vld [vmem:[%s2799_s29 + $0xe8] sm:$0xff]  ;;  %v501_v41 = vld [vmem:[%s2799_s29 + $0xf8] sm:$0xff] }
  0x32   : > { %1325 = vmatprep.subr.bf16.mxu1 %v2491_v45  ;;  %v452_v45 = vld [vmem:[%s2791_s20 + $0x70] sm:$0xff]  ;;  %547 = vst [vmem:[%s2820_s21 + $0x68] sm:$0xff] %v2940_v42  ;;  %v2536_v39 = vld [vmem:[%s3421_s2 + $0x104] ss:$24 sps:$4 sm:$0xff]   ;;  %v2552_v8 = vld [vmem:[%s3421_s2 + $0x220] ss:$24 sps:$4 sm:$0xff]  }
  0x33   : > { %549 = vst [vmem:[%s2820_s21 + $0x78] sm:$0xff] %v2942_v43 }
  0x34   : > { %1213 = vmatpush1.bf16.msra.mxu0 %v2493_v46  ;;  %v482_v46 = vld [vmem:[%s2799_s29 + $0x60] sm:$0xff] }
  0x35   : > { %1326 = vmatpush1.bf16.msra.mxu1 %v2494_v47  ;;  %1214 = vmatprep.subr.bf16.mxu0 %v2495_v49  ;;  %v484_v47 = vld [vmem:[%s2799_s29 + $0x70] sm:$0xff]  ;;  %v2948_v48 = vadd.f32 %v482_v46, %v450_v44  ;;  %v3094_v44 = vadd.f32 %v499_v33, %v467_v40 }
  0x36   : > { %1327 = vmatprep.subr.bf16.mxu1 %v2497_v50  ;;  %v2954_v49 = vadd.f32 %v484_v47, %v452_v45  ;;  %v2958_v50 = vpack.c.bf16 %v2841_v0, %v2829_v60  ;;  %v2980_v60 = vpack.c.bf16 %v2863_v10, %v2857_v7  ;;  %v488_v0 = vld [vmem:[%s2799_s29 + $0x90] sm:$0xff]  ;;  %v491_v7 = vld [vmem:[%s2799_s29 + $0xa8] sm:$0xff]  ;;  %v3015_v10 = vpack.c.bf16 %v2877_v16, %v2875_v15  ;;  %v2530_v16 = vld [vmem:[%s3421_s2 + $0xa4] ss:$24 sps:$4 sm:$0xff]  }
  0x37   : > { %546 = vst [vmem:[%s2820_s21 + $0x60] sm:$0xff] %v2948_v48  ;;  %v3017_v11 = vadd.f32 %v491_v7, %v459_v5  ;;  %v466_v45 = vld [vmem:[%s2791_s20 + $0xe0] sm:$0xff]  ;;  %v468_v46 = vld [vmem:[%s2791_s20 + $0xf0] sm:$0xff]  ;;  %v3100_v47 = vpack.c.bf16 %v2942_v43, %v2940_v42  ;;  %563 = vst [vmem:[%s2820_s21 + $0xe8] sm:$0xff] %v3094_v44 }
  0x38   : > { %1215 = vmatpush1.bf16.msra.mxu0 %v2499_v61  ;;  %548 = vst [vmem:[%s2820_s21 + $0x70] sm:$0xff] %v2954_v49  ;;  %v2982_v61 = vadd.f32 %v489_v56, %v457_v54  ;;  %v3112_v55 = vadd.f32 %v500_v53, %v468_v46  ;;  %v2534_v42 = vld [vmem:[%s3421_s2 + $0x100] ss:$24 sps:$4 sm:$0xff]   ;;  %v2539_v43 = vld [vmem:[%s3421_s2 + $0x134] ss:$24 sps:$4 sm:$0xff]   ;;  %v3130_v56 = vpack.c.bf16 %v2954_v49, %v2948_v48 }
  0x39   : > { %1328 = vmatpush1.bf16.msra.mxu1 %v2500_v62  ;;  %1216 = vmatprep.subr.bf16.mxu0 %v2501_v1  ;;  %v486_v62 = vld [vmem:[%s2799_s29 + $0x80] sm:$0xff]  ;;  %555 = vst [vmem:[%s2820_s21 + $0xa8] sm:$0xff] %v3017_v11  ;;  %v2545_v49 = vld [vmem:[%s3421_s2 + $0x194] ss:$24 sps:$4 sm:$0xff]   ;;  %v2549_v5 = vld [vmem:[%s3421_s2 + $0x1f0] ss:$24 sps:$4 sm:$0xff]  }
  0x3a   : > { %1329 = vmatprep.subr.bf16.mxu1 %v2503_v2  ;;  %v2990_v1 = vadd.f32 %v486_v62, %v454_v58  ;;  %v2992_v2 = vadd.f32 %v488_v0, %v456_v59  ;;  %553 = vst [vmem:[%s2820_s21 + $0x98] sm:$0xff] %v2982_v61  ;;  %564 = vst [vmem:[%s2820_s21 + $0xf0] sm:$0xff] %v3112_v55  ;;  %v2537_v58 = vld [vmem:[%s3421_s2 + $0x130] ss:$24 sps:$4 sm:$0xff]   ;;  %v2542_v59 = vld [vmem:[%s3421_s2 + $0x164] ss:$24 sps:$4 sm:$0xff]   ;;  %v3140_v62 = vpack.c.bf16 %v2982_v61, %v2974_v57 }
  0x3b   : > { %v2540_v48 = vld [vmem:[%s3421_s2 + $0x160] ss:$24 sps:$4 sm:$0xff]   ;;  %v2543_v61 = vld [vmem:[%s3421_s2 + $0x190] ss:$24 sps:$4 sm:$0xff]   ;;  %v2548_v0 = vld [vmem:[%s3421_s2 + $0x1c4] ss:$24 sps:$4 sm:$0xff]  }
  0x3c   : > { %1217 = vmatpush1.bf16.msra.mxu0 %v2505_v13  ;;  %550 = vst [vmem:[%s2820_s21 + $0x80] sm:$0xff] %v2990_v1  ;;  %552 = vst [vmem:[%s2820_s21 + $0x90] sm:$0xff] %v2992_v2  ;;  %v460_v13 = vld [vmem:[%s2791_s20 + $0xb0] sm:$0xff]  ;;  %v3154_v57 = vpack.c.bf16 %v2992_v2, %v2990_v1  ;;  %v2546_v1 = vld [vmem:[%s3421_s2 + $0x1c0] ss:$24 sps:$4 sm:$0xff]  }
  0x3d   : > { %1330 = vmatpush1.bf16.msra.mxu1 %v2506_v14  ;;  %1218 = vmatprep.subr.bf16.mxu0 %v2507_v17  ;;  %v490_v14 = vld [vmem:[%s2799_s29 + $0xa0] sm:$0xff]  ;;  %v492_v17 = vld [vmem:[%s2799_s29 + $0xb0] sm:$0xff] }
  0x3e   : > { %1331 = vmatprep.subr.bf16.mxu1 %v2509_v18  ;;  %v2525_v18 = vld [vmem:[%s3421_s2 + $0x70] ss:$24 sps:$4 sm:$0xff]   ;;  %v3027_v19 = vadd.f32 %v490_v14, %v458_v9  ;;  %v3029_v15 = vadd.f32 %v492_v17, %v460_v13  ;;  %v2551_v2 = vld [vmem:[%s3421_s2 + $0x1f4] ss:$24 sps:$4 sm:$0xff]   ;;  %v2560_v13 = vld [vmem:[%s3421_s2 + $0x284] ss:$24 sps:$4 sm:$0xff]  }
  0x3f   : > { %v2557_v9 = vld [vmem:[%s3421_s2 + $0x254] ss:$24 sps:$4 sm:$0xff]   ;;  %v2558_v17 = vld [vmem:[%s3421_s2 + $0x280] ss:$24 sps:$4 sm:$0xff]  }
  0x40   : > { %1219 = vmatpush1.bf16.msra.mxu0 %v2511_v21  ;;  %v3043_v21 = vpack.c.bf16 %v2904_v27, %v2902_v26  ;;  %554 = vst [vmem:[%s2820_s21 + $0xa0] sm:$0xff] %v3027_v19  ;;  %556 = vst [vmem:[%s2820_s21 + $0xb0] sm:$0xff] %v3029_v15  ;;  %v497_v26 = vld [vmem:[%s2799_s29 + $0xd8] sm:$0xff] }
  0x41   : > { %1332 = vmatpush1.bf16.msra.mxu1 %v2512_v22  ;;  %1220 = vmatprep.subr.bf16.mxu0 %v2513_v31  ;;  %v463_v22 = vld [vmem:[%s2791_s20 + $0xc8] sm:$0xff]  ;;  %v3060_v28 = vadd.f32 %v497_v26, %v465_v24  ;;  %v494_v31 = vld [vmem:[%s2799_s29 + $0xc0] sm:$0xff] }
  0x42   : > { %1333 = vmatprep.subr.bf16.mxu1 %v2515_v34  ;;  %v3058_v27 = vadd.f32 %v495_v25, %v463_v22  ;;  %v496_v34 = vld [vmem:[%s2799_s29 + $0xd0] sm:$0xff] }
  0x43   : > { %561 = vst [vmem:[%s2820_s21 + $0xd8] sm:$0xff] %v3060_v28 }
  0x44   : > { %1221 = vmatpush1.bf16.msra.mxu0 %v2517_v35  ;;  %v3066_v35 = vadd.f32 %v494_v31, %v462_v29  ;;  %559 = vst [vmem:[%s2820_s21 + $0xc8] sm:$0xff] %v3058_v27  ;;  %v579_v7 = vpack.c.bf16 %v3060_v28, %v3058_v27 }
  0x45   : > { %1334 = vmatpush1.bf16.msra.mxu1 %v2518_v36  ;;  %1416 = vmatprep.subr.bf16.mxu0 %v2521_v38  ;;  %v3074_v36 = vadd.f32 %v496_v34, %v464_v30 }
  0x46   : > { %2367 = vmatprep.subr.bf16.mxu1 %v2521_v38  ;;  %v2531_v38 = vld [vmem:[%s3421_s2 + $0xd0] ss:$24 sps:$4 sm:$0xff]   ;;  %558 = vst [vmem:[%s2820_s21 + $0xc0] sm:$0xff] %v3066_v35 }
  0x47   : > { %1223 = vmatmul.mubr.bf16.vlgmr.msra.gmra.mrb[0].mxu0 %v2958_v50  ;;  %560 = vst [vmem:[%s2820_s21 + $0xd0] sm:$0xff] %v3074_v36 }
  0x48   : > { %1336 = vmatmul.mubr.bf16.vlgmr.msra.gmra.mrb[0].mxu1 %v2958_v50  ;;  %1417 = vmatpush1.bf16.msra.mxu0 %v2519_v51 }
  0x49   : > { %2383 = vmatpush1.bf16.msra.mxu1 %v2519_v51  ;;  %1418 = vmatprep.subr.bf16.mxu0 %v2524_v52  ;;  %v3102_v51 = vadd.f32 %v501_v41, %v469_v32 }
  0x4a   : > { %2368 = vmatprep.subr.bf16.mxu1 %v2524_v52  ;;  %1232 = vmatprep.mubr.bf16.mxu0 %v2980_v60  ;;  %v498_v52 = vld [vmem:[%s2799_s29 + $0xe0] sm:$0xff] }
  0x4b   : > { %1345 = vmatprep.mubr.bf16.mxu1 %v2980_v60  ;;  %v3110_v54 = vadd.f32 %v498_v52, %v466_v45  ;;  %565 = vst [vmem:[%s2820_s21 + $0xf8] sm:$0xff] %v3102_v51  ;;  %v581_v14 = vpack.c.bf16 %v3102_v51, %v3094_v44 }
  0x4c   : > { %1419 = vmatpush1.bf16.msra.mxu0 %v2522_v3 }
  0x4d   : > { %2384 = vmatpush1.bf16.msra.mxu1 %v2522_v3  ;;  %1420 = vmatprep.subr.bf16.mxu0 %v2527_v4  ;;  %562 = vst [vmem:[%s2820_s21 + $0xe0] sm:$0xff] %v3110_v54  ;;  %v3164_v3 = vpack.c.bf16 %v3019_v12, %v3017_v11  ;;  %v578_v11 = vpack.c.bf16 %v3074_v36, %v3066_v35  ;;  %v2555_v12 = vld [vmem:[%s3421_s2 + $0x250] ss:$24 sps:$4 sm:$0xff]  }
  0x4e   : > { %2369 = vmatprep.subr.bf16.mxu1 %v2527_v4  ;;  %v576_v4 = vpack.c.bf16 %v3029_v15, %v3027_v19  ;;  %v580_v19 = vpack.c.bf16 %v3112_v55, %v3110_v54  ;;  %v2561_v15 = vld [vmem:[%s3421_s2 + $0x2b0] ss:$24 sps:$4 sm:$0xff]  }
  0x4f   : > { %1233 = vmatmul.mubr.bf16.gmra.mrb[4].mxu0 %v3015_v10 }
  0x50   : > { %1346 = vmatmul.mubr.bf16.gmra.mrb[4].mxu1 %v3015_v10  ;;  %1421 = vmatpush1.bf16.msra.mxu0 %v2525_v18 }
  0x51   : > { %2385 = vmatpush1.bf16.msra.mxu1 %v2525_v18  ;;  %1422 = vmatprep.subr.bf16.mxu0 %v2530_v16  ;;  %v2563_v18 = vld [vmem:[%s3421_s2 + $0x2b4] ss:$24 sps:$4 sm:$0xff]  }
  0x52   : > { %2370 = vmatprep.subr.bf16.mxu1 %v2530_v16  ;;  %1242 = vmatprep.mubr.bf16.mxu0 %v3043_v21  ;;  %v2566_v16 = vld [vmem:[%s3421_s2 + $0x2e4] ss:$24 sps:$4 sm:$0xff]  }
  0x53   : > { %1355 = vmatprep.mubr.bf16.mxu1 %v3043_v21 }
  0x54   : > { %1423 = vmatpush1.bf16.msra.mxu0 %v2528_v20 }
  0x55   : > { %2386 = vmatpush1.bf16.msra.mxu1 %v2528_v20  ;;  %1424 = vmatprep.subr.bf16.mxu0 %v2533_v23  ;;  %v2564_v20 = vld [vmem:[%s3421_s2 + $0x2e0] ss:$24 sps:$4 sm:$0xff]  }
  0x56   : > { %2371 = vmatprep.subr.bf16.mxu1 %v2533_v23 }
  0x57   : > { %1243 = vmatmul.mubr.bf16.gmra.mrb[8].mxu0 %v3078_v37 }
  0x58   : > { %1356 = vmatmul.mubr.bf16.gmra.mrb[8].mxu1 %v3078_v37  ;;  %1425 = vmatpush1.bf16.msra.mxu0 %v2531_v38 }
  0x59   : > { %2387 = vmatpush1.bf16.msra.mxu1 %v2531_v38  ;;  %1426 = vmatprep.subr.bf16.mxu0 %v2536_v39 }
  0x5a   : > { %2372 = vmatprep.subr.bf16.mxu1 %v2536_v39  ;;  %1252 = vmatprep.mubr.bf16.mxu0 %v3100_v47 }
  0x5b   : > { %1365 = vmatprep.mubr.bf16.mxu1 %v3100_v47 }
  0x5c   : > { %1427 = vmatpush1.bf16.msra.mxu0 %v2534_v42 }
  0x5d   : > { %2388 = vmatpush1.bf16.msra.mxu1 %v2534_v42  ;;  %1428 = vmatprep.subr.bf16.mxu0 %v2539_v43 }
  0x5e   : > { %2373 = vmatprep.subr.bf16.mxu1 %v2539_v43 }
  0x5f   : > { %1253 = vmatmul.mubr.bf16.gmra.mrb[12].mxu0 %v3130_v56 }
  0x60   : > { %1366 = vmatmul.mubr.bf16.gmra.mrb[12].mxu1 %v3130_v56  ;;  %1429 = vmatpush1.bf16.msra.mxu0 %v2537_v58 }
  0x61   : > { %2389 = vmatpush1.bf16.msra.mxu1 %v2537_v58  ;;  %1430 = vmatprep.subr.bf16.mxu0 %v2542_v59 }
  0x62   : > { %2374 = vmatprep.subr.bf16.mxu1 %v2542_v59  ;;  %1262 = vmatprep.mubr.bf16.mxu0 %v3140_v62 }
  0x63   : > { %1375 = vmatprep.mubr.bf16.mxu1 %v3140_v62 }
  0x64   : > { %1431 = vmatpush1.bf16.msra.mxu0 %v2540_v48 }
  0x65   : > { %2390 = vmatpush1.bf16.msra.mxu1 %v2540_v48  ;;  %1432 = vmatprep.subr.bf16.mxu0 %v2545_v49 }
  0x66   : > { %2375 = vmatprep.subr.bf16.mxu1 %v2545_v49 }
  0x67   : > { %1263 = vmatmul.mubr.bf16.gmra.mrb[16].mxu0 %v3154_v57 }
  0x68   : > { %1376 = vmatmul.mubr.bf16.gmra.mrb[16].mxu1 %v3154_v57  ;;  %1433 = vmatpush1.bf16.msra.mxu0 %v2543_v61 }
  0x69   : > { %2391 = vmatpush1.bf16.msra.mxu1 %v2543_v61  ;;  %1434 = vmatprep.subr.bf16.mxu0 %v2548_v0 }
  0x6a   : > { %2376 = vmatprep.subr.bf16.mxu1 %v2548_v0  ;;  %1272 = vmatprep.mubr.bf16.mxu0 %v3164_v3 }
  0x6b   : > { %1385 = vmatprep.mubr.bf16.mxu1 %v3164_v3 }
  0x6c   : > { %1435 = vmatpush1.bf16.msra.mxu0 %v2546_v1 }
  0x6d   : > { %2392 = vmatpush1.bf16.msra.mxu1 %v2546_v1  ;;  %1436 = vmatprep.subr.bf16.mxu0 %v2551_v2 }
  0x6e   : > { %2377 = vmatprep.subr.bf16.mxu1 %v2551_v2 }
  0x6f   : > { %1273 = vmatmul.mubr.bf16.gmra.mrb[20].mxu0 %v576_v4 }
  0x70   : > { %1386 = vmatmul.mubr.bf16.gmra.mrb[20].mxu1 %v576_v4  ;;  %1437 = vmatpush1.bf16.msra.mxu0 %v2549_v5 }
  0x71   : > { %2393 = vmatpush1.bf16.msra.mxu1 %v2549_v5  ;;  %1438 = vmatprep.subr.bf16.mxu0 %v2554_v6 }
  0x72   : > { %2378 = vmatprep.subr.bf16.mxu1 %v2554_v6  ;;  %1282 = vmatprep.mubr.bf16.mxu0 %v579_v7 }
  0x73   : > { %1395 = vmatprep.mubr.bf16.mxu1 %v579_v7 }
  0x74   : > { %1439 = vmatpush1.bf16.msra.mxu0 %v2552_v8 }
  0x75   : > { %2394 = vmatpush1.bf16.msra.mxu1 %v2552_v8  ;;  %1440 = vmatprep.subr.bf16.mxu0 %v2557_v9 }
  0x76   : > { %2379 = vmatprep.subr.bf16.mxu1 %v2557_v9 }
  0x77   : > { %1283 = vmatmul.mubr.bf16.gmra.mrb[24].mxu0 %v578_v11 }
  0x78   : > { %1396 = vmatmul.mubr.bf16.gmra.mrb[24].mxu1 %v578_v11  ;;  %1441 = vmatpush1.bf16.msra.mxu0 %v2555_v12 }
  0x79   : > { %2395 = vmatpush1.bf16.msra.mxu1 %v2555_v12  ;;  %1442 = vmatprep.subr.bf16.mxu0 %v2560_v13 }
  0x7a   : > { %2380 = vmatprep.subr.bf16.mxu1 %v2560_v13  ;;  %1292 = vmatprep.mubr.bf16.mxu0 %v581_v14 }
  0x7b   : > { %1405 = vmatprep.mubr.bf16.mxu1 %v581_v14 }
  0x7c   : > { %1443 = vmatpush1.bf16.msra.mxu0 %v2558_v17 }
  0x7d   : > { %2396 = vmatpush1.bf16.msra.mxu1 %v2558_v17  ;;  %1444 = vmatprep.subr.bf16.mxu0 %v2563_v18 }
  0x7e   : > { %2381 = vmatprep.subr.bf16.mxu1 %v2563_v18 }
  0x7f   : > { %1293 = vmatmul.mubr.bf16.gmra.mrb[28].mxu0 %v580_v19 }
  0x80   : > { %1406 = vmatmul.mubr.bf16.gmra.mrb[28].mxu1 %v580_v19  ;;  %1445 = vmatpush1.bf16.msra.mxu0 %v2561_v15 }
  0x81   : > { %2397 = vmatpush1.bf16.msra.mxu1 %v2561_v15  ;;  %1446 = vmatprep.subr.bf16.mxu0 %v2566_v16 }
  0x82   : > { %2382 = vmatprep.subr.bf16.mxu1 %v2566_v16  ;;  %1448 = vmatprep.mubr.bf16.mxu0 %v2839_v63  ;;  %v680_v63 = vlaneseq }
  0x83   : > { %1488 = vmatprep.mubr.bf16.mxu1 %v3140_v62 }
  0x84   : > { %1447 = vmatpush1.bf16.msra.mxu0 %v2564_v20 }
  0x85   : > { %2398 = vmatpush1.bf16.msra.mxu1 %v2564_v20 }
  0x87   : > { %1449 = vmatmul.mubr.bf16.vlgmr.msra.gmra.mrb[32].mxu0 %v2958_v50  ;;  %v681_v50 = vshrl.u32 %v680_v63, 7 }
  0x88   : > { %1489 = vmatmul.mubr.bf16.vlgmr.msra.gmra.mrb[32].mxu1 %v3154_v57  ;;  %1458 = vmatprep.mubr.bf16.mxu0 %v2980_v60 }
  0x89   : > { %1498 = vmatprep.mubr.bf16.mxu1 %v3164_v3  ;;  %v698_v60 = vsub.s32 4, %v681_v50  ;;  %v702_v22 = vsub.s32 5, %v681_v50  ;;  %v682_v24 = vsub.s32 0, %v681_v50  ;;  %v690_v25 = vsub.s32 2, %v681_v50 }
  0x8a   : > { %v686_v26 = vsub.s32 1, %v681_v50  ;;  %v694_v27 = vsub.s32 3, %v681_v50 }
  0x8f   : > { %1459 = vmatmul.mubr.bf16.gmra.mrb[36].mxu0 %v3015_v10  ;;  %v678_v10 = vld [vmem:[%s3422_s3] sm:$0x3f] }
  0x90   : > { %1499 = vmatmul.mubr.bf16.gmra.mrb[36].mxu1 %v576_v4  ;;  %1468 = vmatprep.mubr.bf16.mxu0 %v3043_v21  ;;  %v3233_v21 = vrot.slane %v678_v10, %v698_v60  ;;  %v3235_v23 = vrot.slane %v678_v10, %v702_v22  ;;  %v3237_v28 = vrot.slane %v678_v10, %v682_v24 }
  0x91   : > { %1508 = vmatprep.mubr.bf16.mxu1 %v579_v7  ;;  %v3239_v29 = vrot.slane %v678_v10, %v690_v25  ;;  %v3241_v30 = vrot.slane %v678_v10, %v686_v26  ;;  %v3243_v31 = vrot.slane %v678_v10, %v694_v27 }
  0x97   : > { %1469 = vmatmul.mubr.bf16.gmra.mrb[40].mxu0 %v3078_v37 }
  0x98   : > { %1509 = vmatmul.mubr.bf16.gmra.mrb[40].mxu1 %v578_v11  ;;  %1478 = vmatprep.mubr.bf16.mxu0 %v3100_v47 }
  0x99   : > { %1518 = vmatprep.mubr.bf16.mxu1 %v581_v14 }
  0x9f   : > { %1479 = vmatmul.mubr.bf16.gmra.mrb[44].mxu0 %v3130_v56 }
  0xa0   : > { %1519 = vmatmul.mubr.bf16.gmra.mrb[44].mxu1 %v580_v19 }
 0x11a   : > { %v1224_v34 = vpop.f32.mrb[0].mxu0 }
 0x11b   : > { %v1337_v35 = vpop.f32.mrb[0].mxu1  ;;  %v1225_v36 = vadd.f32 %v1224_v34, %v3237_v28  ;;  %v1226_v38 = vpop.f32.mrb[1].mxu0 }
 0x11c   : > { %v1338_v37 = vadd.f32 %v1337_v35, %v3239_v29  ;;  %v1339_v39 = vpop.f32.mrb[1].mxu1  ;;  %v1227_v40 = vadd.f32 %v1226_v38, %v3241_v30  ;;  %v1228_v33 = vpop.f32.mrb[2].mxu0 }
 0x11d   : > { %v1340_v32 = vadd.f32 %v1339_v39, %v3243_v31  ;;  %v1341_v41 = vpop.f32.mrb[2].mxu1  ;;  %v1229_v44 = vadd.f32 %v1228_v33, %v3237_v28  ;;  %v1230_v46 = vpop.f32.mrb[3].mxu0 }
 0x11e   : > { %v1342_v45 = vadd.f32 %v1341_v41, %v3239_v29  ;;  %v1343_v47 = vpop.f32.mrb[3].mxu1  ;;  %v2319_v51 = vpack.c.bf16 %v1227_v40, %v1225_v36  ;;  %v1231_v53 = vadd.f32 %v1230_v46, %v3241_v30 }
 0x11f   : > { %v2335_v52 = vpack.c.bf16 %v1340_v32, %v1338_v37  ;;  %v1344_v54 = vadd.f32 %v1343_v47, %v3243_v31 }
 0x120   : > { %1625 = vst [vmem:[%s3256_s12] sm:$0xff] %v2319_v51  ;;  %v2320_v55 = vpack.c.bf16 %v1231_v53, %v1229_v44 }
 0x121   : > { %1737 = vst [vmem:[%s3262_s14] sm:$0xff] %v2335_v52  ;;  %v2336_v42 = vpack.c.bf16 %v1344_v54, %v1342_v45 }
 0x122   : > { %1626 = vst [vmem:[%s3256_s12 + $0x8] sm:$0xff] %v2320_v55  ;;  %v1234_v43 = vpop.f32.mrb[4].mxu0 }
 0x123   : > { %1738 = vst [vmem:[%s3262_s14 + $0x8] sm:$0xff] %v2336_v42  ;;  %v1347_v56 = vpop.f32.mrb[4].mxu1  ;;  %v1235_v58 = vadd.f32 %v1234_v43, %v3237_v28  ;;  %v1236_v62 = vpop.f32.mrb[5].mxu0 }
 0x124   : > { %v1348_v59 = vadd.f32 %v1347_v56, %v3239_v29  ;;  %v1349_v48 = vpop.f32.mrb[5].mxu1  ;;  %v1237_v49 = vadd.f32 %v1236_v62, %v3241_v30  ;;  %v1238_v61 = vpop.f32.mrb[6].mxu0 }
 0x125   : > { %v1350_v57 = vadd.f32 %v1349_v48, %v3243_v31  ;;  %v1351_v0 = vpop.f32.mrb[6].mxu1  ;;  %v1239_v3 = vadd.f32 %v1238_v61, %v3237_v28  ;;  %v1240_v2 = vpop.f32.mrb[7].mxu0 }
 0x126   : > { %v1352_v1 = vadd.f32 %v1351_v0, %v3239_v29  ;;  %v1353_v4 = vpop.f32.mrb[7].mxu1  ;;  %v2321_v5 = vpack.c.bf16 %v1237_v49, %v1235_v58  ;;  %v1241_v7 = vadd.f32 %v1240_v2, %v3241_v30 }
 0x127   : > { %v2337_v6 = vpack.c.bf16 %v1350_v57, %v1348_v59  ;;  %v1354_v8 = vadd.f32 %v1353_v4, %v3243_v31 }
 0x128   : > { %1627 = vst [vmem:[%s3256_s12 + $0x10] sm:$0xff] %v2321_v5  ;;  %v2322_v9 = vpack.c.bf16 %v1241_v7, %v1239_v3 }
 0x129   : > { %1739 = vst [vmem:[%s3262_s14 + $0x10] sm:$0xff] %v2337_v6  ;;  %v2338_v11 = vpack.c.bf16 %v1354_v8, %v1352_v1 }
 0x12a   : > { %1628 = vst [vmem:[%s3256_s12 + $0x18] sm:$0xff] %v2322_v9  ;;  %v1244_v12 = vpop.f32.mrb[8].mxu0 }
 0x12b   : > { %1740 = vst [vmem:[%s3262_s14 + $0x18] sm:$0xff] %v2338_v11  ;;  %v1357_v13 = vpop.f32.mrb[8].mxu1  ;;  %v1245_v14 = vadd.f32 %v1244_v12, %v3237_v28  ;;  %v1246_v18 = vpop.f32.mrb[9].mxu0 }
 0x12c   : > { %v1358_v17 = vadd.f32 %v1357_v13, %v3239_v29  ;;  %v1359_v19 = vpop.f32.mrb[9].mxu1  ;;  %v1247_v15 = vadd.f32 %v1246_v18, %v3241_v30  ;;  %v1248_v20 = vpop.f32.mrb[10].mxu0 }
 0x12d   : > { %v1360_v16 = vadd.f32 %v1359_v19, %v3243_v31  ;;  %v1361_v63 = vpop.f32.mrb[10].mxu1  ;;  %v1249_v50 = vadd.f32 %v1248_v20, %v3237_v28  ;;  %v1250_v10 = vpop.f32.mrb[11].mxu0 }
 0x12e   : > { %v1362_v60 = vadd.f32 %v1361_v63, %v3239_v29  ;;  %v1363_v22 = vpop.f32.mrb[11].mxu1  ;;  %v2323_v24 = vpack.c.bf16 %v1247_v15, %v1245_v14  ;;  %v1251_v26 = vadd.f32 %v1250_v10, %v3241_v30 }
 0x12f   : > { %v2339_v25 = vpack.c.bf16 %v1360_v16, %v1358_v17  ;;  %v1364_v27 = vadd.f32 %v1363_v22, %v3243_v31 }
 0x130   : > { %1629 = vst [vmem:[%s3256_s12 + $0x20] sm:$0xff] %v2323_v24  ;;  %v2324_v34 = vpack.c.bf16 %v1251_v26, %v1249_v50 }
 0x131   : > { %1741 = vst [vmem:[%s3262_s14 + $0x20] sm:$0xff] %v2339_v25  ;;  %v2340_v35 = vpack.c.bf16 %v1364_v27, %v1362_v60 }
 0x132   : > { %1630 = vst [vmem:[%s3256_s12 + $0x28] sm:$0xff] %v2324_v34  ;;  %v1254_v36 = vpop.f32.mrb[12].mxu0 }
 0x133   : > { %1742 = vst [vmem:[%s3262_s14 + $0x28] sm:$0xff] %v2340_v35  ;;  %v1367_v37 = vpop.f32.mrb[12].mxu1  ;;  %v1255_v38 = vadd.f32 %v1254_v36, %v3237_v28  ;;  %v1256_v40 = vpop.f32.mrb[13].mxu0 }
 0x134   : > { %v1368_v39 = vadd.f32 %v1367_v37, %v3239_v29  ;;  %v1369_v32 = vpop.f32.mrb[13].mxu1  ;;  %v1257_v33 = vadd.f32 %v1256_v40, %v3241_v30  ;;  %v1258_v44 = vpop.f32.mrb[14].mxu0 }
 0x135   : > { %v1370_v41 = vadd.f32 %v1369_v32, %v3243_v31  ;;  %v1371_v45 = vpop.f32.mrb[14].mxu1  ;;  %v1259_v46 = vadd.f32 %v1258_v44, %v3237_v28  ;;  %v1260_v51 = vpop.f32.mrb[15].mxu0 }
 0x136   : > { %v1372_v47 = vadd.f32 %v1371_v45, %v3239_v29  ;;  %v1373_v52 = vpop.f32.mrb[15].mxu1  ;;  %v2325_v53 = vpack.c.bf16 %v1257_v33, %v1255_v38  ;;  %v1261_v55 = vadd.f32 %v1260_v51, %v3241_v30 }
 0x137   : > { %v2341_v54 = vpack.c.bf16 %v1370_v41, %v1368_v39  ;;  %v1374_v42 = vadd.f32 %v1373_v52, %v3243_v31 }
 0x138   : > { %1631 = vst [vmem:[%s3256_s12 + $0x30] sm:$0xff] %v2325_v53  ;;  %v2326_v43 = vpack.c.bf16 %v1261_v55, %v1259_v46 }
 0x139   : > { %1743 = vst [vmem:[%s3262_s14 + $0x30] sm:$0xff] %v2341_v54  ;;  %v2342_v56 = vpack.c.bf16 %v1374_v42, %v1372_v47 }
 0x13a   : > { %1632 = vst [vmem:[%s3256_s12 + $0x38] sm:$0xff] %v2326_v43  ;;  %v1264_v58 = vpop.f32.mrb[16].mxu0 }
 0x13b   : > { %1744 = vst [vmem:[%s3262_s14 + $0x38] sm:$0xff] %v2342_v56  ;;  %v1377_v59 = vpop.f32.mrb[16].mxu1  ;;  %v1265_v62 = vadd.f32 %v1264_v58, %v3237_v28  ;;  %v1266_v49 = vpop.f32.mrb[17].mxu0 }
 0x13c   : > { %v1378_v48 = vadd.f32 %v1377_v59, %v3239_v29  ;;  %v1379_v57 = vpop.f32.mrb[17].mxu1  ;;  %v1267_v61 = vadd.f32 %v1266_v49, %v3241_v30  ;;  %v1268_v3 = vpop.f32.mrb[18].mxu0 }
 0x13d   : > { %v1380_v0 = vadd.f32 %v1379_v57, %v3243_v31  ;;  %v1381_v1 = vpop.f32.mrb[18].mxu1  ;;  %v1269_v2 = vadd.f32 %v1268_v3, %v3237_v28  ;;  %v1270_v5 = vpop.f32.mrb[19].mxu0 }
 0x13e   : > { %v1382_v4 = vadd.f32 %v1381_v1, %v3239_v29  ;;  %v1383_v6 = vpop.f32.mrb[19].mxu1  ;;  %v2327_v7 = vpack.c.bf16 %v1267_v61, %v1265_v62  ;;  %v1271_v9 = vadd.f32 %v1270_v5, %v3241_v30 }
 0x13f   : > { %v2343_v8 = vpack.c.bf16 %v1380_v0, %v1378_v48  ;;  %v1384_v11 = vadd.f32 %v1383_v6, %v3243_v31 }
 0x140   : > { %1633 = vst [vmem:[%s3256_s12 + $0x40] sm:$0xff] %v2327_v7  ;;  %v2328_v12 = vpack.c.bf16 %v1271_v9, %v1269_v2 }
 0x141   : > { %1745 = vst [vmem:[%s3262_s14 + $0x40] sm:$0xff] %v2343_v8  ;;  %v2344_v13 = vpack.c.bf16 %v1384_v11, %v1382_v4 }
 0x142   : > { %1634 = vst [vmem:[%s3256_s12 + $0x48] sm:$0xff] %v2328_v12  ;;  %v1274_v14 = vpop.f32.mrb[20].mxu0 }
 0x143   : > { %1746 = vst [vmem:[%s3262_s14 + $0x48] sm:$0xff] %v2344_v13  ;;  %v1387_v17 = vpop.f32.mrb[20].mxu1  ;;  %v1275_v18 = vadd.f32 %v1274_v14, %v3237_v28  ;;  %v1276_v15 = vpop.f32.mrb[21].mxu0 }
 0x144   : > { %v1388_v19 = vadd.f32 %v1387_v17, %v3239_v29  ;;  %v1389_v16 = vpop.f32.mrb[21].mxu1  ;;  %v1277_v20 = vadd.f32 %v1276_v15, %v3241_v30  ;;  %v1278_v50 = vpop.f32.mrb[22].mxu0 }
 0x145   : > { %v1390_v63 = vadd.f32 %v1389_v16, %v3243_v31  ;;  %v1391_v60 = vpop.f32.mrb[22].mxu1  ;;  %v1279_v10 = vadd.f32 %v1278_v50, %v3237_v28  ;;  %v1280_v24 = vpop.f32.mrb[23].mxu0 }
 0x146   : > { %v1392_v22 = vadd.f32 %v1391_v60, %v3239_v29  ;;  %v1393_v25 = vpop.f32.mrb[23].mxu1  ;;  %v2329_v26 = vpack.c.bf16 %v1277_v20, %v1275_v18  ;;  %v1281_v34 = vadd.f32 %v1280_v24, %v3241_v30 }
 0x147   : > { %v2345_v27 = vpack.c.bf16 %v1390_v63, %v1388_v19  ;;  %v1394_v35 = vadd.f32 %v1393_v25, %v3243_v31 }
 0x148   : > { %1635 = vst [vmem:[%s3256_s12 + $0x50] sm:$0xff] %v2329_v26  ;;  %v2330_v36 = vpack.c.bf16 %v1281_v34, %v1279_v10 }
 0x149   : > { %1747 = vst [vmem:[%s3262_s14 + $0x50] sm:$0xff] %v2345_v27  ;;  %v2346_v37 = vpack.c.bf16 %v1394_v35, %v1392_v22 }
 0x14a   : > { %1636 = vst [vmem:[%s3256_s12 + $0x58] sm:$0xff] %v2330_v36  ;;  %v1284_v38 = vpop.f32.mrb[24].mxu0 }
 0x14b   : > { %1748 = vst [vmem:[%s3262_s14 + $0x58] sm:$0xff] %v2346_v37  ;;  %v1397_v39 = vpop.f32.mrb[24].mxu1  ;;  %v1285_v40 = vadd.f32 %v1284_v38, %v3237_v28  ;;  %v1286_v33 = vpop.f32.mrb[25].mxu0 }
 0x14c   : > { %v1398_v32 = vadd.f32 %v1397_v39, %v3239_v29  ;;  %v1399_v41 = vpop.f32.mrb[25].mxu1  ;;  %v1287_v44 = vadd.f32 %v1286_v33, %v3241_v30  ;;  %v1288_v46 = vpop.f32.mrb[26].mxu0 }
 0x14d   : > { %v1400_v45 = vadd.f32 %v1399_v41, %v3243_v31  ;;  %v1401_v47 = vpop.f32.mrb[26].mxu1  ;;  %v1289_v51 = vadd.f32 %v1288_v46, %v3237_v28  ;;  %v1290_v53 = vpop.f32.mrb[27].mxu0 }
 0x14e   : > { %v1402_v52 = vadd.f32 %v1401_v47, %v3239_v29  ;;  %v1403_v54 = vpop.f32.mrb[27].mxu1  ;;  %v2331_v55 = vpack.c.bf16 %v1287_v44, %v1285_v40  ;;  %v1291_v43 = vadd.f32 %v1290_v53, %v3241_v30 }
 0x14f   : > { %v2347_v42 = vpack.c.bf16 %v1400_v45, %v1398_v32  ;;  %v1404_v56 = vadd.f32 %v1403_v54, %v3243_v31 }
 0x150   : > { %1637 = vst [vmem:[%s3256_s12 + $0x60] sm:$0xff] %v2331_v55  ;;  %v2332_v58 = vpack.c.bf16 %v1291_v43, %v1289_v51 }
 0x151   : > { %1749 = vst [vmem:[%s3262_s14 + $0x60] sm:$0xff] %v2347_v42  ;;  %v2348_v59 = vpack.c.bf16 %v1404_v56, %v1402_v52 }
 0x152   : > { %1638 = vst [vmem:[%s3256_s12 + $0x68] sm:$0xff] %v2332_v58  ;;  %v1294_v62 = vpop.f32.mrb[28].mxu0 }
 0x153   : > { %1750 = vst [vmem:[%s3262_s14 + $0x68] sm:$0xff] %v2348_v59  ;;  %v1407_v48 = vpop.f32.mrb[28].mxu1  ;;  %v1295_v49 = vadd.f32 %v1294_v62, %v3237_v28  ;;  %v1296_v61 = vpop.f32.mrb[29].mxu0 }
 0x154   : > { %v1408_v57 = vadd.f32 %v1407_v48, %v3239_v29  ;;  %v1409_v0 = vpop.f32.mrb[29].mxu1  ;;  %v1297_v3 = vadd.f32 %v1296_v61, %v3241_v30  ;;  %v1298_v2 = vpop.f32.mrb[30].mxu0 }
 0x155   : > { %v1410_v1 = vadd.f32 %v1409_v0, %v3243_v31  ;;  %v1411_v4 = vpop.f32.mrb[30].mxu1  ;;  %v1299_v5 = vadd.f32 %v1298_v2, %v3237_v28  ;;  %v1300_v7 = vpop.f32.mrb[31].mxu0 }
 0x156   : > { %v1412_v6 = vadd.f32 %v1411_v4, %v3239_v29  ;;  %v1413_v8 = vpop.f32.mrb[31].mxu1  ;;  %v2333_v9 = vpack.c.bf16 %v1297_v3, %v1295_v49  ;;  %v1301_v12 = vadd.f32 %v1300_v7, %v3241_v30 }
 0x157   : > { %v2349_v11 = vpack.c.bf16 %v1410_v1, %v1408_v57  ;;  %v1414_v13 = vadd.f32 %v1413_v8, %v3243_v31 }
 0x158   : > { %1639 = vst [vmem:[%s3256_s12 + $0x70] sm:$0xff] %v2333_v9  ;;  %v2334_v14 = vpack.c.bf16 %v1301_v12, %v1299_v5 }
 0x159   : > { %1751 = vst [vmem:[%s3262_s14 + $0x70] sm:$0xff] %v2349_v11  ;;  %v2350_v17 = vpack.c.bf16 %v1414_v13, %v1412_v6 }
 0x15a   : > { %1640 = vst [vmem:[%s3256_s12 + $0x78] sm:$0xff] %v2334_v14  ;;  %v1450_v18 = vpop.f32.mrb[32].mxu0 }
 0x15b   : > { %1752 = vst [vmem:[%s3262_s14 + $0x78] sm:$0xff] %v2350_v17  ;;  %v1490_v19 = vpop.f32.mrb[32].mxu1  ;;  %v1451_v28 = vadd.f32 %v1450_v18, %v3233_v21  ;;  %v1452_v15 = vpop.f32.mrb[33].mxu0 }
 0x15c   : > { %v1491_v29 = vadd.f32 %v1490_v19, %v3233_v21  ;;  %v1492_v16 = vpop.f32.mrb[33].mxu1  ;;  %v1453_v20 = vadd.f32 %v1452_v15, %v3235_v23  ;;  %v1454_v31 = vpop.f32.mrb[34].mxu0 }
 0x15d   : > { %v1493_v30 = vadd.f32 %v1492_v16, %v3235_v23  ;;  %v1494_v63 = vpop.f32.mrb[34].mxu1  ;;  %v1455_v50 = vadd.f32 %v1454_v31, %v3233_v21  ;;  %v1456_v10 = vpop.f32.mrb[35].mxu0 }
 0x15e   : > { %v1495_v60 = vadd.f32 %v1494_v63, %v3233_v21  ;;  %v1496_v22 = vpop.f32.mrb[35].mxu1  ;;  %v2351_v24 = vpack.c.bf16 %v1453_v20, %v1451_v28  ;;  %v1457_v26 = vadd.f32 %v1456_v10, %v3235_v23 }
 0x15f   : > { %v2359_v25 = vpack.c.bf16 %v1493_v30, %v1491_v29  ;;  %v1497_v27 = vadd.f32 %v1496_v22, %v3235_v23 }
 0x160   : > { %1849 = vst [vmem:[%s3364_s17] sm:$0xff] %v2351_v24  ;;  %v2352_v34 = vpack.c.bf16 %v1457_v26, %v1455_v50 }
 0x161   : > { %1857 = vst [vmem:[%s3364_s17 + $0x40] sm:$0xff] %v2359_v25  ;;  %v2360_v35 = vpack.c.bf16 %v1497_v27, %v1495_v60 }
 0x162   : > { %1850 = vst [vmem:[%s3364_s17 + $0x8] sm:$0xff] %v2352_v34  ;;  %v1460_v36 = vpop.f32.mrb[36].mxu0 }
 0x163   : > { %1858 = vst [vmem:[%s3364_s17 + $0x48] sm:$0xff] %v2360_v35  ;;  %v1500_v37 = vpop.f32.mrb[36].mxu1  ;;  %v1461_v38 = vadd.f32 %v1460_v36, %v3233_v21  ;;  %v1462_v40 = vpop.f32.mrb[37].mxu0 }
 0x164   : > { %v1501_v39 = vadd.f32 %v1500_v37, %v3233_v21  ;;  %v1502_v32 = vpop.f32.mrb[37].mxu1  ;;  %v1463_v33 = vadd.f32 %v1462_v40, %v3235_v23  ;;  %v1464_v44 = vpop.f32.mrb[38].mxu0 }
 0x165   : > { %v1503_v41 = vadd.f32 %v1502_v32, %v3235_v23  ;;  %v1504_v45 = vpop.f32.mrb[38].mxu1  ;;  %v1465_v46 = vadd.f32 %v1464_v44, %v3233_v21  ;;  %v1466_v51 = vpop.f32.mrb[39].mxu0 }
 0x166   : > { %v1505_v47 = vadd.f32 %v1504_v45, %v3233_v21  ;;  %v1506_v52 = vpop.f32.mrb[39].mxu1  ;;  %v2353_v53 = vpack.c.bf16 %v1463_v33, %v1461_v38  ;;  %v1467_v55 = vadd.f32 %v1466_v51, %v3235_v23 }
 0x167   : > { %v2361_v54 = vpack.c.bf16 %v1503_v41, %v1501_v39  ;;  %v1507_v42 = vadd.f32 %v1506_v52, %v3235_v23 }
 0x168   : > { %1851 = vst [vmem:[%s3364_s17 + $0x10] sm:$0xff] %v2353_v53  ;;  %v2354_v43 = vpack.c.bf16 %v1467_v55, %v1465_v46 }
 0x169   : > { %1859 = vst [vmem:[%s3364_s17 + $0x50] sm:$0xff] %v2361_v54  ;;  %v2362_v56 = vpack.c.bf16 %v1507_v42, %v1505_v47 }
 0x16a   : > { %1852 = vst [vmem:[%s3364_s17 + $0x18] sm:$0xff] %v2354_v43  ;;  %v1470_v58 = vpop.f32.mrb[40].mxu0 }
 0x16b   : > { %1860 = vst [vmem:[%s3364_s17 + $0x58] sm:$0xff] %v2362_v56  ;;  %v1510_v59 = vpop.f32.mrb[40].mxu1  ;;  %v1471_v62 = vadd.f32 %v1470_v58, %v3233_v21  ;;  %v1472_v49 = vpop.f32.mrb[41].mxu0 }
 0x16c   : > { %v1511_v48 = vadd.f32 %v1510_v59, %v3233_v21  ;;  %v1512_v57 = vpop.f32.mrb[41].mxu1  ;;  %v1473_v61 = vadd.f32 %v1472_v49, %v3235_v23  ;;  %v1474_v3 = vpop.f32.mrb[42].mxu0 }
 0x16d   : > { %v1513_v0 = vadd.f32 %v1512_v57, %v3235_v23  ;;  %v1514_v1 = vpop.f32.mrb[42].mxu1  ;;  %v1475_v2 = vadd.f32 %v1474_v3, %v3233_v21  ;;  %v1476_v5 = vpop.f32.mrb[43].mxu0 }
 0x16e   : > { %v1515_v4 = vadd.f32 %v1514_v1, %v3233_v21  ;;  %v1516_v6 = vpop.f32.mrb[43].mxu1  ;;  %v2355_v7 = vpack.c.bf16 %v1473_v61, %v1471_v62  ;;  %v1477_v9 = vadd.f32 %v1476_v5, %v3235_v23 }
 0x16f   : > { %v2363_v8 = vpack.c.bf16 %v1513_v0, %v1511_v48  ;;  %v1517_v11 = vadd.f32 %v1516_v6, %v3235_v23 }
 0x170   : > { %1853 = vst [vmem:[%s3364_s17 + $0x20] sm:$0xff] %v2355_v7  ;;  %v2356_v12 = vpack.c.bf16 %v1477_v9, %v1475_v2 }
 0x171   : > { %1861 = vst [vmem:[%s3364_s17 + $0x60] sm:$0xff] %v2363_v8  ;;  %v2364_v13 = vpack.c.bf16 %v1517_v11, %v1515_v4 }
 0x172   : > { %1854 = vst [vmem:[%s3364_s17 + $0x28] sm:$0xff] %v2356_v12  ;;  %v1480_v14 = vpop.f32.mrb[44].mxu0 }
 0x173   : > { %1862 = vst [vmem:[%s3364_s17 + $0x68] sm:$0xff] %v2364_v13  ;;  %v1520_v17 = vpop.f32.mrb[44].mxu1  ;;  %v1481_v18 = vadd.f32 %v1480_v14, %v3233_v21  ;;  %v1482_v28 = vpop.f32.mrb[45].mxu0 }
 0x174   : > { %v1521_v19 = vadd.f32 %v1520_v17, %v3233_v21  ;;  %v1522_v29 = vpop.f32.mrb[45].mxu1  ;;  %v1483_v15 = vadd.f32 %v1482_v28, %v3235_v23  ;;  %v1484_v20 = vpop.f32.mrb[46].mxu0 }
 0x175   : > { %v1523_v16 = vadd.f32 %v1522_v29, %v3235_v23  ;;  %v1524_v30 = vpop.f32.mrb[46].mxu1  ;;  %v1485_v31 = vadd.f32 %v1484_v20, %v3233_v21  ;;  %v1486_v50 = vpop.f32.mrb[47].mxu0 }
 0x176   : > { %v1525_v63 = vadd.f32 %v1524_v30, %v3233_v21  ;;  %v1526_v60 = vpop.f32.mrb[47].mxu1  ;;  %v2357_v10 = vpack.c.bf16 %v1483_v15, %v1481_v18  ;;  %v1487_v24 = vadd.f32 %v1486_v50, %v3235_v23 }
 0x177   : > { %v2365_v22 = vpack.c.bf16 %v1523_v16, %v1521_v19  ;;  %v1527_v25 = vadd.f32 %v1526_v60, %v3235_v23 }
 0x178   : > { %1855 = vst [vmem:[%s3364_s17 + $0x30] sm:$0xff] %v2357_v10  ;;  %v2358_v26 = vpack.c.bf16 %v1487_v24, %v1485_v31 }
 0x179   : > { %1863 = vst [vmem:[%s3364_s17 + $0x70] sm:$0xff] %v2365_v22  ;;  %v2366_v27 = vpack.c.bf16 %v1527_v25, %v1525_v63 }
 0x17a   : > { %1856 = vst [vmem:[%s3364_s17 + $0x38] sm:$0xff] %v2358_v26 }
 0x17b   : > { %1864 = vst [vmem:[%s3364_s17 + $0x78] sm:$0xff] %v2366_v27 }
 0x17c PF: > { %s18_s26 = sadd.s32 1, %s2589_s26   ;;  %s3427_s24 = smov %s2585_s25 }
 0x17d   : > { %p15_p5 = scmp.ge.s32.totalorder %s18_s26, 4   ;;  %s3428_s25 = smov %s3430_s27 }
 0x17f   :  { %17 = sbr.rel (!%p15_p5) target bundleno = 2 (0x2), region = 105 }

// kernel: full_song_transformer_decoder.9
= control target key start
LH: loop header
LB: loop body
LE: loop exit
PB: predicated region body
PF: predicated region fallthrough
CT: control target
= control target key end

     0   :  { %s3452_s12 = smov 0   ;;  %s3454_s13 = smov 0   ;;  %s4122_s0 = inlined_call_operand.vmem [shape: bf16[2,128,256], index: 0, kind: input, shape index: {}]   ;;  %s4123_s1 = inlined_call_operand.vmem [shape: bf16[2,128,256], index: 1, kind: input, shape index: {}]   ;;  %s4124_s2 = inlined_call_operand.vmem [shape: bf16[2,128,256], index: 2, kind: input, shape index: {}]   ;;  %s4125_s3 = inlined_call_operand.vmem [shape: bf16[2,128,256], index: 3, kind: output, shape index: {}]  }
   0x1   :  { %s3456_s14 = smov 0   ;;  %s3458_s15 = smov 0  }
   0x2   :  { %s3460_s16 = smov 0   ;;  %s3462_s17 = smov 0  }
   0x3   :  { %s3464_s18 = smov 0  }
   0x4 LB: > { %s35_s19 = sadd.s32 1, %s3419_s16  ;;  %s39_s20 = sadd.s32 1, %s3423_s17  ;;  %s3427_s18 = sphi %s3464_s18, %s13_s18   ;;  %s3423_s17 = sphi %s3462_s17, %s4147_s17   ;;  %s3419_s16 = sphi %s3460_s16, %s4146_s16   ;;  %s3415_s15 = sphi %s3458_s15, %s4145_s15   ;;  %s3411_s14 = sphi %s3456_s14, %s4144_s14   ;;  %s3407_s13 = sphi %s3454_s13, %s4143_s13   ;;  %s3403_s12 = sphi %s3452_s12, %s4142_s12  }
   0x5   : > { %p37_p0 = scmp.ge.s32.totalorder %s35_s19, 2  ;;  %s2946_s21 = sadd.s32 4294967295, %s3427_s18  }
   0x6   : > { %p57_p1 = scmp.ne.s32.totalorder %s3407_s13, %s3403_s12  ;;  %p58_p2 = scmp.eq.s32.totalorder %s3427_s18, 0 }
   0x7   : > { %s4149_s19 = smov (%p37_p0, %s35_s19), 0  ;;  %s4151_s20 = smov (!%p37_p0, %s39_s20), %s3423_s17 }
   0x8   : > { %p41_p3 = scmp.ge.s32.totalorder %s4151_s20, 2  ;;  %p159_p4 = scmp.eq.s32.totalorder %s2946_s21, 3 }
   0x9   : > { %s46_s22 = ssub.s32 %s3419_s16, %s4149_s19  ;;  %p3498_p5 = por %p58_p2, %p57_p1 }
   0xa   : > { %s4153_s20 = smov (%p41_p3, %s4151_s20), 0  ;;  %p3504_p6 = por %p159_p4, %p57_p1 }
   0xb   : > { %s43_s25 = ssub.s32 %s3423_s17, %s4153_s20  ;;  %s50_s27 = sadd.s32 1, %s3407_s13 }
   0xc   : > { %s47_s26 = sor.u32 %s46_s22, %s43_s25  ;;  %p2949_p8 = scmp.ge.s32.totalorder %s3427_s18, 4 }
   0xd   : > { %p48_p7 = scmp.eq.s32.totalorder %s47_s26, 0 }
   0xe   : > { %181 = sbr.rel (%p2949_p8) target bundleno = 69 (0x45), region = 16 }
   0xf   : > { %s3512_s28 = scalar_select %p48_p7, %s3407_s13, %s50_s27  }
  0x15   : > { %184 = sbr.rel (!%p3498_p5) target bundleno = 37 (0x25), region = 20  ;;  %s186_s29 = sand.u32 (%p3498_p5), 1, %s3407_s13  }
  0x16   : > { %s2951_s30 = sshll.u32 (%p3498_p5), %s3423_s17, 5  ;;  %s2950_s4 = sshll.u32 (%p3498_p5), %s186_s29, 6 }
  0x17   : > { %s193_s5 = sadd.s32 (%p3498_p5), %s3419_s16, %s2951_s30  ;;  %s188_s10 = scalar_lea.vmem (%p3498_p5), [#allocation5], %s2950_s4 }
  0x18   : > { %s2952_s6 = sshll.u32 (%p3498_p5), %s193_s5, 2 }
  0x19   : > { %s3523_s9 = scalar_lea.vmem (%p3498_p5), %s4122_s0, %s2952_s6 }
  0x1a   : > { %v211_v0 = vld [vmem:[%s3523_s9] sm:$0xf] (%p3498_p5)  ;;  %v213_v1 = vld [vmem:[%s3523_s9 + $0x8] sm:$0xf] (%p3498_p5)  ;;  %v215_v2 = vld [vmem:[%s3523_s9 + $0x10] sm:$0xf] (%p3498_p5) }
  0x1b   : > { %212 = vst [vmem:[%s188_s10] sm:$0xf] (%p3498_p5), %v211_v0  ;;  %214 = vst [vmem:[%s188_s10 + $0x4] sm:$0xf] (%p3498_p5), %v213_v1  ;;  %v217_v3 = vld [vmem:[%s3523_s9 + $0x18] sm:$0xf] (%p3498_p5) }
  0x1c   : > { %216 = vst [vmem:[%s188_s10 + $0x8] sm:$0xf] %v215_v2  ;;  %v219_v4 = vld [vmem:[%s3523_s9 + $0x20] sm:$0xf]  ;;  %v221_v5 = vld [vmem:[%s3523_s9 + $0x28] sm:$0xf] }
  0x1d   : > { %218 = vst [vmem:[%s188_s10 + $0xc] sm:$0xf] %v217_v3  ;;  %220 = vst [vmem:[%s188_s10 + $0x10] sm:$0xf] %v219_v4  ;;  %v223_v6 = vld [vmem:[%s3523_s9 + $0x30] sm:$0xf] }
  0x1e   : > { %222 = vst [vmem:[%s188_s10 + $0x14] sm:$0xf] %v221_v5  ;;  %v225_v7 = vld [vmem:[%s3523_s9 + $0x38] sm:$0xf]  ;;  %v227_v8 = vld [vmem:[%s3523_s9 + $0x40] sm:$0xf] }
  0x1f   : > { %224 = vst [vmem:[%s188_s10 + $0x18] sm:$0xf] %v223_v6  ;;  %226 = vst [vmem:[%s188_s10 + $0x1c] sm:$0xf] %v225_v7  ;;  %v229_v9 = vld [vmem:[%s3523_s9 + $0x48] sm:$0xf] }
  0x20   : > { %228 = vst [vmem:[%s188_s10 + $0x20] sm:$0xf] %v227_v8  ;;  %v231_v10 = vld [vmem:[%s3523_s9 + $0x50] sm:$0xf]  ;;  %v233_v11 = vld [vmem:[%s3523_s9 + $0x58] sm:$0xf] }
  0x21   : > { %230 = vst [vmem:[%s188_s10 + $0x24] sm:$0xf] %v229_v9  ;;  %232 = vst [vmem:[%s188_s10 + $0x28] sm:$0xf] %v231_v10  ;;  %v235_v12 = vld [vmem:[%s3523_s9 + $0x60] sm:$0xf] }
  0x22   : > { %234 = vst [vmem:[%s188_s10 + $0x2c] sm:$0xf] %v233_v11  ;;  %v237_v13 = vld [vmem:[%s3523_s9 + $0x68] sm:$0xf]  ;;  %v239_v14 = vld [vmem:[%s3523_s9 + $0x70] sm:$0xf] }
  0x23   : > { %236 = vst [vmem:[%s188_s10 + $0x30] sm:$0xf] %v235_v12  ;;  %238 = vst [vmem:[%s188_s10 + $0x34] sm:$0xf] %v237_v13  ;;  %v241_v15 = vld [vmem:[%s3523_s9 + $0x78] sm:$0xf] }
  0x24   : > { %240 = vst [vmem:[%s188_s10 + $0x38] sm:$0xf] %v239_v14  ;;  %242 = vst [vmem:[%s188_s10 + $0x3c] sm:$0xf] %v241_v15 }
  0x25 PF: > { %297 = sbr.rel (!%p3498_p5) target bundleno = 53 (0x35), region = 61  ;;  %s299_s11 = sand.u32 (%p3498_p5), 1, %s3407_s13  }
  0x26   : > { %s2954_s21 = sshll.u32 (%p3498_p5), %s3423_s17, 5  ;;  %s2953_s22 = sshll.u32 (%p3498_p5), %s299_s11, 6 }
  0x27   : > { %s308_s25 = sadd.s32 (%p3498_p5), %s3419_s16, %s2954_s21  ;;  %s301_s4 = scalar_lea.vmem (%p3498_p5), [#allocation6], %s2953_s22 }
  0x28   : > { %s2955_s26 = sshll.u32 (%p3498_p5), %s308_s25, 2 }
  0x29   : > { %s3549_s30 = scalar_lea.vmem (%p3498_p5), %s4123_s1, %s2955_s26 }
  0x2a   : > { %v326_v16 = vld [vmem:[%s3549_s30] sm:$0xf] (%p3498_p5)  ;;  %v328_v17 = vld [vmem:[%s3549_s30 + $0x8] sm:$0xf] (%p3498_p5)  ;;  %v330_v18 = vld [vmem:[%s3549_s30 + $0x10] sm:$0xf] (%p3498_p5) }
  0x2b   : > { %327 = vst [vmem:[%s301_s4] sm:$0xf] (%p3498_p5), %v326_v16  ;;  %329 = vst [vmem:[%s301_s4 + $0x4] sm:$0xf] (%p3498_p5), %v328_v17  ;;  %v332_v19 = vld [vmem:[%s3549_s30 + $0x18] sm:$0xf] (%p3498_p5) }
  0x2c   : > { %331 = vst [vmem:[%s301_s4 + $0x8] sm:$0xf] %v330_v18  ;;  %v334_v20 = vld [vmem:[%s3549_s30 + $0x20] sm:$0xf]  ;;  %v336_v21 = vld [vmem:[%s3549_s30 + $0x28] sm:$0xf] }
  0x2d   : > { %333 = vst [vmem:[%s301_s4 + $0xc] sm:$0xf] %v332_v19  ;;  %335 = vst [vmem:[%s301_s4 + $0x10] sm:$0xf] %v334_v20  ;;  %v338_v22 = vld [vmem:[%s3549_s30 + $0x30] sm:$0xf] }
  0x2e   : > { %337 = vst [vmem:[%s301_s4 + $0x14] sm:$0xf] %v336_v21  ;;  %v340_v23 = vld [vmem:[%s3549_s30 + $0x38] sm:$0xf]  ;;  %v342_v24 = vld [vmem:[%s3549_s30 + $0x40] sm:$0xf] }
  0x2f   : > { %339 = vst [vmem:[%s301_s4 + $0x18] sm:$0xf] %v338_v22  ;;  %341 = vst [vmem:[%s301_s4 + $0x1c] sm:$0xf] %v340_v23  ;;  %v344_v25 = vld [vmem:[%s3549_s30 + $0x48] sm:$0xf] }
  0x30   : > { %343 = vst [vmem:[%s301_s4 + $0x20] sm:$0xf] %v342_v24  ;;  %v346_v26 = vld [vmem:[%s3549_s30 + $0x50] sm:$0xf]  ;;  %v348_v27 = vld [vmem:[%s3549_s30 + $0x58] sm:$0xf] }
  0x31   : > { %345 = vst [vmem:[%s301_s4 + $0x24] sm:$0xf] %v344_v25  ;;  %347 = vst [vmem:[%s301_s4 + $0x28] sm:$0xf] %v346_v26  ;;  %v350_v28 = vld [vmem:[%s3549_s30 + $0x60] sm:$0xf] }
  0x32   : > { %349 = vst [vmem:[%s301_s4 + $0x2c] sm:$0xf] %v348_v27  ;;  %v352_v29 = vld [vmem:[%s3549_s30 + $0x68] sm:$0xf]  ;;  %v354_v30 = vld [vmem:[%s3549_s30 + $0x70] sm:$0xf] }
  0x33   : > { %351 = vst [vmem:[%s301_s4 + $0x30] sm:$0xf] %v350_v28  ;;  %353 = vst [vmem:[%s301_s4 + $0x34] sm:$0xf] %v352_v29  ;;  %v356_v31 = vld [vmem:[%s3549_s30 + $0x78] sm:$0xf] }
  0x34   : > { %355 = vst [vmem:[%s301_s4 + $0x38] sm:$0xf] %v354_v30  ;;  %357 = vst [vmem:[%s301_s4 + $0x3c] sm:$0xf] %v356_v31 }
  0x35 PF: > { %412 = sbr.rel (!%p3498_p5) target bundleno = 69 (0x45), region = 102  ;;  %s414_s5 = sand.u32 (%p3498_p5), 1, %s3407_s13  }
  0x36   : > { %s2957_s6 = sshll.u32 (%p3498_p5), %s3423_s17, 5  ;;  %s2956_s7 = sshll.u32 (%p3498_p5), %s414_s5, 6 }
  0x37   : > { %s423_s8 = sadd.s32 (%p3498_p5), %s3419_s16, %s2957_s6  ;;  %s416_s23 = scalar_lea.vmem (%p3498_p5), [#allocation7], %s2956_s7 }
  0x38   : > { %s2958_s9 = sshll.u32 (%p3498_p5), %s423_s8, 2 }
  0x39   : > { %s3575_s21 = scalar_lea.vmem (%p3498_p5), %s4124_s2, %s2958_s9 }
  0x3a   : > { %v441_v32 = vld [vmem:[%s3575_s21] sm:$0xf] (%p3498_p5)  ;;  %v443_v33 = vld [vmem:[%s3575_s21 + $0x8] sm:$0xf] (%p3498_p5)  ;;  %v445_v34 = vld [vmem:[%s3575_s21 + $0x10] sm:$0xf] (%p3498_p5) }
  0x3b   : > { %442 = vst [vmem:[%s416_s23] sm:$0xf] (%p3498_p5), %v441_v32  ;;  %444 = vst [vmem:[%s416_s23 + $0x4] sm:$0xf] (%p3498_p5), %v443_v33  ;;  %v447_v35 = vld [vmem:[%s3575_s21 + $0x18] sm:$0xf] (%p3498_p5) }
  0x3c   : > { %446 = vst [vmem:[%s416_s23 + $0x8] sm:$0xf] %v445_v34  ;;  %v449_v36 = vld [vmem:[%s3575_s21 + $0x20] sm:$0xf]  ;;  %v451_v37 = vld [vmem:[%s3575_s21 + $0x28] sm:$0xf] }
  0x3d   : > { %448 = vst [vmem:[%s416_s23 + $0xc] sm:$0xf] %v447_v35  ;;  %450 = vst [vmem:[%s416_s23 + $0x10] sm:$0xf] %v449_v36  ;;  %v453_v38 = vld [vmem:[%s3575_s21 + $0x30] sm:$0xf] }
  0x3e   : > { %452 = vst [vmem:[%s416_s23 + $0x14] sm:$0xf] %v451_v37  ;;  %v455_v39 = vld [vmem:[%s3575_s21 + $0x38] sm:$0xf]  ;;  %v457_v40 = vld [vmem:[%s3575_s21 + $0x40] sm:$0xf] }
  0x3f   : > { %454 = vst [vmem:[%s416_s23 + $0x18] sm:$0xf] %v453_v38  ;;  %456 = vst [vmem:[%s416_s23 + $0x1c] sm:$0xf] %v455_v39  ;;  %v459_v41 = vld [vmem:[%s3575_s21 + $0x48] sm:$0xf] }
  0x40   : > { %458 = vst [vmem:[%s416_s23 + $0x20] sm:$0xf] %v457_v40  ;;  %v461_v42 = vld [vmem:[%s3575_s21 + $0x50] sm:$0xf]  ;;  %v463_v43 = vld [vmem:[%s3575_s21 + $0x58] sm:$0xf] }
  0x41   : > { %460 = vst [vmem:[%s416_s23 + $0x24] sm:$0xf] %v459_v41  ;;  %462 = vst [vmem:[%s416_s23 + $0x28] sm:$0xf] %v461_v42  ;;  %v465_v44 = vld [vmem:[%s3575_s21 + $0x60] sm:$0xf] }
  0x42   : > { %464 = vst [vmem:[%s416_s23 + $0x2c] sm:$0xf] %v463_v43  ;;  %v467_v45 = vld [vmem:[%s3575_s21 + $0x68] sm:$0xf]  ;;  %v469_v46 = vld [vmem:[%s3575_s21 + $0x70] sm:$0xf] }
  0x43   : > { %466 = vst [vmem:[%s416_s23 + $0x30] sm:$0xf] %v465_v44  ;;  %468 = vst [vmem:[%s416_s23 + $0x34] sm:$0xf] %v467_v45  ;;  %v471_v47 = vld [vmem:[%s3575_s21 + $0x78] sm:$0xf] }
  0x44   : > { %470 = vst [vmem:[%s416_s23 + $0x38] sm:$0xf] %v469_v46  ;;  %472 = vst [vmem:[%s416_s23 + $0x3c] sm:$0xf] %v471_v47 }
  0x45 PF: > { %p2959_p9 = scmp.ge.s32.totalorder %s3427_s18, 1  ;;  %p526_p10 = scmp.lt.s32.totalorder %s3427_s18, 5 }
  0x47   : > { %p527_p11 = pnand %p2959_p9, %p526_p10 }
  0x48   : > { %s533_s22 = sand.u32 (!%p527_p11), 1, %s3403_s12   ;;  %vm590_vm0 = vcmask (!%p527_p11), 7168   ;;  %v3429_v0 = vmov (!%p527_p11), -1e+30   ;;  %v1779_v1 = vlaneseq (!%p527_p11)  ;;  %v3430_v33 = vmov (!%p527_p11), 0  }
  0x49   : > { %530 = sbr.rel (%p527_p11) target bundleno = 994 (0x3e2), region = 143  ;;  %s3596_s25 = sshll.u32 (!%p527_p11), %s533_s22, 6  ;;  %593 = vst.msk [vmem:[#allocation2 + $0x10] sm:$0xff] (!%p527_p11), %vm590_vm0, %v3429_v0  ;;  %591 = vst.msk [vmem:[#allocation2] sm:$0xff] (!%p527_p11), %vm590_vm0, %v3429_v0  ;;  %3252 = vset.pattern.permute.xlu1 (!%p527_p11), %v3430_v33  ;;  %3251 = vset.pattern.permute.xlu0 (!%p527_p11), %v3430_v33  ;;  %v3431_v46 = vmov (!%p527_p11), 0.0  }
  0x4a   : > { %s542_s26 = scalar_lea.vmem (!%p527_p11), [#allocation6], %s3596_s25  ;;  %s3600_s27 = scalar_lea.vmem (!%p527_p11), [#allocation5], %s3596_s25  ;;  %592 = vst.msk [vmem:[#allocation2 + $0x8] sm:$0xff] (!%p527_p11), %vm590_vm0, %v3429_v0  ;;  %594 = vst.msk [vmem:[#allocation2 + $0x18] sm:$0xff] (!%p527_p11), %vm590_vm0, %v3429_v0  ;;  %v3626_v2 = vshrl.u32 (!%p527_p11), %v1779_v1, 7  ;;  %v3629_v4 = vand.u32 (!%p527_p11), 127, %v1779_v1 }
  0x4b   : > { %v3253_v48 = vld [vmem:[%s542_s26] sm:$0xff] (!%p527_p11)   ;;  %v3254_v49 = vld [vmem:[%s542_s26 + $0x8] sm:$0xff] (!%p527_p11)   ;;  %v3255_v50 = vld [vmem:[%s542_s26 + $0x10] sm:$0xff] (!%p527_p11)   ;;  %595 = vst.msk [vmem:[#allocation2 + $0x20] sm:$0xff] (!%p527_p11), %vm590_vm0, %v3429_v0  ;;  %s3733_s12 = scalar_lea.vmem (!%p527_p11), [#allocation7], %s3596_s25  ;;  %s4056_s29 = scalar_lea.vmem (!%p527_p11), [#allocation8], %s3596_s25 }
  0x4c   : > { %3128 = vmatprep.subr.bf16.mxu0 (!%p527_p11), %v3253_v48  ;;  %v3261_v51 = vld [vmem:[%s3600_s27] sm:$0xff] (!%p527_p11)   ;;  %v3256_v52 = vld [vmem:[%s542_s26 + $0x18] sm:$0xff] (!%p527_p11)   ;;  %v3258_v54 = vld [vmem:[%s542_s26 + $0x28] sm:$0xff] (!%p527_p11)   ;;  %596 = vst.msk [vmem:[#allocation2 + $0x28] sm:$0xff] (!%p527_p11), %vm590_vm0, %v3429_v0  ;;  %v1782_v3 = vadd.s32 (!%p527_p11), 16, %v3626_v2  ;;  %v1783_v5 = vadd.s32 (!%p527_p11), 24, %v3626_v2  ;;  %vm1798_vm2 = vcmp.le.s32.totalorder (!%p527_p11), %v3629_v4, %v3626_v2 }
  0x4d   : > { %3129 = vmatpush3.bf16.xpose.msra.mxu0 (!%p527_p11), %v3253_v48  ;;  %3144 = vmatprep.mubr.bf16.mxu0 (!%p527_p11), %v3261_v51  ;;  %v3257_v53 = vld [vmem:[%s542_s26 + $0x20] sm:$0xff] (!%p527_p11)   ;;  %v3259_v55 = vld [vmem:[%s542_s26 + $0x30] sm:$0xff] (!%p527_p11)   ;;  %v3260_v56 = vld [vmem:[%s542_s26 + $0x38] sm:$0xff] (!%p527_p11)   ;;  %597 = vst.msk [vmem:[#allocation2 + $0x30] sm:$0xff] (!%p527_p11), %vm590_vm0, %v3429_v0  ;;  %v1781_v6 = vadd.s32 (!%p527_p11), 8, %v3626_v2  ;;  %v1784_v13 = vadd.s32 (!%p527_p11), 32, %v3626_v2 }
  0x4e   : > { %3130 = vmatprep.subr.bf16.mxu0 (!%p527_p11), %v3254_v49  ;;  %v3262_v57 = vld [vmem:[%s3600_s27 + $0x8] sm:$0xff] (!%p527_p11)   ;;  %v3263_v58 = vld [vmem:[%s3600_s27 + $0x10] sm:$0xff] (!%p527_p11)   ;;  %v3264_v59 = vld [vmem:[%s3600_s27 + $0x18] sm:$0xff] (!%p527_p11)   ;;  %598 = vst.msk [vmem:[#allocation2 + $0x38] sm:$0xff] (!%p527_p11), %vm590_vm0, %v3429_v0  ;;  %vm1800_vm1 = vcmp.le.s32.totalorder (!%p527_p11), %v3629_v4, %v1782_v3  ;;  %vm1801_vm3 = vcmp.le.s32.totalorder (!%p527_p11), %v3629_v4, %v1783_v5  ;;  %v1787_v14 = vadd.s32 (!%p527_p11), 56, %v3626_v2  ;;  %v1786_v17 = vadd.s32 (!%p527_p11), 48, %v3626_v2 }
  0x4f   : > { %v3265_v60 = vld [vmem:[%s3600_s27 + $0x20] sm:$0xff] (!%p527_p11)   ;;  %v3266_v61 = vld [vmem:[%s3600_s27 + $0x28] sm:$0xff] (!%p527_p11)   ;;  %v3267_v62 = vld [vmem:[%s3600_s27 + $0x30] sm:$0xff] (!%p527_p11)   ;;  %599 = vst.msk [vmem:[#allocation2 + $0x40] sm:$0xff] (!%p527_p11), %vm590_vm0, %v3429_v0  ;;  %vm1799_vm4 = vcmp.le.s32.totalorder (!%p527_p11), %v3629_v4, %v1781_v6  ;;  %vm1802_vm5 = vcmp.le.s32.totalorder (!%p527_p11), %v3629_v4, %v1784_v13  ;;  %v1785_v19 = vadd.s32 (!%p527_p11), 40, %v3626_v2  ;;  %v1788_v25 = vadd.s32 (!%p527_p11), 64, %v3626_v2 }
  0x50   : > { %v3268_v63 = vld [vmem:[%s3600_s27 + $0x38] sm:$0xff]   ;;  %600 = vst.msk [vmem:[#allocation2 + $0x48] sm:$0xff] %vm590_vm0, %v3429_v0  ;;  %601 = vst.msk [vmem:[#allocation2 + $0x50] sm:$0xff] %vm590_vm0, %v3429_v0  ;;  %vm1805_vm6 = vcmp.le.s32.totalorder %v3629_v4, %v1787_v14  ;;  %vm1804_vm7 = vcmp.le.s32.totalorder %v3629_v4, %v1786_v17  ;;  %v1791_v26 = vadd.s32 88, %v3626_v2  ;;  %v1790_v27 = vadd.s32 80, %v3626_v2  ;;  %v3274_v33 = vld [vmem:[%s3733_s12 + $0x28] sm:$0xff]  }
  0x51   : > { %602 = vst.msk [vmem:[#allocation2 + $0x58] sm:$0xff] %vm590_vm0, %v3429_v0  ;;  %603 = vst.msk [vmem:[#allocation2 + $0x60] sm:$0xff] %vm590_vm0, %v3429_v0  ;;  %vm1803_vm8 = vcmp.le.s32.totalorder %v3629_v4, %v1785_v19  ;;  %v1789_v29 = vadd.s32 72, %v3626_v2  ;;  %vm1806_vm9 = vcmp.le.s32.totalorder %v3629_v4, %v1788_v25  ;;  %v1792_v38 = vadd.s32 96, %v3626_v2  ;;  %s3029_s30 = sshll.u32 (%p3504_p6), %s3415_s15, 5 }
  0x52   : > { %604 = vst.msk [vmem:[#allocation2 + $0x68] sm:$0xff] %vm590_vm0, %v3429_v0  ;;  %605 = vst.msk [vmem:[#allocation2 + $0x70] sm:$0xff] %vm590_vm0, %v3429_v0  ;;  %vm1809_vm10 = vcmp.le.s32.totalorder %v3629_v4, %v1791_v26  ;;  %vm1808_vm11 = vcmp.le.s32.totalorder %v3629_v4, %v1790_v27  ;;  %v1795_v40 = vadd.s32 120, %v3626_v2  ;;  %v1794_v42 = vadd.s32 112, %v3626_v2  ;;  %s2718_s4 = sadd.s32 (%p3504_p6), %s3411_s14, %s3029_s30 }
  0x53   : > { %606 = vst.msk [vmem:[#allocation2 + $0x78] sm:$0xff] %vm590_vm0, %v3429_v0  ;;  %vm1807_vm12 = vcmp.le.s32.totalorder %v3629_v4, %v1789_v29  ;;  %v1793_v43 = vadd.s32 104, %v3626_v2  ;;  %vm1810_vm13 = vcmp.le.s32.totalorder %v3629_v4, %v1792_v38  ;;  %609 = vst.msk [vmem:[#allocation3 + $0x10] sm:$0xff] %vm590_vm0, %v3431_v46  ;;  %v3271_v0 = vld [vmem:[%s3733_s12 + $0x10] sm:$0xff]   ;;  %s3030_s24 = sshll.u32 (%p3504_p6), %s2718_s4, 2 }
  0x54   : > { %vm1813_vm14 = vcmp.le.s32.totalorder %v3629_v4, %v1795_v40  ;;  %vm1812_vm15 = vcmp.le.s32.totalorder %v3629_v4, %v1794_v42  ;;  %607 = vst.msk [vmem:[#allocation3] sm:$0xff] %vm590_vm0, %v3431_v46  ;;  %608 = vst.msk [vmem:[#allocation3 + $0x8] sm:$0xff] %vm590_vm0, %v3431_v46  ;;  %v3789_v19 = vld [vmem:[#allocation2 + $0x30] sm:$0xff]  ;;  %s2720_s7 = scalar_lea.vmem (%p3504_p6), %s4125_s3, %s3030_s24 }
  0x55   : > { %3131 = vmatpush3.bf16.xpose.msra.mxu0 %v3254_v49  ;;  %610 = vst.msk [vmem:[#allocation3 + $0x18] sm:$0xff] %vm590_vm0, %v3431_v46  ;;  %611 = vst.msk [vmem:[#allocation3 + $0x20] sm:$0xff] %vm590_vm0, %v3431_v46 }
  0x56   : > { %3132 = vmatprep.subr.bf16.mxu0 %v3255_v50  ;;  %612 = vst.msk [vmem:[#allocation3 + $0x28] sm:$0xff] %vm590_vm0, %v3431_v46  ;;  %613 = vst.msk [vmem:[#allocation3 + $0x30] sm:$0xff] %vm590_vm0, %v3431_v46 }
  0x57   : > { %614 = vst.msk [vmem:[#allocation3 + $0x38] sm:$0xff] %vm590_vm0, %v3431_v46  ;;  %615 = vst.msk [vmem:[#allocation3 + $0x40] sm:$0xff] %vm590_vm0, %v3431_v46 }
  0x58   : > { %616 = vst.msk [vmem:[#allocation3 + $0x48] sm:$0xff] %vm590_vm0, %v3431_v46  ;;  %617 = vst.msk [vmem:[#allocation3 + $0x50] sm:$0xff] %vm590_vm0, %v3431_v46 }
  0x59   : > { %618 = vst.msk [vmem:[#allocation3 + $0x58] sm:$0xff] %vm590_vm0, %v3431_v46  ;;  %619 = vst.msk [vmem:[#allocation3 + $0x60] sm:$0xff] %vm590_vm0, %v3431_v46 }
  0x5a   : > { %620 = vst.msk [vmem:[#allocation3 + $0x68] sm:$0xff] %vm590_vm0, %v3431_v46  ;;  %621 = vst.msk [vmem:[#allocation3 + $0x70] sm:$0xff] %vm590_vm0, %v3431_v46 }
  0x5b   : > { %622 = vst.msk [vmem:[#allocation3 + $0x78] sm:$0xff] %vm590_vm0, %v3431_v46  ;;  %v3275_v46 = vld [vmem:[%s3733_s12 + $0x30] sm:$0xff]  }
  0x5d   : > { %3133 = vmatpush3.bf16.xpose.msra.mxu0 %v3255_v50 }
  0x5e   : > { %3134 = vmatprep.subr.bf16.mxu0 %v3256_v52 }
  0x65   : > { %3135 = vmatpush3.bf16.xpose.msra.mxu0 %v3256_v52 }
  0x66   : > { %3136 = vmatprep.subr.bf16.mxu0 %v3257_v53 }
  0x6d   : > { %3137 = vmatpush3.bf16.xpose.msra.mxu0 %v3257_v53  ;;  %v3269_v53 = vld [vmem:[%s3733_s12] sm:$0xff]  }
  0x6e   : > { %3138 = vmatprep.subr.bf16.mxu0 %v3258_v54  ;;  %3160 = vmatprep.subr.bf16.mxu1 %v3269_v53 }
  0x6f   : > { %3161 = vmatpush3.bf16.msra.mxu1 %v3269_v53 }
  0x75   : > { %3139 = vmatpush3.bf16.xpose.msra.mxu0 %v3258_v54  ;;  %v3270_v54 = vld [vmem:[%s3733_s12 + $0x8] sm:$0xff]  }
  0x76   : > { %3140 = vmatprep.subr.bf16.mxu0 %v3259_v55  ;;  %3162 = vmatprep.subr.bf16.mxu1 %v3270_v54 }
  0x77   : > { %3163 = vmatpush3.bf16.msra.mxu1 %v3270_v54 }
  0x78   : > { %3164 = vmatprep.subr.bf16.mxu1 %v3271_v0 }
  0x7b   : > { %3165 = vmatpush3.bf16.msra.mxu1 %v3271_v0 }
  0x7d   : > { %3141 = vmatpush3.bf16.xpose.msra.mxu0 %v3259_v55  ;;  %v3737_v55 = vld [vmem:[#allocation2 + $0x10] sm:$0xff] }
  0x7e   : > { %3142 = vmatprep.subr.bf16.mxu0 %v3260_v56 }
  0x85   : > { %3143 = vmatpush3.bf16.xpose.msra.mxu0 %v3260_v56  ;;  %v3739_v56 = vld [vmem:[#allocation2] sm:$0xff] }
  0x8c   : > { %3145 = vmatmul.mubr.bf16.vlgmr.msra.gmra.mrb[0].mxu0 %v3262_v57 }
  0x8d   : > { %3148 = vmatprep.mubr.bf16.mxu0 %v3263_v58 }
  0x94   : > { %3149 = vmatmul.mubr.bf16.gmra.mrb[4].mxu0 %v3264_v59 }
  0x95   : > { %3152 = vmatprep.mubr.bf16.mxu0 %v3265_v60 }
  0x9c   : > { %3153 = vmatmul.mubr.bf16.gmra.mrb[8].mxu0 %v3266_v61  ;;  %v3747_v61 = vld [vmem:[#allocation2 + $0x18] sm:$0xff] }
  0x9d   : > { %3156 = vmatprep.mubr.bf16.mxu0 %v3267_v62 }
  0xa4   : > { %3157 = vmatmul.mubr.bf16.gmra.mrb[12].mxu0 %v3268_v63  ;;  %v3754_v63 = vld [vmem:[#allocation2 + $0x8] sm:$0xff] }
 0x15f   : > { %v3146_v7 = vpop.f32.mrb[0].mxu0 }
 0x160   : > { %v1716_v8 = vpop.f32.mrb[1].mxu0  ;;  %v3636_v9 = vsel %vm1800_vm1, %v3146_v7, -1e+30  ;;  %vm1811_vm1 = vcmp.le.s32.totalorder %v3629_v4, %v1793_v43  ;;  %v3773_v7 = vld [vmem:[#allocation2 + $0x20] sm:$0xff] }
 0x161   : > { %1850 = vmax.xlane.f32.xlu1 %v3636_v9  ;;  %v3147_v10 = vpop.f32.mrb[2].mxu0  ;;  %v3639_v11 = vsel %vm1798_vm2, %v1716_v8, -1e+30  ;;  %v3272_v8 = vld [vmem:[%s3733_s12 + $0x18] sm:$0xff]  }
 0x162   : > { %1846 = vmax.xlane.f32.xlu0 %v3639_v11  ;;  %v1719_v12 = vpop.f32.mrb[3].mxu0  ;;  %v3646_v15 = vsel %vm1801_vm3, %v3147_v10, -1e+30  ;;  %3166 = vmatprep.subr.bf16.mxu1 %v3272_v8 }
 0x163   : > { %v3649_v16 = vsel %vm1799_vm4, %v1719_v12, -1e+30  ;;  %v3780_v12 = vld [vmem:[#allocation2 + $0x38] sm:$0xff]  ;;  %3167 = vmatpush3.bf16.msra.mxu1 %v3272_v8 }
 0x165   : > { %1852 = vmax.xlane.f32.xlu1 %v3646_v15 }
 0x166   : > { %1848 = vmax.xlane.f32.xlu0 %v3649_v16 }
 0x167   : > { %v3150_v18 = vpop.f32.mrb[4].mxu0 }
 0x168   : > { %v1732_v20 = vpop.f32.mrb[5].mxu0  ;;  %v3667_v28 = vsel %vm1804_vm7, %v3150_v18, -1e+30 }
 0x169   : > { %v3151_v21 = vpop.f32.mrb[6].mxu0  ;;  %v3656_v22 = vsel %vm1802_vm5, %v1732_v20, -1e+30  ;;  %v3273_v20 = vld [vmem:[%s3733_s12 + $0x20] sm:$0xff]  }
 0x16a   : > { %1854 = vmax.xlane.f32.xlu0 %v3656_v22  ;;  %v1735_v23 = vpop.f32.mrb[7].mxu0  ;;  %v3659_v24 = vsel %vm1805_vm6, %v3151_v21, -1e+30  ;;  %3168 = vmatprep.subr.bf16.mxu1 %v3273_v20 }
 0x16b   : > { %1860 = vmax.xlane.f32.xlu1 %v3659_v24  ;;  %v3671_v30 = vsel %vm1803_vm8, %v1735_v23, -1e+30  ;;  %v3796_v23 = vld [vmem:[#allocation2 + $0x28] sm:$0xff]  ;;  %3169 = vmatpush3.bf16.msra.mxu1 %v3273_v20 }
 0x16c   : > { %3170 = vmatprep.subr.bf16.mxu1 %v3274_v33 }
 0x16e   : > { %1858 = vmax.xlane.f32.xlu0 %v3667_v28 }
 0x16f   : > { %1856 = vmax.xlane.f32.xlu1 %v3671_v30  ;;  %v3154_v31 = vpop.f32.mrb[8].mxu0  ;;  %3171 = vmatpush3.bf16.msra.mxu1 %v3274_v33 }
 0x170   : > { %v1748_v32 = vpop.f32.mrb[9].mxu0  ;;  %v3685_v39 = vsel %vm1808_vm11, %v3154_v31, -1e+30  ;;  %3172 = vmatprep.subr.bf16.mxu1 %v3275_v46 }
 0x171   : > { %v3155_v34 = vpop.f32.mrb[10].mxu0  ;;  %v3677_v35 = vsel %vm1806_vm9, %v1748_v32, -1e+30  ;;  %v3808_v32 = vld [vmem:[#allocation2 + $0x40] sm:$0xff] }
 0x172   : > { %v3680_v36 = vsel %vm1809_vm10, %v3155_v34, -1e+30  ;;  %1862 = vmax.xlane.f32.xlu0 %v3677_v35  ;;  %v1751_v37 = vpop.f32.mrb[11].mxu0 }
 0x173   : > { %1868 = vmax.xlane.f32.xlu1 %v3680_v36  ;;  %v3688_v41 = vsel %vm1807_vm12, %v1751_v37, -1e+30  ;;  %v3816_v37 = vld [vmem:[#allocation2 + $0x58] sm:$0xff]  ;;  %3173 = vmatpush3.bf16.msra.mxu1 %v3275_v46  ;;  %v3876_v46 = vld [vmem:[#allocation2 + $0x68] sm:$0xff] }
 0x176   : > { %1866 = vmax.xlane.f32.xlu0 %v3685_v39 }
 0x177   : > { %1864 = vmax.xlane.f32.xlu1 %v3688_v41  ;;  %v3158_v44 = vpop.f32.mrb[12].mxu0 }
 0x178   : > { %v1764_v45 = vpop.f32.mrb[13].mxu0  ;;  %v3726_v51 = vsel %vm1812_vm15, %v3158_v44, -1e+30 }
 0x179   : > { %v3159_v47 = vpop.f32.mrb[14].mxu0  ;;  %v3715_v48 = vsel %vm1810_vm13, %v1764_v45, -1e+30  ;;  %v3828_v45 = vld [vmem:[#allocation2 + $0x50] sm:$0xff] }
 0x17a   : > { %v3720_v49 = vsel %vm1813_vm14, %v3159_v47, -1e+30  ;;  %1870 = vmax.xlane.f32.xlu0 %v3715_v48  ;;  %v1767_v50 = vpop.f32.mrb[15].mxu0 }
 0x17b   : > { %1876 = vmax.xlane.f32.xlu1 %v3720_v49  ;;  %v3728_v52 = vsel %vm1811_vm1, %v1767_v50, -1e+30  ;;  %v3836_v50 = vld [vmem:[#allocation2 + $0x48] sm:$0xff] }
 0x17e   : > { %1874 = vmax.xlane.f32.xlu0 %v3726_v51 }
 0x17f   : > { %1872 = vmax.xlane.f32.xlu1 %v3728_v52 }
 0x1ee   : > { %v1851_v57 = vpop.xlane.xlu1 %1850 }
 0x1ef   : > { %v3742_v58 = vmax.f32 %v3737_v55, %v1851_v57  ;;  %v1847_v59 = vpop.xlane.xlu0 %1846 }
 0x1f0   : > { %v3745_v60 = vmax.f32 %v3739_v56, %v1847_v59 }
 0x1f1   : > { %v1896_v62 = vsub.f32 %v3737_v55, %v3742_v58  ;;  %2466 = vst.msk [vmem:[#allocation2 + $0x10] sm:$0xff] %vm590_vm0, %v3742_v58  ;;  %1954 = vperm.xlu1 %3252, %v3742_v58  }
 0x1f2   : > { %2464 = vst.msk [vmem:[#allocation2] sm:$0xff] %vm590_vm0, %v3745_v60  ;;  %v1853_v2 = vpop.xlane.xlu1 %1852  ;;  %1944 = vperm.xlu0 %3251, %v3745_v60  }
 0x1f3   : > { %v3763_v3 = vmax.f32 %v3747_v61, %v1853_v2  ;;  %v1849_v4 = vpop.xlane.xlu0 %1848  ;;  %v3848_v2 = vld [vmem:[#allocation2 + $0x60] sm:$0xff] }
 0x1f4   : > { %v3766_v5 = vmax.f32 %v3754_v63, %v1849_v4  ;;  %v3276_v4 = vld [vmem:[%s3733_s12 + $0x38] sm:$0xff]  }
 0x1f5   : > { %2467 = vst.msk [vmem:[#allocation2 + $0x18] sm:$0xff] %vm590_vm0, %v3763_v3  ;;  %1959 = vperm.xlu1 %3252, %v3763_v3   ;;  %3174 = vmatprep.subr.bf16.mxu1 %v3276_v4 }
 0x1f6   : > { %v1895_v10 = vsub.f32 %v3754_v63, %v3766_v5  ;;  %2465 = vst.msk [vmem:[#allocation2 + $0x8] sm:$0xff] %vm590_vm0, %v3766_v5  ;;  %3175 = vmatpush3.bf16.msra.mxu1 %v3276_v4 }
 0x1f7   : > { %v1855_v13 = vpop.xlane.xlu0 %1854 }
 0x1f8   : > { %v3783_v14 = vmax.f32 %v3773_v7, %v1855_v13  ;;  %v1861_v17 = vpop.xlane.xlu1 %1860  ;;  %v3856_v13 = vld [vmem:[#allocation2 + $0x78] sm:$0xff] }
 0x1f9   : > { %v3786_v18 = vmax.f32 %v3780_v12, %v1861_v17  ;;  %1949 = vperm.xlu1 %3252, %v3766_v5  }
 0x1fa   : > { %2468 = vst.msk [vmem:[#allocation2 + $0x20] sm:$0xff] %vm590_vm0, %v3783_v14 }
 0x1fb   : > { %2471 = vst.msk [vmem:[#allocation2 + $0x38] sm:$0xff] %vm590_vm0, %v3786_v18  ;;  %v1859_v26 = vpop.xlane.xlu0 %1858 }
 0x1fc   : > { %v3803_v27 = vmax.f32 %v3789_v19, %v1859_v26  ;;  %v1857_v29 = vpop.xlane.xlu1 %1856 }
 0x1fd   : > { %v3806_v31 = vmax.f32 %v3796_v23, %v1857_v29 }
 0x1fe   : > { %2470 = vst.msk [vmem:[#allocation2 + $0x30] sm:$0xff] %vm590_vm0, %v3803_v27  ;;  %1974 = vperm.xlu1 %3252, %v3803_v27   ;;  %v4131_v55 = vsub.f32 %v3789_v19, %v3803_v27 }
 0x1ff   : > { %2469 = vst.msk [vmem:[#allocation2 + $0x28] sm:$0xff] %vm590_vm0, %v3806_v31  ;;  %v1863_v40 = vpop.xlane.xlu0 %1862 }
 0x200   : > { %v1869_v42 = vpop.xlane.xlu1 %1868  ;;  %v3823_v43 = vmax.f32 %v3808_v32, %v1863_v40  ;;  %v3869_v40 = vld [vmem:[#allocation2 + $0x70] sm:$0xff]  ;;  %v1922_v58 = vmul.f32 1.442695, %v4131_v55 }
 0x201   : > { %v3826_v44 = vmax.f32 %v3816_v37, %v1869_v42 }
 0x202   : > { %2472 = vst.msk [vmem:[#allocation2 + $0x40] sm:$0xff] %vm590_vm0, %v3823_v43  ;;  %1964 = vperm.xlu1 %3252, %v3783_v14   ;;  %v4133_v5 = vsub.f32 %v3808_v32, %v3823_v43 }
 0x203   : > { %2475 = vst.msk [vmem:[#allocation2 + $0x58] sm:$0xff] %vm590_vm0, %v3826_v44  ;;  %v1867_v54 = vpop.xlane.xlu0 %1866 }
 0x204   : > { %v1865_v57 = vpop.xlane.xlu1 %1864  ;;  %v3843_v59 = vmax.f32 %v3828_v45, %v1867_v54 }
 0x205   : > { %v3846_v0 = vmax.f32 %v3836_v50, %v1865_v57 }
 0x206   : > { %2474 = vst.msk [vmem:[#allocation2 + $0x50] sm:$0xff] %vm590_vm0, %v3843_v59  ;;  %1969 = vperm.xlu1 %3252, %v3806_v31   ;;  %v4135_v19 = vsub.f32 %v3828_v45, %v3843_v59  ;;  %v4138_v45 = vsub.f32 %v3816_v37, %v3826_v44 }
 0x207   : > { %2473 = vst.msk [vmem:[#allocation2 + $0x48] sm:$0xff] %vm590_vm0, %v3846_v0  ;;  %1989 = vperm.xlu0 %3251, %v3846_v0   ;;  %v1871_v20 = vpop.xlane.xlu0 %1870  ;;  %v4136_v27 = vsub.f32 %v3836_v50, %v3846_v0 }
 0x208   : > { %v1877_v26 = vpop.xlane.xlu1 %1876  ;;  %v3864_v29 = vmax.f32 %v3848_v2, %v1871_v20 }
 0x209   : > { %v3867_v33 = vmax.f32 %v3856_v13, %v1877_v26 }
 0x20a   : > { %2476 = vst.msk [vmem:[#allocation2 + $0x60] sm:$0xff] %vm590_vm0, %v3864_v29  ;;  %1979 = vperm.xlu1 %3252, %v3786_v18  }
 0x20b   : > { %2479 = vst.msk [vmem:[#allocation2 + $0x78] sm:$0xff] %vm590_vm0, %v3867_v33  ;;  %1999 = vperm.xlu0 %3251, %v3826_v44   ;;  %v1875_v57 = vpop.xlane.xlu0 %1874  ;;  %v4141_v44 = vsub.f32 %v3856_v13, %v3867_v33 }
 0x20c   : > { %v1873_v4 = vpop.xlane.xlu1 %1872  ;;  %v3884_v20 = vmax.f32 %v3869_v40, %v1875_v57 }
 0x20d   : > { %v3887_v26 = vmax.f32 %v3876_v46, %v1873_v4 }
 0x20e   : > { %2478 = vst.msk [vmem:[#allocation2 + $0x70] sm:$0xff] %vm590_vm0, %v3884_v20  ;;  %1984 = vperm.xlu1 %3252, %v3823_v43   ;;  %v4139_v50 = vsub.f32 %v3869_v40, %v3884_v20  ;;  %v1940_v40 = vmul.f32 1.442695, %v4141_v44 }
 0x20f   : > { %2477 = vst.msk [vmem:[#allocation2 + $0x68] sm:$0xff] %vm590_vm0, %v3887_v26  ;;  %2009 = vperm.xlu0 %3251, %v3887_v26  }
 0x210   : > { %v1938_v0 = vmul.f32 1.442695, %v4139_v50  ;;  %v2078_v50 = vld [vmem:[#allocation3 + $0x40] sm:$0xff] }
 0x212   : > { %1994 = vperm.xlu1 %3252, %v3843_v59   ;;  %v1932_v59 = vmul.f32 1.442695, %v4138_v45 }
 0x213   : > { %2019 = vperm.xlu0 %3251, %v3867_v33  }
 0x216   : > { %2004 = vperm.xlu1 %3252, %v3864_v29  }
 0x21a   : > { %2014 = vperm.xlu1 %3252, %v3884_v20  }
 0x270   : > { %v1955_v57 = vpop.permute.xlu1 %1954 }
 0x271   : > { %v2024_v4 = vsub.f32 %v3636_v9, %v1955_v57  ;;  %v1945_v53 = vpop.permute.xlu0 %1944 }
 0x272   : > { %v2022_v42 = vsub.f32 %v3639_v11, %v1945_v53 }
 0x273   : > { %v2042_v54 = vmul.f32 1.442695, %v2024_v4 }
 0x274   : > { %v2038_v17 = vmul.f32 1.442695, %v2022_v42  ;;  %v1960_v8 = vpop.permute.xlu1 %1959 }
 0x275   : > { %3277 = vpow2.f32 %v2042_v54  ;;  %v2025_v25 = vsub.f32 %v3646_v15, %v1960_v8 }
 0x276   : > { %3279 = vpow2.f32 %v2038_v17 }
 0x277   : > { %v2044_v47 = vmul.f32 1.442695, %v2025_v25 }
 0x278   : > { %v1950_v38 = vpop.permute.xlu1 %1949 }
 0x279   : > { %3281 = vpow2.f32 %v2044_v47  ;;  %v2023_v34 = vsub.f32 %v3649_v16, %v1950_v38 }
 0x27b   : > { %v2040_v6 = vmul.f32 1.442695, %v2023_v34 }
 0x27d   : > { %3283 = vpow2.f32 %v2040_v6  ;;  %v1975_v21 = vpop.permute.xlu1 %1974 }
 0x27e   : > { %v2028_v9 = vsub.f32 %v3667_v28, %v1975_v21 }
 0x27f   : > { %v3278_v57 = vpop.eup %3277 }
 0x280   : > { %v3280_v1 = vpop.eup %3279  ;;  %v2050_v11 = vmul.f32 1.442695, %v2028_v9  ;;  %2106 = vadd.xlane.f32.xlu0 %v3278_v57 }
 0x281   : > { %2102 = vadd.xlane.f32.xlu1 %v3280_v1  ;;  %v1965_v53 = vpop.permute.xlu1 %1964 }
 0x282   : > { %3285 = vpow2.f32 %v2050_v11  ;;  %v2026_v15 = vsub.f32 %v3656_v22, %v1965_v53 }
 0x283   : > { %v3282_v8 = vpop.eup %3281 }
 0x284   : > { %v2046_v25 = vmul.f32 1.442695, %v2026_v15  ;;  %v2280_v42 = vpack.c.bf16 %v3282_v8, %v3278_v57 }
 0x285   : > { %2108 = vadd.xlane.f32.xlu1 %v3282_v8  ;;  %v1970_v47 = vpop.permute.xlu1 %1969 }
 0x286   : > { %3287 = vpow2.f32 %v2046_v25  ;;  %v2027_v16 = vsub.f32 %v3671_v30, %v1970_v47  ;;  %v1990_v6 = vpop.permute.xlu0 %1989 }
 0x287   : > { %v3284_v34 = vpop.eup %3283  ;;  %v2031_v21 = vsub.f32 %v3688_v41, %v1990_v6 }
 0x288   : > { %v2048_v38 = vmul.f32 1.442695, %v2027_v16  ;;  %2104 = vadd.xlane.f32.xlu0 %v3284_v34  ;;  %v2279_v28 = vpack.c.bf16 %v3284_v34, %v3280_v1 }
 0x289   : > { %v1980_v17 = vpop.permute.xlu1 %1979  ;;  %v2056_v11 = vmul.f32 1.442695, %v2031_v21 }
 0x28a   : > { %3289 = vpow2.f32 %v2048_v38  ;;  %v2029_v54 = vsub.f32 %v3659_v24, %v1980_v17  ;;  %v2000_v22 = vpop.permute.xlu0 %1999  ;;  %3176 = vmatprep.mubr.bf16.mxu1 %v2279_v28 }
 0x28b   : > { %3177 = vmatmul.mubr.bf16.vlgmr.msra.gmra.mrb[0].mxu1 %v2280_v42  ;;  %v2033_v30 = vsub.f32 %v3680_v36, %v2000_v22 }
 0x28c   : > { %v3286_v4 = vpop.eup %3285  ;;  %v2052_v9 = vmul.f32 1.442695, %v2029_v54 }
 0x28d   : > { %2114 = vadd.xlane.f32.xlu0 %v3286_v4  ;;  %v1985_v53 = vpop.permute.xlu1 %1984  ;;  %v2060_v57 = vmul.f32 1.442695, %v2033_v30 }
 0x28e   : > { %3291 = vpow2.f32 %v2052_v9  ;;  %v2030_v1 = vsub.f32 %v3677_v35, %v1985_v53  ;;  %v2010_v15 = vpop.permute.xlu0 %2009 }
 0x28f   : > { %3293 = vpow2.f32 %v2056_v11  ;;  %v2035_v24 = vsub.f32 %v3728_v52, %v2010_v15 }
 0x290   : > { %v3288_v41 = vpop.eup %3287  ;;  %v2054_v25 = vmul.f32 1.442695, %v2030_v1 }
 0x291   : > { %2110 = vadd.xlane.f32.xlu0 %v3288_v41  ;;  %v1995_v8 = vpop.permute.xlu1 %1994  ;;  %v2064_v34 = vmul.f32 1.442695, %v2035_v24  ;;  %v1912_v24 = vmul.f32 1.442695, %v1895_v10 }
 0x292   : > { %3295 = vpow2.f32 %v2054_v25  ;;  %v2032_v47 = vsub.f32 %v3685_v39, %v1995_v8  ;;  %v2020_v16 = vpop.permute.xlu0 %2019  ;;  %v1914_v8 = vmul.f32 1.442695, %v1896_v62 }
 0x293   : > { %3297 = vpow2.f32 %v2060_v57  ;;  %v2037_v38 = vsub.f32 %v3720_v49, %v2020_v16 }
 0x294   : > { %v3290_v6 = vpop.eup %3289  ;;  %v2058_v36 = vmul.f32 1.442695, %v2032_v47  ;;  %v4128_v47 = vsub.f32 %v3739_v56, %v3745_v60  ;;  %v4132_v56 = vsub.f32 %v3796_v23, %v3806_v31  ;;  %v1930_v23 = vmul.f32 1.442695, %v4135_v19 }
 0x295   : > { %v2005_v35 = vpop.permute.xlu1 %2004  ;;  %v2281_v28 = vpack.c.bf16 %v3290_v6, %v3288_v41  ;;  %v2068_v42 = vmul.f32 1.442695, %v2037_v38  ;;  %v1928_v31 = vmul.f32 1.442695, %v4136_v27 }
 0x296   : > { %3299 = vpow2.f32 %v2058_v36  ;;  %v2034_v21 = vsub.f32 %v3715_v48, %v2005_v35  ;;  %v1910_v16 = vmul.f32 1.442695, %v4128_v47  ;;  %v1920_v60 = vmul.f32 1.442695, %v4132_v56 }
 0x297   : > { %3180 = vmatprep.mubr.bf16.mxu1 %v2281_v28  ;;  %3301 = vpow2.f32 %v2064_v34  ;;  %v4130_v34 = vsub.f32 %v3747_v61, %v3763_v3  ;;  %v1926_v61 = vmul.f32 1.442695, %v4133_v5  ;;  %v4134_v3 = vsub.f32 %v3780_v12, %v3786_v18 }
 0x298   : > { %v3292_v17 = vpop.eup %3291  ;;  %v2062_v52 = vmul.f32 1.442695, %v2034_v21  ;;  %v4137_v12 = vsub.f32 %v3848_v2, %v3864_v29  ;;  %v4140_v2 = vsub.f32 %v3876_v46, %v3887_v26 }
 0x299   : > { %2116 = vadd.xlane.f32.xlu1 %v3292_v17  ;;  %v2015_v54 = vpop.permute.xlu1 %2014  ;;  %v2282_v39 = vpack.c.bf16 %v3292_v17, %v3286_v4  ;;  %v3294_v9 = vpop.eup %3293  ;;  %v1916_v63 = vmul.f32 1.442695, %v4130_v34 }
 0x29a   : > { %3303 = vpow2.f32 %v2062_v52  ;;  %v2036_v22 = vsub.f32 %v3726_v51, %v2015_v54  ;;  %v1934_v18 = vmul.f32 1.442695, %v4137_v12  ;;  %v1936_v29 = vmul.f32 1.442695, %v4140_v2  ;;  %v2072_v52 = vld [vmem:[#allocation3 + $0x10] sm:$0xff] }
 0x29b   : > { %3181 = vmatmul.mubr.bf16.gmra.mrb[4].mxu1 %v2282_v39  ;;  %3305 = vpow2.f32 %v2068_v42  ;;  %v2070_v42 = vld [vmem:[#allocation3] sm:$0xff] }
 0x29c   : > { %v3296_v11 = vpop.eup %3295  ;;  %v2066_v49 = vmul.f32 1.442695, %v2036_v22 }
 0x29d   : > { %2112 = vadd.xlane.f32.xlu1 %v3290_v6  ;;  %v2283_v30 = vpack.c.bf16 %v3294_v9, %v3296_v11  ;;  %v3298_v48 = vpop.eup %3297  ;;  %v4129_v6 = vsub.f32 %v3773_v7, %v3783_v14  ;;  %v1924_v7 = vmul.f32 1.442695, %v4134_v3 }
 0x29e   : > { %3307 = vpow2.f32 %v2066_v49  ;;  %v2073_v49 = vld [vmem:[#allocation3 + $0x18] sm:$0xff] }
 0x29f   : > { %3184 = vmatprep.mubr.bf16.mxu1 %v2283_v30  ;;  %3309 = vpow2.f32 %v1912_v24  ;;  %v1918_v36 = vmul.f32 1.442695, %v4129_v6 }
 0x2a0   : > { %v3300_v53 = vpop.eup %3299  ;;  %3311 = vpow2.f32 %v1914_v8 }
 0x2a1   : > { %2124 = vadd.xlane.f32.xlu1 %v3298_v48  ;;  %2122 = vadd.xlane.f32.xlu0 %v3300_v53  ;;  %v2284_v1 = vpack.c.bf16 %v3298_v48, %v3300_v53  ;;  %v3302_v15 = vpop.eup %3301  ;;  %3313 = vpow2.f32 %v1910_v16  ;;  %v2071_v53 = vld [vmem:[#allocation3 + $0x8] sm:$0xff]  ;;  %v2074_v16 = vld [vmem:[#allocation3 + $0x20] sm:$0xff] }
 0x2a2   : > { %3315 = vpow2.f32 %v1918_v36 }
 0x2a3   : > { %3185 = vmatmul.mubr.bf16.gmra.mrb[8].mxu1 %v2284_v1  ;;  %3317 = vpow2.f32 %v1916_v63 }
 0x2a4   : > { %v3304_v4 = vpop.eup %3303  ;;  %3319 = vpow2.f32 %v1922_v58 }
 0x2a5   : > { %2120 = vadd.xlane.f32.xlu1 %v3294_v9  ;;  %2118 = vadd.xlane.f32.xlu0 %v3296_v11  ;;  %v2285_v51 = vpack.c.bf16 %v3302_v15, %v3304_v4  ;;  %v3306_v41 = vpop.eup %3305  ;;  %3321 = vpow2.f32 %v1920_v60  ;;  %v2077_v60 = vld [vmem:[#allocation3 + $0x38] sm:$0xff] }
 0x2a6   : > { %3323 = vpow2.f32 %v1926_v61 }
 0x2a7   : > { %3188 = vmatprep.mubr.bf16.mxu1 %v2285_v51  ;;  %3325 = vpow2.f32 %v1924_v7  ;;  %v2075_v7 = vld [vmem:[#allocation3 + $0x28] sm:$0xff] }
 0x2a8   : > { %v3308_v25 = vpop.eup %3307  ;;  %3327 = vpow2.f32 %v1930_v23 }
 0x2a9   : > { %2132 = vadd.xlane.f32.xlu1 %v3306_v41  ;;  %2126 = vadd.xlane.f32.xlu0 %v3304_v4  ;;  %v2286_v57 = vpack.c.bf16 %v3306_v41, %v3308_v25  ;;  %v3940_v62 = vpop.eup %3309  ;;  %3329 = vpow2.f32 %v1928_v31 }
 0x2aa   : > { %v3312_v10 = vpop.eup %3311  ;;  %3331 = vpow2.f32 %v1934_v18  ;;  %v2087_v4 = vmul.f32 %v3940_v62, %v2071_v53 }
 0x2ab   : > { %3189 = vmatmul.mubr.bf16.gmra.mrb[12].mxu1 %v2286_v57  ;;  %v3314_v14 = vpop.eup %3313  ;;  %3333 = vpow2.f32 %v1932_v59  ;;  %v2088_v54 = vmul.f32 %v3312_v10, %v2072_v52  ;;  %v2082_v52 = vld [vmem:[#allocation3 + $0x60] sm:$0xff] }
 0x2ac   : > { %v3955_v32 = vpop.eup %3315  ;;  %3335 = vpow2.f32 %v1938_v0  ;;  %v2086_v22 = vmul.f32 %v3314_v14, %v2070_v42  ;;  %v2079_v0 = vld [vmem:[#allocation3 + $0x48] sm:$0xff]  ;;  %v2085_v42 = vld [vmem:[#allocation3 + $0x78] sm:$0xff] }
 0x2ad   : > { %2128 = vadd.xlane.f32.xlu1 %v3302_v15  ;;  %2130 = vadd.xlane.f32.xlu0 %v3308_v25  ;;  %v3318_v43 = vpop.eup %3317  ;;  %3337 = vpow2.f32 %v1936_v29  ;;  %v2076_v25 = vld [vmem:[#allocation3 + $0x30] sm:$0xff]  ;;  %v2090_v34 = vmul.f32 %v3955_v32, %v2074_v16 }
 0x2ae   : > { %v3320_v38 = vpop.eup %3319  ;;  %3339 = vpow2.f32 %v1940_v40  ;;  %v2089_v48 = vmul.f32 %v3318_v43, %v2073_v49 }
 0x2af   : > { %v3964_v35 = vpop.eup %3321  ;;  %v2092_v24 = vmul.f32 %v3320_v38, %v2076_v25 }
 0x2b0   : > { %v3973_v28 = vpop.eup %3323  ;;  %v2091_v23 = vmul.f32 %v3964_v35, %v2075_v7 }
 0x2b1   : > { %v3975_v37 = vpop.eup %3325  ;;  %v2094_v44 = vmul.f32 %v3973_v28, %v2078_v50 }
 0x2b2   : > { %v3982_v20 = vpop.eup %3327  ;;  %v2093_v5 = vmul.f32 %v3975_v37, %v2077_v60 }
 0x2b3   : > { %v3984_v21 = vpop.eup %3329 }
 0x2b4   : > { %v3988_v46 = vpop.eup %3331  ;;  %v2095_v40 = vmul.f32 %v3984_v21, %v2079_v0 }
 0x2b5   : > { %v3990_v26 = vpop.eup %3333 }
 0x2b6   : > { %v3994_v13 = vpop.eup %3335 }
 0x2b7   : > { %v3996_v33 = vpop.eup %3337 }
 0x2b8   : > { %v4000_v17 = vpop.eup %3339 }
 0x2be   : > { %2190 = vperm.xlu1 %3252, %v3940_v62  }
 0x2c2   : > { %2195 = vperm.xlu1 %3252, %v3312_v10  }
 0x2c3   : > { %2185 = vperm.xlu0 %3251, %v3314_v14  }
 0x2c6   : > { %2205 = vperm.xlu1 %3252, %v3955_v32   ;;  %v2080_v32 = vld [vmem:[#allocation3 + $0x50] sm:$0xff] }
 0x2c7   : > { %2200 = vperm.xlu0 %3251, %v3318_v43   ;;  %v2081_v43 = vld [vmem:[#allocation3 + $0x58] sm:$0xff]  ;;  %v2096_v18 = vmul.f32 %v3982_v20, %v2080_v32 }
 0x2c8   : > { %v2097_v45 = vmul.f32 %v3990_v26, %v2081_v43 }
 0x2ca   : > { %2215 = vperm.xlu1 %3252, %v3320_v38  }
 0x2cb   : > { %2210 = vperm.xlu0 %3251, %v3964_v35  }
 0x2ce   : > { %2225 = vperm.xlu1 %3252, %v3973_v28   ;;  %v2101_v28 = vmul.f32 %v4000_v17, %v2085_v42 }
 0x2cf   : > { %2220 = vperm.xlu0 %3251, %v3975_v37  }
 0x2d2   : > { %2235 = vperm.xlu1 %3252, %v3982_v20  }
 0x2d3   : > { %2230 = vperm.xlu0 %3251, %v3984_v21  }
 0x2d6   : > { %2245 = vperm.xlu1 %3252, %v3988_v46  }
 0x2d7   : > { %2240 = vperm.xlu0 %3251, %v3990_v26  }
 0x2da   : > { %2255 = vperm.xlu1 %3252, %v3994_v13  }
 0x2db   : > { %2250 = vperm.xlu0 %3251, %v3996_v33  }
 0x2df   : > { %2260 = vperm.xlu0 %3251, %v4000_v17  }
 0x30d   : > { %v2107_v39 = vpop.xlane.xlu0 %2106 }
 0x30e   : > { %v2136_v9 = vadd.f32 %v2107_v39, %v2088_v54  ;;  %v2103_v11 = vpop.xlane.xlu1 %2102 }
 0x30f   : > { %v2134_v30 = vadd.f32 %v2103_v11, %v2086_v22  ;;  %v2098_v11 = vmul.f32 %v3988_v46, %v2082_v52 }
 0x310   : > { %2153 = vst.msk [vmem:[#allocation3 + $0x10] sm:$0xff] %vm590_vm0, %v2136_v9 }
 0x311   : > { %2151 = vst.msk [vmem:[#allocation3] sm:$0xff] %vm590_vm0, %v2134_v30  ;;  %v2084_v30 = vld [vmem:[#allocation3 + $0x70] sm:$0xff] }
 0x312   : > { %v2109_v1 = vpop.xlane.xlu1 %2108 }
 0x313   : > { %v2137_v15 = vadd.f32 %v2109_v1, %v2089_v48  ;;  %v2083_v48 = vld [vmem:[#allocation3 + $0x68] sm:$0xff] }
 0x315   : > { %2154 = vst.msk [vmem:[#allocation3 + $0x18] sm:$0xff] %vm590_vm0, %v2137_v15  ;;  %v2105_v51 = vpop.xlane.xlu0 %2104 }
 0x316   : > { %v2135_v41 = vadd.f32 %v2105_v51, %v2087_v4  ;;  %v2100_v51 = vmul.f32 %v3994_v13, %v2084_v30 }
 0x317   : > { %v2501_v57 = vld [vmem:[#allocation3 + $0x10] sm:$0xff] }
 0x318   : > { %2152 = vst.msk [vmem:[#allocation3 + $0x8] sm:$0xff] %vm590_vm0, %v2135_v41  ;;  %3341 = vrcp.f32 %v2501_v57  ;;  %v2499_v8 = vld [vmem:[#allocation3] sm:$0xff]  ;;  %v2099_v41 = vmul.f32 %v3996_v33, %v2083_v48 }
 0x319   : > { %3343 = vrcp.f32 %v2499_v8 }
 0x31a   : > { %v2115_v47 = vpop.xlane.xlu0 %2114 }
 0x31b   : > { %v2140_v6 = vadd.f32 %v2115_v47, %v2092_v24 }
 0x31c   : > { %v2502_v36 = vld [vmem:[#allocation3 + $0x18] sm:$0xff] }
 0x31d   : > { %2157 = vst.msk [vmem:[#allocation3 + $0x30] sm:$0xff] %vm590_vm0, %v2140_v6  ;;  %3345 = vrcp.f32 %v2502_v36 }
 0x31e   : > { %v2111_v63 = vpop.xlane.xlu0 %2110 }
 0x31f   : > { %v2138_v55 = vadd.f32 %v2111_v63, %v2090_v34  ;;  %v2500_v58 = vld [vmem:[#allocation3 + $0x8] sm:$0xff] }
 0x320   : > { %3347 = vrcp.f32 %v2500_v58 }
 0x321   : > { %2155 = vst.msk [vmem:[#allocation3 + $0x20] sm:$0xff] %vm590_vm0, %v2138_v55 }
 0x322   : > { %v3342_v56 = vpop.eup %3341 }
 0x323   : > { %2543 = vperm.xlu1 %3252, %v3342_v56   ;;  %v3344_v61 = vpop.eup %3343 }
 0x324   : > { %v2505_v62 = vld [vmem:[#allocation3 + $0x30] sm:$0xff] }
 0x325   : > { %3349 = vrcp.f32 %v2505_v62 }
 0x326   : > { %v2117_v3 = vpop.xlane.xlu1 %2116 }
 0x327   : > { %v3346_v10 = vpop.eup %3345  ;;  %v2141_v14 = vadd.f32 %v2117_v3, %v2093_v5  ;;  %2533 = vperm.xlu1 %3252, %v3344_v61  }
 0x328   : > { %2548 = vperm.xlu0 %3251, %v3346_v10   ;;  %v2503_v19 = vld [vmem:[#allocation3 + $0x20] sm:$0xff] }
 0x329   : > { %2158 = vst.msk [vmem:[#allocation3 + $0x38] sm:$0xff] %vm590_vm0, %v2141_v14  ;;  %3351 = vrcp.f32 %v2503_v19 }
 0x32a   : > { %v3348_v27 = vpop.eup %3347  ;;  %v2113_v31 = vpop.xlane.xlu1 %2112 }
 0x32b   : > { %v2139_v12 = vadd.f32 %v2113_v31, %v2091_v23 }
 0x32c   : > { %2538 = vperm.xlu0 %3251, %v3348_v27  }
 0x32d   : > { %2156 = vst.msk [vmem:[#allocation3 + $0x28] sm:$0xff] %vm590_vm0, %v2139_v12 }
 0x32e   : > { %v2123_v59 = vpop.xlane.xlu0 %2122  ;;  %v2125_v38 = vpop.xlane.xlu1 %2124 }
 0x32f   : > { %v3350_v2 = vpop.eup %3349  ;;  %v2144_v29 = vadd.f32 %v2123_v59, %v2096_v18  ;;  %v2145_v35 = vadd.f32 %v2125_v38, %v2097_v45 }
 0x330   : > { %2563 = vperm.xlu1 %3252, %v3350_v2   ;;  %v2506_v37 = vld [vmem:[#allocation3 + $0x38] sm:$0xff] }
 0x331   : > { %2161 = vst.msk [vmem:[#allocation3 + $0x50] sm:$0xff] %vm590_vm0, %v2144_v29  ;;  %2162 = vst.msk [vmem:[#allocation3 + $0x58] sm:$0xff] %vm590_vm0, %v2145_v35  ;;  %3353 = vrcp.f32 %v2506_v37 }
 0x332   : > { %v2119_v20 = vpop.xlane.xlu0 %2118  ;;  %v2121_v26 = vpop.xlane.xlu1 %2120 }
 0x333   : > { %v3352_v54 = vpop.eup %3351  ;;  %v2142_v39 = vadd.f32 %v2119_v20, %v2094_v44  ;;  %v2143_v22 = vadd.f32 %v2121_v26, %v2095_v40 }
 0x334   : > { %2553 = vperm.xlu1 %3252, %v3352_v54   ;;  %v2504_v9 = vld [vmem:[#allocation3 + $0x28] sm:$0xff] }
 0x335   : > { %2159 = vst.msk [vmem:[#allocation3 + $0x40] sm:$0xff] %vm590_vm0, %v2142_v39  ;;  %2160 = vst.msk [vmem:[#allocation3 + $0x48] sm:$0xff] %vm590_vm0, %v2143_v22  ;;  %3355 = vrcp.f32 %v2504_v9 }
 0x336   : > { %v2127_v21 = vpop.xlane.xlu0 %2126  ;;  %v2133_v49 = vpop.xlane.xlu1 %2132 }
 0x337   : > { %v2146_v53 = vadd.f32 %v2127_v21, %v2098_v11  ;;  %v2149_v1 = vadd.f32 %v2133_v49, %v2101_v28 }
 0x338   : > { %v2509_v15 = vld [vmem:[#allocation3 + $0x50] sm:$0xff]  ;;  %v2510_v4 = vld [vmem:[#allocation3 + $0x58] sm:$0xff] }
 0x339   : > { %2163 = vst.msk [vmem:[#allocation3 + $0x60] sm:$0xff] %vm590_vm0, %v2146_v53  ;;  %2166 = vst.msk [vmem:[#allocation3 + $0x78] sm:$0xff] %vm590_vm0, %v2149_v1  ;;  %3357 = vrcp.f32 %v2509_v15 }
 0x33a   : > { %v2131_v46 = vpop.xlane.xlu0 %2130  ;;  %v2129_v17 = vpop.xlane.xlu1 %2128  ;;  %3359 = vrcp.f32 %v2510_v4 }
 0x33b   : > { %v3354_v25 = vpop.eup %3353  ;;  %v2148_v57 = vadd.f32 %v2131_v46, %v2100_v51  ;;  %v2147_v24 = vadd.f32 %v2129_v17, %v2099_v41 }
 0x33c   : > { %2568 = vperm.xlu0 %3251, %v3354_v25   ;;  %v2507_v8 = vld [vmem:[#allocation3 + $0x40] sm:$0xff]  ;;  %v2508_v47 = vld [vmem:[#allocation3 + $0x48] sm:$0xff] }
 0x33d   : > { %2165 = vst.msk [vmem:[#allocation3 + $0x70] sm:$0xff] %vm590_vm0, %v2148_v57  ;;  %2164 = vst.msk [vmem:[#allocation3 + $0x68] sm:$0xff] %vm590_vm0, %v2147_v24  ;;  %3361 = vrcp.f32 %v2507_v8 }
 0x33e   : > { %3363 = vrcp.f32 %v2508_v47  ;;  %v2191_v31 = vpop.permute.xlu1 %2190 }
 0x33f   : > { %v3356_v16 = vpop.eup %3355  ;;  %v2264_v53 = vmul.f32 0.0, %v2191_v31 }
 0x340   : > { %2558 = vperm.xlu0 %3251, %v3356_v16   ;;  %v2511_v13 = vld [vmem:[#allocation3 + $0x60] sm:$0xff]  ;;  %v2514_v55 = vld [vmem:[#allocation3 + $0x78] sm:$0xff] }
 0x341   : > { %3365 = vrcp.f32 %v2511_v13 }
 0x342   : > { %v2186_v18 = vpop.permute.xlu0 %2185  ;;  %v2196_v59 = vpop.permute.xlu1 %2195 }
 0x343   : > { %v3358_v33 = vpop.eup %3357  ;;  %v2265_v28 = vmul.f32 0.0, %v2196_v59  ;;  %v2263_v1 = vmul.f32 0.0, %v2186_v18 }
 0x344   : > { %v3360_v6 = vpop.eup %3359  ;;  %2583 = vperm.xlu1 %3252, %v3358_v33   ;;  %v2513_v36 = vld [vmem:[#allocation3 + $0x70] sm:$0xff]  ;;  %v2512_v34 = vld [vmem:[#allocation3 + $0x68] sm:$0xff] }
 0x345   : > { %2588 = vperm.xlu0 %3251, %v3360_v6   ;;  %3367 = vrcp.f32 %v2513_v36 }
 0x346   : > { %3369 = vrcp.f32 %v2512_v34  ;;  %v2201_v50 = vpop.permute.xlu0 %2200  ;;  %v2206_v29 = vpop.permute.xlu1 %2205 }
 0x347   : > { %v3362_v63 = vpop.eup %3361  ;;  %3371 = vrcp.f32 %v2514_v55  ;;  %v2266_v21 = vmul.f32 0.0, %v2201_v50  ;;  %v2267_v34 = vmul.f32 0.0, %v2206_v29 }
 0x348   : > { %v3364_v58 = vpop.eup %3363  ;;  %2573 = vperm.xlu1 %3252, %v3362_v63  }
 0x349   : > { %2578 = vperm.xlu0 %3251, %v3364_v58  }
 0x34a   : > { %v2211_v37 = vpop.permute.xlu0 %2210  ;;  %v2216_v44 = vpop.permute.xlu1 %2215 }
 0x34b   : > { %v3366_v56 = vpop.eup %3365  ;;  %v2269_v16 = vmul.f32 0.0, %v2216_v44  ;;  %v2268_v63 = vmul.f32 0.0, %v2211_v37 }
 0x34c   : > { %2593 = vperm.xlu1 %3252, %v3366_v56  }
 0x34e   : > { %v2221_v40 = vpop.permute.xlu0 %2220  ;;  %v2226_v20 = vpop.permute.xlu1 %2225 }
 0x34f   : > { %v3368_v60 = vpop.eup %3367  ;;  %v2270_v13 = vmul.f32 0.0, %v2221_v40  ;;  %v2271_v50 = vmul.f32 0.0, %v2226_v20 }
 0x350   : > { %v3370_v62 = vpop.eup %3369  ;;  %2603 = vperm.xlu1 %3252, %v3368_v60  }
 0x351   : > { %2598 = vperm.xlu0 %3251, %v3370_v62   ;;  %v3372_v5 = vpop.eup %3371 }
 0x352   : > { %v2231_v26 = vpop.permute.xlu0 %2230  ;;  %v2236_v52 = vpop.permute.xlu1 %2235 }
 0x355   : > { %2608 = vperm.xlu0 %3251, %v3372_v5  }
 0x356   : > { %v2241_v42 = vpop.permute.xlu0 %2240  ;;  %v4047_v54 = vpop.permute.xlu1 %2245 }
 0x357   : > { %v2274_v31 = vmul.f32 0.0, %v2241_v42  ;;  %v2275_v20 = vmul.f32 0.0, %v4047_v54 }
 0x35a   : > { %v4049_v39 = vpop.permute.xlu0 %2250  ;;  %v4051_v22 = vpop.permute.xlu1 %2255 }
 0x35e   : > { %v3178_v61 = vpop.f32.mrb[0].mxu1  ;;  %v4053_v9 = vpop.permute.xlu0 %2260 }
 0x35f   : > { %v2369_v3 = vpop.f32.mrb[1].mxu1  ;;  %v2434_v49 = vadd.f32 %v3178_v61, %v2265_v28 }
 0x360   : > { %v3179_v7 = vpop.f32.mrb[2].mxu1  ;;  %v2432_v41 = vadd.f32 %v2369_v3, %v2263_v1  ;;  %v2273_v3 = vmul.f32 0.0, %v2236_v52 }
 0x361   : > { %v2372_v10 = vpop.f32.mrb[3].mxu1  ;;  %v2435_v30 = vadd.f32 %v3179_v7, %v2266_v21 }
 0x362   : > { %v2433_v46 = vadd.f32 %v2372_v10, %v2264_v53 }
 0x36e   : > { %v3182_v14 = vpop.f32.mrb[4].mxu1 }
 0x36f   : > { %v2385_v19 = vpop.f32.mrb[5].mxu1  ;;  %v2438_v33 = vadd.f32 %v3182_v14, %v2269_v16 }
 0x370   : > { %v3183_v23 = vpop.f32.mrb[6].mxu1  ;;  %v2436_v60 = vadd.f32 %v2385_v19, %v2267_v34 }
 0x371   : > { %v2388_v27 = vpop.f32.mrb[7].mxu1  ;;  %v2439_v6 = vadd.f32 %v3183_v23, %v2270_v13 }
 0x372   : > { %v2437_v62 = vadd.f32 %v2388_v27, %v2268_v63  ;;  %v2272_v27 = vmul.f32 0.0, %v2231_v26 }
 0x376   : > { %v4031_v32 = vpop.f32.mrb[8].mxu1 }
 0x377   : > { %v4033_v43 = vpop.f32.mrb[9].mxu1  ;;  %v2442_v18 = vadd.f32 %v4031_v32, %v2273_v3 }
 0x378   : > { %v4035_v12 = vpop.f32.mrb[10].mxu1  ;;  %v2440_v44 = vadd.f32 %v4033_v43, %v2271_v50 }
 0x379   : > { %v4037_v45 = vpop.f32.mrb[11].mxu1  ;;  %v2443_v23 = vadd.f32 %v4035_v12, %v2274_v31 }
 0x37a   : > { %v2441_v40 = vadd.f32 %v4037_v45, %v2272_v27 }
 0x37e   : > { %v4039_v38 = vpop.f32.mrb[12].mxu1 }
 0x37f   : > { %v4041_v0 = vpop.f32.mrb[13].mxu1 }
 0x380   : > { %v4043_v2 = vpop.f32.mrb[14].mxu1  ;;  %v2444_v26 = vadd.f32 %v4041_v0, %v2275_v20 }
 0x381   : > { %v4045_v35 = vpop.f32.mrb[15].mxu1 }
 0x3a2   : > { %v2544_v11 = vpop.permute.xlu1 %2543 }
 0x3a3   : > { %v2613_v15 = vmul.f32 %v2544_v11, %v2434_v49  ;;  %v2276_v49 = vmul.f32 0.0, %v4049_v39 }
 0x3a5   : > { %v2445_v43 = vadd.f32 %v4045_v35, %v2276_v49 }
 0x3a6   : > { %v2534_v51 = vpop.permute.xlu1 %2533 }
 0x3a7   : > { %v2549_v48 = vpop.permute.xlu0 %2548  ;;  %v2611_v57 = vmul.f32 %v2534_v51, %v2432_v41 }
 0x3a8   : > { %v2614_v4 = vmul.f32 %v2549_v48, %v2435_v30  ;;  %v2277_v30 = vmul.f32 0.0, %v4051_v22  ;;  %v2278_v48 = vmul.f32 0.0, %v4053_v9 }
 0x3aa   : > { %v3057_v17 = vpack.c.bf16 %v2614_v4, %v2613_v15  ;;  %v2446_v4 = vadd.f32 %v4039_v38, %v2277_v30  ;;  %v2447_v54 = vadd.f32 %v4043_v2, %v2278_v48 }
 0x3ab   : > { %v2539_v25 = vpop.permute.xlu0 %2538 }
 0x3ac   : > { %3089 = vst [vmem:[%s4056_s29 + $0x8] sm:$0xff] %v3057_v17   ;;  %v2612_v24 = vmul.f32 %v2539_v25, %v2433_v46 }
 0x3ae   : > { %v3052_v8 = vpack.c.bf16 %v2612_v24, %v2611_v57 }
 0x3af   : > { %v2564_v47 = vpop.permute.xlu1 %2563 }
 0x3b0   : > { %3053 = vst [vmem:[%s4056_s29] sm:$0xff] %v3052_v8   ;;  %v2617_v55 = vmul.f32 %v2564_v47, %v2438_v33 }
 0x3b3   : > { %v2554_v56 = vpop.permute.xlu1 %2553  ;;  %v2740_v35 = vld [vmem:[%s4056_s29 + $0x8] sm:$0xf] (%p3504_p6)  ;;  %v2742_v22 = vld [vmem:[%s4056_s29 + $0xc] sm:$0xf] (%p3504_p6) }
 0x3b4   : > { %v2615_v7 = vmul.f32 %v2554_v56, %v2436_v60  ;;  %2741 = vst [vmem:[%s2720_s7 + $0x10] sm:$0xf] (%p3504_p6), %v2740_v35  ;;  %2743 = vst [vmem:[%s2720_s7 + $0x18] sm:$0xf] (%p3504_p6), %v2742_v22 }
 0x3b7   : > { %v2736_v38 = vld [vmem:[%s4056_s29] sm:$0xf] (%p3504_p6)  ;;  %v2738_v2 = vld [vmem:[%s4056_s29 + $0x4] sm:$0xf] (%p3504_p6) }
 0x3b8   : > { %2737 = vst [vmem:[%s2720_s7] sm:$0xf] (%p3504_p6), %v2736_v38  ;;  %2739 = vst [vmem:[%s2720_s7 + $0x8] sm:$0xf] (%p3504_p6), %v2738_v2 }
 0x3bb   : > { %v2569_v36 = vpop.permute.xlu0 %2568 }
 0x3bc   : > { %v2618_v58 = vmul.f32 %v2569_v36, %v2439_v6 }
 0x3be   : > { %v3067_v5 = vpack.c.bf16 %v2618_v58, %v2617_v55 }
 0x3bf   : > { %v2559_v61 = vpop.permute.xlu0 %2558 }
 0x3c0   : > { %3091 = vst [vmem:[%s4056_s29 + $0x18] sm:$0xff] %v3067_v5   ;;  %v2616_v10 = vmul.f32 %v2559_v61, %v2437_v62 }
 0x3c2   : > { %v3062_v14 = vpack.c.bf16 %v2616_v10, %v2615_v7 }
 0x3c3   : > { %v2584_v59 = vpop.permute.xlu1 %2583 }
 0x3c4   : > { %3090 = vst [vmem:[%s4056_s29 + $0x10] sm:$0xff] %v3062_v14   ;;  %v2589_v29 = vpop.permute.xlu0 %2588  ;;  %v2621_v19 = vmul.f32 %v2584_v59, %v2442_v18 }
 0x3c5   : > { %v2622_v37 = vmul.f32 %v2589_v29, %v2443_v23 }
 0x3c7   : > { %v3077_v52 = vpack.c.bf16 %v2622_v37, %v2621_v19  ;;  %v2574_v42 = vpop.permute.xlu1 %2573  ;;  %v2748_v25 = vld [vmem:[%s4056_s29 + $0x18] sm:$0xf] (%p3504_p6)  ;;  %v2750_v57 = vld [vmem:[%s4056_s29 + $0x1c] sm:$0xf] (%p3504_p6) }
 0x3c8   : > { %v2579_v11 = vpop.permute.xlu0 %2578  ;;  %v2619_v32 = vmul.f32 %v2574_v42, %v2440_v44  ;;  %2749 = vst [vmem:[%s2720_s7 + $0x30] sm:$0xf] (%p3504_p6), %v2748_v25  ;;  %2751 = vst [vmem:[%s2720_s7 + $0x38] sm:$0xf] (%p3504_p6), %v2750_v57 }
 0x3c9   : > { %3093 = vst [vmem:[%s4056_s29 + $0x28] sm:$0xff] %v3077_v52   ;;  %v2620_v28 = vmul.f32 %v2579_v11, %v2441_v40 }
 0x3cb   : > { %v3072_v21 = vpack.c.bf16 %v2620_v28, %v2619_v32  ;;  %v2594_v12 = vpop.permute.xlu1 %2593  ;;  %v2744_v9 = vld [vmem:[%s4056_s29 + $0x10] sm:$0xf] (%p3504_p6)  ;;  %v2746_v17 = vld [vmem:[%s4056_s29 + $0x14] sm:$0xf] (%p3504_p6) }
 0x3cc   : > { %v2623_v53 = vmul.f32 %v2594_v12, %v2444_v26  ;;  %2745 = vst [vmem:[%s2720_s7 + $0x20] sm:$0xf] (%p3504_p6), %v2744_v9  ;;  %2747 = vst [vmem:[%s2720_s7 + $0x28] sm:$0xf] (%p3504_p6), %v2746_v17 }
 0x3cd   : > { %3092 = vst [vmem:[%s4056_s29 + $0x20] sm:$0xff] %v3072_v21  }
 0x3cf   : > { %v2604_v15 = vpop.permute.xlu1 %2603 }
 0x3d0   : > { %v2599_v45 = vpop.permute.xlu0 %2598  ;;  %v2625_v41 = vmul.f32 %v2604_v15, %v2446_v4  ;;  %v2756_v47 = vld [vmem:[%s4056_s29 + $0x28] sm:$0xf] (%p3504_p6)  ;;  %v2758_v16 = vld [vmem:[%s4056_s29 + $0x2c] sm:$0xf] (%p3504_p6) }
 0x3d1   : > { %v2624_v1 = vmul.f32 %v2599_v45, %v2445_v43  ;;  %2757 = vst [vmem:[%s2720_s7 + $0x50] sm:$0xf] (%p3504_p6), %v2756_v47  ;;  %2759 = vst [vmem:[%s2720_s7 + $0x58] sm:$0xf] (%p3504_p6), %v2758_v16 }
 0x3d3   : > { %v3082_v51 = vpack.c.bf16 %v2624_v1, %v2623_v53  ;;  %2713 = sbr.rel (!%p3504_p6) target bundleno = 994 (0x3e2), region = 175 }
 0x3d4   : > { %v2609_v39 = vpop.permute.xlu0 %2608  ;;  %v2752_v24 = vld [vmem:[%s4056_s29 + $0x20] sm:$0xf] (%p3504_p6)  ;;  %v2754_v8 = vld [vmem:[%s4056_s29 + $0x24] sm:$0xf] (%p3504_p6) }
 0x3d5   : > { %3094 = vst [vmem:[%s4056_s29 + $0x30] sm:$0xff] %v3082_v51   ;;  %v2626_v0 = vmul.f32 %v2609_v39, %v2447_v54  ;;  %2753 = vst [vmem:[%s2720_s7 + $0x40] sm:$0xf] (%p3504_p6), %v2752_v24 }
 0x3d6   : > { %2755 = vst [vmem:[%s2720_s7 + $0x48] sm:$0xf] (%p3504_p6), %v2754_v8 }
 0x3d7   : > { %v3087_v46 = vpack.c.bf16 %v2626_v0, %v2625_v41 }
 0x3d9   : > { %3095 = vst [vmem:[%s4056_s29 + $0x38] sm:$0xff] %v3087_v46  }
 0x3dc   : > { %v2760_v13 = vld [vmem:[%s4056_s29 + $0x30] sm:$0xf]  ;;  %v2762_v33 = vld [vmem:[%s4056_s29 + $0x34] sm:$0xf] }
 0x3dd   : > { %2761 = vst [vmem:[%s2720_s7 + $0x60] sm:$0xf] %v2760_v13  ;;  %2763 = vst [vmem:[%s2720_s7 + $0x68] sm:$0xf] %v2762_v33 }
 0x3e0   : > { %v2764_v6 = vld [vmem:[%s4056_s29 + $0x38] sm:$0xf]  ;;  %v2766_v36 = vld [vmem:[%s4056_s29 + $0x3c] sm:$0xf] }
 0x3e1   : > { %2765 = vst [vmem:[%s2720_s7 + $0x70] sm:$0xf] %v2764_v6  ;;  %2767 = vst [vmem:[%s2720_s7 + $0x78] sm:$0xf] %v2766_v36 }
 0x3e2 PF: > { %s13_s18 = sadd.s32 1, %s3427_s18   ;;  %s4142_s12 = smov %s3407_s13 }
 0x3e3   : > { %p10_p12 = scmp.ge.s32.totalorder %s13_s18, 6   ;;  %s4143_s13 = smov %s3512_s28 }
 0x3e4   : > { %s4144_s14 = smov %s3419_s16  ;;  %s4145_s15 = smov %s3423_s17 }
 0x3e5   : > { %s4146_s16 = smov %s4149_s19  ;;  %s4147_s17 = smov %s4153_s20 }
 0x3e6   :  { %12 = sbr.rel (!%p10_p12) target bundleno = 4 (0x4), region = 263 }

// kernel: full_song_transformer_decoder.10
= control target key start
LH: loop header
LB: loop body
LE: loop exit
PB: predicated region body
PF: predicated region fallthrough
CT: control target
= control target key end

     0   :  { %s4324_s21 = smov 0   ;;  %s4326_s22 = smov 0   ;;  %s6111_s0 = inlined_call_operand.vmem [shape: bf16[2,128,256], index: 0, kind: input, shape index: {}]   ;;  %s6112_s1 = inlined_call_operand.vmem [shape: f32[2,128,256], index: 1, kind: input, shape index: {}]   ;;  %s6113_s2 = inlined_call_operand.vmem [shape: bf16[256,256], index: 2, kind: input, shape index: {}]   ;;  %s6114_s3 = inlined_call_operand.vmem [shape: f32[1,256], index: 3, kind: input, shape index: {}]   ;;  %s6115_s4 = inlined_call_operand.vmem [shape: f32[1,256], index: 4, kind: input, shape index: {}]   ;;  %s6116_s5 = inlined_call_operand.vmem [shape: f32[1,256], index: 5, kind: input, shape index: {}]   ;;  %s6117_s6 = inlined_call_operand.vmem [shape: bf16[256,512], index: 6, kind: input, shape index: {}]   ;;  %s6118_s7 = inlined_call_operand.vmem [shape: f32[1,512], index: 7, kind: input, shape index: {}]   ;;  %s6119_s8 = inlined_call_operand.vmem [shape: bf16[512,256], index: 8, kind: input, shape index: {}]   ;;  %s6120_s9 = inlined_call_operand.vmem [shape: f32[1,256], index: 9, kind: input, shape index: {}]   ;;  %s6121_s10 = inlined_call_operand.vmem [shape: f32[1,256], index: 10, kind: input, shape index: {}]   ;;  %s6122_s11 = inlined_call_operand.vmem [shape: f32[1,256], index: 11, kind: input, shape index: {}]   ;;  %s6123_s12 = inlined_call_operand.vmem [shape: f32[2,128,256], index: 12, kind: output, shape index: {}]  }
   0x1   :  { %s4328_s23 = smov 0  }
   0x2 LB: > { %s41_s24 = sadd.s32 1, %s4253_s22  ;;  %p3631_p0 = scmp.ge.s32.totalorder %s4257_s23, 1  ;;  %s4257_s23 = sphi %s4328_s23, %s22_s23   ;;  %s4253_s22 = sphi %s4326_s22, %s6218_s22   ;;  %s4249_s21 = sphi %s4324_s21, %s6217_s21  }
   0x3   : > { %p43_p1 = scmp.ge.s32.totalorder %s41_s24, 2  ;;  %p442_p2 = scmp.lt.s32.totalorder %s4257_s23, 3 }
   0x5   : > { %s6220_s24 = smov (%p43_p1, %s41_s24), 0  ;;  %p443_p3 = pnand %p3631_p0, %p442_p2 }
   0x7   : > { %446 = sbr.rel (%p443_p3) target bundleno = 1463 (0x5b7), region = 68 }
   0xe   : > { %v3907_v0 = vld [vmem:[%s6113_s2 + $0x4] ss:$8 sps:$4 sm:$0xff]   ;;  %v3909_v1 = vld [vmem:[%s6113_s2] ss:$8 sps:$4 sm:$0xff]   ;;  %v3910_v2 = vld [vmem:[%s6113_s2 + $0x14] ss:$8 sps:$4 sm:$0xff]   ;;  %v624_v48 = vlaneseq }
   0xf   : > { %874 = vmatprep.subr.bf16.mxu0 %v3907_v0  ;;  %v3912_v3 = vld [vmem:[%s6113_s2 + $0x10] ss:$8 sps:$4 sm:$0xff]   ;;  %v3913_v4 = vld [vmem:[%s6113_s2 + $0x24] ss:$8 sps:$4 sm:$0xff]   ;;  %v3915_v5 = vld [vmem:[%s6113_s2 + $0x20] ss:$8 sps:$4 sm:$0xff]  }
  0x10   : > { %875 = vmatpush1.bf16.msra.mxu0 %v3909_v1  ;;  %v3916_v6 = vld [vmem:[%s6113_s2 + $0x34] ss:$8 sps:$4 sm:$0xff]   ;;  %p520_p4 = scmp.lt.s32.totalorder %s4249_s21, 1  ;;  %v3918_v7 = vld [vmem:[%s6113_s2 + $0x30] ss:$8 sps:$4 sm:$0xff]   ;;  %v4462_v49 = vshrl.u32 %v624_v48, 7 }
  0x11   : > { %876 = vmatprep.subr.bf16.mxu0 %v3910_v2  ;;  %v3919_v8 = vld [vmem:[%s6113_s2 + $0x44] ss:$8 sps:$4 sm:$0xff]   ;;  %v3921_v9 = vld [vmem:[%s6113_s2 + $0x40] ss:$8 sps:$4 sm:$0xff]   ;;  %v3922_v10 = vld [vmem:[%s6113_s2 + $0x54] ss:$8 sps:$4 sm:$0xff]  }
  0x12   : > { %s6222_s21 = smov (!%p520_p4, %s4249_s21), 1  ;;  %v3924_v11 = vld [vmem:[%s6113_s2 + $0x50] ss:$8 sps:$4 sm:$0xff]   ;;  %v3925_v12 = vld [vmem:[%s6113_s2 + $0x64] ss:$8 sps:$4 sm:$0xff]   ;;  %v4465_v50 = vsub.s32 0, %v4462_v49 }
  0x13   : > { %s3816_s15 = sshll.u32 %s6222_s21, 7  ;;  %v3927_v14 = vld [vmem:[%s6113_s2 + $0x60] ss:$8 sps:$4 sm:$0xff]   ;;  %v3928_v15 = vld [vmem:[%s6113_s2 + $0x74] ss:$8 sps:$4 sm:$0xff]   ;;  %s3817_s26 = sshll.u32 %s6222_s21, 8 }
  0x14   : > { %877 = vmatpush1.bf16.msra.mxu0 %v3912_v3  ;;  %s4384_s20 = scalar_lea.vmem %s6111_s0, %s3816_s15  ;;  %v3930_v16 = vld [vmem:[%s6113_s2 + $0x70] ss:$8 sps:$4 sm:$0xff]   ;;  %v3931_v17 = vld [vmem:[%s6113_s2 + $0x84] ss:$8 sps:$4 sm:$0xff]   ;;  %v3933_v18 = vld [vmem:[%s6113_s2 + $0x80] ss:$8 sps:$4 sm:$0xff]   ;;  %s5978_s29 = scalar_lea.vmem %s6123_s12, %s3817_s26 }
  0x15   : > { %878 = vmatprep.subr.bf16.mxu0 %v3913_v4  ;;  %v3957_v13 = vld [vmem:[%s4384_s20 + $0x4] ss:$8 sps:$4 sm:$0xff]   ;;  %v3934_v19 = vld [vmem:[%s6113_s2 + $0x94] ss:$8 sps:$4 sm:$0xff]   ;;  %v3936_v20 = vld [vmem:[%s6113_s2 + $0x90] ss:$8 sps:$4 sm:$0xff]  }
  0x16   : > { %906 = vmatprep.mubr.bf16.mxu0 %v3957_v13  ;;  %v3937_v21 = vld [vmem:[%s6113_s2 + $0xa4] ss:$8 sps:$4 sm:$0xff]   ;;  %v3939_v22 = vld [vmem:[%s6113_s2 + $0xa0] ss:$8 sps:$4 sm:$0xff]   ;;  %v3940_v23 = vld [vmem:[%s6113_s2 + $0xb4] ss:$8 sps:$4 sm:$0xff]  }
  0x17   : > { %v3942_v24 = vld [vmem:[%s6113_s2 + $0xb0] ss:$8 sps:$4 sm:$0xff]   ;;  %v3943_v25 = vld [vmem:[%s6113_s2 + $0xc4] ss:$8 sps:$4 sm:$0xff]   ;;  %v3945_v26 = vld [vmem:[%s6113_s2 + $0xc0] ss:$8 sps:$4 sm:$0xff]  }
  0x18   : > { %879 = vmatpush1.bf16.msra.mxu0 %v3915_v5  ;;  %v3946_v27 = vld [vmem:[%s6113_s2 + $0xd4] ss:$8 sps:$4 sm:$0xff]   ;;  %v3948_v28 = vld [vmem:[%s6113_s2 + $0xd0] ss:$8 sps:$4 sm:$0xff]   ;;  %v3949_v29 = vld [vmem:[%s6113_s2 + $0xe4] ss:$8 sps:$4 sm:$0xff]  }
  0x19   : > { %880 = vmatprep.subr.bf16.mxu0 %v3916_v6  ;;  %v3951_v30 = vld [vmem:[%s6113_s2 + $0xe0] ss:$8 sps:$4 sm:$0xff]   ;;  %v3952_v31 = vld [vmem:[%s6113_s2 + $0xf4] ss:$8 sps:$4 sm:$0xff]   ;;  %v3954_v32 = vld [vmem:[%s6113_s2 + $0xf0] ss:$8 sps:$4 sm:$0xff]  }
  0x1a   : > { %v3955_v33 = vld [vmem:[%s4384_s20] ss:$8 sps:$4 sm:$0xff]   ;;  %v3958_v34 = vld [vmem:[%s4384_s20 + $0x14] ss:$8 sps:$4 sm:$0xff]   ;;  %v3960_v35 = vld [vmem:[%s4384_s20 + $0x10] ss:$8 sps:$4 sm:$0xff]  }
  0x1b   : > { %v3961_v36 = vld [vmem:[%s4384_s20 + $0x24] ss:$8 sps:$4 sm:$0xff]   ;;  %v3963_v37 = vld [vmem:[%s4384_s20 + $0x20] ss:$8 sps:$4 sm:$0xff]   ;;  %v3964_v38 = vld [vmem:[%s4384_s20 + $0x34] ss:$8 sps:$4 sm:$0xff]  }
  0x1c   : > { %881 = vmatpush1.bf16.msra.mxu0 %v3918_v7  ;;  %v3966_v39 = vld [vmem:[%s4384_s20 + $0x30] ss:$8 sps:$4 sm:$0xff]   ;;  %v3967_v40 = vld [vmem:[%s4384_s20 + $0x44] ss:$8 sps:$4 sm:$0xff]   ;;  %v3969_v41 = vld [vmem:[%s4384_s20 + $0x40] ss:$8 sps:$4 sm:$0xff]  }
  0x1d   : > { %882 = vmatprep.subr.bf16.mxu0 %v3919_v8  ;;  %v3970_v42 = vld [vmem:[%s4384_s20 + $0x54] ss:$8 sps:$4 sm:$0xff]   ;;  %v3972_v43 = vld [vmem:[%s4384_s20 + $0x50] ss:$8 sps:$4 sm:$0xff]   ;;  %v3973_v44 = vld [vmem:[%s4384_s20 + $0x64] ss:$8 sps:$4 sm:$0xff]  }
  0x1e   : > { %v3975_v45 = vld [vmem:[%s4384_s20 + $0x60] ss:$8 sps:$4 sm:$0xff]   ;;  %v3976_v46 = vld [vmem:[%s4384_s20 + $0x74] ss:$8 sps:$4 sm:$0xff]   ;;  %v3978_v47 = vld [vmem:[%s4384_s20 + $0x70] ss:$8 sps:$4 sm:$0xff]   ;;  %s4479_s20 = scalar_lea.vmem %s6112_s1, %s3817_s26 }
  0x1f   : > { %v622_v51 = vld [vmem:[%s6114_s3] sm:$0x3]  ;;  %v4472_v52 = vsub.s32 1, %v4462_v49  ;;  %v988_v59 = vld [vmem:[%s4479_s20 + $0x8] sm:$0xff]  ;;  %v989_v62 = vld [vmem:[%s4479_s20 + $0x10] sm:$0xff] }
  0x20   : > { %883 = vmatpush1.bf16.msra.mxu0 %v3921_v9  ;;  %v4482_v53 = vrot.slane %v622_v51, %v4465_v50  ;;  %v987_v56 = vld [vmem:[%s4479_s20] sm:$0xff]  ;;  %v990_v1 = vld [vmem:[%s4479_s20 + $0x18] sm:$0xff] }
  0x21   : > { %884 = vmatprep.subr.bf16.mxu0 %v3922_v10  ;;  %v4485_v54 = vrot.slane %v622_v51, %v4472_v52  ;;  %v991_v9 = vld [vmem:[%s4479_s20 + $0x20] sm:$0xff]  ;;  %v1000_v51 = vld [vmem:[%s4479_s20 + $0x68] sm:$0xff] }
  0x24   : > { %885 = vmatpush1.bf16.msra.mxu0 %v3924_v11 }
  0x25   : > { %886 = vmatprep.subr.bf16.mxu0 %v3925_v12  ;;  %v992_v12 = vld [vmem:[%s4479_s20 + $0x28] sm:$0xff] }
  0x28   : > { %887 = vmatpush1.bf16.msra.mxu0 %v3927_v14 }
  0x29   : > { %888 = vmatprep.subr.bf16.mxu0 %v3928_v15  ;;  %v993_v15 = vld [vmem:[%s4479_s20 + $0x30] sm:$0xff] }
  0x2c   : > { %889 = vmatpush1.bf16.msra.mxu0 %v3930_v16 }
  0x2d   : > { %890 = vmatprep.subr.bf16.mxu0 %v3931_v17 }
  0x30   : > { %891 = vmatpush1.bf16.msra.mxu0 %v3933_v18 }
  0x31   : > { %892 = vmatprep.subr.bf16.mxu0 %v3934_v19  ;;  %v994_v19 = vld [vmem:[%s4479_s20 + $0x38] sm:$0xff] }
  0x34   : > { %893 = vmatpush1.bf16.msra.mxu0 %v3936_v20 }
  0x35   : > { %894 = vmatprep.subr.bf16.mxu0 %v3937_v21 }
  0x38   : > { %895 = vmatpush1.bf16.msra.mxu0 %v3939_v22 }
  0x39   : > { %896 = vmatprep.subr.bf16.mxu0 %v3940_v23 }
  0x3c   : > { %897 = vmatpush1.bf16.msra.mxu0 %v3942_v24 }
  0x3d   : > { %898 = vmatprep.subr.bf16.mxu0 %v3943_v25 }
  0x40   : > { %899 = vmatpush1.bf16.msra.mxu0 %v3945_v26 }
  0x41   : > { %900 = vmatprep.subr.bf16.mxu0 %v3946_v27  ;;  %v995_v27 = vld [vmem:[%s4479_s20 + $0x40] sm:$0xff] }
  0x44   : > { %901 = vmatpush1.bf16.msra.mxu0 %v3948_v28 }
  0x45   : > { %902 = vmatprep.subr.bf16.mxu0 %v3949_v29 }
  0x48   : > { %903 = vmatpush1.bf16.msra.mxu0 %v3951_v30  ;;  %v996_v30 = vld [vmem:[%s4479_s20 + $0x48] sm:$0xff] }
  0x49   : > { %904 = vmatprep.subr.bf16.mxu0 %v3952_v31 }
  0x4c   : > { %905 = vmatpush1.bf16.msra.mxu0 %v3954_v32 }
  0x4f   : > { %907 = vmatmul.mubr.bf16.vlgmr.msra.gmra.mrb[0].mxu0 %v3955_v33  ;;  %v997_v33 = vld [vmem:[%s4479_s20 + $0x50] sm:$0xff] }
  0x50   : > { %916 = vmatprep.mubr.bf16.mxu0 %v3958_v34 }
  0x57   : > { %917 = vmatmul.mubr.bf16.gmra.mrb[4].mxu0 %v3960_v35 }
  0x58   : > { %926 = vmatprep.mubr.bf16.mxu0 %v3961_v36 }
  0x5f   : > { %927 = vmatmul.mubr.bf16.gmra.mrb[8].mxu0 %v3963_v37 }
  0x60   : > { %936 = vmatprep.mubr.bf16.mxu0 %v3964_v38  ;;  %v998_v38 = vld [vmem:[%s4479_s20 + $0x58] sm:$0xff] }
  0x67   : > { %937 = vmatmul.mubr.bf16.gmra.mrb[12].mxu0 %v3966_v39 }
  0x68   : > { %946 = vmatprep.mubr.bf16.mxu0 %v3967_v40 }
  0x6f   : > { %947 = vmatmul.mubr.bf16.gmra.mrb[16].mxu0 %v3969_v41 }
  0x70   : > { %956 = vmatprep.mubr.bf16.mxu0 %v3970_v42 }
  0x77   : > { %957 = vmatmul.mubr.bf16.gmra.mrb[20].mxu0 %v3972_v43 }
  0x78   : > { %966 = vmatprep.mubr.bf16.mxu0 %v3973_v44 }
  0x7f   : > { %967 = vmatmul.mubr.bf16.gmra.mrb[24].mxu0 %v3975_v45  ;;  %v999_v45 = vld [vmem:[%s4479_s20 + $0x60] sm:$0xff] }
  0x80   : > { %976 = vmatprep.mubr.bf16.mxu0 %v3976_v46 }
  0x87   : > { %977 = vmatmul.mubr.bf16.gmra.mrb[28].mxu0 %v3978_v47 }
 0x122   : > { %v908_v55 = vpop.f32.mrb[0].mxu0 }
 0x123   : > { %v909_v57 = vadd.f32 %v908_v55, %v4482_v53  ;;  %v910_v58 = vpop.f32.mrb[1].mxu0 }
 0x124   : > { %v911_v60 = vadd.f32 %v910_v58, %v4485_v54  ;;  %v912_v61 = vpop.f32.mrb[2].mxu0 }
 0x125   : > { %v913_v63 = vadd.f32 %v912_v61, %v4482_v53  ;;  %v914_v0 = vpop.f32.mrb[3].mxu0  ;;  %v4494_v2 = vadd.f32 %v987_v56, %v909_v57  ;;  %v1001_v57 = vld [vmem:[%s4479_s20 + $0x70] sm:$0xff]  ;;  %v1002_v61 = vld [vmem:[%s4479_s20 + $0x78] sm:$0xff] }
 0x126   : > { %v915_v3 = vadd.f32 %v914_v0, %v4485_v54  ;;  %v4497_v4 = vadd.f32 %v988_v59, %v911_v60 }
 0x127   : > { %v4499_v5 = vadd.f32 %v989_v62, %v913_v63 }
 0x128   : > { %v4501_v6 = vadd.f32 %v990_v1, %v915_v3  ;;  %v1053_v7 = vadd.f32 %v4497_v4, %v4494_v2 }
 0x12a   : > { %v918_v8 = vpop.f32.mrb[4].mxu0  ;;  %1054 = vadd.xlane.f32.xlu0 %v1053_v7  ;;  %v1056_v16 = vadd.f32 %v4501_v6, %v4499_v5 }
 0x12b   : > { %v919_v10 = vadd.f32 %v918_v8, %v4482_v53  ;;  %v920_v11 = vpop.f32.mrb[5].mxu0  ;;  %v1003_v8 = vld [vmem:[%s4479_s20 + $0x80] sm:$0xff] }
 0x12c   : > { %v921_v13 = vadd.f32 %v920_v11, %v4485_v54  ;;  %v922_v14 = vpop.f32.mrb[6].mxu0 }
 0x12d   : > { %v923_v17 = vadd.f32 %v922_v14, %v4482_v53  ;;  %v924_v18 = vpop.f32.mrb[7].mxu0  ;;  %v4514_v20 = vadd.f32 %v991_v9, %v919_v10 }
 0x12e   : > { %v925_v21 = vadd.f32 %v924_v18, %v4485_v54  ;;  %1057 = vadd.xlane.f32.xlu0 %v1056_v16  ;;  %v4517_v22 = vadd.f32 %v992_v12, %v921_v13  ;;  %v1004_v12 = vld [vmem:[%s4479_s20 + $0x88] sm:$0xff] }
 0x12f   : > { %v4519_v23 = vadd.f32 %v993_v15, %v923_v17  ;;  %v1005_v15 = vld [vmem:[%s4479_s20 + $0x90] sm:$0xff] }
 0x130   : > { %v4521_v24 = vadd.f32 %v994_v19, %v925_v21  ;;  %v1059_v25 = vadd.f32 %v4517_v22, %v4514_v20  ;;  %v1006_v19 = vld [vmem:[%s4479_s20 + $0x98] sm:$0xff] }
 0x132   : > { %v928_v26 = vpop.f32.mrb[8].mxu0  ;;  %1060 = vadd.xlane.f32.xlu1 %v1059_v25  ;;  %v1062_v34 = vadd.f32 %v4521_v24, %v4519_v23 }
 0x133   : > { %v929_v28 = vadd.f32 %v928_v26, %v4482_v53  ;;  %v930_v29 = vpop.f32.mrb[9].mxu0 }
 0x134   : > { %v931_v31 = vadd.f32 %v930_v29, %v4485_v54  ;;  %v932_v32 = vpop.f32.mrb[10].mxu0 }
 0x135   : > { %v4532_v35 = vadd.f32 %v995_v27, %v929_v28  ;;  %v933_v36 = vadd.f32 %v932_v32, %v4482_v53  ;;  %v934_v37 = vpop.f32.mrb[11].mxu0 }
 0x136   : > { %v4536_v39 = vadd.f32 %v996_v30, %v931_v31  ;;  %v935_v40 = vadd.f32 %v934_v37, %v4485_v54  ;;  %1063 = vadd.xlane.f32.xlu1 %v1062_v34  ;;  %v1007_v30 = vld [vmem:[%s4479_s20 + $0xa0] sm:$0xff]  ;;  %v1008_v34 = vld [vmem:[%s4479_s20 + $0xa8] sm:$0xff] }
 0x137   : > { %v4539_v41 = vadd.f32 %v997_v33, %v933_v36 }
 0x138   : > { %v4541_v42 = vadd.f32 %v998_v38, %v935_v40  ;;  %v1065_v43 = vadd.f32 %v4536_v39, %v4532_v35  ;;  %v1009_v38 = vld [vmem:[%s4479_s20 + $0xb0] sm:$0xff] }
 0x13a   : > { %v938_v44 = vpop.f32.mrb[12].mxu0  ;;  %1066 = vadd.xlane.f32.xlu0 %v1065_v43  ;;  %v1068_v46 = vadd.f32 %v4541_v42, %v4539_v41 }
 0x13b   : > { %v939_v47 = vadd.f32 %v938_v44, %v4482_v53  ;;  %v940_v48 = vpop.f32.mrb[13].mxu0 }
 0x13c   : > { %v941_v55 = vadd.f32 %v940_v48, %v4485_v54  ;;  %v942_v56 = vpop.f32.mrb[14].mxu0  ;;  %1069 = vadd.xlane.f32.xlu1 %v1068_v46 }
 0x13d   : > { %v4552_v58 = vadd.f32 %v999_v45, %v939_v47  ;;  %v943_v59 = vadd.f32 %v942_v56, %v4482_v53  ;;  %v944_v60 = vpop.f32.mrb[15].mxu0  ;;  %v1010_v45 = vld [vmem:[%s4479_s20 + $0xb8] sm:$0xff] }
 0x13e   : > { %v4556_v62 = vadd.f32 %v1000_v51, %v941_v55  ;;  %v945_v63 = vadd.f32 %v944_v60, %v4485_v54 }
 0x13f   : > { %v4559_v0 = vadd.f32 %v1001_v57, %v943_v59  ;;  %v1011_v57 = vld [vmem:[%s4479_s20 + $0xc0] sm:$0xff] }
 0x140   : > { %v4561_v1 = vadd.f32 %v1002_v61, %v945_v63  ;;  %v1071_v3 = vadd.f32 %v4556_v62, %v4552_v58  ;;  %v1012_v63 = vld [vmem:[%s4479_s20 + $0xc8] sm:$0xff] }
 0x142   : > { %v948_v7 = vpop.f32.mrb[16].mxu0  ;;  %1072 = vadd.xlane.f32.xlu0 %v1071_v3  ;;  %v1074_v9 = vadd.f32 %v4561_v1, %v4559_v0 }
 0x143   : > { %v949_v10 = vadd.f32 %v948_v7, %v4482_v53  ;;  %v950_v11 = vpop.f32.mrb[17].mxu0 }
 0x144   : > { %v951_v13 = vadd.f32 %v950_v11, %v4485_v54  ;;  %v952_v14 = vpop.f32.mrb[18].mxu0  ;;  %1075 = vadd.xlane.f32.xlu1 %v1074_v9 }
 0x145   : > { %v4572_v16 = vadd.f32 %v1003_v8, %v949_v10  ;;  %v953_v17 = vadd.f32 %v952_v14, %v4482_v53  ;;  %v954_v18 = vpop.f32.mrb[19].mxu0  ;;  %v1013_v8 = vld [vmem:[%s4479_s20 + $0xd0] sm:$0xff] }
 0x146   : > { %v4576_v21 = vadd.f32 %v1004_v12, %v951_v13  ;;  %v955_v25 = vadd.f32 %v954_v18, %v4485_v54  ;;  %v1014_v12 = vld [vmem:[%s4479_s20 + $0xd8] sm:$0xff] }
 0x147   : > { %v4579_v26 = vadd.f32 %v1005_v15, %v953_v17 }
 0x148   : > { %v4581_v27 = vadd.f32 %v1006_v19, %v955_v25  ;;  %v1077_v28 = vadd.f32 %v4576_v21, %v4572_v16  ;;  %v1015_v25 = vld [vmem:[%s4479_s20 + $0xe0] sm:$0xff] }
 0x14a   : > { %v958_v29 = vpop.f32.mrb[20].mxu0  ;;  %1078 = vadd.xlane.f32.xlu0 %v1077_v28  ;;  %v1080_v31 = vadd.f32 %v4581_v27, %v4579_v26 }
 0x14b   : > { %v959_v32 = vadd.f32 %v958_v29, %v4482_v53  ;;  %v960_v33 = vpop.f32.mrb[21].mxu0 }
 0x14c   : > { %v961_v36 = vadd.f32 %v960_v33, %v4485_v54  ;;  %v962_v37 = vpop.f32.mrb[22].mxu0  ;;  %1081 = vadd.xlane.f32.xlu1 %v1080_v31  ;;  %v1016_v31 = vld [vmem:[%s4479_s20 + $0xe8] sm:$0xff] }
 0x14d   : > { %v4592_v40 = vadd.f32 %v1007_v30, %v959_v32  ;;  %v963_v43 = vadd.f32 %v962_v37, %v4482_v53  ;;  %v964_v44 = vpop.f32.mrb[23].mxu0 }
 0x14e   : > { %v4596_v46 = vadd.f32 %v1008_v34, %v961_v36  ;;  %v965_v47 = vadd.f32 %v964_v44, %v4485_v54  ;;  %v1017_v34 = vld [vmem:[%s4479_s20 + $0xf0] sm:$0xff] }
 0x14f   : > { %v4599_v48 = vadd.f32 %v1009_v38, %v963_v43  ;;  %v1018_v43 = vld [vmem:[%s4479_s20 + $0xf8] sm:$0xff] }
 0x150   : > { %v4601_v51 = vadd.f32 %v1010_v45, %v965_v47  ;;  %v1083_v55 = vadd.f32 %v4596_v46, %v4592_v40 }
 0x152   : > { %v968_v56 = vpop.f32.mrb[24].mxu0  ;;  %1084 = vadd.xlane.f32.xlu0 %v1083_v55  ;;  %v1086_v59 = vadd.f32 %v4601_v51, %v4599_v48 }
 0x153   : > { %v969_v60 = vadd.f32 %v968_v56, %v4482_v53  ;;  %v970_v61 = vpop.f32.mrb[25].mxu0 }
 0x154   : > { %v971_v3 = vadd.f32 %v970_v61, %v4485_v54  ;;  %v972_v7 = vpop.f32.mrb[26].mxu0  ;;  %1087 = vadd.xlane.f32.xlu1 %v1086_v59  ;;  %v3983_v59 = vld [vmem:[%s6117_s6 + $0xc] ss:$16 sps:$4 sm:$0xff]   ;;  %v3985_v61 = vld [vmem:[%s6117_s6 + $0x24] ss:$16 sps:$4 sm:$0xff]  }
 0x155   : > { %v4612_v9 = vadd.f32 %v1011_v57, %v969_v60  ;;  %v973_v10 = vadd.f32 %v972_v7, %v4482_v53  ;;  %v974_v11 = vpop.f32.mrb[27].mxu0  ;;  %v3984_v60 = vld [vmem:[%s6117_s6] ss:$16 sps:$4 sm:$0xff]   ;;  %2027 = vmatprep.subr.bf16.mxu0 %v3983_v59 }
 0x156   : > { %v4616_v13 = vadd.f32 %v1012_v63, %v971_v3  ;;  %v975_v14 = vadd.f32 %v974_v11, %v4485_v54  ;;  %v3989_v63 = vld [vmem:[%s6117_s6 + $0x2c] ss:$16 sps:$4 sm:$0xff]   ;;  %v3987_v3 = vld [vmem:[%s6117_s6 + $0x28] ss:$16 sps:$4 sm:$0xff]   ;;  %v3990_v7 = vld [vmem:[%s6117_s6 + $0x20] ss:$16 sps:$4 sm:$0xff]  }
 0x157   : > { %v4619_v15 = vadd.f32 %v1013_v8, %v973_v10  ;;  %v3991_v8 = vld [vmem:[%s6117_s6 + $0x44] ss:$16 sps:$4 sm:$0xff]   ;;  %v3995_v10 = vld [vmem:[%s6117_s6 + $0x4c] ss:$16 sps:$4 sm:$0xff]   ;;  %v3993_v11 = vld [vmem:[%s6117_s6 + $0x48] ss:$16 sps:$4 sm:$0xff]  }
 0x158   : > { %v4621_v17 = vadd.f32 %v1014_v12, %v975_v14  ;;  %v1089_v18 = vadd.f32 %v4616_v13, %v4612_v9  ;;  %v3996_v12 = vld [vmem:[%s6117_s6 + $0x40] ss:$16 sps:$4 sm:$0xff]   ;;  %v3997_v14 = vld [vmem:[%s6117_s6 + $0x64] ss:$16 sps:$4 sm:$0xff]  }
 0x159   : > { %v4026_v59 = vld [vmem:[%s6117_s6 + $0xe0] ss:$16 sps:$4 sm:$0xff]  }
 0x15a   : > { %v978_v19 = vpop.f32.mrb[28].mxu0  ;;  %1090 = vadd.xlane.f32.xlu0 %v1089_v18  ;;  %v1092_v28 = vadd.f32 %v4621_v17, %v4619_v15  ;;  %v4001_v18 = vld [vmem:[%s6117_s6 + $0x6c] ss:$16 sps:$4 sm:$0xff]  }
 0x15b   : > { %v979_v29 = vadd.f32 %v978_v19, %v4482_v53  ;;  %v980_v30 = vpop.f32.mrb[29].mxu0  ;;  %v3999_v19 = vld [vmem:[%s6117_s6 + $0x68] ss:$16 sps:$4 sm:$0xff]  }
 0x15c   : > { %v981_v32 = vadd.f32 %v980_v30, %v4485_v54  ;;  %v982_v33 = vpop.f32.mrb[30].mxu0  ;;  %1093 = vadd.xlane.f32.xlu1 %v1092_v28  ;;  %v4003_v28 = vld [vmem:[%s6117_s6 + $0x84] ss:$16 sps:$4 sm:$0xff]   ;;  %v4005_v30 = vld [vmem:[%s6117_s6 + $0x88] ss:$16 sps:$4 sm:$0xff]  }
 0x15d   : > { %v4632_v36 = vadd.f32 %v1015_v25, %v979_v29  ;;  %v983_v37 = vadd.f32 %v982_v33, %v4482_v53  ;;  %v984_v38 = vpop.f32.mrb[31].mxu0  ;;  %v3979_v53 = vld [vmem:[%s6117_s6 + $0x4] ss:$16 sps:$4 sm:$0xff]   ;;  %v4002_v25 = vld [vmem:[%s6117_s6 + $0x60] ss:$16 sps:$4 sm:$0xff]  }
 0x15e   : > { %v4636_v44 = vadd.f32 %v1016_v31, %v981_v32  ;;  %v985_v45 = vadd.f32 %v984_v38, %v4485_v54  ;;  %v3981_v54 = vld [vmem:[%s6117_s6 + $0x8] ss:$16 sps:$4 sm:$0xff]   ;;  %1914 = vmatprep.subr.bf16.mxu1 %v3979_v53  ;;  %v4007_v29 = vld [vmem:[%s6117_s6 + $0x8c] ss:$16 sps:$4 sm:$0xff]   ;;  %v4008_v31 = vld [vmem:[%s6117_s6 + $0x80] ss:$16 sps:$4 sm:$0xff]  }
 0x15f   : > { %v4639_v47 = vadd.f32 %v1017_v34, %v983_v37  ;;  %1915 = vmatpush1.bf16.msra.mxu1 %v3984_v60  ;;  %2028 = vmatpush1.bf16.msra.mxu0 %v3981_v54  ;;  %v4009_v32 = vld [vmem:[%s6117_s6 + $0xa4] ss:$16 sps:$4 sm:$0xff]   ;;  %v4013_v33 = vld [vmem:[%s6117_s6 + $0xac] ss:$16 sps:$4 sm:$0xff]   ;;  %v4011_v34 = vld [vmem:[%s6117_s6 + $0xa8] ss:$16 sps:$4 sm:$0xff]  }
 0x160   : > { %v4641_v55 = vadd.f32 %v1018_v43, %v985_v45  ;;  %v1095_v56 = vadd.f32 %v4636_v44, %v4632_v36  ;;  %1916 = vmatprep.subr.bf16.mxu1 %v3985_v61  ;;  %2029 = vmatprep.subr.bf16.mxu0 %v3989_v63  ;;  %v4014_v37 = vld [vmem:[%s6117_s6 + $0xa0] ss:$16 sps:$4 sm:$0xff]   ;;  %v4015_v38 = vld [vmem:[%s6117_s6 + $0xc4] ss:$16 sps:$4 sm:$0xff]   ;;  %v4019_v43 = vld [vmem:[%s6117_s6 + $0xcc] ss:$16 sps:$4 sm:$0xff]  }
 0x161   : > { %v4017_v45 = vld [vmem:[%s6117_s6 + $0xc8] ss:$16 sps:$4 sm:$0xff]   ;;  %v4025_v53 = vld [vmem:[%s6117_s6 + $0xec] ss:$16 sps:$4 sm:$0xff]   ;;  %v4027_v60 = vld [vmem:[%s6117_s6 + $0x104] ss:$16 sps:$4 sm:$0xff]  }
 0x162   : > { %1096 = vadd.xlane.f32.xlu0 %v1095_v56  ;;  %v1098_v57 = vadd.f32 %v4641_v55, %v4639_v47  ;;  %v4020_v56 = vld [vmem:[%s6117_s6 + $0xc0] ss:$16 sps:$4 sm:$0xff]   ;;  %v4023_v54 = vld [vmem:[%s6117_s6 + $0xe8] ss:$16 sps:$4 sm:$0xff]   ;;  %v4031_v61 = vld [vmem:[%s6117_s6 + $0x10c] ss:$16 sps:$4 sm:$0xff]  }
 0x163   : > { %1917 = vmatpush1.bf16.msra.mxu1 %v3990_v7  ;;  %2030 = vmatpush1.bf16.msra.mxu0 %v3987_v3  ;;  %v4029_v63 = vld [vmem:[%s6117_s6 + $0x108] ss:$16 sps:$4 sm:$0xff]   ;;  %v4032_v3 = vld [vmem:[%s6117_s6 + $0x100] ss:$16 sps:$4 sm:$0xff]  }
 0x164   : > { %1099 = vadd.xlane.f32.xlu1 %v1098_v57  ;;  %1918 = vmatprep.subr.bf16.mxu1 %v3991_v8  ;;  %v4021_v57 = vld [vmem:[%s6117_s6 + $0xe4] ss:$16 sps:$4 sm:$0xff]  }
 0x165   : > { %2031 = vmatprep.subr.bf16.mxu0 %v3995_v10 }
 0x167   : > { %1919 = vmatpush1.bf16.msra.mxu1 %v3996_v12  ;;  %2032 = vmatpush1.bf16.msra.mxu0 %v3993_v11 }
 0x168   : > { %1920 = vmatprep.subr.bf16.mxu1 %v3997_v14  ;;  %2033 = vmatprep.subr.bf16.mxu0 %v4001_v18 }
 0x16b   : > { %1921 = vmatpush1.bf16.msra.mxu1 %v4002_v25  ;;  %2034 = vmatpush1.bf16.msra.mxu0 %v3999_v19 }
 0x16c   : > { %1922 = vmatprep.subr.bf16.mxu1 %v4003_v28  ;;  %2035 = vmatprep.subr.bf16.mxu0 %v4007_v29 }
 0x16f   : > { %1923 = vmatpush1.bf16.msra.mxu1 %v4008_v31  ;;  %2036 = vmatpush1.bf16.msra.mxu0 %v4005_v30 }
 0x170   : > { %1924 = vmatprep.subr.bf16.mxu1 %v4009_v32  ;;  %2037 = vmatprep.subr.bf16.mxu0 %v4013_v33 }
 0x173   : > { %1925 = vmatpush1.bf16.msra.mxu1 %v4014_v37  ;;  %2038 = vmatpush1.bf16.msra.mxu0 %v4011_v34 }
 0x174   : > { %1926 = vmatprep.subr.bf16.mxu1 %v4015_v38  ;;  %2039 = vmatprep.subr.bf16.mxu0 %v4019_v43 }
 0x177   : > { %1927 = vmatpush1.bf16.msra.mxu1 %v4020_v56  ;;  %2040 = vmatpush1.bf16.msra.mxu0 %v4017_v45 }
 0x178   : > { %1928 = vmatprep.subr.bf16.mxu1 %v4021_v57  ;;  %2041 = vmatprep.subr.bf16.mxu0 %v4025_v53 }
 0x17b   : > { %1929 = vmatpush1.bf16.msra.mxu1 %v4026_v59  ;;  %2042 = vmatpush1.bf16.msra.mxu0 %v4023_v54 }
 0x17c   : > { %1930 = vmatprep.subr.bf16.mxu1 %v4027_v60  ;;  %2043 = vmatprep.subr.bf16.mxu0 %v4031_v61 }
 0x17f   : > { %1931 = vmatpush1.bf16.msra.mxu1 %v4032_v3  ;;  %2044 = vmatpush1.bf16.msra.mxu0 %v4029_v63 }
 0x1b7   : > { %v1055_v7 = vpop.xlane.xlu0 %1054 }
 0x1b8   : > { %v1102_v8 = vmul.f32 0.00390625, %v1055_v7 }
 0x1ba   : > { %v4756_v10 = vsub.f32 %v4494_v2, %v1102_v8  ;;  %v4759_v11 = vsub.f32 %v4497_v4, %v1102_v8 }
 0x1bb   : > { %v1058_v12 = vpop.xlane.xlu0 %1057 }
 0x1bc   : > { %v1103_v14 = vmul.f32 0.00390625, %v1058_v12  ;;  %v1150_v18 = vmul.f32 %v4756_v10, %v4756_v10  ;;  %v1151_v19 = vmul.f32 %v4759_v11, %v4759_v11 }
 0x1be   : > { %v4766_v25 = vsub.f32 %v4499_v5, %v1103_v14  ;;  %v4769_v28 = vsub.f32 %v4501_v6, %v1103_v14  ;;  %v1182_v29 = vadd.f32 %v1151_v19, %v1150_v18 }
 0x1bf   : > { %v1061_v2 = vpop.xlane.xlu1 %1060 }
 0x1c0   : > { %v1104_v30 = vmul.f32 0.00390625, %v1061_v2  ;;  %1183 = vadd.xlane.f32.xlu0 %v1182_v29  ;;  %v1152_v4 = vmul.f32 %v4766_v25, %v4766_v25  ;;  %v1153_v31 = vmul.f32 %v4769_v28, %v4769_v28  ;;  %v4039_v2 = vld [vmem:[%s6117_s6 + $0x144] ss:$16 sps:$4 sm:$0xff]  }
 0x1c2   : > { %v4776_v32 = vsub.f32 %v4514_v20, %v1104_v30  ;;  %v4779_v33 = vsub.f32 %v4517_v22, %v1104_v30  ;;  %v1185_v5 = vadd.f32 %v1153_v31, %v1152_v4  ;;  %v4043_v30 = vld [vmem:[%s6117_s6 + $0x14c] ss:$16 sps:$4 sm:$0xff]   ;;  %v4041_v31 = vld [vmem:[%s6117_s6 + $0x148] ss:$16 sps:$4 sm:$0xff]  }
 0x1c3   : > { %v1064_v34 = vpop.xlane.xlu1 %1063 }
 0x1c4   : > { %v1105_v6 = vmul.f32 0.00390625, %v1064_v34  ;;  %1186 = vadd.xlane.f32.xlu1 %v1185_v5  ;;  %v1154_v37 = vmul.f32 %v4776_v32, %v4776_v32  ;;  %v1155_v38 = vmul.f32 %v4779_v33, %v4779_v33  ;;  %v4044_v5 = vld [vmem:[%s6117_s6 + $0x140] ss:$16 sps:$4 sm:$0xff]  }
 0x1c6   : > { %v4786_v43 = vsub.f32 %v4519_v23, %v1105_v6  ;;  %v4789_v45 = vsub.f32 %v4521_v24, %v1105_v6  ;;  %v1188_v20 = vadd.f32 %v1155_v38, %v1154_v37 }
 0x1c7   : > { %v1067_v56 = vpop.xlane.xlu0 %1066 }
 0x1c8   : > { %v1106_v22 = vmul.f32 0.00390625, %v1067_v56  ;;  %1189 = vadd.xlane.f32.xlu0 %v1188_v20  ;;  %v1156_v57 = vmul.f32 %v4786_v43, %v4786_v43  ;;  %v1157_v53 = vmul.f32 %v4789_v45, %v4789_v45 }
 0x1c9   : > { %v1070_v54 = vpop.xlane.xlu1 %1069 }
 0x1ca   : > { %v4796_v59 = vsub.f32 %v4532_v35, %v1106_v22  ;;  %v4799_v23 = vsub.f32 %v4536_v39, %v1106_v22  ;;  %v1107_v60 = vmul.f32 0.00390625, %v1070_v54  ;;  %v1191_v24 = vadd.f32 %v1157_v53, %v1156_v57  ;;  %v4033_v35 = vld [vmem:[%s6117_s6 + $0x124] ss:$16 sps:$4 sm:$0xff]   ;;  %v4037_v39 = vld [vmem:[%s6117_s6 + $0x12c] ss:$16 sps:$4 sm:$0xff]  }
 0x1cb   : > { %1932 = vmatprep.subr.bf16.mxu1 %v4033_v35  ;;  %2045 = vmatprep.subr.bf16.mxu0 %v4037_v39  ;;  %v4049_v22 = vld [vmem:[%s6117_s6 + $0x16c] ss:$16 sps:$4 sm:$0xff]  }
 0x1cc   : > { %v4802_v61 = vsub.f32 %v4539_v41, %v1107_v60  ;;  %v4805_v63 = vsub.f32 %v4541_v42, %v1107_v60  ;;  %1192 = vadd.xlane.f32.xlu1 %v1191_v24  ;;  %v1158_v3 = vmul.f32 %v4796_v59, %v4796_v59  ;;  %v1159_v7 = vmul.f32 %v4799_v23, %v4799_v23  ;;  %v4035_v41 = vld [vmem:[%s6117_s6 + $0x128] ss:$16 sps:$4 sm:$0xff]   ;;  %v4038_v42 = vld [vmem:[%s6117_s6 + $0x120] ss:$16 sps:$4 sm:$0xff]   ;;  %v4055_v35 = vld [vmem:[%s6117_s6 + $0x18c] ss:$16 sps:$4 sm:$0xff]  }
 0x1cd   : > { %1933 = vmatpush1.bf16.msra.mxu1 %v4038_v42  ;;  %2046 = vmatpush1.bf16.msra.mxu0 %v4035_v41  ;;  %v4053_v41 = vld [vmem:[%s6117_s6 + $0x188] ss:$16 sps:$4 sm:$0xff]   ;;  %v4056_v42 = vld [vmem:[%s6117_s6 + $0x180] ss:$16 sps:$4 sm:$0xff]  }
 0x1ce   : > { %v1194_v8 = vadd.f32 %v1159_v7, %v1158_v3  ;;  %v1160_v12 = vmul.f32 %v4802_v61, %v4802_v61  ;;  %v1161_v14 = vmul.f32 %v4805_v63, %v4805_v63  ;;  %1934 = vmatprep.subr.bf16.mxu1 %v4039_v2  ;;  %2047 = vmatprep.subr.bf16.mxu0 %v4043_v30  ;;  %v4051_v7 = vld [vmem:[%s6117_s6 + $0x184] ss:$16 sps:$4 sm:$0xff]   ;;  %v4061_v2 = vld [vmem:[%s6117_s6 + $0x1ac] ss:$16 sps:$4 sm:$0xff]  }
 0x1cf   : > { %v1073_v18 = vpop.xlane.xlu0 %1072 }
 0x1d0   : > { %v1108_v19 = vmul.f32 0.00390625, %v1073_v18  ;;  %1195 = vadd.xlane.f32.xlu0 %v1194_v8  ;;  %v1197_v29 = vadd.f32 %v1161_v14, %v1160_v12 }
 0x1d1   : > { %v1076_v4 = vpop.xlane.xlu1 %1075  ;;  %1935 = vmatpush1.bf16.msra.mxu1 %v4044_v5  ;;  %2048 = vmatpush1.bf16.msra.mxu0 %v4041_v31 }
 0x1d2   : > { %v4840_v34 = vsub.f32 %v4552_v58, %v1108_v19  ;;  %v4843_v6 = vsub.f32 %v4556_v62, %v1108_v19  ;;  %v1109_v37 = vmul.f32 0.00390625, %v1076_v4  ;;  %1198 = vadd.xlane.f32.xlu1 %v1197_v29  ;;  %v4045_v62 = vld [vmem:[%s6117_s6 + $0x164] ss:$16 sps:$4 sm:$0xff]   ;;  %2049 = vmatprep.subr.bf16.mxu0 %v4049_v22 }
 0x1d3   : > { %1936 = vmatprep.subr.bf16.mxu1 %v4045_v62  ;;  %v4067_v62 = vld [vmem:[%s6117_s6 + $0x1cc] ss:$16 sps:$4 sm:$0xff]  }
 0x1d4   : > { %v4846_v38 = vsub.f32 %v4559_v0, %v1109_v37  ;;  %v4849_v20 = vsub.f32 %v4561_v1, %v1109_v37  ;;  %v1162_v56 = vmul.f32 %v4840_v34, %v4840_v34  ;;  %v1163_v58 = vmul.f32 %v4843_v6, %v4843_v6  ;;  %v4047_v0 = vld [vmem:[%s6117_s6 + $0x168] ss:$16 sps:$4 sm:$0xff]   ;;  %v4050_v1 = vld [vmem:[%s6117_s6 + $0x160] ss:$16 sps:$4 sm:$0xff]  }
 0x1d5   : > { %1937 = vmatpush1.bf16.msra.mxu1 %v4050_v1  ;;  %2050 = vmatpush1.bf16.msra.mxu0 %v4047_v0  ;;  %v4065_v0 = vld [vmem:[%s6117_s6 + $0x1c8] ss:$16 sps:$4 sm:$0xff]   ;;  %v4068_v1 = vld [vmem:[%s6117_s6 + $0x1c0] ss:$16 sps:$4 sm:$0xff]  }
 0x1d6   : > { %v1200_v57 = vadd.f32 %v1163_v58, %v1162_v56  ;;  %v1164_v53 = vmul.f32 %v4846_v38, %v4846_v38  ;;  %v1165_v54 = vmul.f32 %v4849_v20, %v4849_v20  ;;  %1938 = vmatprep.subr.bf16.mxu1 %v4051_v7  ;;  %2051 = vmatprep.subr.bf16.mxu0 %v4055_v35  ;;  %v4063_v58 = vld [vmem:[%s6117_s6 + $0x1c4] ss:$16 sps:$4 sm:$0xff]   ;;  %v4073_v7 = vld [vmem:[%s6117_s6 + $0x1ec] ss:$16 sps:$4 sm:$0xff]  }
 0x1d7   : > { %v1079_v60 = vpop.xlane.xlu0 %1078 }
 0x1d8   : > { %v1110_v24 = vmul.f32 0.00390625, %v1079_v60  ;;  %1201 = vadd.xlane.f32.xlu0 %v1200_v57  ;;  %v1203_v3 = vadd.f32 %v1165_v54, %v1164_v53 }
 0x1d9   : > { %v1082_v39 = vpop.xlane.xlu1 %1081  ;;  %1939 = vmatpush1.bf16.msra.mxu1 %v4056_v42  ;;  %2052 = vmatpush1.bf16.msra.mxu0 %v4053_v41 }
 0x1da   : > { %v4884_v8 = vsub.f32 %v4572_v16, %v1110_v24  ;;  %v4887_v12 = vsub.f32 %v4576_v21, %v1110_v24  ;;  %v1111_v14 = vmul.f32 0.00390625, %v1082_v39  ;;  %1204 = vadd.xlane.f32.xlu1 %v1203_v3  ;;  %v4057_v21 = vld [vmem:[%s6117_s6 + $0x1a4] ss:$16 sps:$4 sm:$0xff]   ;;  %2053 = vmatprep.subr.bf16.mxu0 %v4061_v2 }
 0x1db   : > { %1940 = vmatprep.subr.bf16.mxu1 %v4057_v21 }
 0x1dc   : > { %v4890_v18 = vsub.f32 %v4579_v26, %v1111_v14  ;;  %v4893_v19 = vsub.f32 %v4581_v27, %v1111_v14  ;;  %v1166_v29 = vmul.f32 %v4884_v8, %v4884_v8  ;;  %v1167_v16 = vmul.f32 %v4887_v12, %v4887_v12  ;;  %v4059_v26 = vld [vmem:[%s6117_s6 + $0x1a8] ss:$16 sps:$4 sm:$0xff]   ;;  %v4062_v27 = vld [vmem:[%s6117_s6 + $0x1a0] ss:$16 sps:$4 sm:$0xff]  }
 0x1dd   : > { %1941 = vmatpush1.bf16.msra.mxu1 %v4062_v27  ;;  %2054 = vmatpush1.bf16.msra.mxu0 %v4059_v26 }
 0x1de   : > { %v1206_v30 = vadd.f32 %v1167_v16, %v1166_v29  ;;  %v1168_v4 = vmul.f32 %v4890_v18, %v4890_v18  ;;  %v1169_v31 = vmul.f32 %v4893_v19, %v4893_v19  ;;  %1942 = vmatprep.subr.bf16.mxu1 %v4063_v58  ;;  %2055 = vmatprep.subr.bf16.mxu0 %v4067_v62 }
 0x1df   : > { %v1085_v5 = vpop.xlane.xlu0 %1084 }
 0x1e0   : > { %v1112_v37 = vmul.f32 0.00390625, %v1085_v5  ;;  %1207 = vadd.xlane.f32.xlu0 %v1206_v30  ;;  %v1209_v56 = vadd.f32 %v1169_v31, %v1168_v4 }
 0x1e1   : > { %v1088_v22 = vpop.xlane.xlu1 %1087  ;;  %1943 = vmatpush1.bf16.msra.mxu1 %v4068_v1  ;;  %2056 = vmatpush1.bf16.msra.mxu0 %v4065_v0 }
 0x1e2   : > { %v4928_v57 = vsub.f32 %v4592_v40, %v1112_v37  ;;  %v4931_v53 = vsub.f32 %v4596_v46, %v1112_v37  ;;  %v1113_v54 = vmul.f32 0.00390625, %v1088_v22  ;;  %1210 = vadd.xlane.f32.xlu1 %v1209_v56  ;;  %v4069_v46 = vld [vmem:[%s6117_s6 + $0x1e4] ss:$16 sps:$4 sm:$0xff]   ;;  %2057 = vmatprep.subr.bf16.mxu0 %v4073_v7 }
 0x1e3   : > { %1944 = vmatprep.subr.bf16.mxu1 %v4069_v46 }
 0x1e4   : > { %v4934_v60 = vsub.f32 %v4599_v48, %v1113_v54  ;;  %v4937_v24 = vsub.f32 %v4601_v51, %v1113_v54  ;;  %v1170_v3 = vmul.f32 %v4928_v57, %v4928_v57  ;;  %v1171_v40 = vmul.f32 %v4931_v53, %v4931_v53  ;;  %v4071_v48 = vld [vmem:[%s6117_s6 + $0x1e8] ss:$16 sps:$4 sm:$0xff]   ;;  %v4074_v51 = vld [vmem:[%s6117_s6 + $0x1e0] ss:$16 sps:$4 sm:$0xff]  }
 0x1e5   : > { %1945 = vmatpush1.bf16.msra.mxu1 %v4074_v51  ;;  %2058 = vmatpush1.bf16.msra.mxu0 %v4071_v48 }
 0x1e6   : > { %v1212_v35 = vadd.f32 %v1171_v40, %v1170_v3  ;;  %v1172_v39 = vmul.f32 %v4934_v60, %v4934_v60  ;;  %v1173_v41 = vmul.f32 %v4937_v24, %v4937_v24 }
 0x1e7   : > { %v1091_v42 = vpop.xlane.xlu0 %1090 }
 0x1e8   : > { %v1114_v14 = vmul.f32 0.00390625, %v1091_v42  ;;  %1213 = vadd.xlane.f32.xlu0 %v1212_v35  ;;  %v1215_v29 = vadd.f32 %v1173_v41, %v1172_v39 }
 0x1e9   : > { %v1094_v16 = vpop.xlane.xlu1 %1093 }
 0x1ea   : > { %v4960_v21 = vsub.f32 %v4612_v9, %v1114_v14  ;;  %v4963_v2 = vsub.f32 %v4616_v13, %v1114_v14  ;;  %v1115_v26 = vmul.f32 0.00390625, %v1094_v16  ;;  %1216 = vadd.xlane.f32.xlu1 %v1215_v29 }
 0x1ec   : > { %v4966_v27 = vsub.f32 %v4619_v15, %v1115_v26  ;;  %v4969_v30 = vsub.f32 %v4621_v17, %v1115_v26  ;;  %v1174_v4 = vmul.f32 %v4960_v21, %v4960_v21  ;;  %v1175_v31 = vmul.f32 %v4963_v2, %v4963_v2  ;;  %v1051_v26 = vld [vmem:[%s6115_s4] sm:$0x3] }
 0x1ee   : > { %v1218_v5 = vadd.f32 %v1175_v31, %v1174_v4  ;;  %v1176_v9 = vmul.f32 %v4966_v27, %v4966_v27  ;;  %v1177_v13 = vmul.f32 %v4969_v30, %v4969_v30 }
 0x1ef   : > { %v1097_v37 = vpop.xlane.xlu0 %1096 }
 0x1f0   : > { %v1116_v56 = vmul.f32 0.00390625, %v1097_v37  ;;  %1219 = vadd.xlane.f32.xlu0 %v1218_v5  ;;  %v1221_v15 = vadd.f32 %v1177_v13, %v1176_v9  ;;  %v1052_v9 = vld [vmem:[%s6116_s5] sm:$0x3]  ;;  %v5015_v13 = vrot.slane %v1051_v26, %v4465_v50  ;;  %v5018_v37 = vrot.slane %v1051_v26, %v4472_v52 }
 0x1f1   : > { %v1100_v58 = vpop.xlane.xlu1 %1099 }
 0x1f2   : > { %v4980_v17 = vsub.f32 %v4632_v36, %v1116_v56  ;;  %v4983_v62 = vsub.f32 %v4636_v44, %v1116_v56  ;;  %v1117_v22 = vmul.f32 0.00390625, %v1100_v58  ;;  %1222 = vadd.xlane.f32.xlu1 %v1221_v15 }
 0x1f4   : > { %v4986_v0 = vsub.f32 %v4639_v47, %v1117_v22  ;;  %v4989_v1 = vsub.f32 %v4641_v55, %v1117_v22  ;;  %v1178_v54 = vmul.f32 %v4980_v17, %v4980_v17  ;;  %v1179_v3 = vmul.f32 %v4983_v62, %v4983_v62  ;;  %v4077_v47 = vld [vmem:[%s6119_s8 + $0x4] ss:$8 sps:$4 sm:$0xff]  }
 0x1f5   : > { %v5005_v55 = vld [vmem:[%s6119_s8 + $0x104] ss:$8 sps:$4 sm:$0xff]   ;;  %2652 = vmatprep.subr.bf16.mxu1 %v4077_v47 }
 0x1f6   : > { %v1224_v40 = vadd.f32 %v1179_v3, %v1178_v54  ;;  %v1180_v36 = vmul.f32 %v4986_v0, %v4986_v0  ;;  %v1181_v44 = vmul.f32 %v4989_v1, %v4989_v1  ;;  %2765 = vmatprep.subr.bf16.mxu0 %v5005_v55  ;;  %v5023_v3 = vrot.slane %v1052_v9, %v4465_v50 }
 0x1f8   : > { %1225 = vadd.xlane.f32.xlu0 %v1224_v40  ;;  %v1227_v46 = vadd.f32 %v1181_v44, %v1180_v36  ;;  %v5026_v40 = vrot.slane %v1052_v9, %v4472_v52  ;;  %v4075_v9 = vld [vmem:[%s6119_s8] ss:$8 sps:$4 sm:$0xff]  }
 0x1fa   : > { %1228 = vadd.xlane.f32.xlu1 %v1227_v46 }
 0x24d   : > { %v1184_v7 = vpop.xlane.xlu0 %1183 }
 0x24e   : > { %v1230_v48 = vmul.f32 0.00390625, %v1184_v7 }
 0x250   : > { %v1246_v51 = vadd.f32 1e-05, %v1230_v48 }
 0x251   : > { %v1187_v35 = vpop.xlane.xlu1 %1186 }
 0x252   : > { %4171 = vrsqrt.f32 %v1246_v51  ;;  %v1231_v39 = vmul.f32 0.00390625, %v1187_v35 }
 0x254   : > { %v1247_v41 = vadd.f32 1e-05, %v1231_v39 }
 0x255   : > { %v1190_v42 = vpop.xlane.xlu0 %1189 }
 0x256   : > { %4173 = vrsqrt.f32 %v1247_v41  ;;  %v1232_v14 = vmul.f32 0.00390625, %v1190_v42 }
 0x258   : > { %v1248_v29 = vadd.f32 1e-05, %v1232_v14 }
 0x259   : > { %v1193_v16 = vpop.xlane.xlu1 %1192 }
 0x25a   : > { %4175 = vrsqrt.f32 %v1248_v29  ;;  %v1233_v4 = vmul.f32 0.00390625, %v1193_v16 }
 0x25c   : > { %v4172_v31 = vpop.eup %4171  ;;  %v1249_v5 = vadd.f32 1e-05, %v1233_v4 }
 0x25d   : > { %v1196_v56 = vpop.xlane.xlu0 %1195  ;;  %v1279_v15 = vmul.f32 %v4172_v31, %v4759_v11  ;;  %v1278_v58 = vmul.f32 %v4172_v31, %v4756_v10 }
 0x25e   : > { %4177 = vrsqrt.f32 %v1249_v5  ;;  %v1234_v22 = vmul.f32 0.00390625, %v1196_v56  ;;  %v5058_v56 = vld [vmem:[%s6119_s8 + $0x100] ss:$8 sps:$4 sm:$0xff]  }
 0x25f   : > { %v1199_v54 = vpop.xlane.xlu1 %1198  ;;  %v1322_v47 = vmul.f32 %v5018_v37, %v1279_v15  ;;  %v1321_v7 = vmul.f32 %v5015_v13, %v1278_v58 }
 0x260   : > { %v4174_v36 = vpop.eup %4173  ;;  %v1250_v44 = vadd.f32 1e-05, %v1234_v22  ;;  %v1235_v46 = vmul.f32 0.00390625, %v1199_v54  ;;  %v5067_v54 = vld [vmem:[%s6119_s8 + $0x114] ss:$8 sps:$4 sm:$0xff]  }
 0x261   : > { %v1281_v11 = vmul.f32 %v4174_v36, %v4769_v28  ;;  %v1280_v10 = vmul.f32 %v4174_v36, %v4766_v25  ;;  %v5035_v41 = vadd.f32 %v5026_v40, %v1322_v47  ;;  %v5038_v42 = vadd.f32 %v5023_v3, %v1321_v7 }
 0x262   : > { %4179 = vrsqrt.f32 %v1250_v44  ;;  %v1251_v48 = vadd.f32 1e-05, %v1235_v46 }
 0x263   : > { %v1324_v51 = vmul.f32 %v5018_v37, %v1281_v11  ;;  %v1323_v35 = vmul.f32 %v5015_v13, %v1280_v10  ;;  %6155 = vst [vmem:[#allocation4_spill] sm:$0xff] %v5035_v41  ;;  %v4081_v10 = vld [vmem:[%s6119_s8 + $0x10] ss:$8 sps:$4 sm:$0xff]  }
 0x264   : > { %v4176_v39 = vpop.eup %4175  ;;  %4181 = vrsqrt.f32 %v1251_v48  ;;  %v5084_v48 = vld [vmem:[%s6119_s8 + $0x110] ss:$8 sps:$4 sm:$0xff]  }
 0x265   : > { %v1202_v14 = vpop.xlane.xlu0 %1201  ;;  %v5041_v29 = vadd.f32 %v5026_v40, %v1324_v51  ;;  %v5044_v25 = vadd.f32 %v5023_v3, %v1323_v35  ;;  %v1283_v28 = vmul.f32 %v4176_v39, %v4779_v33  ;;  %v1282_v16 = vmul.f32 %v4176_v39, %v4776_v32  ;;  %v4083_v32 = vld [vmem:[%s6119_s8 + $0x14] ss:$8 sps:$4 sm:$0xff]   ;;  %v4089_v51 = vld [vmem:[%s6119_s8 + $0x24] ss:$8 sps:$4 sm:$0xff]  }
 0x266   : > { %v1236_v26 = vmul.f32 0.00390625, %v1202_v14 }
 0x267   : > { %6156 = vst [vmem:[#allocation5_spill] sm:$0xff] %v5041_v29  ;;  %6157 = vst [vmem:[#allocation6_spill] sm:$0xff] %v5044_v25  ;;  %v1205_v4 = vpop.xlane.xlu1 %1204  ;;  %v1493_v31 = vpack.c.bf16 %v5041_v29, %v5035_v41  ;;  %v1492_v5 = vpack.c.bf16 %v5044_v25, %v5038_v42  ;;  %v1326_v22 = vmul.f32 %v5018_v37, %v1283_v28 }
 0x268   : > { %v4178_v33 = vpop.eup %4177  ;;  %v1252_v15 = vadd.f32 1e-05, %v1236_v26  ;;  %v1237_v58 = vmul.f32 0.00390625, %v1205_v4  ;;  %v1325_v46 = vmul.f32 %v5015_v13, %v1282_v16 }
 0x269   : > { %1946 = vmatprep.mubr.bf16.mxu1 %v1493_v31  ;;  %2059 = vmatprep.mubr.bf16.mxu0 %v1493_v31  ;;  %v1285_v36 = vmul.f32 %v4178_v33, %v4789_v45  ;;  %v1284_v44 = vmul.f32 %v4178_v33, %v4786_v43  ;;  %v5079_v43 = vadd.f32 %v5026_v40, %v1326_v22 }
 0x26a   : > { %4183 = vrsqrt.f32 %v1252_v15  ;;  %v1253_v47 = vadd.f32 1e-05, %v1237_v58  ;;  %1947 = vmatmul.mubr.bf16.vlgmr.msra.gmra.mrb[0].mxu1 %v1492_v5  ;;  %2060 = vmatmul.mubr.bf16.vlgmr.msra.gmra.mrb[32].mxu0 %v1492_v5  ;;  %v5094_v14 = vadd.f32 %v5023_v3, %v1325_v46  ;;  %v5118_v58 = vld [vmem:[%s6119_s8 + $0x124] ss:$8 sps:$4 sm:$0xff]  }
 0x26b   : > { %v1328_v7 = vmul.f32 %v5018_v37, %v1285_v36  ;;  %v1327_v11 = vmul.f32 %v5015_v13, %v1284_v44  ;;  %2653 = vmatpush1.bf16.msra.mxu1 %v4075_v9  ;;  %2766 = vmatpush1.bf16.msra.mxu0 %v5058_v56  ;;  %6158 = vst [vmem:[#allocation7_spill] sm:$0xff] %v5079_v43  ;;  %v4095_v44 = vld [vmem:[%s6119_s8 + $0x34] ss:$8 sps:$4 sm:$0xff]  }
 0x26c   : > { %v4180_v45 = vpop.eup %4179  ;;  %4185 = vrsqrt.f32 %v1253_v47  ;;  %2654 = vmatprep.subr.bf16.mxu1 %v4083_v32  ;;  %2767 = vmatprep.subr.bf16.mxu0 %v5067_v54  ;;  %6160 = vst [vmem:[#allocation9_spill] sm:$0xff] %v5094_v14  ;;  %v5129_v47 = vld [vmem:[%s6119_s8 + $0x134] ss:$8 sps:$4 sm:$0xff]  }
 0x26d   : > { %v1208_v35 = vpop.xlane.xlu0 %1207  ;;  %v5091_v39 = vadd.f32 %v5026_v40, %v1328_v7  ;;  %v5097_v28 = vadd.f32 %v5023_v3, %v1327_v11  ;;  %v1287_v16 = vmul.f32 %v4180_v45, %v4799_v23  ;;  %v1286_v31 = vmul.f32 %v4180_v45, %v4796_v59  ;;  %v4087_v23 = vld [vmem:[%s6119_s8 + $0x20] ss:$8 sps:$4 sm:$0xff]  }
 0x26e   : > { %v4182_v26 = vpop.eup %4181  ;;  %v1238_v4 = vmul.f32 0.00390625, %v1208_v35  ;;  %v5113_v59 = vld [vmem:[%s6119_s8 + $0x120] ss:$8 sps:$4 sm:$0xff]  }
 0x26f   : > { %6159 = vst [vmem:[#allocation8_spill] sm:$0xff] %v5091_v39  ;;  %6161 = vst [vmem:[#allocation10_spill] sm:$0xff] %v5097_v28  ;;  %v1211_v5 = vpop.xlane.xlu1 %1210  ;;  %v1495_v9 = vpack.c.bf16 %v5091_v39, %v5079_v43  ;;  %v1494_v32 = vpack.c.bf16 %v5097_v28, %v5094_v14  ;;  %v1289_v33 = vmul.f32 %v4182_v26, %v4805_v63  ;;  %2655 = vmatpush1.bf16.msra.mxu1 %v4081_v10 }
 0x270   : > { %v1330_v15 = vmul.f32 %v5018_v37, %v1287_v16  ;;  %v1254_v22 = vadd.f32 1e-05, %v1238_v4  ;;  %v1239_v36 = vmul.f32 0.00390625, %v1211_v5  ;;  %v1288_v63 = vmul.f32 %v4182_v26, %v4802_v61  ;;  %2768 = vmatpush1.bf16.msra.mxu0 %v5084_v48  ;;  %2656 = vmatprep.subr.bf16.mxu1 %v4089_v51  ;;  %v4093_v16 = vld [vmem:[%s6119_s8 + $0x30] ss:$8 sps:$4 sm:$0xff]  }
 0x271   : > { %1956 = vmatprep.mubr.bf16.mxu1 %v1495_v9  ;;  %2069 = vmatprep.mubr.bf16.mxu0 %v1495_v9  ;;  %v1332_v46 = vmul.f32 %v5018_v37, %v1289_v33  ;;  %v1329_v61 = vmul.f32 %v5015_v13, %v1286_v31  ;;  %v5150_v26 = vld [vmem:[%s6119_s8 + $0x130] ss:$8 sps:$4 sm:$0xff]   ;;  %v4101_v9 = vld [vmem:[%s6119_s8 + $0x44] ss:$8 sps:$4 sm:$0xff]  }
 0x272   : > { %4187 = vrsqrt.f32 %v1254_v22  ;;  %v1255_v7 = vadd.f32 1e-05, %v1239_v36  ;;  %1957 = vmatmul.mubr.bf16.gmra.mrb[4].mxu1 %v1494_v32  ;;  %2070 = vmatmul.mubr.bf16.gmra.mrb[36].mxu0 %v1494_v32  ;;  %v1331_v11 = vmul.f32 %v5015_v13, %v1288_v63  ;;  %v5134_v10 = vadd.f32 %v5026_v40, %v1330_v15  ;;  %v5162_v32 = vld [vmem:[%s6119_s8 + $0x144] ss:$8 sps:$4 sm:$0xff]  }
 0x273   : > { %v5137_v45 = vadd.f32 %v5026_v40, %v1332_v46  ;;  %2657 = vmatpush1.bf16.msra.mxu1 %v4087_v23  ;;  %2769 = vmatprep.subr.bf16.mxu0 %v5118_v58  ;;  %v5165_v23 = vadd.f32 %v5023_v3, %v1329_v61  ;;  %v4099_v46 = vld [vmem:[%s6119_s8 + $0x40] ss:$8 sps:$4 sm:$0xff]  }
 0x274   : > { %6162 = vst [vmem:[#allocation11_spill] sm:$0xff] %v5134_v10  ;;  %v4184_v51 = vpop.eup %4183  ;;  %4189 = vrsqrt.f32 %v1255_v7  ;;  %v5141_v35 = vadd.f32 %v5023_v3, %v1331_v11  ;;  %2770 = vmatpush1.bf16.msra.mxu0 %v5113_v59  ;;  %2658 = vmatprep.subr.bf16.mxu1 %v4095_v44 }
 0x275   : > { %6163 = vst [vmem:[#allocation12_spill] sm:$0xff] %v5137_v45  ;;  %v1214_v4 = vpop.xlane.xlu0 %1213  ;;  %v1497_v31 = vpack.c.bf16 %v5137_v45, %v5134_v10  ;;  %v1291_v5 = vmul.f32 %v4184_v51, %v4843_v6  ;;  %2771 = vmatprep.subr.bf16.mxu0 %v5129_v47  ;;  %6165 = vst [vmem:[#allocation14_spill] sm:$0xff] %v5165_v23  ;;  %v1290_v22 = vmul.f32 %v4184_v51, %v4840_v34  ;;  %v5180_v34 = vld [vmem:[%s6119_s8 + $0x140] ss:$8 sps:$4 sm:$0xff]   ;;  %v4107_v51 = vld [vmem:[%s6119_s8 + $0x54] ss:$8 sps:$4 sm:$0xff]  }
 0x276   : > { %6164 = vst [vmem:[#allocation13_spill] sm:$0xff] %v5141_v35  ;;  %v4186_v33 = vpop.eup %4185  ;;  %v1240_v15 = vmul.f32 0.00390625, %v1214_v4  ;;  %v1496_v61 = vpack.c.bf16 %v5141_v35, %v5165_v23 }
 0x277   : > { %v1217_v36 = vpop.xlane.xlu1 %1216  ;;  %1966 = vmatprep.mubr.bf16.mxu1 %v1497_v31  ;;  %2079 = vmatprep.mubr.bf16.mxu0 %v1497_v31  ;;  %v1293_v6 = vmul.f32 %v4186_v33, %v4849_v20  ;;  %v1334_v63 = vmul.f32 %v5018_v37, %v1291_v5  ;;  %v1292_v44 = vmul.f32 %v4186_v33, %v4846_v38  ;;  %v5192_v31 = vld [vmem:[%s6119_s8 + $0x154] ss:$8 sps:$4 sm:$0xff]  }
 0x278   : > { %v1256_v7 = vadd.f32 1e-05, %v1240_v15  ;;  %v1241_v11 = vmul.f32 0.00390625, %v1217_v36  ;;  %2659 = vmatpush1.bf16.msra.mxu1 %v4093_v16  ;;  %2772 = vmatpush1.bf16.msra.mxu0 %v5150_v26  ;;  %v1333_v4 = vmul.f32 %v5015_v13, %v1290_v22  ;;  %v4105_v22 = vld [vmem:[%s6119_s8 + $0x50] ss:$8 sps:$4 sm:$0xff]  }
 0x279   : > { %v1336_v20 = vmul.f32 %v5018_v37, %v1293_v6  ;;  %v1335_v38 = vmul.f32 %v5015_v13, %v1292_v44  ;;  %2660 = vmatprep.subr.bf16.mxu1 %v4101_v9  ;;  %2773 = vmatprep.subr.bf16.mxu0 %v5162_v32  ;;  %v5195_v5 = vadd.f32 %v5026_v40, %v1334_v63  ;;  %v5210_v36 = vld [vmem:[%s6119_s8 + $0x150] ss:$8 sps:$4 sm:$0xff]  }
 0x27a   : > { %4191 = vrsqrt.f32 %v1256_v7  ;;  %v1257_v16 = vadd.f32 1e-05, %v1241_v11  ;;  %1967 = vmatmul.mubr.bf16.gmra.mrb[8].mxu1 %v1496_v61  ;;  %2080 = vmatmul.mubr.bf16.gmra.mrb[40].mxu0 %v1496_v61  ;;  %v5221_v7 = vld [vmem:[%s6119_s8 + $0x164] ss:$8 sps:$4 sm:$0xff]  }
 0x27b   : > { %6166 = vst [vmem:[#allocation15_spill] sm:$0xff] %v5195_v5  ;;  %v5198_v9 = vadd.f32 %v5026_v40, %v1336_v20  ;;  %v5201_v15 = vadd.f32 %v5023_v3, %v1335_v38  ;;  %v5224_v20 = vadd.f32 %v5023_v3, %v1333_v4 }
 0x27c   : > { %v4188_v33 = vpop.eup %4187  ;;  %4193 = vrsqrt.f32 %v1257_v16  ;;  %2661 = vmatpush1.bf16.msra.mxu1 %v4099_v46  ;;  %2774 = vmatpush1.bf16.msra.mxu0 %v5180_v34  ;;  %v4113_v46 = vld [vmem:[%s6119_s8 + $0x64] ss:$8 sps:$4 sm:$0xff]  }
 0x27d   : > { %6167 = vst [vmem:[#allocation16_spill] sm:$0xff] %v5198_v9  ;;  %6168 = vst [vmem:[#allocation17_spill] sm:$0xff] %v5201_v15  ;;  %v1220_v6 = vpop.xlane.xlu0 %1219  ;;  %v1499_v63 = vpack.c.bf16 %v5198_v9, %v5195_v5  ;;  %v1295_v44 = vmul.f32 %v4188_v33, %v4887_v12  ;;  %2662 = vmatprep.subr.bf16.mxu1 %v4107_v51  ;;  %v1294_v38 = vmul.f32 %v4188_v33, %v4884_v8 }
 0x27e   : > { %v4190_v11 = vpop.eup %4189  ;;  %v1242_v61 = vmul.f32 0.00390625, %v1220_v6  ;;  %6169 = vst [vmem:[#allocation18_spill] sm:$0xff] %v5224_v20  ;;  %2775 = vmatprep.subr.bf16.mxu0 %v5192_v31  ;;  %v4111_v6 = vld [vmem:[%s6119_s8 + $0x60] ss:$8 sps:$4 sm:$0xff]   ;;  %v1498_v8 = vpack.c.bf16 %v5201_v15, %v5224_v20 }
 0x27f   : > { %v1223_v12 = vpop.xlane.xlu1 %1222  ;;  %1976 = vmatprep.mubr.bf16.mxu1 %v1499_v63  ;;  %2089 = vmatprep.mubr.bf16.mxu0 %v1499_v63  ;;  %v1297_v51 = vmul.f32 %v4190_v11, %v4893_v19  ;;  %v1338_v16 = vmul.f32 %v5018_v37, %v1295_v44  ;;  %v1296_v9 = vmul.f32 %v4190_v11, %v4890_v18  ;;  %v5240_v19 = vld [vmem:[%s6119_s8 + $0x160] ss:$8 sps:$4 sm:$0xff]   ;;  %v4119_v63 = vld [vmem:[%s6119_s8 + $0x74] ss:$8 sps:$4 sm:$0xff]  }
 0x280   : > { %v1258_v5 = vadd.f32 1e-05, %v1242_v61  ;;  %v1243_v4 = vmul.f32 0.00390625, %v1223_v12  ;;  %2663 = vmatpush1.bf16.msra.mxu1 %v4105_v22  ;;  %2776 = vmatpush1.bf16.msra.mxu0 %v5210_v36  ;;  %v1337_v44 = vmul.f32 %v5015_v13, %v1294_v38  ;;  %v5252_v11 = vld [vmem:[%s6119_s8 + $0x174] ss:$8 sps:$4 sm:$0xff]  }
 0x281   : > { %v1340_v33 = vmul.f32 %v5018_v37, %v1297_v51  ;;  %v1339_v18 = vmul.f32 %v5015_v13, %v1296_v9  ;;  %2664 = vmatprep.subr.bf16.mxu1 %v4113_v46  ;;  %2777 = vmatprep.subr.bf16.mxu0 %v5221_v7  ;;  %v5255_v9 = vadd.f32 %v5026_v40, %v1338_v16  ;;  %v4117_v38 = vld [vmem:[%s6119_s8 + $0x70] ss:$8 sps:$4 sm:$0xff]  }
 0x282   : > { %4195 = vrsqrt.f32 %v1258_v5  ;;  %v1259_v22 = vadd.f32 1e-05, %v1243_v4  ;;  %1977 = vmatmul.mubr.bf16.gmra.mrb[12].mxu1 %v1498_v8  ;;  %2090 = vmatmul.mubr.bf16.gmra.mrb[44].mxu0 %v1498_v8  ;;  %v5270_v12 = vld [vmem:[%s6119_s8 + $0x170] ss:$8 sps:$4 sm:$0xff]   ;;  %v5281_v8 = vld [vmem:[%s6119_s8 + $0x184] ss:$8 sps:$4 sm:$0xff]  }
 0x283   : > { %6170 = vst [vmem:[#allocation19_spill] sm:$0xff] %v5255_v9  ;;  %v5258_v46 = vadd.f32 %v5026_v40, %v1340_v33  ;;  %v5261_v5 = vadd.f32 %v5023_v3, %v1339_v18 }
 0x284   : > { %v4192_v61 = vpop.eup %4191  ;;  %4197 = vrsqrt.f32 %v1259_v22  ;;  %2665 = vmatpush1.bf16.msra.mxu1 %v4111_v6  ;;  %2778 = vmatpush1.bf16.msra.mxu0 %v5240_v19  ;;  %v4125_v6 = vld [vmem:[%s6119_s8 + $0x84] ss:$8 sps:$4 sm:$0xff]   ;;  %v5284_v22 = vadd.f32 %v5023_v3, %v1337_v44 }
 0x285   : > { %6171 = vst [vmem:[#allocation20_spill] sm:$0xff] %v5258_v46  ;;  %6172 = vst [vmem:[#allocation21_spill] sm:$0xff] %v5261_v5  ;;  %v1226_v51 = vpop.xlane.xlu0 %1225  ;;  %v1501_v16 = vpack.c.bf16 %v5258_v46, %v5255_v9  ;;  %v1299_v4 = vmul.f32 %v4192_v61, %v4931_v53  ;;  %2666 = vmatprep.subr.bf16.mxu1 %v4119_v63  ;;  %v1298_v15 = vmul.f32 %v4192_v61, %v4928_v57 }
 0x286   : > { %v4194_v33 = vpop.eup %4193  ;;  %v1244_v18 = vmul.f32 0.00390625, %v1226_v51  ;;  %6173 = vst [vmem:[#allocation22_spill] sm:$0xff] %v5284_v22  ;;  %2779 = vmatprep.subr.bf16.mxu0 %v5252_v11  ;;  %v4123_v51 = vld [vmem:[%s6119_s8 + $0x80] ss:$8 sps:$4 sm:$0xff]   ;;  %v1500_v57 = vpack.c.bf16 %v5261_v5, %v5284_v22 }
 0x287   : > { %v1229_v53 = vpop.xlane.xlu1 %1228  ;;  %1986 = vmatprep.mubr.bf16.mxu1 %v1501_v16  ;;  %2099 = vmatprep.mubr.bf16.mxu0 %v1501_v16  ;;  %v1301_v63 = vmul.f32 %v4194_v33, %v4937_v24  ;;  %v1342_v46 = vmul.f32 %v5018_v37, %v1299_v4  ;;  %v1300_v9 = vmul.f32 %v4194_v33, %v4934_v60  ;;  %v5300_v24 = vld [vmem:[%s6119_s8 + $0x180] ss:$8 sps:$4 sm:$0xff]   ;;  %v4131_v16 = vld [vmem:[%s6119_s8 + $0x94] ss:$8 sps:$4 sm:$0xff]  }
 0x288   : > { %v1260_v20 = vadd.f32 1e-05, %v1244_v18  ;;  %v1245_v44 = vmul.f32 0.00390625, %v1229_v53  ;;  %2667 = vmatpush1.bf16.msra.mxu1 %v4117_v38  ;;  %2780 = vmatpush1.bf16.msra.mxu0 %v5270_v12  ;;  %v1341_v4 = vmul.f32 %v5015_v13, %v1298_v15  ;;  %v5312_v33 = vld [vmem:[%s6119_s8 + $0x194] ss:$8 sps:$4 sm:$0xff]  }
 0x289   : > { %v1344_v61 = vmul.f32 %v5018_v37, %v1301_v63  ;;  %v1343_v60 = vmul.f32 %v5015_v13, %v1300_v9  ;;  %2668 = vmatprep.subr.bf16.mxu1 %v4125_v6  ;;  %2781 = vmatprep.subr.bf16.mxu0 %v5281_v8  ;;  %v5315_v9 = vadd.f32 %v5026_v40, %v1342_v46  ;;  %v4129_v15 = vld [vmem:[%s6119_s8 + $0x90] ss:$8 sps:$4 sm:$0xff]  }
 0x28a   : > { %4199 = vrsqrt.f32 %v1260_v20  ;;  %v1261_v38 = vadd.f32 1e-05, %v1245_v44  ;;  %1987 = vmatmul.mubr.bf16.gmra.mrb[16].mxu1 %v1500_v57  ;;  %2100 = vmatmul.mubr.bf16.gmra.mrb[48].mxu0 %v1500_v57  ;;  %v5330_v46 = vld [vmem:[%s6119_s8 + $0x190] ss:$8 sps:$4 sm:$0xff]   ;;  %v5341_v44 = vld [vmem:[%s6119_s8 + $0x1a4] ss:$8 sps:$4 sm:$0xff]  }
 0x28b   : > { %6174 = vst [vmem:[#allocation23_spill] sm:$0xff] %v5315_v9  ;;  %v5318_v6 = vadd.f32 %v5026_v40, %v1344_v61  ;;  %v5321_v20 = vadd.f32 %v5023_v3, %v1343_v60  ;;  %v5344_v61 = vadd.f32 %v5023_v3, %v1341_v4  ;;  %v5360_v4 = vld [vmem:[%s6119_s8 + $0x1a0] ss:$8 sps:$4 sm:$0xff]  }
 0x28c   : > { %v4196_v18 = vpop.eup %4195  ;;  %4201 = vrsqrt.f32 %v1261_v38  ;;  %2669 = vmatpush1.bf16.msra.mxu1 %v4123_v51  ;;  %2782 = vmatpush1.bf16.msra.mxu0 %v5300_v24  ;;  %v4137_v51 = vld [vmem:[%s6119_s8 + $0xa4] ss:$8 sps:$4 sm:$0xff]  }
 0x28d   : > { %6175 = vst [vmem:[#allocation24_spill] sm:$0xff] %v5318_v6  ;;  %6176 = vst [vmem:[#allocation25_spill] sm:$0xff] %v5321_v20  ;;  %v1503_v53 = vpack.c.bf16 %v5318_v6, %v5315_v9  ;;  %v1303_v63 = vmul.f32 %v4196_v18, %v4963_v2  ;;  %2670 = vmatprep.subr.bf16.mxu1 %v4131_v16  ;;  %v1302_v60 = vmul.f32 %v4196_v18, %v4960_v21  ;;  %v4135_v21 = vld [vmem:[%s6119_s8 + $0xa0] ss:$8 sps:$4 sm:$0xff]  }
 0x28e   : > { %v4198_v57 = vpop.eup %4197  ;;  %6177 = vst [vmem:[#allocation26_spill] sm:$0xff] %v5344_v61  ;;  %2783 = vmatprep.subr.bf16.mxu0 %v5312_v33  ;;  %v1502_v6 = vpack.c.bf16 %v5321_v20, %v5344_v61 }
 0x28f   : > { %1996 = vmatprep.mubr.bf16.mxu1 %v1503_v53  ;;  %2109 = vmatprep.mubr.bf16.mxu0 %v1503_v53  ;;  %v1305_v2 = vmul.f32 %v4198_v57, %v4969_v30  ;;  %v1346_v16 = vmul.f32 %v5018_v37, %v1303_v63  ;;  %v1304_v38 = vmul.f32 %v4198_v57, %v4966_v27  ;;  %v4143_v27 = vld [vmem:[%s6119_s8 + $0xb4] ss:$8 sps:$4 sm:$0xff]  }
 0x290   : > { %2671 = vmatpush1.bf16.msra.mxu1 %v4129_v15  ;;  %2784 = vmatpush1.bf16.msra.mxu0 %v5330_v46  ;;  %v1345_v15 = vmul.f32 %v5015_v13, %v1302_v60  ;;  %v5372_v53 = vld [vmem:[%s6119_s8 + $0x1b4] ss:$8 sps:$4 sm:$0xff]   ;;  %v5390_v60 = vld [vmem:[%s6119_s8 + $0x1b0] ss:$8 sps:$4 sm:$0xff]  }
 0x291   : > { %v1348_v30 = vmul.f32 %v5018_v37, %v1305_v2  ;;  %v1347_v18 = vmul.f32 %v5015_v13, %v1304_v38  ;;  %2672 = vmatprep.subr.bf16.mxu1 %v4137_v51  ;;  %2785 = vmatprep.subr.bf16.mxu0 %v5341_v44  ;;  %v5375_v63 = vadd.f32 %v5026_v40, %v1346_v16 }
 0x292   : > { %1997 = vmatmul.mubr.bf16.gmra.mrb[20].mxu1 %v1502_v6  ;;  %2110 = vmatmul.mubr.bf16.gmra.mrb[52].mxu0 %v1502_v6  ;;  %v4141_v6 = vld [vmem:[%s6119_s8 + $0xb0] ss:$8 sps:$4 sm:$0xff]   ;;  %v5404_v20 = vadd.f32 %v5023_v3, %v1345_v15  ;;  %v5420_v15 = vld [vmem:[%s6119_s8 + $0x1c0] ss:$8 sps:$4 sm:$0xff]  }
 0x293   : > { %6178 = vst [vmem:[#allocation27_spill] sm:$0xff] %v5375_v63  ;;  %v5378_v51 = vadd.f32 %v5026_v40, %v1348_v30  ;;  %v5381_v2 = vadd.f32 %v5023_v3, %v1347_v18  ;;  %v5401_v30 = vld [vmem:[%s6119_s8 + $0x1c4] ss:$8 sps:$4 sm:$0xff]  }
 0x294   : > { %v4200_v57 = vpop.eup %4199  ;;  %2673 = vmatpush1.bf16.msra.mxu1 %v4135_v21  ;;  %2786 = vmatpush1.bf16.msra.mxu0 %v5360_v4  ;;  %v4149_v21 = vld [vmem:[%s6119_s8 + $0xc4] ss:$8 sps:$4 sm:$0xff]   ;;  %6181 = vst [vmem:[#allocation30_spill] sm:$0xff] %v5404_v20 }
 0x295   : > { %6179 = vst [vmem:[#allocation28_spill] sm:$0xff] %v5378_v51  ;;  %6180 = vst [vmem:[#allocation29_spill] sm:$0xff] %v5381_v2  ;;  %v1505_v16 = vpack.c.bf16 %v5378_v51, %v5375_v63  ;;  %v1307_v38 = vmul.f32 %v4200_v57, %v4983_v62  ;;  %2674 = vmatprep.subr.bf16.mxu1 %v4143_v27  ;;  %v1306_v9 = vmul.f32 %v4200_v57, %v4980_v17  ;;  %v4147_v17 = vld [vmem:[%s6119_s8 + $0xc0] ss:$8 sps:$4 sm:$0xff]  }
 0x296   : > { %v4202_v18 = vpop.eup %4201  ;;  %2787 = vmatprep.subr.bf16.mxu0 %v5372_v53  ;;  %v1504_v63 = vpack.c.bf16 %v5381_v2, %v5404_v20 }
 0x297   : > { %2006 = vmatprep.mubr.bf16.mxu1 %v1505_v16  ;;  %2119 = vmatprep.mubr.bf16.mxu0 %v1505_v16  ;;  %v1309_v62 = vmul.f32 %v4202_v18, %v4989_v1  ;;  %v1350_v27 = vmul.f32 %v5018_v37, %v1307_v38  ;;  %v1308_v51 = vmul.f32 %v4202_v18, %v4986_v0  ;;  %v4155_v0 = vld [vmem:[%s6119_s8 + $0xd4] ss:$8 sps:$4 sm:$0xff]   ;;  %v4161_v18 = vld [vmem:[%s6119_s8 + $0xe4] ss:$8 sps:$4 sm:$0xff]  }
 0x298   : > { %2675 = vmatpush1.bf16.msra.mxu1 %v4141_v6  ;;  %2788 = vmatpush1.bf16.msra.mxu0 %v5390_v60  ;;  %v5431_v6 = vld [vmem:[%s6119_s8 + $0x1d4] ss:$8 sps:$4 sm:$0xff]   ;;  %v1349_v16 = vmul.f32 %v5015_v13, %v1306_v9 }
 0x299   : > { %v1352_v1 = vmul.f32 %v5018_v37, %v1309_v62  ;;  %v1351_v57 = vmul.f32 %v5015_v13, %v1308_v51  ;;  %2676 = vmatprep.subr.bf16.mxu1 %v4149_v21  ;;  %2789 = vmatprep.subr.bf16.mxu0 %v5401_v30  ;;  %v5435_v37 = vadd.f32 %v5026_v40, %v1350_v27  ;;  %v4153_v21 = vld [vmem:[%s6119_s8 + $0xd0] ss:$8 sps:$4 sm:$0xff]   ;;  %v5467_v62 = vld [vmem:[%s6119_s8 + $0x1e4] ss:$8 sps:$4 sm:$0xff]   ;;  %v5475_v27 = vld [vmem:[%s6119_s8 + $0x1e0] ss:$8 sps:$4 sm:$0xff]  }
 0x29a   : > { %2007 = vmatmul.mubr.bf16.gmra.mrb[24].mxu1 %v1504_v63  ;;  %2120 = vmatmul.mubr.bf16.gmra.mrb[56].mxu0 %v1504_v63  ;;  %v5450_v13 = vld [vmem:[%s6119_s8 + $0x1d0] ss:$8 sps:$4 sm:$0xff]  }
 0x29b   : > { %6182 = vst [vmem:[#allocation31_spill] sm:$0xff] %v5435_v37  ;;  %v5438_v51 = vadd.f32 %v5026_v40, %v1352_v1  ;;  %v5441_v38 = vadd.f32 %v5023_v3, %v1351_v57  ;;  %v5456_v40 = vadd.f32 %v5023_v3, %v1349_v16  ;;  %v4159_v3 = vld [vmem:[%s6119_s8 + $0xe0] ss:$8 sps:$4 sm:$0xff]   ;;  %v5485_v1 = vld [vmem:[%s6119_s8 + $0x1f4] ss:$8 sps:$4 sm:$0xff]   ;;  %v1584_v16 = vsub.s32 2, %v4462_v49 }
 0x29c   : > { %2677 = vmatpush1.bf16.msra.mxu1 %v4147_v17  ;;  %2790 = vmatpush1.bf16.msra.mxu0 %v5420_v15  ;;  %v4167_v17 = vld [vmem:[%s6119_s8 + $0xf4] ss:$8 sps:$4 sm:$0xff]   ;;  %v4165_v57 = vld [vmem:[%s6119_s8 + $0xf0] ss:$8 sps:$4 sm:$0xff]  }
 0x29d   : > { %6183 = vst [vmem:[#allocation32_spill] sm:$0xff] %v5438_v51  ;;  %6184 = vst [vmem:[#allocation33_spill] sm:$0xff] %v5441_v38  ;;  %v1507_v9 = vpack.c.bf16 %v5438_v51, %v5435_v37  ;;  %2678 = vmatprep.subr.bf16.mxu1 %v4155_v0  ;;  %2791 = vmatprep.subr.bf16.mxu0 %v5431_v6  ;;  %v1506_v63 = vpack.c.bf16 %v5441_v38, %v5456_v40  ;;  %v5493_v0 = vld [vmem:[%s6119_s8 + $0x1f0] ss:$8 sps:$4 sm:$0xff]  }
 0x29e   : > { %6185 = vst [vmem:[#allocation34_spill] sm:$0xff] %v5456_v40 }
 0x29f   : > { %2016 = vmatprep.mubr.bf16.mxu1 %v1507_v9  ;;  %2129 = vmatprep.mubr.bf16.mxu0 %v1507_v9  ;;  %v1588_v9 = vsub.s32 3, %v4462_v49 }
 0x2a0   : > { %2679 = vmatpush1.bf16.msra.mxu1 %v4153_v21  ;;  %2792 = vmatpush1.bf16.msra.mxu0 %v5450_v13  ;;  %v1572_v21 = vld [vmem:[%s6118_s7] sm:$0xf] }
 0x2a1   : > { %2680 = vmatprep.subr.bf16.mxu1 %v4161_v18  ;;  %2793 = vmatprep.subr.bf16.mxu0 %v5467_v62  ;;  %v5506_v18 = vrot.slane %v1572_v21, %v1584_v16 }
 0x2a2   : > { %2017 = vmatmul.mubr.bf16.gmra.mrb[28].mxu1 %v1506_v63  ;;  %2130 = vmatmul.mubr.bf16.gmra.mrb[60].mxu0 %v1506_v63  ;;  %v5504_v63 = vrot.slane %v1572_v21, %v4465_v50 }
 0x2a4   : > { %2681 = vmatpush1.bf16.msra.mxu1 %v4159_v3  ;;  %2794 = vmatpush1.bf16.msra.mxu0 %v5475_v27  ;;  %v5509_v3 = vrot.slane %v1572_v21, %v4472_v52 }
 0x2a5   : > { %2682 = vmatprep.subr.bf16.mxu1 %v4167_v17  ;;  %2795 = vmatprep.subr.bf16.mxu0 %v5485_v1  ;;  %v5511_v17 = vrot.slane %v1572_v21, %v1588_v9 }
 0x2a8   : > { %2683 = vmatpush1.bf16.msra.mxu1 %v4165_v57  ;;  %2796 = vmatpush1.bf16.msra.mxu0 %v5493_v0 }
 0x2a9   : > { %3819 = vmatprep.subr.bf16.mxu1 %v5005_v55 }
 0x33d   : > { %v1948_v57 = vpop.f32.mrb[0].mxu1  ;;  %v2061_v55 = vpop.f32.mrb[32].mxu0 }
 0x33e   : > { %v1949_v51 = vadd.f32 %v1948_v57, %v5504_v63  ;;  %v2062_v38 = vadd.f32 %v2061_v55, %v5506_v18  ;;  %v1950_v37 = vpop.f32.mrb[1].mxu1  ;;  %v2063_v40 = vpop.f32.mrb[33].mxu0 }
 0x33f   : > { %v1951_v49 = vadd.f32 %v1950_v37, %v5509_v3  ;;  %v2064_v2 = vadd.f32 %v2063_v40, %v5511_v17  ;;  %v1952_v20 = vpop.f32.mrb[2].mxu1  ;;  %v2065_v16 = vpop.f32.mrb[34].mxu0 }
 0x340   : > { %v1953_v61 = vadd.f32 %v1952_v20, %v5504_v63  ;;  %v2066_v5 = vadd.f32 %v2065_v16, %v5506_v18  ;;  %v1954_v21 = vpop.f32.mrb[3].mxu1  ;;  %v2067_v9 = vpop.f32.mrb[35].mxu0  ;;  %v2140_v45 = vmax.f32 %v1949_v51, 0.0  ;;  %v2142_v55 = vmax.f32 %v2062_v38, 0.0 }
 0x341   : > { %v1955_v22 = vadd.f32 %v1954_v21, %v5509_v3  ;;  %v2068_v57 = vadd.f32 %v2067_v9, %v5511_v17  ;;  %v2141_v23 = vmax.f32 %v1951_v49, 0.0  ;;  %v2143_v37 = vmax.f32 %v2064_v2, 0.0 }
 0x342   : > { %v2144_v35 = vmax.f32 %v1953_v61, 0.0  ;;  %v2146_v10 = vmax.f32 %v2066_v5, 0.0 }
 0x343   : > { %v2145_v39 = vmax.f32 %v1955_v22, 0.0  ;;  %v2147_v40 = vmax.f32 %v2068_v57, 0.0 }
 0x344   : > { %v2236_v28 = vpack.c.bf16 %v2144_v35, %v2140_v45  ;;  %v2238_v43 = vpack.c.bf16 %v2146_v10, %v2142_v55 }
 0x345   : > { %v2237_v14 = vpack.c.bf16 %v2145_v39, %v2141_v23  ;;  %v2239_v20 = vpack.c.bf16 %v2147_v40, %v2143_v37  ;;  %v1958_v29 = vpop.f32.mrb[4].mxu1  ;;  %v2071_v16 = vpop.f32.mrb[36].mxu0 }
 0x346   : > { %v1959_v25 = vadd.f32 %v1958_v29, %v5504_v63  ;;  %v2072_v21 = vadd.f32 %v2071_v16, %v5506_v18  ;;  %v1960_v41 = vpop.f32.mrb[5].mxu1  ;;  %v2073_v9 = vpop.f32.mrb[37].mxu0 }
 0x347   : > { %v1961_v51 = vadd.f32 %v1960_v41, %v5509_v3  ;;  %v2074_v5 = vadd.f32 %v2073_v9, %v5511_v17  ;;  %v1962_v61 = vpop.f32.mrb[6].mxu1  ;;  %v2075_v2 = vpop.f32.mrb[38].mxu0  ;;  %2684 = vmatprep.mubr.bf16.mxu1 %v2237_v14  ;;  %2797 = vmatprep.mubr.bf16.mxu0 %v2239_v20 }
 0x348   : > { %v1963_v10 = vadd.f32 %v1962_v61, %v5504_v63  ;;  %v2076_v39 = vadd.f32 %v2075_v2, %v5506_v18  ;;  %v1964_v45 = vpop.f32.mrb[7].mxu1  ;;  %v2077_v35 = vpop.f32.mrb[39].mxu0  ;;  %2685 = vmatmul.mubr.bf16.vlgmr.msra.gmra.mrb[32].mxu1 %v2236_v28  ;;  %2798 = vmatmul.mubr.bf16.vlgmr.msra.gmra.mrb[64].mxu0 %v2238_v43  ;;  %v2148_v41 = vmax.f32 %v1959_v25, 0.0  ;;  %v2150_v22 = vmax.f32 %v2072_v21, 0.0 }
 0x349   : > { %v1965_v29 = vadd.f32 %v1964_v45, %v5509_v3  ;;  %v2078_v23 = vadd.f32 %v2077_v35, %v5511_v17  ;;  %3835 = vmatpush1.bf16.msra.mxu1 %v5058_v56  ;;  %v2149_v14 = vmax.f32 %v1961_v51, 0.0  ;;  %v2151_v57 = vmax.f32 %v2074_v5, 0.0 }
 0x34a   : > { %v2152_v38 = vmax.f32 %v1963_v10, 0.0  ;;  %v2154_v49 = vmax.f32 %v2076_v39, 0.0  ;;  %3820 = vmatprep.subr.bf16.mxu1 %v5067_v54 }
 0x34b   : > { %v2153_v55 = vmax.f32 %v1965_v29, 0.0  ;;  %v2155_v37 = vmax.f32 %v2078_v23, 0.0 }
 0x34c   : > { %v2240_v40 = vpack.c.bf16 %v2152_v38, %v2148_v41  ;;  %v2242_v20 = vpack.c.bf16 %v2154_v49, %v2150_v22 }
 0x34d   : > { %v2241_v28 = vpack.c.bf16 %v2153_v55, %v2149_v14  ;;  %v2243_v43 = vpack.c.bf16 %v2155_v37, %v2151_v57  ;;  %3836 = vmatpush1.bf16.msra.mxu1 %v5084_v48  ;;  %v1968_v16 = vpop.f32.mrb[8].mxu1  ;;  %v2081_v9 = vpop.f32.mrb[40].mxu0 }
 0x34e   : > { %v1969_v56 = vadd.f32 %v1968_v16, %v5504_v63  ;;  %v2082_v25 = vadd.f32 %v2081_v9, %v5506_v18  ;;  %v1970_v21 = vpop.f32.mrb[9].mxu1  ;;  %v2083_v61 = vpop.f32.mrb[41].mxu0  ;;  %3821 = vmatprep.subr.bf16.mxu1 %v5118_v58 }
 0x34f   : > { %v1971_v54 = vadd.f32 %v1970_v21, %v5509_v3  ;;  %v2084_v51 = vadd.f32 %v2083_v61, %v5511_v17  ;;  %v1972_v5 = vpop.f32.mrb[10].mxu1  ;;  %v2085_v2 = vpop.f32.mrb[42].mxu0  ;;  %2694 = vmatprep.mubr.bf16.mxu1 %v2241_v28  ;;  %2807 = vmatprep.mubr.bf16.mxu0 %v2243_v43 }
 0x350   : > { %v1973_v48 = vadd.f32 %v1972_v5, %v5504_v63  ;;  %v2086_v10 = vadd.f32 %v2085_v2, %v5506_v18  ;;  %v1974_v39 = vpop.f32.mrb[11].mxu1  ;;  %v2087_v45 = vpop.f32.mrb[43].mxu0  ;;  %2695 = vmatmul.mubr.bf16.gmra.mrb[36].mxu1 %v2240_v40  ;;  %2808 = vmatmul.mubr.bf16.gmra.mrb[68].mxu0 %v2242_v20  ;;  %v2156_v29 = vmax.f32 %v1969_v56, 0.0  ;;  %v2158_v23 = vmax.f32 %v2082_v25, 0.0 }
 0x351   : > { %v1975_v35 = vadd.f32 %v1974_v39, %v5509_v3  ;;  %v2088_v58 = vadd.f32 %v2087_v45, %v5511_v17  ;;  %3837 = vmatpush1.bf16.msra.mxu1 %v5113_v59  ;;  %v2157_v38 = vmax.f32 %v1971_v54, 0.0  ;;  %v2159_v49 = vmax.f32 %v2084_v51, 0.0 }
 0x352   : > { %v2160_v41 = vmax.f32 %v1973_v48, 0.0  ;;  %v2162_v22 = vmax.f32 %v2086_v10, 0.0  ;;  %3822 = vmatprep.subr.bf16.mxu1 %v5129_v47 }
 0x353   : > { %v2161_v14 = vmax.f32 %v1975_v35, 0.0  ;;  %v2163_v57 = vmax.f32 %v2088_v58, 0.0 }
 0x354   : > { %v2244_v55 = vpack.c.bf16 %v2160_v41, %v2156_v29  ;;  %v2246_v37 = vpack.c.bf16 %v2162_v22, %v2158_v23 }
 0x355   : > { %v2245_v40 = vpack.c.bf16 %v2161_v14, %v2157_v38  ;;  %v2247_v20 = vpack.c.bf16 %v2163_v57, %v2159_v49  ;;  %3838 = vmatpush1.bf16.msra.mxu1 %v5150_v26  ;;  %v1978_v28 = vpop.f32.mrb[12].mxu1  ;;  %v2091_v43 = vpop.f32.mrb[44].mxu0 }
 0x356   : > { %v1979_v59 = vadd.f32 %v1978_v28, %v5504_v63  ;;  %v2092_v16 = vadd.f32 %v2091_v43, %v5506_v18  ;;  %v1980_v9 = vpop.f32.mrb[13].mxu1  ;;  %v2093_v56 = vpop.f32.mrb[45].mxu0  ;;  %3823 = vmatprep.subr.bf16.mxu1 %v5162_v32 }
 0x357   : > { %v1981_v47 = vadd.f32 %v1980_v9, %v5509_v3  ;;  %v2094_v25 = vadd.f32 %v2093_v56, %v5511_v17  ;;  %v1982_v21 = vpop.f32.mrb[14].mxu1  ;;  %v2095_v61 = vpop.f32.mrb[46].mxu0  ;;  %2704 = vmatprep.mubr.bf16.mxu1 %v2245_v40  ;;  %2817 = vmatprep.mubr.bf16.mxu0 %v2247_v20 }
 0x358   : > { %v1983_v26 = vadd.f32 %v1982_v21, %v5504_v63  ;;  %v2096_v54 = vadd.f32 %v2095_v61, %v5506_v18  ;;  %v1984_v51 = vpop.f32.mrb[15].mxu1  ;;  %v2097_v5 = vpop.f32.mrb[47].mxu0  ;;  %2705 = vmatmul.mubr.bf16.gmra.mrb[40].mxu1 %v2244_v55  ;;  %2818 = vmatmul.mubr.bf16.gmra.mrb[72].mxu0 %v2246_v37  ;;  %v2164_v48 = vmax.f32 %v1979_v59, 0.0  ;;  %v2166_v10 = vmax.f32 %v2092_v16, 0.0 }
 0x359   : > { %v1985_v2 = vadd.f32 %v1984_v51, %v5509_v3  ;;  %v2098_v32 = vadd.f32 %v2097_v5, %v5511_v17  ;;  %3839 = vmatpush1.bf16.msra.mxu1 %v5180_v34  ;;  %v2165_v35 = vmax.f32 %v1981_v47, 0.0  ;;  %v2167_v58 = vmax.f32 %v2094_v25, 0.0 }
 0x35a   : > { %v2168_v39 = vmax.f32 %v1983_v26, 0.0  ;;  %v2170_v45 = vmax.f32 %v2096_v54, 0.0  ;;  %3824 = vmatprep.subr.bf16.mxu1 %v5192_v31 }
 0x35b   : > { %v2169_v29 = vmax.f32 %v1985_v2, 0.0  ;;  %v2171_v23 = vmax.f32 %v2098_v32, 0.0 }
 0x35c   : > { %v2248_v41 = vpack.c.bf16 %v2168_v39, %v2164_v48  ;;  %v2250_v22 = vpack.c.bf16 %v2170_v45, %v2166_v10 }
 0x35d   : > { %v2249_v38 = vpack.c.bf16 %v2169_v29, %v2165_v35  ;;  %v2251_v49 = vpack.c.bf16 %v2171_v23, %v2167_v58  ;;  %3840 = vmatpush1.bf16.msra.mxu1 %v5210_v36  ;;  %v1988_v14 = vpop.f32.mrb[16].mxu1  ;;  %v2101_v57 = vpop.f32.mrb[48].mxu0 }
 0x35e   : > { %v1989_v34 = vadd.f32 %v1988_v14, %v5504_v63  ;;  %v2102_v55 = vadd.f32 %v2101_v57, %v5506_v18  ;;  %v1990_v37 = vpop.f32.mrb[17].mxu1  ;;  %v2103_v40 = vpop.f32.mrb[49].mxu0  ;;  %3825 = vmatprep.subr.bf16.mxu1 %v5221_v7 }
 0x35f   : > { %v1991_v31 = vadd.f32 %v1990_v37, %v5509_v3  ;;  %v2104_v20 = vadd.f32 %v2103_v40, %v5511_v17  ;;  %v1992_v28 = vpop.f32.mrb[18].mxu1  ;;  %v2105_v43 = vpop.f32.mrb[50].mxu0  ;;  %2714 = vmatprep.mubr.bf16.mxu1 %v2249_v38  ;;  %2827 = vmatprep.mubr.bf16.mxu0 %v2251_v49 }
 0x360   : > { %v1993_v36 = vadd.f32 %v1992_v28, %v5504_v63  ;;  %v2106_v59 = vadd.f32 %v2105_v43, %v5506_v18  ;;  %v1994_v16 = vpop.f32.mrb[19].mxu1  ;;  %v2107_v9 = vpop.f32.mrb[51].mxu0  ;;  %2715 = vmatmul.mubr.bf16.gmra.mrb[44].mxu1 %v2248_v41  ;;  %2828 = vmatmul.mubr.bf16.gmra.mrb[76].mxu0 %v2250_v22  ;;  %v2172_v47 = vmax.f32 %v1989_v34, 0.0  ;;  %v2174_v25 = vmax.f32 %v2102_v55, 0.0 }
 0x361   : > { %v1995_v56 = vadd.f32 %v1994_v16, %v5509_v3  ;;  %v2108_v7 = vadd.f32 %v2107_v9, %v5511_v17  ;;  %3841 = vmatpush1.bf16.msra.mxu1 %v5240_v19  ;;  %v2173_v26 = vmax.f32 %v1991_v31, 0.0  ;;  %v2175_v54 = vmax.f32 %v2104_v20, 0.0 }
 0x362   : > { %v2176_v21 = vmax.f32 %v1993_v36, 0.0  ;;  %v2178_v61 = vmax.f32 %v2106_v59, 0.0  ;;  %3826 = vmatprep.subr.bf16.mxu1 %v5252_v11 }
 0x363   : > { %v2177_v51 = vmax.f32 %v1995_v56, 0.0  ;;  %v2179_v5 = vmax.f32 %v2108_v7, 0.0 }
 0x364   : > { %v2252_v2 = vpack.c.bf16 %v2176_v21, %v2172_v47  ;;  %v5567_v32 = vpack.c.bf16 %v2178_v61, %v2174_v25 }
 0x365   : > { %v2253_v48 = vpack.c.bf16 %v2177_v51, %v2173_v26  ;;  %v5569_v10 = vpack.c.bf16 %v2179_v5, %v2175_v54  ;;  %3842 = vmatpush1.bf16.msra.mxu1 %v5270_v12  ;;  %v1998_v39 = vpop.f32.mrb[20].mxu1  ;;  %v2111_v19 = vpop.f32.mrb[52].mxu0 }
 0x366   : > { %v1999_v45 = vadd.f32 %v1998_v39, %v5504_v63  ;;  %v2112_v35 = vadd.f32 %v2111_v19, %v5506_v18  ;;  %v2000_v58 = vpop.f32.mrb[21].mxu1  ;;  %v2113_v11 = vpop.f32.mrb[53].mxu0  ;;  %3827 = vmatprep.subr.bf16.mxu1 %v5281_v8 }
 0x367   : > { %v2001_v29 = vadd.f32 %v2000_v58, %v5509_v3  ;;  %v2114_v23 = vadd.f32 %v2113_v11, %v5511_v17  ;;  %v2002_v41 = vpop.f32.mrb[22].mxu1  ;;  %v2115_v22 = vpop.f32.mrb[54].mxu0  ;;  %2724 = vmatprep.mubr.bf16.mxu1 %v2253_v48 }
 0x368   : > { %v2003_v38 = vadd.f32 %v2002_v41, %v5504_v63  ;;  %v2116_v12 = vadd.f32 %v2115_v22, %v5506_v18  ;;  %v2004_v49 = vpop.f32.mrb[23].mxu1  ;;  %v2117_v14 = vpop.f32.mrb[55].mxu0  ;;  %2725 = vmatmul.mubr.bf16.gmra.mrb[48].mxu1 %v2252_v2  ;;  %v2180_v8 = vmax.f32 %v1999_v45, 0.0  ;;  %v2182_v55 = vmax.f32 %v2112_v35, 0.0 }
 0x369   : > { %v2005_v57 = vadd.f32 %v2004_v49, %v5509_v3  ;;  %v2118_v34 = vadd.f32 %v2117_v14, %v5511_v17  ;;  %3843 = vmatpush1.bf16.msra.mxu1 %v5300_v24  ;;  %v2181_v31 = vmax.f32 %v2001_v29, 0.0  ;;  %v2183_v20 = vmax.f32 %v2114_v23, 0.0 }
 0x36a   : > { %v2184_v37 = vmax.f32 %v2003_v38, 0.0  ;;  %v2186_v40 = vmax.f32 %v2116_v12, 0.0  ;;  %3828 = vmatprep.subr.bf16.mxu1 %v5312_v33 }
 0x36b   : > { %v2185_v28 = vmax.f32 %v2005_v57, 0.0  ;;  %v2187_v43 = vmax.f32 %v2118_v34, 0.0 }
 0x36c   : > { %v2256_v36 = vpack.c.bf16 %v2184_v37, %v2180_v8  ;;  %v5583_v59 = vpack.c.bf16 %v2186_v40, %v2182_v55 }
 0x36d   : > { %v2257_v16 = vpack.c.bf16 %v2185_v28, %v2181_v31  ;;  %v5585_v9 = vpack.c.bf16 %v2187_v43, %v2183_v20  ;;  %3844 = vmatpush1.bf16.msra.mxu1 %v5330_v46  ;;  %v2008_v56 = vpop.f32.mrb[24].mxu1  ;;  %v2121_v24 = vpop.f32.mrb[56].mxu0 }
 0x36e   : > { %v2009_v7 = vadd.f32 %v2008_v56, %v5504_v63  ;;  %v2122_v47 = vadd.f32 %v2121_v24, %v5506_v18  ;;  %v2010_v25 = vpop.f32.mrb[25].mxu1  ;;  %v2123_v33 = vpop.f32.mrb[57].mxu0  ;;  %3829 = vmatprep.subr.bf16.mxu1 %v5341_v44 }
 0x36f   : > { %v2011_v21 = vadd.f32 %v2010_v25, %v5509_v3  ;;  %v2124_v61 = vadd.f32 %v2123_v33, %v5511_v17  ;;  %v2012_v26 = vpop.f32.mrb[26].mxu1  ;;  %v2125_v54 = vpop.f32.mrb[58].mxu0  ;;  %2734 = vmatprep.mubr.bf16.mxu1 %v2257_v16 }
 0x370   : > { %v2013_v51 = vadd.f32 %v2012_v26, %v5504_v63  ;;  %v2126_v46 = vadd.f32 %v2125_v54, %v5506_v18  ;;  %v2014_v5 = vpop.f32.mrb[27].mxu1  ;;  %v2127_v2 = vpop.f32.mrb[59].mxu0  ;;  %2735 = vmatmul.mubr.bf16.gmra.mrb[52].mxu1 %v2256_v36  ;;  %v2188_v44 = vmax.f32 %v2009_v7, 0.0  ;;  %v2190_v19 = vmax.f32 %v2122_v47, 0.0 }
 0x371   : > { %v2015_v48 = vadd.f32 %v2014_v5, %v5509_v3  ;;  %v2128_v39 = vadd.f32 %v2127_v2, %v5511_v17  ;;  %3845 = vmatpush1.bf16.msra.mxu1 %v5360_v4  ;;  %v2189_v58 = vmax.f32 %v2011_v21, 0.0  ;;  %v2191_v11 = vmax.f32 %v2124_v61, 0.0 }
 0x372   : > { %v2192_v45 = vmax.f32 %v2013_v51, 0.0  ;;  %v2194_v35 = vmax.f32 %v2126_v46, 0.0  ;;  %3830 = vmatprep.subr.bf16.mxu1 %v5372_v53 }
 0x373   : > { %v2193_v29 = vmax.f32 %v2015_v48, 0.0  ;;  %v2195_v23 = vmax.f32 %v2128_v39, 0.0  ;;  %v6186_v39 = vld [vmem:[#allocation4_spill] sm:$0xff] }
 0x374   : > { %v2260_v41 = vpack.c.bf16 %v2192_v45, %v2188_v44  ;;  %v2262_v22 = vpack.c.bf16 %v2194_v35, %v2190_v19  ;;  %v6187_v19 = vld [vmem:[#allocation6_spill] sm:$0xff] }
 0x375   : > { %v2261_v38 = vpack.c.bf16 %v2193_v29, %v2189_v58  ;;  %v2263_v12 = vpack.c.bf16 %v2195_v23, %v2191_v11  ;;  %3846 = vmatpush1.bf16.msra.mxu1 %v5390_v60  ;;  %v2018_v49 = vpop.f32.mrb[28].mxu1  ;;  %v2131_v14 = vpop.f32.mrb[60].mxu0  ;;  %v6188_v29 = vld [vmem:[#allocation5_spill] sm:$0xff] }
 0x376   : > { %v2019_v4 = vadd.f32 %v2018_v49, %v5504_v63  ;;  %v2132_v57 = vadd.f32 %v2131_v14, %v5506_v18  ;;  %v2020_v34 = vpop.f32.mrb[29].mxu1  ;;  %v2133_v8 = vpop.f32.mrb[61].mxu0  ;;  %3831 = vmatprep.subr.bf16.mxu1 %v5401_v30 }
 0x377   : > { %v2021_v53 = vadd.f32 %v2020_v34, %v5509_v3  ;;  %v2134_v55 = vadd.f32 %v2133_v8, %v5511_v17  ;;  %v2022_v37 = vpop.f32.mrb[30].mxu1  ;;  %v2135_v40 = vpop.f32.mrb[62].mxu0  ;;  %2744 = vmatprep.mubr.bf16.mxu1 %v2261_v38 }
 0x378   : > { %v2023_v31 = vadd.f32 %v2022_v37, %v5504_v63  ;;  %v2136_v60 = vadd.f32 %v2135_v40, %v5506_v18  ;;  %v2024_v20 = vpop.f32.mrb[31].mxu1  ;;  %v2137_v28 = vpop.f32.mrb[63].mxu0  ;;  %2745 = vmatmul.mubr.bf16.gmra.mrb[56].mxu1 %v2260_v41  ;;  %v2196_v30 = vmax.f32 %v2019_v4, 0.0  ;;  %v2198_v16 = vmax.f32 %v2132_v57, 0.0  ;;  %v6189_v40 = vld [vmem:[#allocation9_spill] sm:$0xff] }
 0x379   : > { %v2025_v43 = vadd.f32 %v2024_v20, %v5509_v3  ;;  %v2138_v36 = vadd.f32 %v2137_v28, %v5511_v17  ;;  %3847 = vmatpush1.bf16.msra.mxu1 %v5420_v15  ;;  %v2197_v7 = vmax.f32 %v2021_v53, 0.0  ;;  %v2199_v47 = vmax.f32 %v2134_v55, 0.0  ;;  %v2977_v15 = vld [vmem:[%s6120_s9] sm:$0x3]  ;;  %v6190_v20 = vld [vmem:[#allocation7_spill] sm:$0xff] }
 0x37a   : > { %v2200_v56 = vmax.f32 %v2023_v31, 0.0  ;;  %v2202_v24 = vmax.f32 %v2136_v60, 0.0  ;;  %3832 = vmatprep.subr.bf16.mxu1 %v5431_v6  ;;  %v5624_v6 = vrot.slane %v2977_v15, %v4465_v50 }
 0x37b   : > { %v2201_v63 = vmax.f32 %v2025_v43, 0.0  ;;  %v2203_v25 = vmax.f32 %v2138_v36, 0.0  ;;  %v6191_v43 = vld [vmem:[#allocation10_spill] sm:$0xff] }
 0x37c   : > { %v2264_v18 = vpack.c.bf16 %v2200_v56, %v2196_v30  ;;  %v2266_v33 = vpack.c.bf16 %v2202_v24, %v2198_v16  ;;  %v6192_v24 = vld [vmem:[#allocation8_spill] sm:$0xff] }
 0x37d   : > { %v2265_v21 = vpack.c.bf16 %v2201_v63, %v2197_v7  ;;  %v2267_v61 = vpack.c.bf16 %v2203_v25, %v2199_v47  ;;  %3848 = vmatpush1.bf16.msra.mxu1 %v5450_v13 }
 0x37e   : > { %3833 = vmatprep.subr.bf16.mxu1 %v5467_v62 }
 0x37f   : > { %2754 = vmatprep.mubr.bf16.mxu1 %v2265_v21 }
 0x380   : > { %2755 = vmatmul.mubr.bf16.gmra.mrb[60].mxu1 %v2264_v18 }
 0x381   : > { %3849 = vmatpush1.bf16.msra.mxu1 %v5475_v27  ;;  %2837 = vmatprep.mubr.bf16.mxu1 %v5569_v10  ;;  %v5627_v27 = vrot.slane %v2977_v15, %v4472_v52 }
 0x382   : > { %3834 = vmatprep.subr.bf16.mxu1 %v5485_v1 }
 0x385   : > { %3850 = vmatpush1.bf16.msra.mxu1 %v5493_v0 }
 0x388   : > { %2838 = vmatmul.mubr.bf16.vlgmr.msra.gmra.mrb[48].mxu1 %v5567_v32 }
 0x389   : > { %2847 = vmatprep.mubr.bf16.mxu1 %v5585_v9 }
 0x390   : > { %2848 = vmatmul.mubr.bf16.gmra.mrb[52].mxu1 %v5583_v59 }
 0x391   : > { %2857 = vmatprep.mubr.bf16.mxu1 %v2263_v12 }
 0x398   : > { %2858 = vmatmul.mubr.bf16.gmra.mrb[56].mxu1 %v2262_v22 }
 0x399   : > { %2867 = vmatprep.mubr.bf16.mxu1 %v2267_v61 }
 0x3a0   : > { %2868 = vmatmul.mubr.bf16.gmra.mrb[60].mxu1 %v2266_v33 }
 0x41b   : > { %v2686_v13 = vpop.f32.mrb[32].mxu1  ;;  %v2799_v62 = vpop.f32.mrb[64].mxu0 }
 0x41c   : > { %v2800_v1 = vadd.f32 %v2799_v62, %v2686_v13  ;;  %v2688_v0 = vpop.f32.mrb[33].mxu1  ;;  %v2801_v3 = vpop.f32.mrb[65].mxu0 }
 0x41d   : > { %v2802_v17 = vadd.f32 %v2801_v3, %v2688_v0  ;;  %v2690_v32 = vpop.f32.mrb[34].mxu1  ;;  %v2803_v10 = vpop.f32.mrb[66].mxu0 }
 0x41e   : > { %v2989_v59 = vadd.f32 %v5624_v6, %v2800_v1  ;;  %v2804_v9 = vadd.f32 %v2803_v10, %v2690_v32  ;;  %v2692_v26 = vpop.f32.mrb[35].mxu1  ;;  %v2805_v54 = vpop.f32.mrb[67].mxu0  ;;  %v6193_v32 = vld [vmem:[#allocation14_spill] sm:$0xff] }
 0x41f   : > { %v2990_v51 = vadd.f32 %v5627_v27, %v2802_v17  ;;  %v2806_v46 = vadd.f32 %v2805_v54, %v2692_v26  ;;  %v6195_v54 = vld [vmem:[#allocation13_spill] sm:$0xff] }
 0x420   : > { %v2991_v5 = vadd.f32 %v5624_v6, %v2804_v9  ;;  %v5633_v2 = vadd.f32 %v2989_v59, %v5038_v42  ;;  %v6194_v9 = vld [vmem:[#allocation11_spill] sm:$0xff] }
 0x421   : > { %v2992_v48 = vadd.f32 %v5627_v27, %v2806_v46  ;;  %v5637_v44 = vadd.f32 %v2990_v51, %v6186_v39  ;;  %v6196_v39 = vld [vmem:[#allocation12_spill] sm:$0xff] }
 0x422   : > { %v5640_v45 = vadd.f32 %v2991_v5, %v6187_v19 }
 0x423   : > { %v2696_v35 = vpop.f32.mrb[36].mxu1  ;;  %v2809_v58 = vpop.f32.mrb[68].mxu0  ;;  %v3087_v11 = vadd.f32 %v5637_v44, %v5633_v2  ;;  %v5645_v23 = vadd.f32 %v2992_v48, %v6188_v29 }
 0x424   : > { %v2810_v41 = vadd.f32 %v2809_v58, %v2696_v35  ;;  %v2698_v22 = vpop.f32.mrb[37].mxu1  ;;  %v2811_v42 = vpop.f32.mrb[69].mxu0 }
 0x425   : > { %v2812_v38 = vadd.f32 %v2811_v42, %v2698_v22  ;;  %v2813_v12 = vpop.f32.mrb[70].mxu0  ;;  %3088 = vadd.xlane.f32.xlu0 %v3087_v11  ;;  %v2700_v49 = vpop.f32.mrb[38].mxu1  ;;  %v3090_v14 = vadd.f32 %v5645_v23, %v5640_v45 }
 0x426   : > { %v2993_v4 = vadd.f32 %v5624_v6, %v2810_v41  ;;  %v2814_v57 = vadd.f32 %v2813_v12, %v2700_v49  ;;  %v2702_v34 = vpop.f32.mrb[39].mxu1  ;;  %v2815_v8 = vpop.f32.mrb[71].mxu0 }
 0x427   : > { %v2994_v53 = vadd.f32 %v5627_v27, %v2812_v38  ;;  %v2816_v55 = vadd.f32 %v2815_v8, %v2702_v34  ;;  %3091 = vadd.xlane.f32.xlu1 %v3090_v14  ;;  %v6197_v8 = vld [vmem:[#allocation18_spill] sm:$0xff] }
 0x428   : > { %v2995_v37 = vadd.f32 %v5624_v6, %v2814_v57  ;;  %v5653_v31 = vadd.f32 %v2993_v4, %v6189_v40 }
 0x429   : > { %v2996_v60 = vadd.f32 %v5627_v27, %v2816_v55  ;;  %v5657_v28 = vadd.f32 %v2994_v53, %v6190_v20 }
 0x42a   : > { %v5660_v36 = vadd.f32 %v2995_v37, %v6191_v43  ;;  %v6198_v37 = vld [vmem:[#allocation15_spill] sm:$0xff] }
 0x42b   : > { %v2706_v30 = vpop.f32.mrb[40].mxu1  ;;  %v2819_v16 = vpop.f32.mrb[72].mxu0  ;;  %v3093_v56 = vadd.f32 %v5657_v28, %v5653_v31  ;;  %v5665_v7 = vadd.f32 %v2996_v60, %v6192_v24  ;;  %v6199_v60 = vld [vmem:[#allocation17_spill] sm:$0xff] }
 0x42c   : > { %v2820_v47 = vadd.f32 %v2819_v16, %v2706_v30  ;;  %v2708_v63 = vpop.f32.mrb[41].mxu1  ;;  %v2821_v25 = vpop.f32.mrb[73].mxu0  ;;  %v6200_v30 = vld [vmem:[#allocation16_spill] sm:$0xff] }
 0x42d   : > { %v2822_v18 = vadd.f32 %v2821_v25, %v2708_v63  ;;  %v2823_v33 = vpop.f32.mrb[74].mxu0  ;;  %3094 = vadd.xlane.f32.xlu0 %v3093_v56  ;;  %v2710_v21 = vpop.f32.mrb[42].mxu1  ;;  %v3096_v61 = vadd.f32 %v5665_v7, %v5660_v36 }
 0x42e   : > { %v2997_v15 = vadd.f32 %v5624_v6, %v2820_v47  ;;  %v2824_v13 = vadd.f32 %v2823_v33, %v2710_v21  ;;  %v2712_v62 = vpop.f32.mrb[43].mxu1  ;;  %v2825_v1 = vpop.f32.mrb[75].mxu0  ;;  %v6201_v33 = vld [vmem:[#allocation22_spill] sm:$0xff] }
 0x42f   : > { %v2998_v0 = vadd.f32 %v5627_v27, %v2822_v18  ;;  %v2826_v3 = vadd.f32 %v2825_v1, %v2712_v62  ;;  %3097 = vadd.xlane.f32.xlu1 %v3096_v61 }
 0x430   : > { %v2999_v17 = vadd.f32 %v5624_v6, %v2824_v13  ;;  %v5673_v10 = vadd.f32 %v2997_v15, %v6193_v32  ;;  %v6202_v13 = vld [vmem:[#allocation19_spill] sm:$0xff] }
 0x431   : > { %v3000_v59 = vadd.f32 %v5627_v27, %v2826_v3  ;;  %v5677_v26 = vadd.f32 %v2998_v0, %v6194_v9  ;;  %v6203_v0 = vld [vmem:[#allocation21_spill] sm:$0xff] }
 0x432   : > { %v5680_v51 = vadd.f32 %v2999_v17, %v6195_v54  ;;  %v6204_v17 = vld [vmem:[#allocation20_spill] sm:$0xff] }
 0x433   : > { %v2716_v46 = vpop.f32.mrb[44].mxu1  ;;  %v2829_v5 = vpop.f32.mrb[76].mxu0  ;;  %v3099_v48 = vadd.f32 %v5677_v26, %v5673_v10  ;;  %v5685_v19 = vadd.f32 %v3000_v59, %v6196_v39 }
 0x434   : > { %v2830_v35 = vadd.f32 %v2829_v5, %v2716_v46  ;;  %v2718_v58 = vpop.f32.mrb[45].mxu1  ;;  %v2831_v11 = vpop.f32.mrb[77].mxu0 }
 0x435   : > { %v2832_v29 = vadd.f32 %v2831_v11, %v2718_v58  ;;  %v2833_v41 = vpop.f32.mrb[78].mxu0  ;;  %3100 = vadd.xlane.f32.xlu0 %v3099_v48  ;;  %v2720_v22 = vpop.f32.mrb[46].mxu1  ;;  %v3102_v42 = vadd.f32 %v5685_v19, %v5680_v51 }
 0x436   : > { %v3001_v38 = vadd.f32 %v5624_v6, %v2830_v35  ;;  %v2834_v12 = vadd.f32 %v2833_v41, %v2720_v22  ;;  %v2722_v49 = vpop.f32.mrb[47].mxu1  ;;  %v2835_v14 = vpop.f32.mrb[79].mxu0  ;;  %v6205_v35 = vld [vmem:[#allocation26_spill] sm:$0xff]  ;;  %v6206_v41 = vld [vmem:[#allocation23_spill] sm:$0xff] }
 0x437   : > { %v3002_v4 = vadd.f32 %v5627_v27, %v2832_v29  ;;  %v2836_v57 = vadd.f32 %v2835_v14, %v2722_v49  ;;  %3103 = vadd.xlane.f32.xlu1 %v3102_v42  ;;  %v6208_v49 = vld [vmem:[#allocation24_spill] sm:$0xff] }
 0x438   : > { %v3003_v34 = vadd.f32 %v5624_v6, %v2834_v12  ;;  %v5693_v53 = vadd.f32 %v3001_v38, %v6197_v8  ;;  %v6207_v38 = vld [vmem:[#allocation25_spill] sm:$0xff] }
 0x439   : > { %v3004_v55 = vadd.f32 %v5627_v27, %v2836_v57  ;;  %v5697_v40 = vadd.f32 %v3002_v4, %v6198_v37 }
 0x43a   : > { %v5700_v20 = vadd.f32 %v3003_v34, %v6199_v60 }
 0x43b   : > { %v3105_v43 = vadd.f32 %v5697_v40, %v5693_v53  ;;  %v5705_v16 = vadd.f32 %v3004_v55, %v6200_v30 }
 0x43d   : > { %3106 = vadd.xlane.f32.xlu0 %v3105_v43  ;;  %v3108_v56 = vadd.f32 %v5705_v16, %v5700_v20  ;;  %v6209_v43 = vld [vmem:[#allocation30_spill] sm:$0xff] }
 0x43f   : > { %3109 = vadd.xlane.f32.xlu1 %v3108_v56 }
 0x45b   : > { %v2839_v24 = vpop.f32.mrb[48].mxu1 }
 0x45c   : > { %v3005_v47 = vadd.f32 %v5624_v6, %v2839_v24  ;;  %v2841_v63 = vpop.f32.mrb[49].mxu1 }
 0x45d   : > { %v3006_v25 = vadd.f32 %v5627_v27, %v2841_v63  ;;  %v2843_v18 = vpop.f32.mrb[50].mxu1 }
 0x45e   : > { %v5712_v21 = vadd.f32 %v3005_v47, %v6201_v33  ;;  %v3007_v61 = vadd.f32 %v5624_v6, %v2843_v18  ;;  %v2845_v15 = vpop.f32.mrb[51].mxu1  ;;  %v6210_v47 = vld [vmem:[#allocation27_spill] sm:$0xff]  ;;  %v6211_v18 = vld [vmem:[#allocation29_spill] sm:$0xff] }
 0x45f   : > { %v5716_v62 = vadd.f32 %v3006_v25, %v6202_v13  ;;  %v3008_v1 = vadd.f32 %v5627_v27, %v2845_v15 }
 0x460   : > { %v5720_v3 = vadd.f32 %v3007_v61, %v6203_v0  ;;  %v6212_v61 = vld [vmem:[#allocation28_spill] sm:$0xff] }
 0x461   : > { %v5723_v32 = vadd.f32 %v3008_v1, %v6204_v17  ;;  %v3111_v59 = vadd.f32 %v5716_v62, %v5712_v21 }
 0x463   : > { %3112 = vadd.xlane.f32.xlu0 %v3111_v59  ;;  %v2849_v9 = vpop.f32.mrb[52].mxu1  ;;  %v3114_v54 = vadd.f32 %v5723_v32, %v5720_v3 }
 0x464   : > { %v3009_v46 = vadd.f32 %v5624_v6, %v2849_v9  ;;  %v2851_v5 = vpop.f32.mrb[53].mxu1 }
 0x465   : > { %v3010_v48 = vadd.f32 %v5627_v27, %v2851_v5  ;;  %3115 = vadd.xlane.f32.xlu1 %v3114_v54  ;;  %v2853_v39 = vpop.f32.mrb[54].mxu1 }
 0x466   : > { %v5732_v58 = vadd.f32 %v3009_v46, %v6205_v35  ;;  %v3011_v11 = vadd.f32 %v5624_v6, %v2853_v39  ;;  %v2855_v29 = vpop.f32.mrb[55].mxu1  ;;  %v6213_v46 = vld [vmem:[#allocation34_spill] sm:$0xff]  ;;  %v6214_v35 = vld [vmem:[#allocation31_spill] sm:$0xff] }
 0x467   : > { %v5736_v22 = vadd.f32 %v3010_v48, %v6206_v41  ;;  %v3012_v42 = vadd.f32 %v5627_v27, %v2855_v29  ;;  %v6215_v41 = vld [vmem:[#allocation33_spill] sm:$0xff] }
 0x468   : > { %v5740_v12 = vadd.f32 %v3011_v11, %v6207_v38  ;;  %v6216_v38 = vld [vmem:[#allocation32_spill] sm:$0xff] }
 0x469   : > { %v5743_v14 = vadd.f32 %v3012_v42, %v6208_v49  ;;  %v3117_v4 = vadd.f32 %v5736_v22, %v5732_v58 }
 0x46b   : > { %3118 = vadd.xlane.f32.xlu0 %v3117_v4  ;;  %v2859_v57 = vpop.f32.mrb[56].mxu1  ;;  %v3120_v34 = vadd.f32 %v5743_v14, %v5740_v12 }
 0x46c   : > { %v3013_v8 = vadd.f32 %v5624_v6, %v2859_v57  ;;  %v2861_v55 = vpop.f32.mrb[57].mxu1 }
 0x46d   : > { %v3014_v37 = vadd.f32 %v5627_v27, %v2861_v55  ;;  %3121 = vadd.xlane.f32.xlu1 %v3120_v34  ;;  %v2863_v60 = vpop.f32.mrb[58].mxu1 }
 0x46e   : > { %v5752_v30 = vadd.f32 %v3013_v8, %v6209_v43  ;;  %v3015_v56 = vadd.f32 %v5624_v6, %v2863_v60  ;;  %v2865_v24 = vpop.f32.mrb[59].mxu1 }
 0x46f   : > { %v5756_v63 = vadd.f32 %v3014_v37, %v6210_v47  ;;  %v3016_v25 = vadd.f32 %v5627_v27, %v2865_v24 }
 0x470   : > { %v5760_v33 = vadd.f32 %v3015_v56, %v6211_v18 }
 0x471   : > { %v5763_v15 = vadd.f32 %v3016_v25, %v6212_v61  ;;  %v3123_v13 = vadd.f32 %v5756_v63, %v5752_v30 }
 0x473   : > { %3124 = vadd.xlane.f32.xlu0 %v3123_v13  ;;  %v2869_v1 = vpop.f32.mrb[60].mxu1  ;;  %v3126_v0 = vadd.f32 %v5763_v15, %v5760_v33 }
 0x474   : > { %v3017_v17 = vadd.f32 %v5624_v6, %v2869_v1  ;;  %v2871_v59 = vpop.f32.mrb[61].mxu1 }
 0x475   : > { %v3018_v9 = vadd.f32 %v5627_v27, %v2871_v59  ;;  %3127 = vadd.xlane.f32.xlu1 %v3126_v0  ;;  %v2873_v54 = vpop.f32.mrb[62].mxu1 }
 0x476   : > { %v5772_v5 = vadd.f32 %v3017_v17, %v6213_v46  ;;  %v3019_v48 = vadd.f32 %v5624_v6, %v2873_v54  ;;  %v2875_v39 = vpop.f32.mrb[63].mxu1 }
 0x477   : > { %v5776_v11 = vadd.f32 %v3018_v9, %v6214_v35  ;;  %v3020_v29 = vadd.f32 %v5627_v27, %v2875_v39 }
 0x478   : > { %v5780_v42 = vadd.f32 %v3019_v48, %v6215_v41 }
 0x479   : > { %v5783_v49 = vadd.f32 %v3020_v29, %v6216_v38  ;;  %v3129_v4 = vadd.f32 %v5776_v11, %v5772_v5 }
 0x47b   : > { %3130 = vadd.xlane.f32.xlu0 %v3129_v4  ;;  %v3132_v57 = vadd.f32 %v5783_v49, %v5780_v42 }
 0x47d   : > { %3133 = vadd.xlane.f32.xlu1 %v3132_v57 }
 0x4b2   : > { %v3089_v6 = vpop.xlane.xlu0 %3088 }
 0x4b3   : > { %v3136_v34 = vmul.f32 0.00390625, %v3089_v6 }
 0x4b4   : > { %v3092_v8 = vpop.xlane.xlu1 %3091 }
 0x4b5   : > { %v5790_v55 = vsub.f32 %v5633_v2, %v3136_v34  ;;  %v5793_v27 = vsub.f32 %v5637_v44, %v3136_v34  ;;  %v3137_v37 = vmul.f32 0.00390625, %v3092_v8 }
 0x4b7   : > { %v5796_v60 = vsub.f32 %v5640_v45, %v3137_v37  ;;  %v5799_v43 = vsub.f32 %v5645_v23, %v3137_v37  ;;  %v3184_v56 = vmul.f32 %v5790_v55, %v5790_v55  ;;  %v3185_v24 = vmul.f32 %v5793_v27, %v5793_v27 }
 0x4b9   : > { %v3216_v47 = vadd.f32 %v3185_v24, %v3184_v56  ;;  %v3186_v2 = vmul.f32 %v5796_v60, %v5796_v60  ;;  %v3187_v44 = vmul.f32 %v5799_v43, %v5799_v43 }
 0x4ba   : > { %v3095_v25 = vpop.xlane.xlu0 %3094 }
 0x4bb   : > { %v3138_v18 = vmul.f32 0.00390625, %v3095_v25  ;;  %3217 = vadd.xlane.f32.xlu0 %v3216_v47  ;;  %v3219_v45 = vadd.f32 %v3187_v44, %v3186_v2 }
 0x4bc   : > { %v3098_v61 = vpop.xlane.xlu1 %3097 }
 0x4bd   : > { %v5810_v23 = vsub.f32 %v5653_v31, %v3138_v18  ;;  %v5813_v13 = vsub.f32 %v5657_v28, %v3138_v18  ;;  %v3139_v1 = vmul.f32 0.00390625, %v3098_v61  ;;  %3220 = vadd.xlane.f32.xlu1 %v3219_v45 }
 0x4bf   : > { %v5816_v0 = vsub.f32 %v5660_v36, %v3139_v1  ;;  %v5819_v17 = vsub.f32 %v5665_v7, %v3139_v1  ;;  %v3188_v59 = vmul.f32 %v5810_v23, %v5810_v23  ;;  %v3189_v9 = vmul.f32 %v5813_v13, %v5813_v13 }
 0x4c1   : > { %v3222_v54 = vadd.f32 %v3189_v9, %v3188_v59  ;;  %v3190_v31 = vmul.f32 %v5816_v0, %v5816_v0  ;;  %v3191_v28 = vmul.f32 %v5819_v17, %v5819_v17 }
 0x4c2   : > { %v3101_v46 = vpop.xlane.xlu0 %3100 }
 0x4c3   : > { %v3140_v48 = vmul.f32 0.00390625, %v3101_v46  ;;  %3223 = vadd.xlane.f32.xlu0 %v3222_v54  ;;  %v3225_v36 = vadd.f32 %v3191_v28, %v3190_v31 }
 0x4c4   : > { %v3104_v39 = vpop.xlane.xlu1 %3103 }
 0x4c5   : > { %v5830_v7 = vsub.f32 %v5673_v10, %v3140_v48  ;;  %v5833_v35 = vsub.f32 %v5677_v26, %v3140_v48  ;;  %v3141_v29 = vmul.f32 0.00390625, %v3104_v39  ;;  %3226 = vadd.xlane.f32.xlu1 %v3225_v36 }
 0x4c7   : > { %v5836_v41 = vsub.f32 %v5680_v51, %v3141_v29  ;;  %v5839_v38 = vsub.f32 %v5685_v19, %v3141_v29  ;;  %v3192_v4 = vmul.f32 %v5830_v7, %v5830_v7  ;;  %v3193_v57 = vmul.f32 %v5833_v35, %v5833_v35 }
 0x4c9   : > { %v3228_v6 = vadd.f32 %v3193_v57, %v3192_v4  ;;  %v3194_v10 = vmul.f32 %v5836_v41, %v5836_v41  ;;  %v3195_v26 = vmul.f32 %v5839_v38, %v5839_v38 }
 0x4ca   : > { %v3107_v34 = vpop.xlane.xlu0 %3106 }
 0x4cb   : > { %v3142_v8 = vmul.f32 0.00390625, %v3107_v34  ;;  %3229 = vadd.xlane.f32.xlu0 %v3228_v6  ;;  %v3231_v51 = vadd.f32 %v3195_v26, %v3194_v10 }
 0x4cc   : > { %v3110_v37 = vpop.xlane.xlu1 %3109 }
 0x4cd   : > { %v5850_v19 = vsub.f32 %v5693_v53, %v3142_v8  ;;  %v5853_v56 = vsub.f32 %v5697_v40, %v3142_v8  ;;  %v3143_v24 = vmul.f32 0.00390625, %v3110_v37  ;;  %3232 = vadd.xlane.f32.xlu1 %v3231_v51 }
 0x4cf   : > { %v5856_v47 = vsub.f32 %v5700_v20, %v3143_v24  ;;  %v5859_v2 = vsub.f32 %v5705_v16, %v3143_v24  ;;  %v3196_v44 = vmul.f32 %v5850_v19, %v5850_v19  ;;  %v3197_v25 = vmul.f32 %v5853_v56, %v5853_v56 }
 0x4d1   : > { %v3234_v18 = vadd.f32 %v3197_v25, %v3196_v44  ;;  %v3198_v53 = vmul.f32 %v5856_v47, %v5856_v47  ;;  %v3199_v40 = vmul.f32 %v5859_v2, %v5859_v2 }
 0x4d3   : > { %3235 = vadd.xlane.f32.xlu0 %v3234_v18  ;;  %v3237_v45 = vadd.f32 %v3199_v40, %v3198_v53 }
 0x4d5   : > { %3238 = vadd.xlane.f32.xlu1 %v3237_v45 }
 0x4f0   : > { %v3113_v20 = vpop.xlane.xlu0 %3112 }
 0x4f1   : > { %v3144_v61 = vmul.f32 0.00390625, %v3113_v20 }
 0x4f2   : > { %v3116_v16 = vpop.xlane.xlu1 %3115 }
 0x4f3   : > { %v5870_v1 = vsub.f32 %v5712_v21, %v3144_v61  ;;  %v5873_v59 = vsub.f32 %v5716_v62, %v3144_v61  ;;  %v3145_v9 = vmul.f32 0.00390625, %v3116_v16 }
 0x4f5   : > { %v5876_v54 = vsub.f32 %v5720_v3, %v3145_v9  ;;  %v5879_v31 = vsub.f32 %v5723_v32, %v3145_v9  ;;  %v3200_v28 = vmul.f32 %v5870_v1, %v5870_v1  ;;  %v3201_v46 = vmul.f32 %v5873_v59, %v5873_v59 }
 0x4f7   : > { %v3240_v48 = vadd.f32 %v3201_v46, %v3200_v28  ;;  %v3202_v21 = vmul.f32 %v5876_v54, %v5876_v54  ;;  %v3203_v62 = vmul.f32 %v5879_v31, %v5879_v31 }
 0x4f8   : > { %v3119_v36 = vpop.xlane.xlu0 %3118 }
 0x4f9   : > { %v3146_v39 = vmul.f32 0.00390625, %v3119_v36  ;;  %3241 = vadd.xlane.f32.xlu0 %v3240_v48  ;;  %v3243_v3 = vadd.f32 %v3203_v62, %v3202_v21 }
 0x4fa   : > { %v3122_v29 = vpop.xlane.xlu1 %3121 }
 0x4fb   : > { %v5890_v32 = vsub.f32 %v5732_v58, %v3146_v39  ;;  %v5893_v4 = vsub.f32 %v5736_v22, %v3146_v39  ;;  %v3147_v57 = vmul.f32 0.00390625, %v3122_v29  ;;  %3244 = vadd.xlane.f32.xlu1 %v3243_v3 }
 0x4fd   : > { %v5896_v6 = vsub.f32 %v5740_v12, %v3147_v57  ;;  %v5899_v10 = vsub.f32 %v5743_v14, %v3147_v57  ;;  %v3204_v26 = vmul.f32 %v5890_v32, %v5890_v32  ;;  %v3205_v34 = vmul.f32 %v5893_v4, %v5893_v4 }
 0x4ff   : > { %v3246_v8 = vadd.f32 %v3205_v34, %v3204_v26  ;;  %v3206_v58 = vmul.f32 %v5896_v6, %v5896_v6  ;;  %v3207_v22 = vmul.f32 %v5899_v10, %v5899_v10 }
 0x500   : > { %v3125_v51 = vpop.xlane.xlu0 %3124 }
 0x501   : > { %v3148_v37 = vmul.f32 0.00390625, %v3125_v51  ;;  %3247 = vadd.xlane.f32.xlu0 %v3246_v8  ;;  %v3249_v12 = vadd.f32 %v3207_v22, %v3206_v58  ;;  %v3085_v51 = vld [vmem:[%s6121_s10] sm:$0x3] }
 0x502   : > { %v3128_v24 = vpop.xlane.xlu1 %3127 }
 0x503   : > { %v5910_v14 = vsub.f32 %v5752_v30, %v3148_v37  ;;  %v5913_v44 = vsub.f32 %v5756_v63, %v3148_v37  ;;  %v3149_v25 = vmul.f32 0.00390625, %v3128_v24  ;;  %3250 = vadd.xlane.f32.xlu1 %v3249_v12  ;;  %v3086_v24 = vld [vmem:[%s6122_s11] sm:$0x3] }
 0x505   : > { %v5916_v18 = vsub.f32 %v5760_v33, %v3149_v25  ;;  %v5919_v53 = vsub.f32 %v5763_v15, %v3149_v25  ;;  %v3208_v40 = vmul.f32 %v5910_v14, %v5910_v14  ;;  %v3209_v45 = vmul.f32 %v5913_v44, %v5913_v44 }
 0x507   : > { %v3252_v20 = vadd.f32 %v3209_v45, %v3208_v40  ;;  %v3210_v30 = vmul.f32 %v5916_v18, %v5916_v18  ;;  %v3211_v63 = vmul.f32 %v5919_v53, %v5919_v53  ;;  %v5956_v40 = vrot.slane %v3085_v51, %v4465_v50 }
 0x508   : > { %v3131_v61 = vpop.xlane.xlu0 %3130  ;;  %v5959_v45 = vrot.slane %v3085_v51, %v4472_v52 }
 0x509   : > { %v3150_v16 = vmul.f32 0.00390625, %v3131_v61  ;;  %3253 = vadd.xlane.f32.xlu0 %v3252_v20  ;;  %v3255_v33 = vadd.f32 %v3211_v63, %v3210_v30  ;;  %v5962_v30 = vrot.slane %v3086_v24, %v4465_v50  ;;  %v5965_v63 = vrot.slane %v3086_v24, %v4472_v52 }
 0x50a   : > { %v3134_v9 = vpop.xlane.xlu1 %3133 }
 0x50b   : > { %v5930_v15 = vsub.f32 %v5772_v5, %v3150_v16  ;;  %v5933_v28 = vsub.f32 %v5776_v11, %v3150_v16  ;;  %v3151_v46 = vmul.f32 0.00390625, %v3134_v9  ;;  %3256 = vadd.xlane.f32.xlu1 %v3255_v33 }
 0x50d   : > { %v5936_v48 = vsub.f32 %v5780_v42, %v3151_v46  ;;  %v5939_v21 = vsub.f32 %v5783_v49, %v3151_v46  ;;  %v3212_v62 = vmul.f32 %v5930_v15, %v5930_v15  ;;  %v3213_v36 = vmul.f32 %v5933_v28, %v5933_v28 }
 0x50f   : > { %v3258_v39 = vadd.f32 %v3213_v36, %v3212_v62  ;;  %v3214_v5 = vmul.f32 %v5936_v48, %v5936_v48  ;;  %v3215_v11 = vmul.f32 %v5939_v21, %v5939_v21 }
 0x511   : > { %3259 = vadd.xlane.f32.xlu0 %v3258_v39  ;;  %v3261_v3 = vadd.f32 %v3215_v11, %v3214_v5 }
 0x513   : > { %3262 = vadd.xlane.f32.xlu1 %v3261_v3 }
 0x548   : > { %v3218_v42 = vpop.xlane.xlu0 %3217 }
 0x549   : > { %v3264_v29 = vmul.f32 0.00390625, %v3218_v42 }
 0x54a   : > { %v3221_v49 = vpop.xlane.xlu1 %3220 }
 0x54b   : > { %v3280_v57 = vadd.f32 1e-05, %v3264_v29  ;;  %v3265_v26 = vmul.f32 0.00390625, %v3221_v49 }
 0x54d   : > { %4203 = vrsqrt.f32 %v3280_v57  ;;  %v3281_v34 = vadd.f32 1e-05, %v3265_v26 }
 0x54f   : > { %4205 = vrsqrt.f32 %v3281_v34 }
 0x550   : > { %v3224_v8 = vpop.xlane.xlu0 %3223 }
 0x551   : > { %v3266_v58 = vmul.f32 0.00390625, %v3224_v8 }
 0x552   : > { %v3227_v22 = vpop.xlane.xlu1 %3226 }
 0x553   : > { %v3282_v37 = vadd.f32 1e-05, %v3266_v58  ;;  %v3267_v12 = vmul.f32 0.00390625, %v3227_v22 }
 0x555   : > { %4207 = vrsqrt.f32 %v3282_v37  ;;  %v3283_v25 = vadd.f32 1e-05, %v3267_v12 }
 0x557   : > { %v4204_v20 = vpop.eup %4203  ;;  %4209 = vrsqrt.f32 %v3283_v25 }
 0x558   : > { %v3312_v61 = vmul.f32 %v4204_v20, %v5790_v55  ;;  %v3313_v16 = vmul.f32 %v4204_v20, %v5793_v27  ;;  %v3230_v33 = vpop.xlane.xlu0 %3229 }
 0x559   : > { %v4206_v9 = vpop.eup %4205  ;;  %v3268_v46 = vmul.f32 0.00390625, %v3230_v33 }
 0x55a   : > { %v3355_v62 = vmul.f32 %v5956_v40, %v3312_v61  ;;  %v3356_v36 = vmul.f32 %v5959_v45, %v3313_v16  ;;  %v3314_v39 = vmul.f32 %v4206_v9, %v5796_v60  ;;  %v3315_v5 = vmul.f32 %v4206_v9, %v5799_v43  ;;  %v3233_v50 = vpop.xlane.xlu1 %3232 }
 0x55b   : > { %v3284_v52 = vadd.f32 1e-05, %v3268_v46  ;;  %v3269_v55 = vmul.f32 0.00390625, %v3233_v50 }
 0x55c   : > { %v3398_v27 = vadd.f32 %v5962_v30, %v3355_v62  ;;  %v3399_v11 = vadd.f32 %v5965_v63, %v3356_v36  ;;  %v3357_v60 = vmul.f32 %v5956_v40, %v3314_v39  ;;  %v3358_v43 = vmul.f32 %v5959_v45, %v3315_v5 }
 0x55d   : > { %4211 = vrsqrt.f32 %v3284_v52  ;;  %v3285_v3 = vadd.f32 1e-05, %v3269_v55 }
 0x55e   : > { %3430 = vst [vmem:[%s5978_s29] sm:$0xff] %v3398_v27  ;;  %3431 = vst [vmem:[%s5978_s29 + $0x8] sm:$0xff] %v3399_v11  ;;  %v3400_v42 = vadd.f32 %v5962_v30, %v3357_v60  ;;  %v3401_v29 = vadd.f32 %v5965_v63, %v3358_v43 }
 0x55f   : > { %v4208_v49 = vpop.eup %4207  ;;  %4213 = vrsqrt.f32 %v3285_v3 }
 0x560   : > { %3432 = vst [vmem:[%s5978_s29 + $0x10] sm:$0xff] %v3400_v42  ;;  %3433 = vst [vmem:[%s5978_s29 + $0x18] sm:$0xff] %v3401_v29  ;;  %v3316_v57 = vmul.f32 %v4208_v49, %v5810_v23  ;;  %v3317_v26 = vmul.f32 %v4208_v49, %v5813_v13  ;;  %v3236_v34 = vpop.xlane.xlu0 %3235 }
 0x561   : > { %v4210_v8 = vpop.eup %4209  ;;  %v3270_v58 = vmul.f32 0.00390625, %v3236_v34 }
 0x562   : > { %v3359_v22 = vmul.f32 %v5956_v40, %v3316_v57  ;;  %v3360_v51 = vmul.f32 %v5959_v45, %v3317_v26  ;;  %v3318_v37 = vmul.f32 %v4210_v8, %v5816_v0  ;;  %v3319_v12 = vmul.f32 %v4210_v8, %v5819_v17  ;;  %v3239_v24 = vpop.xlane.xlu1 %3238 }
 0x563   : > { %v3286_v25 = vadd.f32 1e-05, %v3270_v58  ;;  %v3271_v23 = vmul.f32 0.00390625, %v3239_v24 }
 0x564   : > { %v3402_v13 = vadd.f32 %v5962_v30, %v3359_v22  ;;  %v3403_v20 = vadd.f32 %v5965_v63, %v3360_v51  ;;  %v3361_v61 = vmul.f32 %v5956_v40, %v3318_v37  ;;  %v3362_v16 = vmul.f32 %v5959_v45, %v3319_v12 }
 0x565   : > { %4215 = vrsqrt.f32 %v3286_v25  ;;  %v3287_v33 = vadd.f32 1e-05, %v3271_v23 }
 0x566   : > { %3434 = vst [vmem:[%s5978_s29 + $0x20] sm:$0xff] %v3402_v13  ;;  %3435 = vst [vmem:[%s5978_s29 + $0x28] sm:$0xff] %v3403_v20  ;;  %v3404_v0 = vadd.f32 %v5962_v30, %v3361_v61  ;;  %v3405_v17 = vadd.f32 %v5965_v63, %v3362_v16 }
 0x567   : > { %v4212_v9 = vpop.eup %4211  ;;  %4217 = vrsqrt.f32 %v3287_v33 }
 0x568   : > { %3436 = vst [vmem:[%s5978_s29 + $0x30] sm:$0xff] %v3404_v0  ;;  %3437 = vst [vmem:[%s5978_s29 + $0x38] sm:$0xff] %v3405_v17  ;;  %v3320_v46 = vmul.f32 %v4212_v9, %v5830_v7  ;;  %v3321_v62 = vmul.f32 %v4212_v9, %v5833_v35 }
 0x569   : > { %v4214_v36 = vpop.eup %4213 }
 0x56a   : > { %v3363_v39 = vmul.f32 %v5956_v40, %v3320_v46  ;;  %v3364_v5 = vmul.f32 %v5959_v45, %v3321_v62  ;;  %v3322_v50 = vmul.f32 %v4214_v36, %v5836_v41  ;;  %v3323_v52 = vmul.f32 %v4214_v36, %v5839_v38 }
 0x56c   : > { %v3406_v55 = vadd.f32 %v5962_v30, %v3363_v39  ;;  %v3407_v27 = vadd.f32 %v5965_v63, %v3364_v5  ;;  %v3365_v11 = vmul.f32 %v5956_v40, %v3322_v50  ;;  %v3366_v7 = vmul.f32 %v5959_v45, %v3323_v52 }
 0x56e   : > { %3438 = vst [vmem:[%s5978_s29 + $0x40] sm:$0xff] %v3406_v55  ;;  %3439 = vst [vmem:[%s5978_s29 + $0x48] sm:$0xff] %v3407_v27  ;;  %v3408_v35 = vadd.f32 %v5962_v30, %v3365_v11  ;;  %v3409_v60 = vadd.f32 %v5965_v63, %v3366_v7 }
 0x56f   : > { %v4216_v43 = vpop.eup %4215 }
 0x570   : > { %3440 = vst [vmem:[%s5978_s29 + $0x50] sm:$0xff] %v3408_v35  ;;  %3441 = vst [vmem:[%s5978_s29 + $0x58] sm:$0xff] %v3409_v60  ;;  %v3324_v41 = vmul.f32 %v4216_v43, %v5850_v19  ;;  %v3325_v38 = vmul.f32 %v4216_v43, %v5853_v56 }
 0x571   : > { %v4218_v3 = vpop.eup %4217 }
 0x572   : > { %v3367_v42 = vmul.f32 %v5956_v40, %v3324_v41  ;;  %v3368_v29 = vmul.f32 %v5959_v45, %v3325_v38  ;;  %v3326_v49 = vmul.f32 %v4218_v3, %v5856_v47  ;;  %v3327_v57 = vmul.f32 %v4218_v3, %v5859_v2 }
 0x574   : > { %v3410_v26 = vadd.f32 %v5962_v30, %v3367_v42  ;;  %v3411_v34 = vadd.f32 %v5965_v63, %v3368_v29  ;;  %v3369_v8 = vmul.f32 %v5956_v40, %v3326_v49  ;;  %v3370_v19 = vmul.f32 %v5959_v45, %v3327_v57 }
 0x576   : > { %3442 = vst [vmem:[%s5978_s29 + $0x60] sm:$0xff] %v3410_v26  ;;  %3443 = vst [vmem:[%s5978_s29 + $0x68] sm:$0xff] %v3411_v34  ;;  %v3412_v56 = vadd.f32 %v5962_v30, %v3369_v8  ;;  %v3413_v58 = vadd.f32 %v5965_v63, %v3370_v19 }
 0x578   : > { %3444 = vst [vmem:[%s5978_s29 + $0x70] sm:$0xff] %v3412_v56  ;;  %3445 = vst [vmem:[%s5978_s29 + $0x78] sm:$0xff] %v3413_v58 }
 0x586   : > { %v3242_v22 = vpop.xlane.xlu0 %3241 }
 0x587   : > { %v3272_v47 = vmul.f32 0.00390625, %v3242_v22 }
 0x588   : > { %v3245_v51 = vpop.xlane.xlu1 %3244 }
 0x589   : > { %v3288_v2 = vadd.f32 1e-05, %v3272_v47  ;;  %v3273_v37 = vmul.f32 0.00390625, %v3245_v51 }
 0x58b   : > { %4219 = vrsqrt.f32 %v3288_v2  ;;  %v3289_v12 = vadd.f32 1e-05, %v3273_v37 }
 0x58d   : > { %4221 = vrsqrt.f32 %v3289_v12 }
 0x58e   : > { %v3248_v24 = vpop.xlane.xlu0 %3247 }
 0x58f   : > { %v3274_v25 = vmul.f32 0.00390625, %v3248_v24 }
 0x590   : > { %v3251_v23 = vpop.xlane.xlu1 %3250 }
 0x591   : > { %v3290_v13 = vadd.f32 1e-05, %v3274_v25  ;;  %v3275_v20 = vmul.f32 0.00390625, %v3251_v23 }
 0x593   : > { %4223 = vrsqrt.f32 %v3290_v13  ;;  %v3291_v61 = vadd.f32 1e-05, %v3275_v20 }
 0x595   : > { %v4220_v16 = vpop.eup %4219  ;;  %4225 = vrsqrt.f32 %v3291_v61 }
 0x596   : > { %v3328_v33 = vmul.f32 %v4220_v16, %v5870_v1  ;;  %v3329_v0 = vmul.f32 %v4220_v16, %v5873_v59  ;;  %v3254_v17 = vpop.xlane.xlu0 %3253 }
 0x597   : > { %v4222_v9 = vpop.eup %4221  ;;  %v3276_v46 = vmul.f32 0.00390625, %v3254_v17 }
 0x598   : > { %v3371_v62 = vmul.f32 %v5956_v40, %v3328_v33  ;;  %v3372_v36 = vmul.f32 %v5959_v45, %v3329_v0  ;;  %v3330_v39 = vmul.f32 %v4222_v9, %v5876_v54  ;;  %v3331_v5 = vmul.f32 %v4222_v9, %v5879_v31  ;;  %v3257_v50 = vpop.xlane.xlu1 %3256 }
 0x599   : > { %v3292_v52 = vadd.f32 1e-05, %v3276_v46  ;;  %v3277_v1 = vmul.f32 0.00390625, %v3257_v50 }
 0x59a   : > { %v3414_v59 = vadd.f32 %v5962_v30, %v3371_v62  ;;  %v3415_v55 = vadd.f32 %v5965_v63, %v3372_v36  ;;  %v3373_v27 = vmul.f32 %v5956_v40, %v3330_v39  ;;  %v3374_v11 = vmul.f32 %v5959_v45, %v3331_v5 }
 0x59b   : > { %4227 = vrsqrt.f32 %v3292_v52  ;;  %v3293_v7 = vadd.f32 1e-05, %v3277_v1 }
 0x59c   : > { %3446 = vst [vmem:[%s5978_s29 + $0x80] sm:$0xff] %v3414_v59  ;;  %3447 = vst [vmem:[%s5978_s29 + $0x88] sm:$0xff] %v3415_v55  ;;  %v3416_v54 = vadd.f32 %v5962_v30, %v3373_v27  ;;  %v3417_v31 = vadd.f32 %v5965_v63, %v3374_v11 }
 0x59d   : > { %v4224_v35 = vpop.eup %4223  ;;  %4229 = vrsqrt.f32 %v3293_v7 }
 0x59e   : > { %3448 = vst [vmem:[%s5978_s29 + $0x90] sm:$0xff] %v3416_v54  ;;  %3449 = vst [vmem:[%s5978_s29 + $0x98] sm:$0xff] %v3417_v31  ;;  %v3332_v60 = vmul.f32 %v4224_v35, %v5890_v32  ;;  %v3333_v43 = vmul.f32 %v4224_v35, %v5893_v4  ;;  %v3260_v41 = vpop.xlane.xlu0 %3259 }
 0x59f   : > { %v4226_v38 = vpop.eup %4225  ;;  %v3278_v3 = vmul.f32 0.00390625, %v3260_v41 }
 0x5a0   : > { %v3375_v42 = vmul.f32 %v5956_v40, %v3332_v60  ;;  %v3376_v29 = vmul.f32 %v5959_v45, %v3333_v43  ;;  %v3334_v49 = vmul.f32 %v4226_v38, %v5896_v6  ;;  %v3335_v57 = vmul.f32 %v4226_v38, %v5899_v10  ;;  %v3263_v26 = vpop.xlane.xlu1 %3262 }
 0x5a1   : > { %v3294_v34 = vadd.f32 1e-05, %v3278_v3  ;;  %v3279_v32 = vmul.f32 0.00390625, %v3263_v26 }
 0x5a2   : > { %v3418_v4 = vadd.f32 %v5962_v30, %v3375_v42  ;;  %v3419_v8 = vadd.f32 %v5965_v63, %v3376_v29  ;;  %v3377_v19 = vmul.f32 %v5956_v40, %v3334_v49  ;;  %v3378_v56 = vmul.f32 %v5959_v45, %v3335_v57 }
 0x5a3   : > { %4231 = vrsqrt.f32 %v3294_v34  ;;  %v3295_v58 = vadd.f32 1e-05, %v3279_v32 }
 0x5a4   : > { %3450 = vst [vmem:[%s5978_s29 + $0xa0] sm:$0xff] %v3418_v4  ;;  %3451 = vst [vmem:[%s5978_s29 + $0xa8] sm:$0xff] %v3419_v8  ;;  %v3420_v6 = vadd.f32 %v5962_v30, %v3377_v19  ;;  %v3421_v10 = vadd.f32 %v5965_v63, %v3378_v56 }
 0x5a5   : > { %v4228_v22 = vpop.eup %4227  ;;  %4233 = vrsqrt.f32 %v3295_v58 }
 0x5a6   : > { %3452 = vst [vmem:[%s5978_s29 + $0xb0] sm:$0xff] %v3420_v6  ;;  %3453 = vst [vmem:[%s5978_s29 + $0xb8] sm:$0xff] %v3421_v10  ;;  %v3336_v47 = vmul.f32 %v4228_v22, %v5910_v14  ;;  %v3337_v51 = vmul.f32 %v4228_v22, %v5913_v44 }
 0x5a7   : > { %v4230_v2 = vpop.eup %4229 }
 0x5a8   : > { %v3379_v37 = vmul.f32 %v5956_v40, %v3336_v47  ;;  %v3380_v12 = vmul.f32 %v5959_v45, %v3337_v51  ;;  %v3338_v24 = vmul.f32 %v4230_v2, %v5916_v18  ;;  %v3339_v25 = vmul.f32 %v4230_v2, %v5919_v53 }
 0x5aa   : > { %v3422_v23 = vadd.f32 %v5962_v30, %v3379_v37  ;;  %v3423_v13 = vadd.f32 %v5965_v63, %v3380_v12  ;;  %v3381_v20 = vmul.f32 %v5956_v40, %v3338_v24  ;;  %v3382_v14 = vmul.f32 %v5959_v45, %v3339_v25 }
 0x5ac   : > { %3454 = vst [vmem:[%s5978_s29 + $0xc0] sm:$0xff] %v3422_v23  ;;  %3455 = vst [vmem:[%s5978_s29 + $0xc8] sm:$0xff] %v3423_v13  ;;  %v3424_v44 = vadd.f32 %v5962_v30, %v3381_v20  ;;  %v3425_v61 = vadd.f32 %v5965_v63, %v3382_v14 }
 0x5ad   : > { %v4232_v16 = vpop.eup %4231 }
 0x5ae   : > { %3456 = vst [vmem:[%s5978_s29 + $0xd0] sm:$0xff] %v3424_v44  ;;  %3457 = vst [vmem:[%s5978_s29 + $0xd8] sm:$0xff] %v3425_v61  ;;  %v3340_v18 = vmul.f32 %v4232_v16, %v5930_v15  ;;  %v3341_v53 = vmul.f32 %v4232_v16, %v5933_v28 }
 0x5af   : > { %v4234_v33 = vpop.eup %4233 }
 0x5b0   : > { %v3383_v0 = vmul.f32 %v5956_v40, %v3340_v18  ;;  %v3384_v17 = vmul.f32 %v5959_v45, %v3341_v53  ;;  %v3342_v9 = vmul.f32 %v4234_v33, %v5936_v48  ;;  %v3343_v46 = vmul.f32 %v4234_v33, %v5939_v21 }
 0x5b2   : > { %v3426_v62 = vadd.f32 %v5962_v30, %v3383_v0  ;;  %v3427_v36 = vadd.f32 %v5965_v63, %v3384_v17  ;;  %v3385_v39 = vmul.f32 %v5956_v40, %v3342_v9  ;;  %v3386_v15 = vmul.f32 %v5959_v45, %v3343_v46 }
 0x5b4   : > { %3458 = vst [vmem:[%s5978_s29 + $0xe0] sm:$0xff] %v3426_v62  ;;  %3459 = vst [vmem:[%s5978_s29 + $0xe8] sm:$0xff] %v3427_v36  ;;  %v3428_v28 = vadd.f32 %v5962_v30, %v3385_v39  ;;  %v3429_v5 = vadd.f32 %v5965_v63, %v3386_v15 }
 0x5b6   : > { %3460 = vst [vmem:[%s5978_s29 + $0xf0] sm:$0xff] %v3428_v28  ;;  %3461 = vst [vmem:[%s5978_s29 + $0xf8] sm:$0xff] %v3429_v5 }
 0x5b7 PF: > { %s22_s23 = sadd.s32 1, %s4257_s23   ;;  %s6217_s21 = smov %s4253_s22 }
 0x5b8   : > { %p19_p5 = scmp.ge.s32.totalorder %s22_s23, 4   ;;  %s6218_s22 = smov %s6220_s24 }
 0x5ba   :  { %21 = sbr.rel (!%p19_p5) target bundleno = 2 (0x2), region = 118 }

</bundles_post_ra>
